<compile_context>
chip_gen: v5e
topology: v5e:2x2
jax: 0.10.0
libtpu: 0.0.40
codegen_flags: <defaults>
</compile_context>

<pallas_src>
import functools
import math
import numpy as np

import jax
import jax.numpy as jnp
from jax import lax
from jax.experimental import pallas as pl
from jax.experimental.pallas import tpu as pltpu

# --------------------------- config (small, synthetic) ----------------------
B = 2                     # batch
ENC_HIDDEN = 48           # config.vision_encoder_hidden_size
EMBED_DIM = 64            # config.bridge_embed_dim
NUM_HEADS = 4             # config.bridge_num_attention_heads
HEAD_DIM = EMBED_DIM // NUM_HEADS
NUM_QUERY = 24            # config.bridge_num_query
STAGE_NUM = 3             # config.bridge_stage_num (int)
SQ = NUM_QUERY // STAGE_NUM          # queries per stage
NUM_PATCHES = 16          # config.bridge_num_patches -> (4, 4)
NP_SIDE = int(NUM_PATCHES ** 0.5)
SI = NP_SIDE * NP_SIDE    # per-stage image tokens (each entry of split_part)
SPLIT_PART = [SI] * STAGE_NUM
SEQ_IMG = SI * STAGE_NUM  # total image tokens per batch element
NUM_LAYERS = 2            # config.bridge_num_layers
MLP_DIM = 4 * EMBED_DIM   # ResidualAttentionBlock mlp_ratio = 4
MAX_SIZE = 8              # config.bridge_max_size
OUT_SIZE = 96             # config.hidden_size
OUT_PAD = 128             # lane-dense output store; sliced back to OUT_SIZE outside
LN_EPS = 1e-5
MASK_NEG = -1e30


# --------------------------- 2D sin-cos pos embed (numpy, buffer) -----------
def _get_1d_sincos(embed_dim, pos):
    omega = np.arange(embed_dim // 2, dtype=np.float64)
    omega /= embed_dim / 2.0
    omega = 1.0 / (10000 ** omega)
    out = np.einsum("m,d->md", pos.reshape(-1).astype(np.float64), omega)
    return np.concatenate([np.sin(out), np.cos(out)], axis=1)


def get_2d_sincos_pos_embed(embed_dim, grid_size):
    grid_h = np.arange(grid_size, dtype=np.float32)
    grid_w = np.arange(grid_size, dtype=np.float32)
    grid = np.meshgrid(grid_w, grid_h)
    grid = np.stack(grid, axis=0).reshape(2, 1, grid_size, grid_size)
    emb_h = _get_1d_sincos(embed_dim // 2, grid[0])
    emb_w = _get_1d_sincos(embed_dim // 2, grid[1])
    emb = np.concatenate([emb_h, emb_w], axis=1)          # (grid*grid, D)
    return emb.reshape(grid_size, grid_size, embed_dim)   # (H, W, D)


_POS_FULL = get_2d_sincos_pos_embed(EMBED_DIM, MAX_SIZE)                     # (8,8,D)
_POS_BLOCK = jnp.asarray(
    _POS_FULL[:NP_SIDE, :NP_SIDE, :].reshape(SI, EMBED_DIM), dtype=jnp.float32)   # (16, D)
_POS_TILED = jnp.tile(_POS_BLOCK, (STAGE_NUM, 1))                            # (SEQ_IMG, D)


# --------------------------- packed small-parameter slab layout -------------
(_R_B_IN, _R_LNKV_W, _R_LNKV_B, _R_BK_ALL, _R_BV_ALL,
 _R_LNPOST_W, _R_LNPOST_B, _R_B_OUT) = range(8)
_R_LAYER0 = 8
_PER_LAYER = 7            # ln1_w, ln1_b, bq(scaled), bo, ln2_w, ln2_b, bpr
_R_BFC0 = _R_LAYER0 + NUM_LAYERS * _PER_LAYER
_SLAB_ROWS = _R_BFC0 + NUM_LAYERS        # = 24


# --------------------------- in-kernel helpers -------------------------------
def _normalize(x, eps=LN_EPS):
    mu = jnp.mean(x, axis=-1, keepdims=True)
    var = jnp.mean(jnp.square(x - mu), axis=-1, keepdims=True)
    return (x - mu) * jax.lax.rsqrt(var + eps)


def _step_count(x, thresholds):
    # sum_t [x >= t]  (monotone step function) using only compares/adds
    acc = jnp.zeros(x.shape, jnp.int32)
    for t in thresholds:
        acc = acc + (x >= t).astype(jnp.int32)
    return acc


# --------------------------- fused forward kernel ----------------------------
def _make_kernel(batch_in_block):
    D = EMBED_DIM

    def kernel(img_ref, pos_ref, q_ref, vslab_ref,
               w_in_ref, wk_all_ref, wv_all_ref,
               wq_ref, wo_ref, wfc_ref, wpr_ref, w_out_ref,
               o_ref):
        f32 = jnp.float32
        RK = img_ref.shape[0]                       # SEQ_IMG or B*SEQ_IMG
        RQ = batch_in_block * NUM_QUERY             # NUM_QUERY or B*NUM_QUERY
        WIDE = NUM_HEADS * RK

        V = vslab_ref[...]                          # (_SLAB_ROWS, MLP_DIM)

        def vec(row, width=D):
            return V[row:row + 1, :width]           # (1, width)

        # ---- in_proj + layernorm_kv -------------------------------------------
        x = jnp.dot(img_ref[...].astype(f32), w_in_ref[...],
                    preferred_element_type=f32) + vec(_R_B_IN)                 # (RK, D)
        kv = _normalize(x) * vec(_R_LNKV_W) + vec(_R_LNKV_B)

        # ---- ln_1_kv statistics (layer-invariant; affine folded into Wk/Wv) ----
        k_base = _normalize(kv + pos_ref[...].astype(f32))   # keys   <- image + pos
        v_base = _normalize(kv)                               # values <- image

        # ---- K/V projections for all layers: one wide 128-lane matmul each -----
        kp_all = jnp.dot(k_base, wk_all_ref[...],
                         preferred_element_type=f32) + vec(_R_BK_ALL, NUM_LAYERS * D)
        vp_all = jnp.dot(v_base, wv_all_ref[...],
                         preferred_element_type=f32) + vec(_R_BV_ALL, NUM_LAYERS * D)

        # ---- queries (layernorm_query already applied at parameter-prep time) --
        q = q_ref[...].astype(f32)                            # (NUM_QUERY, D)
        if batch_in_block > 1:
            q = jnp.concatenate([q] * batch_in_block, axis=0)  # (RQ, D)

        # ---- hoisted constants: head-lane mask + stage/batch additive bias -----
        jj = lax.broadcasted_iota(jnp.int32, (WIDE, D), 0)
        dd = lax.broadcasted_iota(jnp.int32, (WIDE, D), 1)
        j_head = _step_count(jj, [h * RK for h in range(1, NUM_HEADS)])
        d_head = _step_count(dd, [h * HEAD_DIM for h in range(1, NUM_HEADS)])
        head_mask = (j_head == d_head).astype(f32)            # (WIDE, D)

        qi = lax.broadcasted_iota(jnp.int32, (RQ, WIDE), 0)
        ji = lax.broadcasted_iota(jnp.int32, (RQ, WIDE), 1)
        q_grp = _step_count(qi, [m * SQ for m in range(1, RQ // SQ)])
        seg = _step_count(ji, [h * RK for h in range(1, NUM_HEADS)])
        k_grp = _step_count(ji - seg * RK, [m * SI for m in range(1, RK // SI)])
        attn_bias = jnp.where(q_grp == k_grp, 0.0, MASK_NEG).astype(f32)  # (RQ, WIDE)

        for l in range(NUM_LAYERS):
            base = _R_LAYER0 + l * _PER_LAYER

            # ---- cross-attention (1/sqrt(head_dim) folded into Wq/bq) ----------
            qx = _normalize(q) * vec(base + 0) + vec(base + 1)
            qp = jnp.dot(qx, wq_ref[l], preferred_element_type=f32) + vec(base + 2)

            kp = kp_all[:, l * D:(l + 1) * D]                 # (RK, D)
            vp = vp_all[:, l * D:(l + 1) * D]
            k_bd = jnp.concatenate([kp] * NUM_HEADS, axis=0) * head_mask   # (WIDE, D)
            v_bd = jnp.concatenate([vp] * NUM_HEADS, axis=0) * head_mask   # (WIDE, D)

            # scores for all heads / stages (/batch) in one rhs-transposed matmul
            s = lax.dot_general(qp, k_bd, (((1,), (1,)), ((), ())),
                                preferred_element_type=f32)                # (RQ, WIDE)
            s = s + attn_bias
            s = s - jnp.max(s, axis=-1, keepdims=True)
            e = jnp.exp(s)

            # one 128-lane matmul: per-head numerators + lane-aligned denominators
            aug = jnp.dot(e, jnp.concatenate([v_bd, head_mask], axis=1),
                          preferred_element_type=f32)                      # (RQ, 2D)
            den = jnp.maximum(aug[:, D:], 1e-30)
            ctx = aug[:, :D] * pl.reciprocal(den, approx=True)             # (RQ, D)

            q = q + jnp.dot(ctx, wo_ref[l], preferred_element_type=f32) + vec(base + 3)

            # ---- MLP: c_fc -> GELU(tanh) -> c_proj, residual -------------------
            x2 = _normalize(q) * vec(base + 4) + vec(base + 5)
            hmid = jnp.dot(x2, wfc_ref[l],
                           preferred_element_type=f32) + vec(_R_BFC0 + l, MLP_DIM)
            hmid = jax.nn.gelu(hmid, approximate=True)   # torch ref uses exact erf GELU
            q = q + jnp.dot(hmid, wpr_ref[l], preferred_element_type=f32) + vec(base + 6)

        # ---- layernorm_post + lane-padded out_proj ------------------------------
        y = _normalize(q) * vec(_R_LNPOST_W) + vec(_R_LNPOST_B)
        o_ref[...] = (jnp.dot(y, w_out_ref[...], preferred_element_type=f32)
                      + vec(_R_B_OUT, OUT_PAD)).astype(o_ref.dtype)

    return kernel


def _rep(shape):
    n = len(shape)

    def idx(*_):
        return (0,) * n

    return pl.BlockSpec(shape, idx)


@functools.partial(jax.jit, static_argnames=("per_batch_grid",))
def _forward(image_embs, prepared, per_batch_grid):
    Bb = image_embs.shape[0]
    D, L, M = EMBED_DIM, NUM_LAYERS, MLP_DIM

    if per_batch_grid:
        # v7x: keep one batch element per TensorCore via a 2-way "parallel" grid.
        grid = (Bb,)
        batch_in_block = 1
        img_arg = image_embs
        img_spec = pl.BlockSpec((None, SEQ_IMG, ENC_HIDDEN), lambda b: (b, 0, 0))
        pos_arg = _POS_TILED
        out_shape = jax.ShapeDtypeStruct((Bb, NUM_QUERY, OUT_PAD), jnp.float32)
        out_spec = pl.BlockSpec((None, NUM_QUERY, OUT_PAD), lambda b: (b, 0, 0))
        dim_sem = ("parallel",)
    else:
        # v5e / v6e (single TensorCore): fold batch into matmul rows, one grid step.
        grid = (1,)
        batch_in_block = Bb
        img_arg = image_embs.reshape(Bb * SEQ_IMG, ENC_HIDDEN)
        img_spec = _rep((Bb * SEQ_IMG, ENC_HIDDEN))
        pos_arg = jnp.tile(_POS_TILED, (Bb, 1))
        out_shape = jax.ShapeDtypeStruct((Bb * NUM_QUERY, OUT_PAD), jnp.float32)
        out_spec = _rep((Bb * NUM_QUERY, OUT_PAD))
        dim_sem = ("arbitrary",)

    in_specs = [
        img_spec,
        _rep(pos_arg.shape),                      # tiled sin-cos pos embed
        _rep((NUM_QUERY, D)),                     # LN'd learned queries
        _rep((_SLAB_ROWS, M)),                    # packed small-parameter slab
        _rep((ENC_HIDDEN, D)),                    # in_proj weight
        _rep((D, L * D)),                         # Wk (both layers, ln_1_kv folded)
        _rep((D, L * D)),                         # Wv (both layers, ln_1_kv folded)
        _rep((L, D, D)),                          # Wq (scale folded)
        _rep((L, D, D)),                          # attn out_proj
        _rep((L, D, M)),                          # c_fc
        _rep((L, M, D)),                          # c_proj
        _rep((D, OUT_PAD)),                       # out_proj (lane-padded)
    ]

    out = pl.pallas_call(
        _make_kernel(batch_in_block),
        out_shape=out_shape,
        grid=grid,
        in_specs=in_specs,
        out_specs=out_spec,
        compiler_params=pltpu.CompilerParams(dimension_semantics=dim_sem),
    )(img_arg, pos_arg, prepared["query"], prepared["vslab"],
      prepared["w_in"], prepared["wk_all"], prepared["wv_all"],
      prepared["wq"], prepared["wo"], prepared["wfc"], prepared["wpr"],
      prepared["w_out"])

    if per_batch_grid:
        return out[..., :OUT_SIZE]
    return out.reshape(Bb, NUM_QUERY, OUT_PAD)[..., :OUT_SIZE]


def _detect_multi_tensorcore():
    try:
        kind = jax.devices()[0].device_kind.lower()
    except Exception:
        return False
    return "v7" in kind


_PER_BATCH_GRID_DEFAULT = _detect_multi_tensorcore()


def vision_perceiver_forward(image_embs, prepared, per_batch_grid=None):
    if per_batch_grid is None:
        per_batch_grid = _PER_BATCH_GRID_DEFAULT
    return _forward(image_embs, prepared, per_batch_grid=per_batch_grid)


# --------------------------- parameter preparation (done once) ---------------
def prepare_params(params):
    """Fold layer-invariant affines / softmax scale into weights and pack the
    ~30 tiny vectors into one slab.  Pure parameter preprocessing (one time)."""
    D, L, M = EMBED_DIM, NUM_LAYERS, MLP_DIM
    f32 = jnp.float32
    scale = 1.0 / math.sqrt(HEAD_DIM)

    # ln_1_kv affine folded into K/V projections (its input stats are layer-invariant)
    ln1kv_w, ln1kv_b = params["ln1kv_w"], params["ln1kv_b"]              # (L, D)
    wk_f = ln1kv_w[:, :, None] * params["wk"]                            # diag(w) @ Wk
    wv_f = ln1kv_w[:, :, None] * params["wv"]
    bk_f = jnp.einsum("ld,lde->le", ln1kv_b, params["wk"]) + params["bk"]
    bv_f = jnp.einsum("ld,lde->le", ln1kv_b, params["wv"]) + params["bv"]
    wk_all = jnp.concatenate([wk_f[l] for l in range(L)], axis=1)        # (D, L*D)
    wv_all = jnp.concatenate([wv_f[l] for l in range(L)], axis=1)
    bk_all = jnp.concatenate([bk_f[l] for l in range(L)], axis=0)        # (L*D,)
    bv_all = jnp.concatenate([bv_f[l] for l in range(L)], axis=0)

    # 1/sqrt(head_dim) folded into the Q projection
    wq_s = params["wq"] * scale
    bq_s = params["bq"] * scale

    # layernorm_query applied once to the constant learned queries
    q0 = params["query"].reshape(NUM_QUERY, D).astype(f32)
    q_ln = (_normalize(q0) * params["lnq_w"].reshape(1, D)
            + params["lnq_b"].reshape(1, D))

    # lane-padded out_proj
    w_out = jnp.zeros((D, OUT_PAD), f32).at[:, :OUT_SIZE].set(params["w_out"])
    b_out = jnp.zeros((OUT_PAD,), f32).at[:OUT_SIZE].set(params["b_out"].reshape(-1))

    # packed slab of all small vectors
    slab = jnp.zeros((_SLAB_ROWS, M), f32)

    def put(s, row, v):
        v = jnp.asarray(v, f32).reshape(-1)
        return s.at[row, :v.shape[0]].set(v)

    slab = put(slab, _R_B_IN, params["b_in"])
    slab = put(slab, _R_LNKV_W, params["lnkv_w"])
    slab = put(slab, _R_LNKV_B, params["lnkv_b"])
    slab = put(slab, _R_BK_ALL, bk_all)
    slab = put(slab, _R_BV_ALL, bv_all)
    slab = put(slab, _R_LNPOST_W, params["lnpost_w"])
    slab = put(slab, _R_LNPOST_B, params["lnpost_b"])
    slab = put(slab, _R_B_OUT, b_out)
    for l in range(L):
        base = _R_LAYER0 + l * _PER_LAYER
        slab = put(slab, base + 0, params["ln1_w"][l])
        slab = put(slab, base + 1, params["ln1_b"][l])
        slab = put(slab, base + 2, bq_s[l])
        slab = put(slab, base + 3, params["bo"][l])
        slab = put(slab, base + 4, params["ln2_w"][l])
        slab = put(slab, base + 5, params["ln2_b"][l])
        slab = put(slab, base + 6, params["bpr"][l])
        slab = put(slab, _R_BFC0 + l, params["bfc"][l])

    return {
        "query": q_ln, "vslab": slab, "w_in": params["w_in"],
        "wk_all": wk_all, "wv_all": wv_all,
        "wq": wq_s, "wo": params["wo"], "wfc": params["wfc"], "wpr": params["wpr"],
        "w_out": w_out,
    }


# --------------------------- parameters (deterministic synthetic init) -------
def init_params(key):
    keys = jax.random.split(key, 16)

    def tn(k, shape):
        return jax.random.truncated_normal(k, -2.0, 2.0, shape, jnp.float32) * 0.02

    D, L, M = EMBED_DIM, NUM_LAYERS, MLP_DIM
    return {
        "query": tn(keys[0], (1, NUM_QUERY, D)),
        "w_in": tn(keys[1], (ENC_HIDDEN, D)),
        "b_in": jnp.zeros((1, D), jnp.float32),
        "lnq_w": jnp.ones((1, D), jnp.float32),
        "lnq_b": jnp.zeros((1, D), jnp.float32),
        "lnkv_w": jnp.ones((1, D), jnp.float32),
        "lnkv_b": jnp.zeros((1, D), jnp.float32),
        "ln1_w": jnp.ones((L, D), jnp.float32),
        "ln1_b": jnp.zeros((L, D), jnp.float32),
        "ln1kv_w": jnp.ones((L, D), jnp.float32),
        "ln1kv_b": jnp.zeros((L, D), jnp.float32),
        "wq": tn(keys[2], (L, D, D)),
        "bq": jnp.zeros((L, D), jnp.float32),
        "wk": tn(keys[3], (L, D, D)),
        "bk": jnp.zeros((L, D), jnp.float32),
        "wv": tn(keys[4], (L, D, D)),
        "bv": jnp.zeros((L, D), jnp.float32),
        "wo": tn(keys[5], (L, D, D)),
        "bo": jnp.zeros((L, D), jnp.float32),
        "ln2_w": jnp.ones((L, D), jnp.float32),
        "ln2_b": jnp.zeros((L, D), jnp.float32),
        "wfc": tn(keys[6], (L, D, M)),
        "bfc": jnp.zeros((L, M), jnp.float32),
        "wpr": tn(keys[7], (L, M, D)),
        "bpr": jnp.zeros((L, D), jnp.float32),
        "lnpost_w": jnp.ones((1, D), jnp.float32),
        "lnpost_b": jnp.zeros((1, D), jnp.float32),
        "w_out": tn(keys[8], (D, OUT_SIZE)),
        "b_out": jnp.zeros((1, OUT_SIZE), jnp.float32),
    }


# --------------------------- pure-JAX reference (follows torch structure) ----
@jax.jit
def vision_perceiver_reference(image_embs, params):
    P = jax.lax.Precision.HIGHEST
    Bb = image_embs.shape[0]

    def ln(x, w, b):
        return _normalize(x) * w + b

    x = jnp.einsum("bse,ed->bsd", image_embs, params["w_in"], precision=P) \
        + params["b_in"].reshape(-1)
    q_tok = jnp.broadcast_to(params["query"], (Bb, NUM_QUERY, EMBED_DIM))
    pos = _POS_BLOCK                                         # (SI, D), same per stage
    outs = []
    for t in range(STAGE_NUM):
        sub_q = ln(q_tok[:, t * SQ:(t + 1) * SQ],
                   params["lnq_w"].reshape(-1), params["lnq_b"].reshape(-1))
        sub_i = ln(x[:, t * SI:(t + 1) * SI],
                   params["lnkv_w"].reshape(-1), params["lnkv_b"].reshape(-1))
        k_in, v_in = sub_i + pos, sub_i
        for l in range(NUM_LAYERS):
            qx = ln(sub_q, params["ln1_w"][l], params["ln1_b"][l])
            kx = ln(k_in, params["ln1kv_w"][l], params["ln1kv_b"][l])
            vx = ln(v_in, params["ln1kv_w"][l], params["ln1kv_b"][l])
            qp = jnp.einsum("bqc,cd->bqd", qx, params["wq"][l], precision=P) + params["bq"][l]
            kp = jnp.einsum("bkc,cd->bkd", kx, params["wk"][l], precision=P) + params["bk"][l]
            vp = jnp.einsum("bkc,cd->bkd", vx, params["wv"][l], precision=P) + params["bv"][l]
            qh = qp.reshape(Bb, SQ, NUM_HEADS, HEAD_DIM)
            kh = kp.reshape(Bb, SI, NUM_HEADS, HEAD_DIM)
            vh = vp.reshape(Bb, SI, NUM_HEADS, HEAD_DIM)
            s = jnp.einsum("bqhd,bkhd->bhqk", qh, kh, precision=P) / math.sqrt(HEAD_DIM)
            p = jax.nn.softmax(s, axis=-1)
            ctx = jnp.einsum("bhqk,bkhd->bqhd", p, vh,
                             precision=P).reshape(Bb, SQ, EMBED_DIM)
            sub_q = sub_q + jnp.einsum("bqd,de->bqe", ctx, params["wo"][l],
                                       precision=P) + params["bo"][l]
            x2 = ln(sub_q, params["ln2_w"][l], params["ln2_b"][l])
            hmid = jax.nn.gelu(
                jnp.einsum("bqd,dm->bqm", x2, params["wfc"][l], precision=P)
                + params["bfc"][l], approximate=True)
            sub_q = sub_q + jnp.einsum("bqm,md->bqd", hmid, params["wpr"][l],
                                       precision=P) + params["bpr"][l]
        outs.append(sub_q)
    yq = jnp.concatenate(outs, axis=1)
    y = ln(yq, params["lnpost_w"].reshape(-1), params["lnpost_b"].reshape(-1))
    return jnp.einsum("bqd,do->bqo", y, params["w_out"], precision=P) \
        + params["b_out"].reshape(-1)


if __name__ == "__main__":
    key = jax.random.PRNGKey(0)
    k_in, k_params = jax.random.split(key)
    params = init_params(k_params)
    prepared = prepare_params(params)

    image_embs = jax.random.normal(
        k_in, (B, sum(SPLIT_PART), ENC_HIDDEN), dtype=jnp.float32)

    out = vision_perceiver_forward(image_embs, prepared)
    out = jax.block_until_ready(out)

    assert out.shape == (B, NUM_QUERY, OUT_SIZE), out.shape
    assert bool(jnp.all(jnp.isfinite(out)))

    ref = jax.block_until_ready(vision_perceiver_reference(image_embs, params))
    max_err = float(jnp.max(jnp.abs(out - ref)))
    assert max_err < 2e-2, f"kernel vs reference max abs err = {max_err}"

    print("KERNEL_OK")
</pallas_src>

<mosaic_0001>
module attributes {stable_mosaic.version = 11 : i64} {
  func.func @kernel(%arg0: i32, %arg1: memref<96x48xf32, #tpu.memory_space<vmem>>, %arg2: memref<96x64xf32, #tpu.memory_space<vmem>>, %arg3: memref<24x64xf32, #tpu.memory_space<vmem>>, %arg4: memref<24x256xf32, #tpu.memory_space<vmem>>, %arg5: memref<48x64xf32, #tpu.memory_space<vmem>>, %arg6: memref<64x128xf32, #tpu.memory_space<vmem>>, %arg7: memref<64x128xf32, #tpu.memory_space<vmem>>, %arg8: memref<2x64x64xf32, #tpu.memory_space<vmem>>, %arg9: memref<2x64x64xf32, #tpu.memory_space<vmem>>, %arg10: memref<2x64x256xf32, #tpu.memory_space<vmem>>, %arg11: memref<2x256x64xf32, #tpu.memory_space<vmem>>, %arg12: memref<64x128xf32, #tpu.memory_space<vmem>>, %arg13: memref<48x128xf32, #tpu.memory_space<vmem>>) attributes {dimension_semantics = [#tpu.dimension_semantics<arbitrary>], iteration_bounds = array<i64: 1>, scalar_prefetch = 0 : i64, scratch_operands = 0 : i64, tpu.core_type = #tpu.core_type<tc>, window_params = [{pipeline_mode = #tpu.pipeline_mode<synchronous>, transform_indices = @transform_0, window_bounds = array<i64: 96, 48>}, {pipeline_mode = #tpu.pipeline_mode<synchronous>, transform_indices = @transform_1, window_bounds = array<i64: 96, 64>}, {pipeline_mode = #tpu.pipeline_mode<synchronous>, transform_indices = @transform_2, window_bounds = array<i64: 24, 64>}, {pipeline_mode = #tpu.pipeline_mode<synchronous>, transform_indices = @transform_3, window_bounds = array<i64: 24, 256>}, {pipeline_mode = #tpu.pipeline_mode<synchronous>, transform_indices = @transform_4, window_bounds = array<i64: 48, 64>}, {pipeline_mode = #tpu.pipeline_mode<synchronous>, transform_indices = @transform_5, window_bounds = array<i64: 64, 128>}, {pipeline_mode = #tpu.pipeline_mode<synchronous>, transform_indices = @transform_6, window_bounds = array<i64: 64, 128>}, {pipeline_mode = #tpu.pipeline_mode<synchronous>, transform_indices = @transform_7, window_bounds = array<i64: 2, 64, 64>}, {pipeline_mode = #tpu.pipeline_mode<synchronous>, transform_indices = @transform_8, window_bounds = array<i64: 2, 64, 64>}, {pipeline_mode = #tpu.pipeline_mode<synchronous>, transform_indices = @transform_9, window_bounds = array<i64: 2, 64, 256>}, {pipeline_mode = #tpu.pipeline_mode<synchronous>, transform_indices = @transform_10, window_bounds = array<i64: 2, 256, 64>}, {pipeline_mode = #tpu.pipeline_mode<synchronous>, transform_indices = @transform_11, window_bounds = array<i64: 64, 128>}, {pipeline_mode = #tpu.pipeline_mode<synchronous>, transform_indices = @transform_12, window_bounds = array<i64: 48, 128>}]} {
    %c0 = arith.constant 0 : index
    %c0_0 = arith.constant 0 : index
    %0 = vector.load %arg4[%c0, %c0_0] : memref<24x256xf32, #tpu.memory_space<vmem>>, vector<24x256xf32>
    %c0_1 = arith.constant 0 : index
    %c0_2 = arith.constant 0 : index
    %1 = vector.load %arg1[%c0_1, %c0_2] : memref<96x48xf32, #tpu.memory_space<vmem>>, vector<96x48xf32>
    %c0_3 = arith.constant 0 : index
    %c0_4 = arith.constant 0 : index
    %2 = vector.load %arg5[%c0_3, %c0_4] : memref<48x64xf32, #tpu.memory_space<vmem>>, vector<48x64xf32>
    %cst = arith.constant dense<0.000000e+00> : vector<96x64xf32>
    %3 = tpu.matmul %1, %2, %cst {dimension_numbers = #tpu.dot_dimension_numbers<[1], [0], [0], [1], [0, 0, 1, 1], [], []>} : vector<96x48xf32>, vector<48x64xf32>, vector<96x64xf32> -> vector<96x64xf32>
    %4 = vector.extract_strided_slice %0 {offsets = [0, 0], sizes = [1, 64], strides = [1, 1]} : vector<24x256xf32> to vector<1x64xf32>
    %5 = vector.broadcast %4 : vector<1x64xf32> to vector<96x64xf32>
    %6 = arith.addf %3, %5 : vector<96x64xf32>
    %cst_5 = arith.constant dense<0.000000e+00> : vector<96xf32>
    %7 = vector.multi_reduction <add>, %6, %cst_5 [1] : vector<96x64xf32> to vector<96xf32>
    %8 = vector.shape_cast %7 : vector<96xf32> to vector<96x1xf32>
    %cst_6 = arith.constant 6.400000e+01 : f32
    %9 = vector.broadcast %cst_6 : f32 to vector<96x1xf32>
    %10 = arith.divf %8, %9 : vector<96x1xf32>
    %11 = vector.broadcast %10 : vector<96x1xf32> to vector<96x64xf32>
    %12 = arith.subf %6, %11 : vector<96x64xf32>
    %13 = arith.mulf %12, %12 : vector<96x64xf32>
    %cst_7 = arith.constant dense<0.000000e+00> : vector<96xf32>
    %14 = vector.multi_reduction <add>, %13, %cst_7 [1] : vector<96x64xf32> to vector<96xf32>
    %15 = vector.shape_cast %14 : vector<96xf32> to vector<96x1xf32>
    %cst_8 = arith.constant 6.400000e+01 : f32
    %16 = vector.broadcast %cst_8 : f32 to vector<96x1xf32>
    %17 = arith.divf %15, %16 : vector<96x1xf32>
    %18 = vector.broadcast %10 : vector<96x1xf32> to vector<96x64xf32>
    %19 = arith.subf %6, %18 : vector<96x64xf32>
    %cst_9 = arith.constant 9.99999974E-6 : f32
    %20 = vector.broadcast %cst_9 : f32 to vector<96x1xf32>
    %21 = arith.addf %17, %20 : vector<96x1xf32>
    %22 = math.rsqrt %21 : vector<96x1xf32>
    %23 = vector.broadcast %22 : vector<96x1xf32> to vector<96x64xf32>
    %24 = arith.mulf %19, %23 : vector<96x64xf32>
    %25 = vector.extract_strided_slice %0 {offsets = [1, 0], sizes = [1, 64], strides = [1, 1]} : vector<24x256xf32> to vector<1x64xf32>
    %26 = vector.broadcast %25 : vector<1x64xf32> to vector<96x64xf32>
    %27 = arith.mulf %24, %26 : vector<96x64xf32>
    %28 = vector.extract_strided_slice %0 {offsets = [2, 0], sizes = [1, 64], strides = [1, 1]} : vector<24x256xf32> to vector<1x64xf32>
    %29 = vector.broadcast %28 : vector<1x64xf32> to vector<96x64xf32>
    %30 = arith.addf %27, %29 : vector<96x64xf32>
    %c0_10 = arith.constant 0 : index
    %c0_11 = arith.constant 0 : index
    %31 = vector.load %arg2[%c0_10, %c0_11] : memref<96x64xf32, #tpu.memory_space<vmem>>, vector<96x64xf32>
    %32 = arith.addf %30, %31 : vector<96x64xf32>
    %cst_12 = arith.constant dense<0.000000e+00> : vector<96xf32>
    %33 = vector.multi_reduction <add>, %32, %cst_12 [1] : vector<96x64xf32> to vector<96xf32>
    %34 = vector.shape_cast %33 : vector<96xf32> to vector<96x1xf32>
    %cst_13 = arith.constant 6.400000e+01 : f32
    %35 = vector.broadcast %cst_13 : f32 to vector<96x1xf32>
    %36 = arith.divf %34, %35 : vector<96x1xf32>
    %37 = vector.broadcast %36 : vector<96x1xf32> to vector<96x64xf32>
    %38 = arith.subf %32, %37 : vector<96x64xf32>
    %39 = arith.mulf %38, %38 : vector<96x64xf32>
    %cst_14 = arith.constant dense<0.000000e+00> : vector<96xf32>
    %40 = vector.multi_reduction <add>, %39, %cst_14 [1] : vector<96x64xf32> to vector<96xf32>
    %41 = vector.shape_cast %40 : vector<96xf32> to vector<96x1xf32>
    %cst_15 = arith.constant 6.400000e+01 : f32
    %42 = vector.broadcast %cst_15 : f32 to vector<96x1xf32>
    %43 = arith.divf %41, %42 : vector<96x1xf32>
    %44 = vector.broadcast %36 : vector<96x1xf32> to vector<96x64xf32>
    %45 = arith.subf %32, %44 : vector<96x64xf32>
    %cst_16 = arith.constant 9.99999974E-6 : f32
    %46 = vector.broadcast %cst_16 : f32 to vector<96x1xf32>
    %47 = arith.addf %43, %46 : vector<96x1xf32>
    %48 = math.rsqrt %47 : vector<96x1xf32>
    %49 = vector.broadcast %48 : vector<96x1xf32> to vector<96x64xf32>
    %50 = arith.mulf %45, %49 : vector<96x64xf32>
    %cst_17 = arith.constant dense<0.000000e+00> : vector<96xf32>
    %51 = vector.multi_reduction <add>, %30, %cst_17 [1] : vector<96x64xf32> to vector<96xf32>
    %52 = vector.shape_cast %51 : vector<96xf32> to vector<96x1xf32>
    %cst_18 = arith.constant 6.400000e+01 : f32
    %53 = vector.broadcast %cst_18 : f32 to vector<96x1xf32>
    %54 = arith.divf %52, %53 : vector<96x1xf32>
    %55 = vector.broadcast %54 : vector<96x1xf32> to vector<96x64xf32>
    %56 = arith.subf %30, %55 : vector<96x64xf32>
    %57 = arith.mulf %56, %56 : vector<96x64xf32>
    %cst_19 = arith.constant dense<0.000000e+00> : vector<96xf32>
    %58 = vector.multi_reduction <add>, %57, %cst_19 [1] : vector<96x64xf32> to vector<96xf32>
    %59 = vector.shape_cast %58 : vector<96xf32> to vector<96x1xf32>
    %cst_20 = arith.constant 6.400000e+01 : f32
    %60 = vector.broadcast %cst_20 : f32 to vector<96x1xf32>
    %61 = arith.divf %59, %60 : vector<96x1xf32>
    %62 = vector.broadcast %54 : vector<96x1xf32> to vector<96x64xf32>
    %63 = arith.subf %30, %62 : vector<96x64xf32>
    %cst_21 = arith.constant 9.99999974E-6 : f32
    %64 = vector.broadcast %cst_21 : f32 to vector<96x1xf32>
    %65 = arith.addf %61, %64 : vector<96x1xf32>
    %66 = math.rsqrt %65 : vector<96x1xf32>
    %67 = vector.broadcast %66 : vector<96x1xf32> to vector<96x64xf32>
    %68 = arith.mulf %63, %67 : vector<96x64xf32>
    %c0_22 = arith.constant 0 : index
    %c0_23 = arith.constant 0 : index
    %69 = vector.load %arg6[%c0_22, %c0_23] : memref<64x128xf32, #tpu.memory_space<vmem>>, vector<64x128xf32>
    %cst_24 = arith.constant dense<0.000000e+00> : vector<96x128xf32>
    %70 = tpu.matmul %50, %69, %cst_24 {dimension_numbers = #tpu.dot_dimension_numbers<[1], [0], [0], [1], [0, 0, 1, 1], [], []>} : vector<96x64xf32>, vector<64x128xf32>, vector<96x128xf32> -> vector<96x128xf32>
    %71 = vector.extract_strided_slice %0 {offsets = [3, 0], sizes = [1, 128], strides = [1, 1]} : vector<24x256xf32> to vector<1x128xf32>
    %72 = vector.broadcast %71 : vector<1x128xf32> to vector<96x128xf32>
    %73 = arith.addf %70, %72 : vector<96x128xf32>
    %c0_25 = arith.constant 0 : index
    %c0_26 = arith.constant 0 : index
    %74 = vector.load %arg7[%c0_25, %c0_26] : memref<64x128xf32, #tpu.memory_space<vmem>>, vector<64x128xf32>
    %cst_27 = arith.constant dense<0.000000e+00> : vector<96x128xf32>
    %75 = tpu.matmul %68, %74, %cst_27 {dimension_numbers = #tpu.dot_dimension_numbers<[1], [0], [0], [1], [0, 0, 1, 1], [], []>} : vector<96x64xf32>, vector<64x128xf32>, vector<96x128xf32> -> vector<96x128xf32>
    %76 = vector.extract_strided_slice %0 {offsets = [4, 0], sizes = [1, 128], strides = [1, 1]} : vector<24x256xf32> to vector<1x128xf32>
    %77 = vector.broadcast %76 : vector<1x128xf32> to vector<96x128xf32>
    %78 = arith.addf %75, %77 : vector<96x128xf32>
    %c0_28 = arith.constant 0 : index
    %c0_29 = arith.constant 0 : index
    %79 = vector.load %arg3[%c0_28, %c0_29] : memref<24x64xf32, #tpu.memory_space<vmem>>, vector<24x64xf32>
    %80 = tpu.concatenate %79, %79 in 0 : vector<24x64xf32>, vector<24x64xf32> -> vector<48x64xf32>
    %81 = tpu.iota {dimensions = array<i32: 0>} : vector<384x64xi32>
    %82 = tpu.iota {dimensions = array<i32: 1>} : vector<384x64xi32>
    %c0_i32 = arith.constant 0 : i32
    %83 = vector.broadcast %c0_i32 : i32 to vector<384x64xi32>
    %c96_i32 = arith.constant 96 : i32
    %84 = vector.broadcast %c96_i32 : i32 to vector<384x64xi32>
    %85 = arith.cmpi sge, %81, %84 : vector<384x64xi32>
    %86 = arith.extui %85 : vector<384x64xi1> to vector<384x64xi32>
    %87 = arith.addi %83, %86 : vector<384x64xi32>
    %c192_i32 = arith.constant 192 : i32
    %88 = vector.broadcast %c192_i32 : i32 to vector<384x64xi32>
    %89 = arith.cmpi sge, %81, %88 : vector<384x64xi32>
    %90 = arith.extui %89 : vector<384x64xi1> to vector<384x64xi32>
    %91 = arith.addi %87, %90 : vector<384x64xi32>
    %c288_i32 = arith.constant 288 : i32
    %92 = vector.broadcast %c288_i32 : i32 to vector<384x64xi32>
    %93 = arith.cmpi sge, %81, %92 : vector<384x64xi32>
    %94 = arith.extui %93 : vector<384x64xi1> to vector<384x64xi32>
    %95 = arith.addi %91, %94 : vector<384x64xi32>
    %c0_i32_30 = arith.constant 0 : i32
    %96 = vector.broadcast %c0_i32_30 : i32 to vector<384x64xi32>
    %c16_i32 = arith.constant 16 : i32
    %97 = vector.broadcast %c16_i32 : i32 to vector<384x64xi32>
    %98 = arith.cmpi sge, %82, %97 : vector<384x64xi32>
    %99 = arith.extui %98 : vector<384x64xi1> to vector<384x64xi32>
    %100 = arith.addi %96, %99 : vector<384x64xi32>
    %c32_i32 = arith.constant 32 : i32
    %101 = vector.broadcast %c32_i32 : i32 to vector<384x64xi32>
    %102 = arith.cmpi sge, %82, %101 : vector<384x64xi32>
    %103 = arith.extui %102 : vector<384x64xi1> to vector<384x64xi32>
    %104 = arith.addi %100, %103 : vector<384x64xi32>
    %c48_i32 = arith.constant 48 : i32
    %105 = vector.broadcast %c48_i32 : i32 to vector<384x64xi32>
    %106 = arith.cmpi sge, %82, %105 : vector<384x64xi32>
    %107 = arith.extui %106 : vector<384x64xi1> to vector<384x64xi32>
    %108 = arith.addi %104, %107 : vector<384x64xi32>
    %109 = arith.cmpi eq, %95, %108 : vector<384x64xi32>
    %110 = arith.extui %109 : vector<384x64xi1> to vector<384x64xi32>
    %111 = arith.sitofp %110 : vector<384x64xi32> to vector<384x64xf32>
    %112 = tpu.iota {dimensions = array<i32: 0>} : vector<48x384xi32>
    %113 = tpu.iota {dimensions = array<i32: 1>} : vector<48x384xi32>
    %c0_i32_31 = arith.constant 0 : i32
    %114 = vector.broadcast %c0_i32_31 : i32 to vector<48x384xi32>
    %c8_i32 = arith.constant 8 : i32
    %115 = vector.broadcast %c8_i32 : i32 to vector<48x384xi32>
    %116 = arith.cmpi sge, %112, %115 : vector<48x384xi32>
    %117 = arith.extui %116 : vector<48x384xi1> to vector<48x384xi32>
    %118 = arith.addi %114, %117 : vector<48x384xi32>
    %c16_i32_32 = arith.constant 16 : i32
    %119 = vector.broadcast %c16_i32_32 : i32 to vector<48x384xi32>
    %120 = arith.cmpi sge, %112, %119 : vector<48x384xi32>
    %121 = arith.extui %120 : vector<48x384xi1> to vector<48x384xi32>
    %122 = arith.addi %118, %121 : vector<48x384xi32>
    %c24_i32 = arith.constant 24 : i32
    %123 = vector.broadcast %c24_i32 : i32 to vector<48x384xi32>
    %124 = arith.cmpi sge, %112, %123 : vector<48x384xi32>
    %125 = arith.extui %124 : vector<48x384xi1> to vector<48x384xi32>
    %126 = arith.addi %122, %125 : vector<48x384xi32>
    %c32_i32_33 = arith.constant 32 : i32
    %127 = vector.broadcast %c32_i32_33 : i32 to vector<48x384xi32>
    %128 = arith.cmpi sge, %112, %127 : vector<48x384xi32>
    %129 = arith.extui %128 : vector<48x384xi1> to vector<48x384xi32>
    %130 = arith.addi %126, %129 : vector<48x384xi32>
    %c40_i32 = arith.constant 40 : i32
    %131 = vector.broadcast %c40_i32 : i32 to vector<48x384xi32>
    %132 = arith.cmpi sge, %112, %131 : vector<48x384xi32>
    %133 = arith.extui %132 : vector<48x384xi1> to vector<48x384xi32>
    %134 = arith.addi %130, %133 : vector<48x384xi32>
    %c0_i32_34 = arith.constant 0 : i32
    %135 = vector.broadcast %c0_i32_34 : i32 to vector<48x384xi32>
    %c96_i32_35 = arith.constant 96 : i32
    %136 = vector.broadcast %c96_i32_35 : i32 to vector<48x384xi32>
    %137 = arith.cmpi sge, %113, %136 : vector<48x384xi32>
    %138 = arith.extui %137 : vector<48x384xi1> to vector<48x384xi32>
    %139 = arith.addi %135, %138 : vector<48x384xi32>
    %c192_i32_36 = arith.constant 192 : i32
    %140 = vector.broadcast %c192_i32_36 : i32 to vector<48x384xi32>
    %141 = arith.cmpi sge, %113, %140 : vector<48x384xi32>
    %142 = arith.extui %141 : vector<48x384xi1> to vector<48x384xi32>
    %143 = arith.addi %139, %142 : vector<48x384xi32>
    %c288_i32_37 = arith.constant 288 : i32
    %144 = vector.broadcast %c288_i32_37 : i32 to vector<48x384xi32>
    %145 = arith.cmpi sge, %113, %144 : vector<48x384xi32>
    %146 = arith.extui %145 : vector<48x384xi1> to vector<48x384xi32>
    %147 = arith.addi %143, %146 : vector<48x384xi32>
    %c96_i32_38 = arith.constant 96 : i32
    %148 = vector.broadcast %c96_i32_38 : i32 to vector<48x384xi32>
    %149 = arith.muli %147, %148 : vector<48x384xi32>
    %150 = arith.subi %113, %149 : vector<48x384xi32>
    %c0_i32_39 = arith.constant 0 : i32
    %151 = vector.broadcast %c0_i32_39 : i32 to vector<48x384xi32>
    %c16_i32_40 = arith.constant 16 : i32
    %152 = vector.broadcast %c16_i32_40 : i32 to vector<48x384xi32>
    %153 = arith.cmpi sge, %150, %152 : vector<48x384xi32>
    %154 = arith.extui %153 : vector<48x384xi1> to vector<48x384xi32>
    %155 = arith.addi %151, %154 : vector<48x384xi32>
    %c32_i32_41 = arith.constant 32 : i32
    %156 = vector.broadcast %c32_i32_41 : i32 to vector<48x384xi32>
    %157 = arith.cmpi sge, %150, %156 : vector<48x384xi32>
    %158 = arith.extui %157 : vector<48x384xi1> to vector<48x384xi32>
    %159 = arith.addi %155, %158 : vector<48x384xi32>
    %c48_i32_42 = arith.constant 48 : i32
    %160 = vector.broadcast %c48_i32_42 : i32 to vector<48x384xi32>
    %161 = arith.cmpi sge, %150, %160 : vector<48x384xi32>
    %162 = arith.extui %161 : vector<48x384xi1> to vector<48x384xi32>
    %163 = arith.addi %159, %162 : vector<48x384xi32>
    %c64_i32 = arith.constant 64 : i32
    %164 = vector.broadcast %c64_i32 : i32 to vector<48x384xi32>
    %165 = arith.cmpi sge, %150, %164 : vector<48x384xi32>
    %166 = arith.extui %165 : vector<48x384xi1> to vector<48x384xi32>
    %167 = arith.addi %163, %166 : vector<48x384xi32>
    %c80_i32 = arith.constant 80 : i32
    %168 = vector.broadcast %c80_i32 : i32 to vector<48x384xi32>
    %169 = arith.cmpi sge, %150, %168 : vector<48x384xi32>
    %170 = arith.extui %169 : vector<48x384xi1> to vector<48x384xi32>
    %171 = arith.addi %167, %170 : vector<48x384xi32>
    %172 = arith.cmpi eq, %134, %171 : vector<48x384xi32>
    %cst_43 = arith.constant 0.000000e+00 : f32
    %cst_44 = arith.constant -1.000000e+30 : f32
    %173 = vector.broadcast %cst_43 : f32 to vector<48x384xf32>
    %174 = vector.broadcast %cst_44 : f32 to vector<48x384xf32>
    %175 = arith.select %172, %173, %174 : vector<48x384xi1>, vector<48x384xf32>
    %cst_45 = arith.constant dense<0.000000e+00> : vector<48xf32>
    %176 = vector.multi_reduction <add>, %80, %cst_45 [1] : vector<48x64xf32> to vector<48xf32>
    %177 = vector.shape_cast %176 : vector<48xf32> to vector<48x1xf32>
    %cst_46 = arith.constant 6.400000e+01 : f32
    %178 = vector.broadcast %cst_46 : f32 to vector<48x1xf32>
    %179 = arith.divf %177, %178 : vector<48x1xf32>
    %180 = vector.broadcast %179 : vector<48x1xf32> to vector<48x64xf32>
    %181 = arith.subf %80, %180 : vector<48x64xf32>
    %182 = arith.mulf %181, %181 : vector<48x64xf32>
    %cst_47 = arith.constant dense<0.000000e+00> : vector<48xf32>
    %183 = vector.multi_reduction <add>, %182, %cst_47 [1] : vector<48x64xf32> to vector<48xf32>
    %184 = vector.shape_cast %183 : vector<48xf32> to vector<48x1xf32>
    %cst_48 = arith.constant 6.400000e+01 : f32
    %185 = vector.broadcast %cst_48 : f32 to vector<48x1xf32>
    %186 = arith.divf %184, %185 : vector<48x1xf32>
    %187 = vector.broadcast %179 : vector<48x1xf32> to vector<48x64xf32>
    %188 = arith.subf %80, %187 : vector<48x64xf32>
    %cst_49 = arith.constant 9.99999974E-6 : f32
    %189 = vector.broadcast %cst_49 : f32 to vector<48x1xf32>
    %190 = arith.addf %186, %189 : vector<48x1xf32>
    %191 = math.rsqrt %190 : vector<48x1xf32>
    %192 = vector.broadcast %191 : vector<48x1xf32> to vector<48x64xf32>
    %193 = arith.mulf %188, %192 : vector<48x64xf32>
    %194 = vector.extract_strided_slice %0 {offsets = [8, 0], sizes = [1, 64], strides = [1, 1]} : vector<24x256xf32> to vector<1x64xf32>
    %195 = vector.broadcast %194 : vector<1x64xf32> to vector<48x64xf32>
    %196 = arith.mulf %193, %195 : vector<48x64xf32>
    %197 = vector.extract_strided_slice %0 {offsets = [9, 0], sizes = [1, 64], strides = [1, 1]} : vector<24x256xf32> to vector<1x64xf32>
    %198 = vector.broadcast %197 : vector<1x64xf32> to vector<48x64xf32>
    %199 = arith.addf %196, %198 : vector<48x64xf32>
    %c0_50 = arith.constant 0 : index
    %c0_51 = arith.constant 0 : index
    %c0_52 = arith.constant 0 : index
    %200 = vector.load %arg8[%c0_50, %c0_51, %c0_52] : memref<2x64x64xf32, #tpu.memory_space<vmem>>, vector<1x64x64xf32>
    %201 = vector.shape_cast %200 : vector<1x64x64xf32> to vector<64x64xf32>
    %cst_53 = arith.constant dense<0.000000e+00> : vector<48x64xf32>
    %202 = tpu.matmul %199, %201, %cst_53 {dimension_numbers = #tpu.dot_dimension_numbers<[1], [0], [0], [1], [0, 0, 1, 1], [], []>} : vector<48x64xf32>, vector<64x64xf32>, vector<48x64xf32> -> vector<48x64xf32>
    %203 = vector.extract_strided_slice %0 {offsets = [10, 0], sizes = [1, 64], strides = [1, 1]} : vector<24x256xf32> to vector<1x64xf32>
    %204 = vector.broadcast %203 : vector<1x64xf32> to vector<48x64xf32>
    %205 = arith.addf %202, %204 : vector<48x64xf32>
    %206 = vector.extract_strided_slice %73 {offsets = [0, 0], sizes = [96, 64], strides = [1, 1]} : vector<96x128xf32> to vector<96x64xf32>
    %207 = vector.extract_strided_slice %78 {offsets = [0, 0], sizes = [96, 64], strides = [1, 1]} : vector<96x128xf32> to vector<96x64xf32>
    %208 = tpu.concatenate %206, %206, %206, %206 in 0 : vector<96x64xf32>, vector<96x64xf32>, vector<96x64xf32>, vector<96x64xf32> -> vector<384x64xf32>
    %209 = arith.mulf %208, %111 : vector<384x64xf32>
    %210 = tpu.concatenate %207, %207, %207, %207 in 0 : vector<96x64xf32>, vector<96x64xf32>, vector<96x64xf32>, vector<96x64xf32> -> vector<384x64xf32>
    %211 = arith.mulf %210, %111 : vector<384x64xf32>
    %cst_54 = arith.constant dense<0.000000e+00> : vector<48x384xf32>
    %212 = tpu.matmul %205, %209, %cst_54 {dimension_numbers = #tpu.dot_dimension_numbers<[1], [1], [0], [0], [0, 0, 1, 0], [], []>} : vector<48x64xf32>, vector<384x64xf32>, vector<48x384xf32> -> vector<48x384xf32>
    %213 = arith.addf %212, %175 : vector<48x384xf32>
    %cst_55 = arith.constant dense<0xFF800000> : vector<48xf32>
    %214 = vector.multi_reduction <maximumf>, %213, %cst_55 [1] : vector<48x384xf32> to vector<48xf32>
    %215 = vector.shape_cast %214 : vector<48xf32> to vector<48x1xf32>
    %216 = vector.broadcast %215 : vector<48x1xf32> to vector<48x384xf32>
    %217 = arith.subf %213, %216 : vector<48x384xf32>
    %218 = math.exp %217 : vector<48x384xf32>
    %219 = tpu.concatenate %211, %111 in 1 : vector<384x64xf32>, vector<384x64xf32> -> vector<384x128xf32>
    %cst_56 = arith.constant dense<0.000000e+00> : vector<48x128xf32>
    %220 = tpu.matmul %218, %219, %cst_56 {dimension_numbers = #tpu.dot_dimension_numbers<[1], [0], [0], [1], [0, 0, 1, 1], [], []>} : vector<48x384xf32>, vector<384x128xf32>, vector<48x128xf32> -> vector<48x128xf32>
    %221 = vector.extract_strided_slice %220 {offsets = [0, 64], sizes = [48, 64], strides = [1, 1]} : vector<48x128xf32> to vector<48x64xf32>
    %cst_57 = arith.constant 1.000000e-30 : f32
    %222 = vector.broadcast %cst_57 : f32 to vector<48x64xf32>
    %223 = arith.maximumf %221, %222 : vector<48x64xf32>
    %224 = vector.extract_strided_slice %220 {offsets = [0, 0], sizes = [48, 64], strides = [1, 1]} : vector<48x128xf32> to vector<48x64xf32>
    %225 = tpu.reciprocal %223 {approx = true} : vector<48x64xf32> -> vector<48x64xf32>
    %226 = arith.mulf %224, %225 : vector<48x64xf32>
    %c0_58 = arith.constant 0 : index
    %c0_59 = arith.constant 0 : index
    %c0_60 = arith.constant 0 : index
    %227 = vector.load %arg9[%c0_58, %c0_59, %c0_60] : memref<2x64x64xf32, #tpu.memory_space<vmem>>, vector<1x64x64xf32>
    %228 = vector.shape_cast %227 : vector<1x64x64xf32> to vector<64x64xf32>
    %cst_61 = arith.constant dense<0.000000e+00> : vector<48x64xf32>
    %229 = tpu.matmul %226, %228, %cst_61 {dimension_numbers = #tpu.dot_dimension_numbers<[1], [0], [0], [1], [0, 0, 1, 1], [], []>} : vector<48x64xf32>, vector<64x64xf32>, vector<48x64xf32> -> vector<48x64xf32>
    %230 = arith.addf %80, %229 : vector<48x64xf32>
    %231 = vector.extract_strided_slice %0 {offsets = [11, 0], sizes = [1, 64], strides = [1, 1]} : vector<24x256xf32> to vector<1x64xf32>
    %232 = vector.broadcast %231 : vector<1x64xf32> to vector<48x64xf32>
    %233 = arith.addf %230, %232 : vector<48x64xf32>
    %cst_62 = arith.constant dense<0.000000e+00> : vector<48xf32>
    %234 = vector.multi_reduction <add>, %233, %cst_62 [1] : vector<48x64xf32> to vector<48xf32>
    %235 = vector.shape_cast %234 : vector<48xf32> to vector<48x1xf32>
    %cst_63 = arith.constant 6.400000e+01 : f32
    %236 = vector.broadcast %cst_63 : f32 to vector<48x1xf32>
    %237 = arith.divf %235, %236 : vector<48x1xf32>
    %238 = vector.broadcast %237 : vector<48x1xf32> to vector<48x64xf32>
    %239 = arith.subf %233, %238 : vector<48x64xf32>
    %240 = arith.mulf %239, %239 : vector<48x64xf32>
    %cst_64 = arith.constant dense<0.000000e+00> : vector<48xf32>
    %241 = vector.multi_reduction <add>, %240, %cst_64 [1] : vector<48x64xf32> to vector<48xf32>
    %242 = vector.shape_cast %241 : vector<48xf32> to vector<48x1xf32>
    %cst_65 = arith.constant 6.400000e+01 : f32
    %243 = vector.broadcast %cst_65 : f32 to vector<48x1xf32>
    %244 = arith.divf %242, %243 : vector<48x1xf32>
    %245 = vector.broadcast %237 : vector<48x1xf32> to vector<48x64xf32>
    %246 = arith.subf %233, %245 : vector<48x64xf32>
    %cst_66 = arith.constant 9.99999974E-6 : f32
    %247 = vector.broadcast %cst_66 : f32 to vector<48x1xf32>
    %248 = arith.addf %244, %247 : vector<48x1xf32>
    %249 = math.rsqrt %248 : vector<48x1xf32>
    %250 = vector.broadcast %249 : vector<48x1xf32> to vector<48x64xf32>
    %251 = arith.mulf %246, %250 : vector<48x64xf32>
    %252 = vector.extract_strided_slice %0 {offsets = [12, 0], sizes = [1, 64], strides = [1, 1]} : vector<24x256xf32> to vector<1x64xf32>
    %253 = vector.broadcast %252 : vector<1x64xf32> to vector<48x64xf32>
    %254 = arith.mulf %251, %253 : vector<48x64xf32>
    %255 = vector.extract_strided_slice %0 {offsets = [13, 0], sizes = [1, 64], strides = [1, 1]} : vector<24x256xf32> to vector<1x64xf32>
    %256 = vector.broadcast %255 : vector<1x64xf32> to vector<48x64xf32>
    %257 = arith.addf %254, %256 : vector<48x64xf32>
    %c0_67 = arith.constant 0 : index
    %c0_68 = arith.constant 0 : index
    %c0_69 = arith.constant 0 : index
    %258 = vector.load %arg10[%c0_67, %c0_68, %c0_69] : memref<2x64x256xf32, #tpu.memory_space<vmem>>, vector<1x64x256xf32>
    %259 = vector.shape_cast %258 : vector<1x64x256xf32> to vector<64x256xf32>
    %cst_70 = arith.constant dense<0.000000e+00> : vector<48x256xf32>
    %260 = tpu.matmul %257, %259, %cst_70 {dimension_numbers = #tpu.dot_dimension_numbers<[1], [0], [0], [1], [0, 0, 1, 1], [], []>} : vector<48x64xf32>, vector<64x256xf32>, vector<48x256xf32> -> vector<48x256xf32>
    %261 = vector.extract_strided_slice %0 {offsets = [22, 0], sizes = [1, 256], strides = [1, 1]} : vector<24x256xf32> to vector<1x256xf32>
    %262 = vector.broadcast %261 : vector<1x256xf32> to vector<48x256xf32>
    %263 = arith.addf %260, %262 : vector<48x256xf32>
    %264 = arith.mulf %263, %263 : vector<48x256xf32>
    %265 = arith.mulf %263, %264 : vector<48x256xf32>
    %cst_71 = arith.constant 4.471500e-02 : f32
    %266 = vector.broadcast %cst_71 : f32 to vector<48x256xf32>
    %267 = arith.mulf %266, %265 : vector<48x256xf32>
    %268 = arith.addf %263, %267 : vector<48x256xf32>
    %cst_72 = arith.constant 0.797884583 : f32
    %269 = vector.broadcast %cst_72 : f32 to vector<48x256xf32>
    %270 = arith.mulf %269, %268 : vector<48x256xf32>
    %271 = math.tanh %270 : vector<48x256xf32>
    %cst_73 = arith.constant 1.000000e+00 : f32
    %272 = vector.broadcast %cst_73 : f32 to vector<48x256xf32>
    %273 = arith.addf %272, %271 : vector<48x256xf32>
    %cst_74 = arith.constant 5.000000e-01 : f32
    %274 = vector.broadcast %cst_74 : f32 to vector<48x256xf32>
    %275 = arith.mulf %274, %273 : vector<48x256xf32>
    %276 = arith.mulf %263, %275 : vector<48x256xf32>
    %c0_75 = arith.constant 0 : index
    %c0_76 = arith.constant 0 : index
    %c0_77 = arith.constant 0 : index
    %277 = vector.load %arg11[%c0_75, %c0_76, %c0_77] : memref<2x256x64xf32, #tpu.memory_space<vmem>>, vector<1x256x64xf32>
    %278 = vector.shape_cast %277 : vector<1x256x64xf32> to vector<256x64xf32>
    %cst_78 = arith.constant dense<0.000000e+00> : vector<48x64xf32>
    %279 = tpu.matmul %276, %278, %cst_78 {dimension_numbers = #tpu.dot_dimension_numbers<[1], [0], [0], [1], [0, 0, 1, 1], [], []>} : vector<48x256xf32>, vector<256x64xf32>, vector<48x64xf32> -> vector<48x64xf32>
    %280 = arith.addf %233, %279 : vector<48x64xf32>
    %281 = vector.extract_strided_slice %0 {offsets = [14, 0], sizes = [1, 64], strides = [1, 1]} : vector<24x256xf32> to vector<1x64xf32>
    %282 = vector.broadcast %281 : vector<1x64xf32> to vector<48x64xf32>
    %283 = arith.addf %280, %282 : vector<48x64xf32>
    %cst_79 = arith.constant dense<0.000000e+00> : vector<48xf32>
    %284 = vector.multi_reduction <add>, %283, %cst_79 [1] : vector<48x64xf32> to vector<48xf32>
    %285 = vector.shape_cast %284 : vector<48xf32> to vector<48x1xf32>
    %cst_80 = arith.constant 6.400000e+01 : f32
    %286 = vector.broadcast %cst_80 : f32 to vector<48x1xf32>
    %287 = arith.divf %285, %286 : vector<48x1xf32>
    %288 = vector.broadcast %287 : vector<48x1xf32> to vector<48x64xf32>
    %289 = arith.subf %283, %288 : vector<48x64xf32>
    %290 = arith.mulf %289, %289 : vector<48x64xf32>
    %cst_81 = arith.constant dense<0.000000e+00> : vector<48xf32>
    %291 = vector.multi_reduction <add>, %290, %cst_81 [1] : vector<48x64xf32> to vector<48xf32>
    %292 = vector.shape_cast %291 : vector<48xf32> to vector<48x1xf32>
    %cst_82 = arith.constant 6.400000e+01 : f32
    %293 = vector.broadcast %cst_82 : f32 to vector<48x1xf32>
    %294 = arith.divf %292, %293 : vector<48x1xf32>
    %295 = vector.broadcast %287 : vector<48x1xf32> to vector<48x64xf32>
    %296 = arith.subf %283, %295 : vector<48x64xf32>
    %cst_83 = arith.constant 9.99999974E-6 : f32
    %297 = vector.broadcast %cst_83 : f32 to vector<48x1xf32>
    %298 = arith.addf %294, %297 : vector<48x1xf32>
    %299 = math.rsqrt %298 : vector<48x1xf32>
    %300 = vector.broadcast %299 : vector<48x1xf32> to vector<48x64xf32>
    %301 = arith.mulf %296, %300 : vector<48x64xf32>
    %302 = vector.extract_strided_slice %0 {offsets = [15, 0], sizes = [1, 64], strides = [1, 1]} : vector<24x256xf32> to vector<1x64xf32>
    %303 = vector.broadcast %302 : vector<1x64xf32> to vector<48x64xf32>
    %304 = arith.mulf %301, %303 : vector<48x64xf32>
    %305 = vector.extract_strided_slice %0 {offsets = [16, 0], sizes = [1, 64], strides = [1, 1]} : vector<24x256xf32> to vector<1x64xf32>
    %306 = vector.broadcast %305 : vector<1x64xf32> to vector<48x64xf32>
    %307 = arith.addf %304, %306 : vector<48x64xf32>
    %c1 = arith.constant 1 : index
    %c0_84 = arith.constant 0 : index
    %c0_85 = arith.constant 0 : index
    %308 = vector.load %arg8[%c1, %c0_84, %c0_85] : memref<2x64x64xf32, #tpu.memory_space<vmem>>, vector<1x64x64xf32>
    %309 = vector.shape_cast %308 : vector<1x64x64xf32> to vector<64x64xf32>
    %cst_86 = arith.constant dense<0.000000e+00> : vector<48x64xf32>
    %310 = tpu.matmul %307, %309, %cst_86 {dimension_numbers = #tpu.dot_dimension_numbers<[1], [0], [0], [1], [0, 0, 1, 1], [], []>} : vector<48x64xf32>, vector<64x64xf32>, vector<48x64xf32> -> vector<48x64xf32>
    %311 = vector.extract_strided_slice %0 {offsets = [17, 0], sizes = [1, 64], strides = [1, 1]} : vector<24x256xf32> to vector<1x64xf32>
    %312 = vector.broadcast %311 : vector<1x64xf32> to vector<48x64xf32>
    %313 = arith.addf %310, %312 : vector<48x64xf32>
    %314 = vector.extract_strided_slice %73 {offsets = [0, 64], sizes = [96, 64], strides = [1, 1]} : vector<96x128xf32> to vector<96x64xf32>
    %315 = vector.extract_strided_slice %78 {offsets = [0, 64], sizes = [96, 64], strides = [1, 1]} : vector<96x128xf32> to vector<96x64xf32>
    %316 = tpu.concatenate %314, %314, %314, %314 in 0 : vector<96x64xf32>, vector<96x64xf32>, vector<96x64xf32>, vector<96x64xf32> -> vector<384x64xf32>
    %317 = arith.mulf %316, %111 : vector<384x64xf32>
    %318 = tpu.concatenate %315, %315, %315, %315 in 0 : vector<96x64xf32>, vector<96x64xf32>, vector<96x64xf32>, vector<96x64xf32> -> vector<384x64xf32>
    %319 = arith.mulf %318, %111 : vector<384x64xf32>
    %cst_87 = arith.constant dense<0.000000e+00> : vector<48x384xf32>
    %320 = tpu.matmul %313, %317, %cst_87 {dimension_numbers = #tpu.dot_dimension_numbers<[1], [1], [0], [0], [0, 0, 1, 0], [], []>} : vector<48x64xf32>, vector<384x64xf32>, vector<48x384xf32> -> vector<48x384xf32>
    %321 = arith.addf %320, %175 : vector<48x384xf32>
    %cst_88 = arith.constant dense<0xFF800000> : vector<48xf32>
    %322 = vector.multi_reduction <maximumf>, %321, %cst_88 [1] : vector<48x384xf32> to vector<48xf32>
    %323 = vector.shape_cast %322 : vector<48xf32> to vector<48x1xf32>
    %324 = vector.broadcast %323 : vector<48x1xf32> to vector<48x384xf32>
    %325 = arith.subf %321, %324 : vector<48x384xf32>
    %326 = math.exp %325 : vector<48x384xf32>
    %327 = tpu.concatenate %319, %111 in 1 : vector<384x64xf32>, vector<384x64xf32> -> vector<384x128xf32>
    %cst_89 = arith.constant dense<0.000000e+00> : vector<48x128xf32>
    %328 = tpu.matmul %326, %327, %cst_89 {dimension_numbers = #tpu.dot_dimension_numbers<[1], [0], [0], [1], [0, 0, 1, 1], [], []>} : vector<48x384xf32>, vector<384x128xf32>, vector<48x128xf32> -> vector<48x128xf32>
    %329 = vector.extract_strided_slice %328 {offsets = [0, 64], sizes = [48, 64], strides = [1, 1]} : vector<48x128xf32> to vector<48x64xf32>
    %cst_90 = arith.constant 1.000000e-30 : f32
    %330 = vector.broadcast %cst_90 : f32 to vector<48x64xf32>
    %331 = arith.maximumf %329, %330 : vector<48x64xf32>
    %332 = vector.extract_strided_slice %328 {offsets = [0, 0], sizes = [48, 64], strides = [1, 1]} : vector<48x128xf32> to vector<48x64xf32>
    %333 = tpu.reciprocal %331 {approx = true} : vector<48x64xf32> -> vector<48x64xf32>
    %334 = arith.mulf %332, %333 : vector<48x64xf32>
    %c1_91 = arith.constant 1 : index
    %c0_92 = arith.constant 0 : index
    %c0_93 = arith.constant 0 : index
    %335 = vector.load %arg9[%c1_91, %c0_92, %c0_93] : memref<2x64x64xf32, #tpu.memory_space<vmem>>, vector<1x64x64xf32>
    %336 = vector.shape_cast %335 : vector<1x64x64xf32> to vector<64x64xf32>
    %cst_94 = arith.constant dense<0.000000e+00> : vector<48x64xf32>
    %337 = tpu.matmul %334, %336, %cst_94 {dimension_numbers = #tpu.dot_dimension_numbers<[1], [0], [0], [1], [0, 0, 1, 1], [], []>} : vector<48x64xf32>, vector<64x64xf32>, vector<48x64xf32> -> vector<48x64xf32>
    %338 = arith.addf %283, %337 : vector<48x64xf32>
    %339 = vector.extract_strided_slice %0 {offsets = [18, 0], sizes = [1, 64], strides = [1, 1]} : vector<24x256xf32> to vector<1x64xf32>
    %340 = vector.broadcast %339 : vector<1x64xf32> to vector<48x64xf32>
    %341 = arith.addf %338, %340 : vector<48x64xf32>
    %cst_95 = arith.constant dense<0.000000e+00> : vector<48xf32>
    %342 = vector.multi_reduction <add>, %341, %cst_95 [1] : vector<48x64xf32> to vector<48xf32>
    %343 = vector.shape_cast %342 : vector<48xf32> to vector<48x1xf32>
    %cst_96 = arith.constant 6.400000e+01 : f32
    %344 = vector.broadcast %cst_96 : f32 to vector<48x1xf32>
    %345 = arith.divf %343, %344 : vector<48x1xf32>
    %346 = vector.broadcast %345 : vector<48x1xf32> to vector<48x64xf32>
    %347 = arith.subf %341, %346 : vector<48x64xf32>
    %348 = arith.mulf %347, %347 : vector<48x64xf32>
    %cst_97 = arith.constant dense<0.000000e+00> : vector<48xf32>
    %349 = vector.multi_reduction <add>, %348, %cst_97 [1] : vector<48x64xf32> to vector<48xf32>
    %350 = vector.shape_cast %349 : vector<48xf32> to vector<48x1xf32>
    %cst_98 = arith.constant 6.400000e+01 : f32
    %351 = vector.broadcast %cst_98 : f32 to vector<48x1xf32>
    %352 = arith.divf %350, %351 : vector<48x1xf32>
    %353 = vector.broadcast %345 : vector<48x1xf32> to vector<48x64xf32>
    %354 = arith.subf %341, %353 : vector<48x64xf32>
    %cst_99 = arith.constant 9.99999974E-6 : f32
    %355 = vector.broadcast %cst_99 : f32 to vector<48x1xf32>
    %356 = arith.addf %352, %355 : vector<48x1xf32>
    %357 = math.rsqrt %356 : vector<48x1xf32>
    %358 = vector.broadcast %357 : vector<48x1xf32> to vector<48x64xf32>
    %359 = arith.mulf %354, %358 : vector<48x64xf32>
    %360 = vector.extract_strided_slice %0 {offsets = [19, 0], sizes = [1, 64], strides = [1, 1]} : vector<24x256xf32> to vector<1x64xf32>
    %361 = vector.broadcast %360 : vector<1x64xf32> to vector<48x64xf32>
    %362 = arith.mulf %359, %361 : vector<48x64xf32>
    %363 = vector.extract_strided_slice %0 {offsets = [20, 0], sizes = [1, 64], strides = [1, 1]} : vector<24x256xf32> to vector<1x64xf32>
    %364 = vector.broadcast %363 : vector<1x64xf32> to vector<48x64xf32>
    %365 = arith.addf %362, %364 : vector<48x64xf32>
    %c1_100 = arith.constant 1 : index
    %c0_101 = arith.constant 0 : index
    %c0_102 = arith.constant 0 : index
    %366 = vector.load %arg10[%c1_100, %c0_101, %c0_102] : memref<2x64x256xf32, #tpu.memory_space<vmem>>, vector<1x64x256xf32>
    %367 = vector.shape_cast %366 : vector<1x64x256xf32> to vector<64x256xf32>
    %cst_103 = arith.constant dense<0.000000e+00> : vector<48x256xf32>
    %368 = tpu.matmul %365, %367, %cst_103 {dimension_numbers = #tpu.dot_dimension_numbers<[1], [0], [0], [1], [0, 0, 1, 1], [], []>} : vector<48x64xf32>, vector<64x256xf32>, vector<48x256xf32> -> vector<48x256xf32>
    %369 = vector.extract_strided_slice %0 {offsets = [23, 0], sizes = [1, 256], strides = [1, 1]} : vector<24x256xf32> to vector<1x256xf32>
    %370 = vector.broadcast %369 : vector<1x256xf32> to vector<48x256xf32>
    %371 = arith.addf %368, %370 : vector<48x256xf32>
    %372 = arith.mulf %371, %371 : vector<48x256xf32>
    %373 = arith.mulf %371, %372 : vector<48x256xf32>
    %cst_104 = arith.constant 4.471500e-02 : f32
    %374 = vector.broadcast %cst_104 : f32 to vector<48x256xf32>
    %375 = arith.mulf %374, %373 : vector<48x256xf32>
    %376 = arith.addf %371, %375 : vector<48x256xf32>
    %cst_105 = arith.constant 0.797884583 : f32
    %377 = vector.broadcast %cst_105 : f32 to vector<48x256xf32>
    %378 = arith.mulf %377, %376 : vector<48x256xf32>
    %379 = math.tanh %378 : vector<48x256xf32>
    %cst_106 = arith.constant 1.000000e+00 : f32
    %380 = vector.broadcast %cst_106 : f32 to vector<48x256xf32>
    %381 = arith.addf %380, %379 : vector<48x256xf32>
    %cst_107 = arith.constant 5.000000e-01 : f32
    %382 = vector.broadcast %cst_107 : f32 to vector<48x256xf32>
    %383 = arith.mulf %382, %381 : vector<48x256xf32>
    %384 = arith.mulf %371, %383 : vector<48x256xf32>
    %c1_108 = arith.constant 1 : index
    %c0_109 = arith.constant 0 : index
    %c0_110 = arith.constant 0 : index
    %385 = vector.load %arg11[%c1_108, %c0_109, %c0_110] : memref<2x256x64xf32, #tpu.memory_space<vmem>>, vector<1x256x64xf32>
    %386 = vector.shape_cast %385 : vector<1x256x64xf32> to vector<256x64xf32>
    %cst_111 = arith.constant dense<0.000000e+00> : vector<48x64xf32>
    %387 = tpu.matmul %384, %386, %cst_111 {dimension_numbers = #tpu.dot_dimension_numbers<[1], [0], [0], [1], [0, 0, 1, 1], [], []>} : vector<48x256xf32>, vector<256x64xf32>, vector<48x64xf32> -> vector<48x64xf32>
    %388 = arith.addf %341, %387 : vector<48x64xf32>
    %389 = vector.extract_strided_slice %0 {offsets = [21, 0], sizes = [1, 64], strides = [1, 1]} : vector<24x256xf32> to vector<1x64xf32>
    %390 = vector.broadcast %389 : vector<1x64xf32> to vector<48x64xf32>
    %391 = arith.addf %388, %390 : vector<48x64xf32>
    %cst_112 = arith.constant dense<0.000000e+00> : vector<48xf32>
    %392 = vector.multi_reduction <add>, %391, %cst_112 [1] : vector<48x64xf32> to vector<48xf32>
    %393 = vector.shape_cast %392 : vector<48xf32> to vector<48x1xf32>
    %cst_113 = arith.constant 6.400000e+01 : f32
    %394 = vector.broadcast %cst_113 : f32 to vector<48x1xf32>
    %395 = arith.divf %393, %394 : vector<48x1xf32>
    %396 = vector.broadcast %395 : vector<48x1xf32> to vector<48x64xf32>
    %397 = arith.subf %391, %396 : vector<48x64xf32>
    %398 = arith.mulf %397, %397 : vector<48x64xf32>
    %cst_114 = arith.constant dense<0.000000e+00> : vector<48xf32>
    %399 = vector.multi_reduction <add>, %398, %cst_114 [1] : vector<48x64xf32> to vector<48xf32>
    %400 = vector.shape_cast %399 : vector<48xf32> to vector<48x1xf32>
    %cst_115 = arith.constant 6.400000e+01 : f32
    %401 = vector.broadcast %cst_115 : f32 to vector<48x1xf32>
    %402 = arith.divf %400, %401 : vector<48x1xf32>
    %403 = vector.broadcast %395 : vector<48x1xf32> to vector<48x64xf32>
    %404 = arith.subf %391, %403 : vector<48x64xf32>
    %cst_116 = arith.constant 9.99999974E-6 : f32
    %405 = vector.broadcast %cst_116 : f32 to vector<48x1xf32>
    %406 = arith.addf %402, %405 : vector<48x1xf32>
    %407 = math.rsqrt %406 : vector<48x1xf32>
    %408 = vector.broadcast %407 : vector<48x1xf32> to vector<48x64xf32>
    %409 = arith.mulf %404, %408 : vector<48x64xf32>
    %410 = vector.extract_strided_slice %0 {offsets = [5, 0], sizes = [1, 64], strides = [1, 1]} : vector<24x256xf32> to vector<1x64xf32>
    %411 = vector.broadcast %410 : vector<1x64xf32> to vector<48x64xf32>
    %412 = arith.mulf %409, %411 : vector<48x64xf32>
    %413 = vector.extract_strided_slice %0 {offsets = [6, 0], sizes = [1, 64], strides = [1, 1]} : vector<24x256xf32> to vector<1x64xf32>
    %414 = vector.broadcast %413 : vector<1x64xf32> to vector<48x64xf32>
    %415 = arith.addf %412, %414 : vector<48x64xf32>
    %c0_117 = arith.constant 0 : index
    %c0_118 = arith.constant 0 : index
    %416 = vector.load %arg12[%c0_117, %c0_118] : memref<64x128xf32, #tpu.memory_space<vmem>>, vector<64x128xf32>
    %cst_119 = arith.constant dense<0.000000e+00> : vector<48x128xf32>
    %417 = tpu.matmul %415, %416, %cst_119 {dimension_numbers = #tpu.dot_dimension_numbers<[1], [0], [0], [1], [0, 0, 1, 1], [], []>} : vector<48x64xf32>, vector<64x128xf32>, vector<48x128xf32> -> vector<48x128xf32>
    %418 = vector.extract_strided_slice %0 {offsets = [7, 0], sizes = [1, 128], strides = [1, 1]} : vector<24x256xf32> to vector<1x128xf32>
    %419 = vector.broadcast %418 : vector<1x128xf32> to vector<48x128xf32>
    %420 = arith.addf %417, %419 : vector<48x128xf32>
    %c0_120 = arith.constant 0 : index
    %c0_121 = arith.constant 0 : index
    %421 = vector.load %arg13[%c0_120, %c0_121] : memref<48x128xf32, #tpu.memory_space<vmem>>, vector<48x128xf32>
    tpu.vector_store %arg13[%c0_120, %c0_121], %420 {strides = array<i32>} : memref<48x128xf32, #tpu.memory_space<vmem>>, vector<48x128xf32>,
    return
  }
  func.func @transform_0(%arg0: i32) -> (i32, i32) {
    %c0_i32 = arith.constant 0 : i32
    %c0_i32_0 = arith.constant 0 : i32
    %c0_i32_1 = arith.constant 0 : i32
    return %c0_i32, %c0_i32_0 : i32, i32
  }
  func.func @transform_1(%arg0: i32) -> (i32, i32) {
    %c0_i32 = arith.constant 0 : i32
    %c0_i32_0 = arith.constant 0 : i32
    %c0_i32_1 = arith.constant 0 : i32
    return %c0_i32, %c0_i32_0 : i32, i32
  }
  func.func @transform_2(%arg0: i32) -> (i32, i32) {
    %c0_i32 = arith.constant 0 : i32
    %c0_i32_0 = arith.constant 0 : i32
    %c0_i32_1 = arith.constant 0 : i32
    return %c0_i32, %c0_i32_0 : i32, i32
  }
  func.func @transform_3(%arg0: i32) -> (i32, i32) {
    %c0_i32 = arith.constant 0 : i32
    %c0_i32_0 = arith.constant 0 : i32
    %c0_i32_1 = arith.constant 0 : i32
    return %c0_i32, %c0_i32_0 : i32, i32
  }
  func.func @transform_4(%arg0: i32) -> (i32, i32) {
    %c0_i32 = arith.constant 0 : i32
    %c0_i32_0 = arith.constant 0 : i32
    %c0_i32_1 = arith.constant 0 : i32
    return %c0_i32, %c0_i32_0 : i32, i32
  }
  func.func @transform_5(%arg0: i32) -> (i32, i32) {
    %c0_i32 = arith.constant 0 : i32
    %c0_i32_0 = arith.constant 0 : i32
    %c0_i32_1 = arith.constant 0 : i32
    return %c0_i32, %c0_i32_0 : i32, i32
  }
  func.func @transform_6(%arg0: i32) -> (i32, i32) {
    %c0_i32 = arith.constant 0 : i32
    %c0_i32_0 = arith.constant 0 : i32
    %c0_i32_1 = arith.constant 0 : i32
    return %c0_i32, %c0_i32_0 : i32, i32
  }
  func.func @transform_7(%arg0: i32) -> (i32, i32, i32) {
    %c0_i32 = arith.constant 0 : i32
    %c0_i32_0 = arith.constant 0 : i32
    %c0_i32_1 = arith.constant 0 : i32
    %c0_i32_2 = arith.constant 0 : i32
    return %c0_i32, %c0_i32_0, %c0_i32_1 : i32, i32, i32
  }
  func.func @transform_8(%arg0: i32) -> (i32, i32, i32) {
    %c0_i32 = arith.constant 0 : i32
    %c0_i32_0 = arith.constant 0 : i32
    %c0_i32_1 = arith.constant 0 : i32
    %c0_i32_2 = arith.constant 0 : i32
    return %c0_i32, %c0_i32_0, %c0_i32_1 : i32, i32, i32
  }
  func.func @transform_9(%arg0: i32) -> (i32, i32, i32) {
    %c0_i32 = arith.constant 0 : i32
    %c0_i32_0 = arith.constant 0 : i32
    %c0_i32_1 = arith.constant 0 : i32
    %c0_i32_2 = arith.constant 0 : i32
    return %c0_i32, %c0_i32_0, %c0_i32_1 : i32, i32, i32
  }
  func.func @transform_10(%arg0: i32) -> (i32, i32, i32) {
    %c0_i32 = arith.constant 0 : i32
    %c0_i32_0 = arith.constant 0 : i32
    %c0_i32_1 = arith.constant 0 : i32
    %c0_i32_2 = arith.constant 0 : i32
    return %c0_i32, %c0_i32_0, %c0_i32_1 : i32, i32, i32
  }
  func.func @transform_11(%arg0: i32) -> (i32, i32) {
    %c0_i32 = arith.constant 0 : i32
    %c0_i32_0 = arith.constant 0 : i32
    %c0_i32_1 = arith.constant 0 : i32
    return %c0_i32, %c0_i32_0 : i32, i32
  }
  func.func @transform_12(%arg0: i32) -> (i32, i32) {
    %c0_i32 = arith.constant 0 : i32
    %c0_i32_0 = arith.constant 0 : i32
    %c0_i32_1 = arith.constant 0 : i32
    return %c0_i32, %c0_i32_0 : i32, i32
  }
}

</mosaic_0001>

<bundles_post_ra>
// kernel: _forward.1
= control target key start
LH: loop header
LB: loop body
LE: loop exit
PB: predicated region body
PF: predicated region fallthrough
CT: control target
= control target key end

     0   :  { %17 = vsyncpa [#allocation3], 0  ;;  %s9948_s0 = inlined_call_operand.vmem [shape: f32[96,48], index: 0, kind: input, shape index: {}]   ;;  %s9949_s1 = inlined_call_operand.vmem [shape: f32[96,64], index: 1, kind: input, shape index: {}]   ;;  %s9950_s2 = inlined_call_operand.hbm [shape: f32[24,64], index: 2, kind: input, shape index: {}]   ;;  %s9951_s3 = inlined_call_operand.vmem [shape: f32[24,256], index: 3, kind: input, shape index: {}]   ;;  %s9952_s4 = inlined_call_operand.vmem [shape: f32[48,64], index: 4, kind: input, shape index: {}]   ;;  %s9953_s5 = inlined_call_operand.vmem [shape: f32[64,128], index: 5, kind: input, shape index: {}]   ;;  %s9954_s6 = inlined_call_operand.vmem [shape: f32[64,128], index: 6, kind: input, shape index: {}]   ;;  %s9955_s7 = inlined_call_operand.vmem [shape: f32[2,64,64], index: 7, kind: input, shape index: {}]   ;;  %s9956_s8 = inlined_call_operand.vmem [shape: f32[2,64,64], index: 8, kind: input, shape index: {}]   ;;  %s9957_s9 = inlined_call_operand.vmem [shape: f32[2,64,256], index: 9, kind: input, shape index: {}]   ;;  %s9958_s10 = inlined_call_operand.vmem [shape: f32[2,256,64], index: 10, kind: input, shape index: {}]   ;;  %s9959_s11 = inlined_call_operand.vmem [shape: f32[64,128], index: 11, kind: input, shape index: {}]   ;;  %s9960_s12 = inlined_call_operand.hbm [shape: f32[48,128], index: 12, kind: output, shape index: {}]  }
   0x1   :  { %18 = vsyncpa [#allocation4], 0  ;;  %s27_s23 = sshll.u32 %s9950_s2, 4  ;;  %s6415_s24 = smov [#allocation2]   ;;  %s28_s23 = int_to_ptr.hbm [resolvable:$true] %s27_s23 }
   0x2   :  { %s29_s25 = sshll.u32 %s6415_s24, 4  ;;  %s6416_s26 = smov 128   ;;  %s30_s25 = int_to_ptr.vmem [resolvable:$true] %s29_s25 }
   0x3   :  { %s6417_s27 = smov 8  }
   0x4   :  { %35 = dma.hbm_to_vmem [thread:$0]  %s28_s23, 384, %s30_s25, [#allocation3], %s6416_s26, %s6416_s26, %s6417_s27  }
   0x5   :  { %6411 = dma.done.wait [#allocation3], 384  }
   0x6   :  { %6412 = vsyncadd [#allocation3], 4294966912  ;;  %v79_v0 = vld [vmem:[%s9952_s4 + $0x28] sm:$0xff]  ;;  %v78_v1 = vld [vmem:[%s9952_s4 + $0x20] sm:$0xff]  ;;  %vm81_vm0 = vcmask 392192   ;;  %vm171_vm1 = vcmask 523264  }
   0x7   :  { %128 = vmatpush.msra.mxu0 %v79_v0  ;;  %v77_v2 = vld [vmem:[%s9952_s4 + $0x18] sm:$0xff]  ;;  %v76_v3 = vld [vmem:[%s9952_s4 + $0x10] sm:$0xff]  ;;  %v75_v4 = vld [vmem:[%s9952_s4 + $0x8] sm:$0xff]  ;;  %v6418_v41 = vmov 64.0  }
   0x8   :  { %v74_v5 = vld [vmem:[%s9952_s4] sm:$0xff]  ;;  %v63_v7 = vld [vmem:[%s9948_s0 + $0x8] sm:$0xff]  ;;  %v64_v8 = vld [vmem:[%s9948_s0 + $0x10] sm:$0xff]  ;;  %6080 = vrcp.f32 %v6418_v41  ;;  %s5410_s4 = sshll.u32 %s9960_s12, 4  ;;  %s5411_s4 = int_to_ptr.hbm [resolvable:$true] %s5410_s4 }
   0x9   :  { %129 = vmatpush.msra.mxu0 %v78_v1  ;;  %v62_v6 = vld [vmem:[%s9948_s0] sm:$0xff]  ;;  %v65_v9 = vld [vmem:[%s9948_s0 + $0x18] sm:$0xff]  ;;  %v67_v11 = vld [vmem:[%s9948_s0 + $0x28] sm:$0xff] }
   0xa   :  { %v66_v10 = vld [vmem:[%s9948_s0 + $0x20] sm:$0xff]  ;;  %v68_v12 = vld [vmem:[%s9948_s0 + $0x30] sm:$0xff]  ;;  %v69_v13 = vld [vmem:[%s9948_s0 + $0x38] sm:$0xff] }
   0xb   :  { %130 = vmatpush.msra.mxu0 %v77_v2  ;;  %v70_v14 = vld [vmem:[%s9948_s0 + $0x40] sm:$0xff]  ;;  %v71_v15 = vld [vmem:[%s9948_s0 + $0x48] sm:$0xff]  ;;  %v72_v17 = vld [vmem:[%s9948_s0 + $0x50] sm:$0xff] }
   0xc   :  { %v6556_v16 = vld [vmem:[%s9951_s3] sm:$0xff]  ;;  %v73_v22 = vld [vmem:[%s9948_s0 + $0x58] sm:$0xff] }
   0xd   :  { %131 = vmatpush.msra.mxu0 %v76_v3  ;;  %v6562_v18 = vperm.slane %v6556_v16, 0 }
   0xe   :  { %v6081_v42 = vpop.eup %6080 }
   0xf   :  { %132 = vmatpush.msra.mxu0 %v75_v4  ;;  %v209_v43 = vmul.f32 64.0, %v6081_v42  ;;  %vm213_vm2 = vweird.f32 %v6081_v42 }
  0x11   :  { %133 = vmatpush.msra.mxu0 %v74_v5  ;;  %v210_v44 = vsub.f32 1.0, %v209_v43 }
  0x12   :  { %5423 = vmatmul.msk.f32.vlgmr.msra.gmra.mxu0 %vm81_vm0, %v62_v6 }
  0x13   :  { %v211_v45 = vmul.f32 %v6081_v42, %v210_v44 }
  0x15   :  { %v212_v46 = vadd.f32 %v6081_v42, %v211_v45 }
  0x17   :  { %v6589_v47 = vsel %vm213_vm2, %v6081_v42, %v212_v46 }
  0x18   :  { %10134 = vst [vmem:[#allocation8_spill] sm:$0xff] %v6589_v47 }
  0x1a   :  { %5424 = vmatmul.msk.f32.gmra.mxu0 %vm81_vm0, %v63_v7 }
  0x22   :  { %5425 = vmatmul.msk.f32.gmra.mxu0 %vm81_vm0, %v64_v8 }
  0x2a   :  { %5426 = vmatmul.msk.f32.gmra.mxu0 %vm81_vm0, %v65_v9 }
  0x32   :  { %5427 = vmatmul.msk.f32.gmra.mxu0 %vm81_vm0, %v66_v10 }
  0x3a   :  { %5428 = vmatmul.msk.f32.gmra.mxu0 %vm81_vm0, %v67_v11 }
  0x42   :  { %5429 = vmatmul.msk.f32.gmra.mxu0 %vm81_vm0, %v68_v12 }
  0x4a   :  { %5430 = vmatmul.msk.f32.gmra.mxu0 %vm81_vm0, %v69_v13 }
  0x52   :  { %5431 = vmatmul.msk.f32.gmra.mxu0 %vm81_vm0, %v70_v14 }
  0x5a   :  { %5432 = vmatmul.msk.f32.gmra.mxu0 %vm81_vm0, %v71_v15 }
  0x62   :  { %5433 = vmatmul.msk.f32.gmra.mxu0 %vm81_vm0, %v72_v17 }
  0x6a   :  { %5434 = vmatmul.msk.f32.gmra.mxu0 %vm81_vm0, %v73_v22 }
  0x8f   :  { %v135_v19 = vpop.f32.mrf.mxu0 }
  0x90   :  { %v136_v20 = vadd.f32 %v135_v19, %v6562_v18 }
  0x92   :  { %v172_v21 = vsel %vm171_vm1, %v136_v20, 0.0 }
  0x93   :  { %173 = vadd.xlane.f32.xlu0 %v172_v21 }
  0x97   :  { %v138_v23 = vpop.f32.mrf.mxu0 }
  0x98   :  { %v139_v24 = vadd.f32 %v138_v23, %v6562_v18 }
  0x9a   :  { %v175_v25 = vsel %vm171_vm1, %v139_v24, 0.0 }
  0x9b   :  { %176 = vadd.xlane.f32.xlu0 %v175_v25 }
  0x9f   :  { %v141_v26 = vpop.f32.mrf.mxu0 }
  0xa0   :  { %v142_v27 = vadd.f32 %v141_v26, %v6562_v18 }
  0xa2   :  { %v178_v28 = vsel %vm171_vm1, %v142_v27, 0.0 }
  0xa3   :  { %179 = vadd.xlane.f32.xlu1 %v178_v28 }
  0xa7   :  { %v144_v29 = vpop.f32.mrf.mxu0 }
  0xa8   :  { %v145_v30 = vadd.f32 %v144_v29, %v6562_v18 }
  0xaa   :  { %v181_v31 = vsel %vm171_vm1, %v145_v30, 0.0 }
  0xab   :  { %182 = vadd.xlane.f32.xlu1 %v181_v31 }
  0xaf   :  { %v147_v32 = vpop.f32.mrf.mxu0 }
  0xb0   :  { %v148_v33 = vadd.f32 %v147_v32, %v6562_v18 }
  0xb2   :  { %v184_v34 = vsel %vm171_vm1, %v148_v33, 0.0 }
  0xb3   :  { %185 = vadd.xlane.f32.xlu2 %v184_v34 }
  0xb7   :  { %v150_v35 = vpop.f32.mrf.mxu0 }
  0xb8   :  { %v6580_v36 = vadd.f32 %v150_v35, %v6562_v18 }
  0xba   :  { %v187_v37 = vsel %vm171_vm1, %v6580_v36, 0.0 }
  0xbb   :  { %188 = vadd.xlane.f32.xlu2 %v187_v37 }
  0xbf   :  { %v153_v38 = vpop.f32.mrf.mxu0 }
  0xc0   :  { %v6585_v39 = vadd.f32 %v153_v38, %v6562_v18 }
  0xc2   :  { %v190_v40 = vsel %vm171_vm1, %v6585_v39, 0.0 }
  0xc3   :  { %191 = vadd.xlane.f32.xlu1 %v190_v40 }
  0xc7   :  { %v156_v48 = vpop.f32.mrf.mxu0 }
  0xc8   :  { %v157_v57 = vadd.f32 %v156_v48, %v6562_v18 }
  0xca   :  { %v193_v59 = vsel %vm171_vm1, %v157_v57, 0.0 }
  0xcf   :  { %v159_v55 = vpop.f32.mrf.mxu0 }
  0xd0   :  { %v6607_v0 = vadd.f32 %v159_v55, %v6562_v18 }
  0xd2   :  { %v196_v4 = vsel %vm171_vm1, %v6607_v0, 0.0 }
  0xd7   :  { %v162_v1 = vpop.f32.mrf.mxu0 }
  0xd8   :  { %v6618_v8 = vadd.f32 %v162_v1, %v6562_v18  ;;  %v6673_v1 = vperm.slane %v6556_v16, 1 }
  0xda   :  { %v199_v11 = vsel %vm171_vm1, %v6618_v8, 0.0 }
  0xdf   :  { %v165_v10 = vpop.f32.mrf.mxu0 }
  0xe0   :  { %v6629_v17 = vadd.f32 %v165_v10, %v6562_v18 }
  0xe7   :  { %v168_v22 = vpop.f32.mrf.mxu0 }
  0xe8   :  { %v6640_v26 = vadd.f32 %v168_v22, %v6562_v18 }
  0xea   :  { %v205_v29 = vsel %vm171_vm1, %v6640_v26, 0.0 }
 0x106   :  { %v174_v49 = vpop.xlane.xlu0 %173 }
 0x107   :  { %v215_v50 = vmul.f32 %v6589_v47, %v174_v49 }
 0x109   :  { %v6592_v51 = vsub.f32 %v136_v20, %v215_v50  ;;  %v202_v20 = vsel %vm171_vm1, %v6629_v17, 0.0 }
 0x10b   :  { %v239_v52 = vmul.f32 %v6592_v51, %v6592_v51 }
 0x10d   :  { %v251_v53 = vsel %vm171_vm1, %v239_v52, 0.0 }
 0x10e   :  { %252 = vadd.xlane.f32.xlu0 %v251_v53  ;;  %v177_v54 = vpop.xlane.xlu0 %176 }
 0x10f   :  { %v216_v56 = vmul.f32 %v6589_v47, %v177_v54 }
 0x111   :  { %v6599_v58 = vsub.f32 %v139_v24, %v216_v56 }
 0x113   :  { %v240_v60 = vmul.f32 %v6599_v58, %v6599_v58 }
 0x115   :  { %v254_v61 = vsel %vm171_vm1, %v240_v60, 0.0 }
 0x116   :  { %v180_v62 = vpop.xlane.xlu1 %179  ;;  %194 = vadd.xlane.f32.xlu0 %v193_v59  ;;  %255 = vadd.xlane.f32.xlu2 %v254_v61 }
 0x117   :  { %v217_v63 = vmul.f32 %v6589_v47, %v180_v62 }
 0x119   :  { %v6609_v2 = vsub.f32 %v142_v27, %v217_v63 }
 0x11b   :  { %v241_v3 = vmul.f32 %v6609_v2, %v6609_v2 }
 0x11d   :  { %v257_v5 = vsel %vm171_vm1, %v241_v3, 0.0 }
 0x11e   :  { %258 = vadd.xlane.f32.xlu1 %v257_v5  ;;  %v183_v6 = vpop.xlane.xlu1 %182  ;;  %197 = vadd.xlane.f32.xlu2 %v196_v4 }
 0x11f   :  { %v218_v7 = vmul.f32 %v6589_v47, %v183_v6 }
 0x121   :  { %v6620_v9 = vsub.f32 %v145_v30, %v218_v7 }
 0x123   :  { %v242_v12 = vmul.f32 %v6620_v9, %v6620_v9 }
 0x125   :  { %v260_v13 = vsel %vm171_vm1, %v242_v12, 0.0 }
 0x126   :  { %v186_v14 = vpop.xlane.xlu2 %185  ;;  %200 = vadd.xlane.f32.xlu1 %v199_v11  ;;  %261 = vadd.xlane.f32.xlu0 %v260_v13 }
 0x127   :  { %v219_v15 = vmul.f32 %v6589_v47, %v186_v14 }
 0x129   :  { %v6631_v19 = vsub.f32 %v148_v33, %v219_v15 }
 0x12b   :  { %v243_v21 = vmul.f32 %v6631_v19, %v6631_v19 }
 0x12d   :  { %v263_v23 = vsel %vm171_vm1, %v243_v21, 0.0 }
 0x12e   :  { %v189_v24 = vpop.xlane.xlu2 %188  ;;  %203 = vadd.xlane.f32.xlu0 %v202_v20  ;;  %264 = vadd.xlane.f32.xlu2 %v263_v23  ;;  %v469_v20 = vld [vmem:[%s9949_s1] sm:$0xff] }
 0x12f   :  { %v220_v25 = vmul.f32 %v6589_v47, %v189_v24 }
 0x131   :  { %v6643_v27 = vsub.f32 %v6580_v36, %v220_v25 }
 0x133   :  { %v244_v28 = vmul.f32 %v6643_v27, %v6643_v27 }
 0x135   :  { %v266_v30 = vsel %vm171_vm1, %v244_v28, 0.0 }
 0x136   :  { %267 = vadd.xlane.f32.xlu1 %v266_v30  ;;  %v192_v31 = vpop.xlane.xlu1 %191  ;;  %206 = vadd.xlane.f32.xlu2 %v205_v29 }
 0x137   :  { %v221_v32 = vmul.f32 %v6589_v47, %v192_v31 }
 0x139   :  { %v6652_v33 = vsub.f32 %v6585_v39, %v221_v32 }
 0x13b   :  { %v245_v18 = vmul.f32 %v6652_v33, %v6652_v33 }
 0x13d   :  { %v269_v34 = vsel %vm171_vm1, %v245_v18, 0.0 }
 0x13e   :  { %270 = vadd.xlane.f32.xlu0 %v269_v34 }
 0x181   :  { %v253_v35 = vpop.xlane.xlu0 %252 }
 0x182   :  { %v287_v36 = vmul.f32 %v253_v35, %v6589_v47 }
 0x184   :  { %v299_v37 = vadd.f32 1e-05, %v287_v36 }
 0x186   :  { %6082 = vrsqrt.f32 %v299_v37  ;;  %vm317_vm4 = vweird.f32 %v299_v37 }
 0x189   :  { %v256_v38 = vpop.xlane.xlu2 %255  ;;  %v195_v40 = vpop.xlane.xlu0 %194 }
 0x18a   :  { %v288_v41 = vmul.f32 %v256_v38, %v6589_v47  ;;  %v222_v42 = vmul.f32 %v6589_v47, %v195_v40 }
 0x18c   :  { %v6083_v43 = vpop.eup %6082  ;;  %v300_v39 = vadd.f32 1e-05, %v288_v41  ;;  %v6660_v44 = vsub.f32 %v157_v57, %v222_v42  ;;  %v470_v41 = vld [vmem:[%s9949_s1 + $0x8] sm:$0xff] }
 0x18d   :  { %v312_v45 = vmul.f32 %v6083_v43, %v299_v37  ;;  %vm318_vm3 = vweird.f32 %v6083_v43 }
 0x18e   :  { %6084 = vrsqrt.f32 %v300_v39  ;;  %v246_v46 = vmul.f32 %v6660_v44, %v6660_v44  ;;  %vm319_vm5 = vmor %vm317_vm4, %vm318_vm3  ;;  %vm327_vm7 = vweird.f32 %v300_v39 }
 0x18f   :  { %v313_v48 = vmul.f32 %v6083_v43, %v312_v45 }
 0x190   :  { %v272_v49 = vsel %vm171_vm1, %v246_v46, 0.0 }
 0x191   :  { %v314_v50 = vmul.f32 0.5, %v313_v48  ;;  %v259_v52 = vpop.xlane.xlu1 %258  ;;  %v198_v53 = vpop.xlane.xlu2 %197  ;;  %273 = vadd.xlane.f32.xlu1 %v272_v49 }
 0x192   :  { %v289_v54 = vmul.f32 %v259_v52, %v6589_v47  ;;  %v223_v55 = vmul.f32 %v6589_v47, %v198_v53 }
 0x193   :  { %v315_v56 = vsub.f32 1.5, %v314_v50 }
 0x194   :  { %v6085_v57 = vpop.eup %6084  ;;  %v301_v59 = vadd.f32 1e-05, %v289_v54  ;;  %v6668_v60 = vsub.f32 %v6607_v0, %v223_v55  ;;  %v6678_v0 = vperm.slane %v6556_v16, 2 }
 0x195   :  { %v316_v61 = vmul.f32 %v6083_v43, %v315_v56  ;;  %v322_v62 = vmul.f32 %v6085_v57, %v300_v39  ;;  %vm328_vm6 = vweird.f32 %v6085_v57 }
 0x196   :  { %6086 = vrsqrt.f32 %v301_v59  ;;  %v247_v63 = vmul.f32 %v6668_v60, %v6668_v60  ;;  %vm329_vm8 = vmor %vm327_vm7, %vm328_vm6  ;;  %vm337_vm10 = vweird.f32 %v301_v59 }
 0x197   :  { %v320_v3 = vsel %vm319_vm5, %v6083_v43, %v316_v61  ;;  %v323_v4 = vmul.f32 %v6085_v57, %v322_v62 }
 0x198   :  { %v275_v5 = vsel %vm171_vm1, %v247_v63, 0.0  ;;  %v431_v6 = vmul.f32 %v320_v3, %v6592_v51  ;;  %v471_v3 = vld [vmem:[%s9949_s1 + $0x10] sm:$0xff] }
 0x199   :  { %v324_v7 = vmul.f32 0.5, %v323_v4  ;;  %v201_v10 = vpop.xlane.xlu1 %200  ;;  %276 = vadd.xlane.f32.xlu2 %v275_v5  ;;  %v262_v11 = vpop.xlane.xlu0 %261 }
 0x19a   :  { %v224_v12 = vmul.f32 %v6589_v47, %v201_v10  ;;  %v290_v13 = vmul.f32 %v262_v11, %v6589_v47  ;;  %v444_v14 = vmul.f32 %v6673_v1, %v431_v6 }
 0x19b   :  { %v325_v15 = vsub.f32 1.5, %v324_v7 }
 0x19c   :  { %v6087_v51 = vpop.eup %6086  ;;  %v6687_v16 = vsub.f32 %v6618_v8, %v224_v12  ;;  %v302_v21 = vadd.f32 1e-05, %v290_v13  ;;  %v6690_v22 = vadd.f32 %v6678_v0, %v444_v14 }
 0x19d   :  { %v326_v23 = vmul.f32 %v6085_v57, %v325_v15  ;;  %v332_v24 = vmul.f32 %v6087_v51, %v301_v59  ;;  %vm338_vm9 = vweird.f32 %v6087_v51 }
 0x19e   :  { %6088 = vrsqrt.f32 %v302_v21  ;;  %v6693_v25 = vadd.f32 %v469_v20, %v6690_v22  ;;  %v248_v28 = vmul.f32 %v6687_v16, %v6687_v16  ;;  %vm339_vm11 = vmor %vm337_vm10, %vm338_vm9  ;;  %vm347_vm13 = vweird.f32 %v302_v21 }
 0x19f   :  { %v330_v29 = vsel %vm329_vm8, %v6085_v57, %v326_v23  ;;  %v333_v30 = vmul.f32 %v6087_v51, %v332_v24 }
 0x1a0   :  { %v493_v8 = vsel %vm171_vm1, %v6693_v25, 0.0  ;;  %v278_v31 = vsel %vm171_vm1, %v248_v28, 0.0  ;;  %v432_v32 = vmul.f32 %v330_v29, %v6599_v58  ;;  %v472_v29 = vld [vmem:[%s9949_s1 + $0x18] sm:$0xff] }
 0x1a1   :  { %v334_v18 = vmul.f32 0.5, %v333_v30  ;;  %v265_v34 = vpop.xlane.xlu2 %264  ;;  %494 = vadd.xlane.f32.xlu0 %v493_v8  ;;  %279 = vadd.xlane.f32.xlu1 %v278_v31  ;;  %v204_v35 = vpop.xlane.xlu0 %203 }
 0x1a2   :  { %v291_v36 = vmul.f32 %v265_v34, %v6589_v47  ;;  %v225_v37 = vmul.f32 %v6589_v47, %v204_v35  ;;  %v445_v38 = vmul.f32 %v6673_v1, %v432_v32 }
 0x1a3   :  { %v335_v40 = vsub.f32 1.5, %v334_v18 }
 0x1a4   :  { %v6089_v42 = vpop.eup %6088  ;;  %v303_v43 = vadd.f32 1e-05, %v291_v36  ;;  %v6708_v58 = vsub.f32 %v6629_v17, %v225_v37  ;;  %v6711_v39 = vadd.f32 %v6678_v0, %v445_v38 }
 0x1a5   :  { %v336_v45 = vmul.f32 %v6087_v51, %v335_v40  ;;  %v342_v46 = vmul.f32 %v6089_v42, %v302_v21  ;;  %vm348_vm12 = vweird.f32 %v6089_v42 }
 0x1a6   :  { %6090 = vrsqrt.f32 %v303_v43  ;;  %v6714_v48 = vadd.f32 %v470_v41, %v6711_v39  ;;  %v249_v49 = vmul.f32 %v6708_v58, %v6708_v58  ;;  %vm349_vm14 = vmor %vm347_vm13, %vm348_vm12  ;;  %vm357_vm0 = vweird.f32 %v303_v43 }
 0x1a7   :  { %v340_v50 = vsel %vm339_vm11, %v6087_v51, %v336_v45  ;;  %v343_v52 = vmul.f32 %v6089_v42, %v342_v46 }
 0x1a8   :  { %v496_v17 = vsel %vm171_vm1, %v6714_v48, 0.0  ;;  %v281_v53 = vsel %vm171_vm1, %v249_v49, 0.0  ;;  %v433_v54 = vmul.f32 %v340_v50, %v6609_v2 }
 0x1a9   :  { %v344_v55 = vmul.f32 0.5, %v343_v52  ;;  %v268_v56 = vpop.xlane.xlu1 %267  ;;  %497 = vadd.xlane.f32.xlu2 %v496_v17  ;;  %v207_v57 = vpop.xlane.xlu2 %206  ;;  %282 = vadd.xlane.f32.xlu0 %v281_v53 }
 0x1aa   :  { %v292_v59 = vmul.f32 %v268_v56, %v6589_v47  ;;  %v226_v61 = vmul.f32 %v6589_v47, %v207_v57  ;;  %v446_v62 = vmul.f32 %v6673_v1, %v433_v54  ;;  %v474_v57 = vld [vmem:[%s9949_s1 + $0x28] sm:$0xff] }
 0x1ab   :  { %v345_v63 = vsub.f32 1.5, %v344_v55 }
 0x1ac   :  { %v6091_v4 = vpop.eup %6090  ;;  %v304_v5 = vadd.f32 1e-05, %v292_v59  ;;  %v6729_v2 = vsub.f32 %v6640_v26, %v226_v61  ;;  %v6732_v6 = vadd.f32 %v6678_v0, %v446_v62 }
 0x1ad   :  { %v346_v7 = vmul.f32 %v6089_v42, %v345_v63  ;;  %v352_v10 = vmul.f32 %v6091_v4, %v303_v43  ;;  %vm358_vm15 = vweird.f32 %v6091_v4 }
 0x1ae   :  { %6092 = vrsqrt.f32 %v304_v5  ;;  %v250_v11 = vmul.f32 %v6729_v2, %v6729_v2  ;;  %v6737_v12 = vadd.f32 %v471_v3, %v6732_v6  ;;  %vm359_vm2 = vmor %vm357_vm0, %vm358_vm15  ;;  %vm367_vm4 = vweird.f32 %v304_v5 }
 0x1af   :  { %v350_v13 = vsel %vm349_vm14, %v6089_v42, %v346_v7  ;;  %v353_v14 = vmul.f32 %v6091_v4, %v352_v10  ;;  %v473_v42 = vld [vmem:[%s9949_s1 + $0x20] sm:$0xff] }
 0x1b0   :  { %v284_v15 = vsel %vm171_vm1, %v250_v11, 0.0  ;;  %v499_v26 = vsel %vm171_vm1, %v6737_v12, 0.0  ;;  %v434_v20 = vmul.f32 %v350_v13, %v6620_v9 }
 0x1b1   :  { %v354_v51 = vmul.f32 0.5, %v353_v14  ;;  %285 = vadd.xlane.f32.xlu2 %v284_v15  ;;  %500 = vadd.xlane.f32.xlu1 %v499_v26  ;;  %v271_v21 = vpop.xlane.xlu0 %270 }
 0x1b2   :  { %v293_v23 = vmul.f32 %v271_v21, %v6589_v47  ;;  %v447_v24 = vmul.f32 %v6673_v1, %v434_v20 }
 0x1b3   :  { %v355_v28 = vsub.f32 1.5, %v354_v51 }
 0x1b4   :  { %v6093_v30 = vpop.eup %6092  ;;  %v305_v8 = vadd.f32 1e-05, %v293_v23  ;;  %v6749_v31 = vadd.f32 %v6678_v0, %v447_v24 }
 0x1b5   :  { %v356_v9 = vmul.f32 %v6091_v4, %v355_v28  ;;  %v362_v32 = vmul.f32 %v6093_v30, %v304_v5  ;;  %vm368_vm3 = vweird.f32 %v6093_v30  ;;  %v475_v5 = vld [vmem:[%s9949_s1 + $0x30] sm:$0xff] }
 0x1b6   :  { %6094 = vrsqrt.f32 %v305_v8  ;;  %v6752_v18 = vadd.f32 %v472_v29, %v6749_v31  ;;  %vm369_vm5 = vmor %vm367_vm4, %vm368_vm3  ;;  %vm377_vm7 = vweird.f32 %v305_v8 }
 0x1b7   :  { %v360_v34 = vsel %vm359_vm2, %v6091_v4, %v356_v9  ;;  %v363_v35 = vmul.f32 %v6093_v30, %v362_v32 }
 0x1b8   :  { %v502_v36 = vsel %vm171_vm1, %v6752_v18, 0.0  ;;  %v435_v37 = vmul.f32 %v360_v34, %v6631_v19 }
 0x1b9   :  { %v364_v38 = vmul.f32 0.5, %v363_v35  ;;  %503 = vadd.xlane.f32.xlu0 %v502_v36 }
 0x1ba   :  { %v448_v40 = vmul.f32 %v6673_v1, %v435_v37 }
 0x1bb   :  { %v365_v41 = vsub.f32 1.5, %v364_v38 }
 0x1bc   :  { %v6095_v43 = vpop.eup %6094  ;;  %v6762_v45 = vadd.f32 %v6678_v0, %v448_v40 }
 0x1bd   :  { %v366_v46 = vmul.f32 %v6093_v30, %v365_v41  ;;  %v372_v49 = vmul.f32 %v6095_v43, %v305_v8  ;;  %vm378_vm6 = vweird.f32 %v6095_v43 }
 0x1be   :  { %v6765_v19 = vadd.f32 %v473_v42, %v6762_v45  ;;  %vm379_vm8 = vmor %vm377_vm7, %vm378_vm6 }
 0x1bf   :  { %v370_v50 = vsel %vm369_vm5, %v6093_v30, %v366_v46  ;;  %v373_v52 = vmul.f32 %v6095_v43, %v372_v49 }
 0x1c0   :  { %v505_v17 = vsel %vm171_vm1, %v6765_v19, 0.0  ;;  %v436_v53 = vmul.f32 %v370_v50, %v6643_v27 }
 0x1c1   :  { %v374_v54 = vmul.f32 0.5, %v373_v52  ;;  %506 = vadd.xlane.f32.xlu1 %v505_v17 }
 0x1c2   :  { %v449_v55 = vmul.f32 %v6673_v1, %v436_v53 }
 0x1c3   :  { %v375_v56 = vsub.f32 1.5, %v374_v54  ;;  %v476_v54 = vld [vmem:[%s9949_s1 + $0x38] sm:$0xff] }
 0x1c4   :  { %v6775_v59 = vadd.f32 %v6678_v0, %v449_v55 }
 0x1c5   :  { %v376_v61 = vmul.f32 %v6095_v43, %v375_v56 }
 0x1c6   :  { %v6778_v62 = vadd.f32 %v474_v57, %v6775_v59 }
 0x1c7   :  { %v380_v27 = vsel %vm379_vm8, %v6095_v43, %v376_v61 }
 0x1c8   :  { %v508_v63 = vsel %vm171_vm1, %v6778_v62, 0.0  ;;  %v437_v3 = vmul.f32 %v380_v27, %v6652_v33 }
 0x1c9   :  { %509 = vadd.xlane.f32.xlu2 %v508_v63 }
 0x1ca   :  { %v450_v4 = vmul.f32 %v6673_v1, %v437_v3 }
 0x1cc   :  { %v6788_v7 = vadd.f32 %v6678_v0, %v450_v4 }
 0x1ce   :  { %v6791_v10 = vadd.f32 %v475_v5, %v6788_v7 }
 0x1d0   :  { %v511_v11 = vsel %vm171_vm1, %v6791_v10, 0.0 }
 0x1d1   :  { %512 = vadd.xlane.f32.xlu1 %v511_v11 }
 0x204   :  { %v274_v13 = vpop.xlane.xlu1 %273 }
 0x205   :  { %v294_v33 = vmul.f32 %v274_v13, %v6589_v47 }
 0x207   :  { %v306_v14 = vadd.f32 1e-05, %v294_v33 }
 0x209   :  { %6096 = vrsqrt.f32 %v306_v14  ;;  %vm387_vm10 = vweird.f32 %v306_v14 }
 0x20c   :  { %v277_v15 = vpop.xlane.xlu2 %276 }
 0x20d   :  { %v295_v26 = vmul.f32 %v277_v15, %v6589_v47 }
 0x20f   :  { %v6097_v20 = vpop.eup %6096  ;;  %v307_v51 = vadd.f32 1e-05, %v295_v26 }
 0x210   :  { %v382_v21 = vmul.f32 %v6097_v20, %v306_v14  ;;  %vm388_vm9 = vweird.f32 %v6097_v20 }
 0x211   :  { %6098 = vrsqrt.f32 %v307_v51  ;;  %vm389_vm11 = vmor %vm387_vm10, %vm388_vm9  ;;  %vm397_vm13 = vweird.f32 %v307_v51 }
 0x212   :  { %v383_v23 = vmul.f32 %v6097_v20, %v382_v21 }
 0x214   :  { %v384_v24 = vmul.f32 0.5, %v383_v23  ;;  %v280_v28 = vpop.xlane.xlu1 %279  ;;  %v495_v29 = vpop.xlane.xlu0 %494  ;;  %v477_v23 = vld [vmem:[%s9949_s1 + $0x40] sm:$0xff] }
 0x215   :  { %v296_v30 = vmul.f32 %v280_v28, %v6589_v47  ;;  %v529_v8 = vmul.f32 %v495_v29, %v6589_v47 }
 0x216   :  { %v385_v9 = vsub.f32 1.5, %v384_v24 }
 0x217   :  { %v6099_v32 = vpop.eup %6098  ;;  %v308_v34 = vadd.f32 1e-05, %v296_v30  ;;  %v6800_v35 = vsub.f32 %v6693_v25, %v529_v8 }
 0x218   :  { %v386_v36 = vmul.f32 %v6097_v20, %v385_v9  ;;  %v392_v37 = vmul.f32 %v6099_v32, %v307_v51  ;;  %vm398_vm12 = vweird.f32 %v6099_v32 }
 0x219   :  { %6100 = vrsqrt.f32 %v308_v34  ;;  %v553_v38 = vmul.f32 %v6800_v35, %v6800_v35  ;;  %vm399_vm14 = vmor %vm397_vm13, %vm398_vm12  ;;  %vm407_vm0 = vweird.f32 %v308_v34 }
 0x21a   :  { %v390_v40 = vsel %vm389_vm11, %v6097_v20, %v386_v36  ;;  %v393_v41 = vmul.f32 %v6099_v32, %v392_v37 }
 0x21b   :  { %v565_v42 = vsel %vm171_vm1, %v553_v38, 0.0  ;;  %v438_v43 = vmul.f32 %v390_v40, %v6660_v44 }
 0x21c   :  { %v394_v46 = vmul.f32 0.5, %v393_v41  ;;  %v498_v49 = vpop.xlane.xlu2 %497  ;;  %566 = vadd.xlane.f32.xlu0 %v565_v42  ;;  %v283_v50 = vpop.xlane.xlu0 %282 }
 0x21d   :  { %v530_v25 = vmul.f32 %v498_v49, %v6589_v47  ;;  %v297_v52 = vmul.f32 %v283_v50, %v6589_v47  ;;  %v451_v17 = vmul.f32 %v6673_v1, %v438_v43  ;;  %v478_v49 = vld [vmem:[%s9949_s1 + $0x48] sm:$0xff] }
 0x21e   :  { %v395_v53 = vsub.f32 1.5, %v394_v46 }
 0x21f   :  { %v6101_v55 = vpop.eup %6100  ;;  %v6813_v56 = vsub.f32 %v6714_v48, %v530_v25  ;;  %v309_v44 = vadd.f32 1e-05, %v297_v52  ;;  %v6816_v57 = vadd.f32 %v6678_v0, %v451_v17 }
 0x220   :  { %v396_v61 = vmul.f32 %v6099_v32, %v395_v53  ;;  %v402_v27 = vmul.f32 %v6101_v55, %v308_v34  ;;  %vm408_vm15 = vweird.f32 %v6101_v55 }
 0x221   :  { %6102 = vrsqrt.f32 %v309_v44  ;;  %v554_v63 = vmul.f32 %v6813_v56, %v6813_v56  ;;  %v6821_v3 = vadd.f32 %v476_v54, %v6816_v57  ;;  %vm409_vm2 = vmor %vm407_vm0, %vm408_vm15  ;;  %vm417_vm4 = vweird.f32 %v309_v44 }
 0x222   :  { %v400_v4 = vsel %vm399_vm14, %v6099_v32, %v396_v61  ;;  %v403_v5 = vmul.f32 %v6101_v55, %v402_v27 }
 0x223   :  { %v568_v48 = vsel %vm171_vm1, %v554_v63, 0.0  ;;  %v514_v11 = vsel %vm171_vm1, %v6821_v3, 0.0  ;;  %v439_v13 = vmul.f32 %v400_v4, %v6668_v60 }
 0x224   :  { %v404_v33 = vmul.f32 0.5, %v403_v5  ;;  %569 = vadd.xlane.f32.xlu2 %v568_v48  ;;  %v286_v14 = vpop.xlane.xlu2 %285  ;;  %v501_v15 = vpop.xlane.xlu1 %500  ;;  %515 = vadd.xlane.f32.xlu0 %v514_v11 }
 0x225   :  { %v298_v26 = vmul.f32 %v286_v14, %v6589_v47  ;;  %v531_v20 = vmul.f32 %v501_v15, %v6589_v47  ;;  %v452_v51 = vmul.f32 %v6673_v1, %v439_v13  ;;  %v479_v13 = vld [vmem:[%s9949_s1 + $0x50] sm:$0xff] }
 0x226   :  { %v405_v21 = vsub.f32 1.5, %v404_v33 }
 0x227   :  { %v6103_v24 = vpop.eup %6102  ;;  %v310_v28 = vadd.f32 1e-05, %v298_v26  ;;  %v6834_v60 = vsub.f32 %v6737_v12, %v531_v20  ;;  %v6837_v29 = vadd.f32 %v6678_v0, %v452_v51 }
 0x228   :  { %v406_v30 = vmul.f32 %v6101_v55, %v405_v21  ;;  %v412_v8 = vmul.f32 %v6103_v24, %v309_v44  ;;  %vm418_vm3 = vweird.f32 %v6103_v24 }
 0x229   :  { %6104 = vrsqrt.f32 %v310_v28  ;;  %v6840_v9 = vadd.f32 %v477_v23, %v6837_v29  ;;  %v555_v32 = vmul.f32 %v6834_v60, %v6834_v60  ;;  %vm419_vm5 = vmor %vm417_vm4, %vm418_vm3  ;;  %vm427_vm7 = vweird.f32 %v310_v28 }
 0x22a   :  { %v410_v36 = vsel %vm409_vm2, %v6101_v55, %v406_v30  ;;  %v413_v37 = vmul.f32 %v6103_v24, %v412_v8  ;;  %v480_v30 = vld [vmem:[%s9949_s1 + $0x58] sm:$0xff] }
 0x22b   :  { %v517_v12 = vsel %vm171_vm1, %v6840_v9, 0.0  ;;  %v571_v38 = vsel %vm171_vm1, %v555_v32, 0.0  ;;  %v440_v40 = vmul.f32 %v410_v36, %v6687_v16 }
 0x22c   :  { %v414_v41 = vmul.f32 0.5, %v413_v37  ;;  %518 = vadd.xlane.f32.xlu2 %v517_v12  ;;  %572 = vadd.xlane.f32.xlu1 %v571_v38  ;;  %v504_v34 = vpop.xlane.xlu0 %503 }
 0x22d   :  { %v532_v42 = vmul.f32 %v504_v34, %v6589_v47  ;;  %v453_v43 = vmul.f32 %v6673_v1, %v440_v40  ;;  %v1027_v34 = vld [vmem:[%s9953_s5 + $0x30] sm:$0xff] }
 0x22e   :  { %v415_v46 = vsub.f32 1.5, %v414_v41  ;;  %v1028_v41 = vld [vmem:[%s9953_s5 + $0x38] sm:$0xff] }
 0x22f   :  { %v6105_v50 = vpop.eup %6104  ;;  %v6854_v25 = vsub.f32 %v6752_v18, %v532_v42  ;;  %v6857_v16 = vadd.f32 %v6678_v0, %v453_v43  ;;  %1074 = vmatpush.msra.mxu1 %v1028_v41  ;;  %v1025_v42 = vld [vmem:[%s9953_s5 + $0x20] sm:$0xff]  ;;  %v1024_v43 = vld [vmem:[%s9953_s5 + $0x18] sm:$0xff] }
 0x230   :  { %v416_v52 = vmul.f32 %v6103_v24, %v415_v46  ;;  %v422_v17 = vmul.f32 %v6105_v50, %v310_v28  ;;  %vm428_vm6 = vweird.f32 %v6105_v50  ;;  %v1023_v46 = vld [vmem:[%s9953_s5 + $0x10] sm:$0xff] }
 0x231   :  { %v6860_v53 = vadd.f32 %v478_v49, %v6857_v16  ;;  %v556_v54 = vmul.f32 %v6854_v25, %v6854_v25  ;;  %vm429_vm8 = vmor %vm427_vm7, %vm428_vm6  ;;  %1075 = vmatpush.msra.mxu1 %v1027_v34  ;;  %v1022_v49 = vld [vmem:[%s9953_s5 + $0x8] sm:$0xff] }
 0x232   :  { %v420_v55 = vsel %vm419_vm5, %v6103_v24, %v416_v52  ;;  %v423_v61 = vmul.f32 %v6105_v50, %v422_v17 }
 0x233   :  { %v520_v27 = vsel %vm171_vm1, %v6860_v53, 0.0  ;;  %v574_v18 = vsel %vm171_vm1, %v556_v54, 0.0  ;;  %v441_v63 = vmul.f32 %v420_v55, %v6708_v58 }
 0x234   :  { %v424_v4 = vmul.f32 0.5, %v423_v61  ;;  %v507_v5 = vpop.xlane.xlu1 %506  ;;  %521 = vadd.xlane.f32.xlu1 %v520_v27  ;;  %575 = vadd.xlane.f32.xlu0 %v574_v18 }
 0x235   :  { %v533_v44 = vmul.f32 %v507_v5, %v6589_v47  ;;  %v454_v48 = vmul.f32 %v6673_v1, %v441_v63 }
 0x236   :  { %v425_v11 = vsub.f32 1.5, %v424_v4 }
 0x237   :  { %v6874_v33 = vsub.f32 %v6765_v19, %v533_v44  ;;  %v6877_v14 = vadd.f32 %v6678_v0, %v454_v48 }
 0x238   :  { %v426_v58 = vmul.f32 %v6105_v50, %v425_v11 }
 0x239   :  { %v557_v15 = vmul.f32 %v6874_v33, %v6874_v33  ;;  %v6882_v26 = vadd.f32 %v479_v13, %v6877_v14 }
 0x23a   :  { %v430_v20 = vsel %vm429_vm8, %v6105_v50, %v426_v58  ;;  %v1021_v50 = vld [vmem:[%s9953_s5] sm:$0xff] }
 0x23b   :  { %v577_v51 = vsel %vm171_vm1, %v557_v15, 0.0  ;;  %v523_v21 = vsel %vm171_vm1, %v6882_v26, 0.0  ;;  %v442_v19 = vmul.f32 %v430_v20, %v6729_v2 }
 0x23c   :  { %v510_v23 = vpop.xlane.xlu2 %509  ;;  %578 = vadd.xlane.f32.xlu2 %v577_v51  ;;  %524 = vadd.xlane.f32.xlu0 %v523_v21 }
 0x23d   :  { %v534_v24 = vmul.f32 %v510_v23, %v6589_v47  ;;  %v455_v28 = vmul.f32 %v6673_v1, %v442_v19 }
 0x23f   :  { %v6894_v8 = vsub.f32 %v6778_v62, %v534_v24  ;;  %v6897_v32 = vadd.f32 %v6678_v0, %v455_v28 }
 0x241   :  { %v6900_v36 = vadd.f32 %v480_v30, %v6897_v32  ;;  %v558_v2 = vmul.f32 %v6894_v8, %v6894_v8 }
 0x243   :  { %v526_v37 = vsel %vm171_vm1, %v6900_v36, 0.0  ;;  %v580_v1 = vsel %vm171_vm1, %v558_v2, 0.0 }
 0x244   :  { %527 = vadd.xlane.f32.xlu2 %v526_v37  ;;  %581 = vadd.xlane.f32.xlu1 %v580_v1  ;;  %v513_v12 = vpop.xlane.xlu1 %512 }
 0x245   :  { %v535_v62 = vmul.f32 %v513_v12, %v6589_v47 }
 0x247   :  { %v6909_v38 = vsub.f32 %v6791_v10, %v535_v62  ;;  %v1026_v10 = vld [vmem:[%s9953_s5 + $0x28] sm:$0xff] }
 0x248   :  { %1076 = vmatpush.msra.mxu1 %v1026_v10 }
 0x249   :  { %v559_v0 = vmul.f32 %v6909_v38, %v6909_v38 }
 0x24a   :  { %1077 = vmatpush.msra.mxu1 %v1025_v42 }
 0x24b   :  { %v583_v40 = vsel %vm171_vm1, %v559_v0, 0.0 }
 0x24c   :  { %584 = vadd.xlane.f32.xlu0 %v583_v40  ;;  %1078 = vmatpush.msra.mxu1 %v1024_v43 }
 0x24e   :  { %1079 = vmatpush.msra.mxu1 %v1023_v46 }
 0x250   :  { %1080 = vmatpush.msra.mxu1 %v1022_v49 }
 0x252   :  { %1081 = vmatpush.msra.mxu1 %v1021_v50 }
 0x28f   :  { %v567_v52 = vpop.xlane.xlu0 %566 }
 0x290   :  { %v601_v17 = vmul.f32 %v567_v52, %v6589_v47 }
 0x292   :  { %v613_v54 = vadd.f32 1e-05, %v601_v17 }
 0x294   :  { %6106 = vrsqrt.f32 %v613_v54  ;;  %vm631_vm10 = vweird.f32 %v613_v54 }
 0x297   :  { %v570_v55 = vpop.xlane.xlu2 %569  ;;  %v516_v61 = vpop.xlane.xlu0 %515 }
 0x298   :  { %v602_v27 = vmul.f32 %v570_v55, %v6589_v47  ;;  %v536_v18 = vmul.f32 %v516_v61, %v6589_v47 }
 0x29a   :  { %v6107_v63 = vpop.eup %6106  ;;  %v614_v4 = vadd.f32 1e-05, %v602_v27  ;;  %v6942_v5 = vsub.f32 %v6821_v3, %v536_v18 }
 0x29b   :  { %v626_v44 = vmul.f32 %v6107_v63, %v613_v54  ;;  %vm632_vm9 = vweird.f32 %v6107_v63 }
 0x29c   :  { %6108 = vrsqrt.f32 %v614_v4  ;;  %v560_v48 = vmul.f32 %v6942_v5, %v6942_v5  ;;  %vm633_vm11 = vmor %vm631_vm10, %vm632_vm9  ;;  %vm641_vm13 = vweird.f32 %v614_v4 }
 0x29d   :  { %v627_v11 = vmul.f32 %v6107_v63, %v626_v44  ;;  %v6969_v44 = vld [vmem:[#allocation2] sm:$0xff] }
 0x29e   :  { %v586_v13 = vsel %vm171_vm1, %v560_v48, 0.0 }
 0x29f   :  { %v628_v58 = vmul.f32 0.5, %v627_v11  ;;  %v519_v15 = vpop.xlane.xlu2 %518  ;;  %v573_v20 = vpop.xlane.xlu1 %572  ;;  %587 = vadd.xlane.f32.xlu1 %v586_v13 }
 0x2a0   :  { %v537_v51 = vmul.f32 %v519_v15, %v6589_v47  ;;  %v603_v21 = vmul.f32 %v573_v20, %v6589_v47  ;;  %v2001_v15 = vsel %vm171_vm1, %v6969_v44, 0.0 }
 0x2a1   :  { %v629_v19 = vsub.f32 1.5, %v628_v58 }
 0x2a2   :  { %v6109_v3 = vpop.eup %6108  ;;  %v6950_v23 = vsub.f32 %v6840_v9, %v537_v51  ;;  %v615_v24 = vadd.f32 1e-05, %v603_v21 }
 0x2a3   :  { %v636_v28 = vmul.f32 %v6109_v3, %v614_v4  ;;  %v630_v30 = vmul.f32 %v6107_v63, %v629_v19  ;;  %vm642_vm12 = vweird.f32 %v6109_v3 }
 0x2a4   :  { %6110 = vrsqrt.f32 %v615_v24  ;;  %v561_v2 = vmul.f32 %v6950_v23, %v6950_v23  ;;  %vm643_vm14 = vmor %vm641_vm13, %vm642_vm12  ;;  %vm651_vm0 = vweird.f32 %v615_v24 }
 0x2a5   :  { %v637_v37 = vmul.f32 %v6109_v3, %v636_v28  ;;  %v634_v1 = vsel %vm633_vm11, %v6107_v63, %v630_v30 }
 0x2a6   :  { %v589_v12 = vsel %vm171_vm1, %v561_v2, 0.0  ;;  %v745_v62 = vmul.f32 %v634_v1, %v6800_v35  ;;  %v6983_v1 = vld [vmem:[#allocation2 + $0x8] sm:$0xff] }
 0x2a7   :  { %v638_v0 = vmul.f32 0.5, %v637_v37  ;;  %590 = vadd.xlane.f32.xlu2 %v589_v12  ;;  %v522_v40 = vpop.xlane.xlu1 %521  ;;  %v576_v9 = vpop.xlane.xlu0 %575 }
 0x2a8   :  { %v538_v41 = vmul.f32 %v522_v40, %v6589_v47  ;;  %v604_v34 = vmul.f32 %v576_v9, %v6589_v47  ;;  %5435 = vmatmul.msk.f32.vlgmr.msra.gmra.mxu1 %vm171_vm1, %v745_v62 }
 0x2a9   :  { %v639_v10 = vsub.f32 1.5, %v638_v0 }
 0x2aa   :  { %v6111_v42 = vpop.eup %6110  ;;  %v6960_v43 = vsub.f32 %v6860_v53, %v538_v41  ;;  %v616_v46 = vadd.f32 1e-05, %v604_v34  ;;  %v2004_v41 = vsel %vm171_vm1, %v6983_v1, 0.0 }
 0x2ab   :  { %v646_v49 = vmul.f32 %v6111_v42, %v615_v24  ;;  %v640_v35 = vmul.f32 %v6109_v3, %v639_v10  ;;  %vm652_vm15 = vweird.f32 %v6111_v42 }
 0x2ac   :  { %6112 = vrsqrt.f32 %v616_v46  ;;  %v562_v50 = vmul.f32 %v6960_v43, %v6960_v43  ;;  %vm653_vm2 = vmor %vm651_vm0, %vm652_vm15  ;;  %vm661_vm4 = vweird.f32 %v616_v46 }
 0x2ad   :  { %v647_v52 = vmul.f32 %v6111_v42, %v646_v49  ;;  %v644_v17 = vsel %vm643_vm14, %v6109_v3, %v640_v35 }
 0x2ae   :  { %v592_v54 = vsel %vm171_vm1, %v562_v50, 0.0  ;;  %v746_v55 = vmul.f32 %v644_v17, %v6813_v56 }
 0x2af   :  { %v648_v61 = vmul.f32 0.5, %v647_v52  ;;  %v579_v27 = vpop.xlane.xlu2 %578  ;;  %593 = vadd.xlane.f32.xlu0 %v592_v54  ;;  %v525_v53 = vpop.xlane.xlu0 %524  ;;  %v6996_v52 = vld [vmem:[#allocation2 + $0x10] sm:$0xff] }
 0x2b0   :  { %v605_v18 = vmul.f32 %v579_v27, %v6589_v47  ;;  %v539_v63 = vmul.f32 %v525_v53, %v6589_v47  ;;  %5436 = vmatmul.msk.f32.gmra.mxu1 %vm171_vm1, %v746_v55 }
 0x2b1   :  { %v649_v4 = vsub.f32 1.5, %v648_v61 }
 0x2b2   :  { %v6113_v48 = vpop.eup %6112  ;;  %v617_v11 = vadd.f32 1e-05, %v605_v18  ;;  %v6972_v13 = vsub.f32 %v6882_v26, %v539_v63 }
 0x2b3   :  { %v656_v56 = vmul.f32 %v6113_v48, %v616_v46  ;;  %v650_v58 = vmul.f32 %v6111_v42, %v649_v4  ;;  %vm662_vm3 = vweird.f32 %v6113_v48 }
 0x2b4   :  { %6114 = vrsqrt.f32 %v617_v11  ;;  %v563_v20 = vmul.f32 %v6972_v13, %v6972_v13  ;;  %vm663_vm5 = vmor %vm661_vm4, %vm662_vm3  ;;  %vm671_vm7 = vweird.f32 %v617_v11 }
 0x2b5   :  { %v657_v51 = vmul.f32 %v6113_v48, %v656_v56  ;;  %v654_v21 = vsel %vm653_vm2, %v6111_v42, %v650_v58 }
 0x2b6   :  { %v595_v19 = vsel %vm171_vm1, %v563_v20, 0.0  ;;  %v747_v3 = vmul.f32 %v654_v21, %v6834_v60 }
 0x2b7   :  { %v658_v28 = vmul.f32 0.5, %v657_v51  ;;  %v528_v26 = vpop.xlane.xlu2 %527  ;;  %v582_v30 = vpop.xlane.xlu1 %581  ;;  %2002 = vadd.xlane.f32.xlu0 %v2001_v15  ;;  %596 = vadd.xlane.f32.xlu1 %v595_v19 }
 0x2b8   :  { %v540_v24 = vmul.f32 %v528_v26, %v6589_v47  ;;  %v606_v2 = vmul.f32 %v582_v30, %v6589_v47  ;;  %5437 = vmatmul.msk.f32.gmra.mxu1 %vm171_vm1, %v747_v3 }
 0x2b9   :  { %v659_v37 = vsub.f32 1.5, %v658_v28  ;;  %v1269_v28 = vlaneseq }
 0x2ba   :  { %v6115_v12 = vpop.eup %6114  ;;  %v6986_v62 = vsub.f32 %v6900_v36, %v540_v24  ;;  %v618_v60 = vadd.f32 1e-05, %v606_v2 }
 0x2bb   :  { %v666_v0 = vmul.f32 %v6115_v12, %v617_v11  ;;  %v660_v40 = vmul.f32 %v6113_v48, %v659_v37  ;;  %vm672_vm6 = vweird.f32 %v6115_v12  ;;  %v7006_v26 = vand.u32 127, %v1269_v28 }
 0x2bc   :  { %6116 = vrsqrt.f32 %v618_v60  ;;  %v564_v9 = vmul.f32 %v6986_v62, %v6986_v62  ;;  %vm673_vm8 = vmor %vm671_vm7, %vm672_vm6  ;;  %vm681_vm10 = vweird.f32 %v618_v60 }
 0x2bd   :  { %v667_v34 = vmul.f32 %v6115_v12, %v666_v0  ;;  %v664_v10 = vsel %vm663_vm5, %v6113_v48, %v660_v40  ;;  %vm1655_vm15 = vcmp.ge.s32.totalorder %v7006_v26, 16  ;;  %vm1657_vm0 = vcmp.ge.s32.totalorder %v7006_v26, 32 }
 0x2be   :  { %v598_v42 = vsel %vm171_vm1, %v564_v9, 0.0  ;;  %v748_v49 = vmul.f32 %v664_v10, %v6854_v25  ;;  %v2007_v25 = vsel %vm171_vm1, %v6996_v52, 0.0  ;;  %vm1660_vm2 = vcmp.ge.s32.totalorder %v7006_v26, 48  ;;  %v2081_v10 = vld [vmem:[%s9955_s7 + $0x30] sm:$0xff] }
 0x2bf   :  { %v668_v36 = vmul.f32 0.5, %v667_v34  ;;  %599 = vadd.xlane.f32.xlu2 %v598_v42  ;;  %2005 = vadd.xlane.f32.xlu1 %v2004_v41  ;;  %v585_v46 = vpop.xlane.xlu0 %584  ;;  %v2082_v41 = vld [vmem:[%s9955_s7 + $0x38] sm:$0xff] }
 0x2c0   :  { %v607_v35 = vmul.f32 %v585_v46, %v6589_v47  ;;  %5438 = vmatmul.msk.f32.gmra.mxu1 %vm171_vm1, %v748_v49  ;;  %2101 = vmatpush.msra.mxu3 %v2082_v41  ;;  %v2080_v49 = vld [vmem:[%s9955_s7 + $0x28] sm:$0xff] }
 0x2c1   :  { %v669_v50 = vsub.f32 1.5, %v668_v36  ;;  %v2079_v36 = vld [vmem:[%s9955_s7 + $0x20] sm:$0xff] }
 0x2c2   :  { %v6117_v17 = vpop.eup %6116  ;;  %v619_v54 = vadd.f32 1e-05, %v607_v35  ;;  %2102 = vmatpush.msra.mxu3 %v2081_v10 }
 0x2c3   :  { %v676_v55 = vmul.f32 %v6117_v17, %v618_v60  ;;  %v670_v61 = vmul.f32 %v6115_v12, %v669_v50  ;;  %vm682_vm9 = vweird.f32 %v6117_v17  ;;  %v2078_v50 = vld [vmem:[%s9955_s7 + $0x18] sm:$0xff] }
 0x2c4   :  { %6118 = vrsqrt.f32 %v619_v54  ;;  %vm683_vm11 = vmor %vm681_vm10, %vm682_vm9  ;;  %vm691_vm13 = vweird.f32 %v619_v54  ;;  %2103 = vmatpush.msra.mxu3 %v2080_v49 }
 0x2c5   :  { %v677_v27 = vmul.f32 %v6117_v17, %v676_v55  ;;  %v674_v53 = vsel %vm673_vm8, %v6115_v12, %v670_v61  ;;  %v6420_v12 = vmov 0.0   ;;  %v2077_v55 = vld [vmem:[%s9955_s7 + $0x10] sm:$0xff] }
 0x2c6   :  { %v749_v18 = vmul.f32 %v674_v53, %v6874_v33  ;;  %2104 = vmatpush.msra.mxu3 %v2079_v36  ;;  %v2075_v53 = vld [vmem:[%s9955_s7] sm:$0xff] }
 0x2c7   :  { %v678_v63 = vmul.f32 0.5, %v677_v27  ;;  %2008 = vadd.xlane.f32.xlu2 %v2007_v25  ;;  %v2076_v25 = vld [vmem:[%s9955_s7 + $0x8] sm:$0xff] }
 0x2c8   :  { %5439 = vmatmul.msk.f32.gmra.mxu1 %vm171_vm1, %v749_v18  ;;  %2105 = vmatpush.msra.mxu3 %v2078_v50 }
 0x2c9   :  { %v679_v4 = vsub.f32 1.5, %v678_v63 }
 0x2ca   :  { %v6119_v48 = vpop.eup %6118  ;;  %2106 = vmatpush.msra.mxu3 %v2077_v55 }
 0x2cb   :  { %v686_v11 = vmul.f32 %v6119_v48, %v619_v54  ;;  %v680_v56 = vmul.f32 %v6117_v17, %v679_v4  ;;  %vm692_vm12 = vweird.f32 %v6119_v48 }
 0x2cc   :  { %vm693_vm14 = vmor %vm691_vm13, %vm692_vm12  ;;  %2107 = vmatpush.msra.mxu3 %v2076_v25 }
 0x2cd   :  { %v687_v58 = vmul.f32 %v6119_v48, %v686_v11  ;;  %v684_v15 = vsel %vm683_vm11, %v6117_v17, %v680_v56 }
 0x2ce   :  { %v750_v20 = vmul.f32 %v684_v15, %v6894_v8  ;;  %v6419_v8 = vmov 0   ;;  %2108 = vmatpush.msra.mxu3 %v2075_v53 }
 0x2cf   :  { %v688_v51 = vmul.f32 0.5, %v687_v58  ;;  %v1656_v30 = vsel %vm1655_vm15, 1, %v6419_v8  ;;  %v1658_v24 = vsel %vm1657_vm0, 1, %v6419_v8  ;;  %v1661_v37 = vsel %vm1660_vm2, 1, %v6419_v8 }
 0x2d0   :  { %5440 = vmatmul.msk.f32.gmra.mxu1 %vm171_vm1, %v750_v20  ;;  %v1659_v2 = vadd.s32 %v1658_v24, %v1656_v30 }
 0x2d1   :  { %v689_v21 = vsub.f32 1.5, %v688_v51 }
 0x2d3   :  { %v690_v33 = vmul.f32 %v6119_v48, %v689_v21 }
 0x2d5   :  { %v694_v19 = vsel %vm693_vm14, %v6119_v48, %v690_v33 }
 0x2d6   :  { %v751_v3 = vmul.f32 %v694_v19, %v6909_v38  ;;  %v7014_v38 = vadd.s32 %v1661_v37, %v1659_v2 }
 0x2d8   :  { %5441 = vmatmul.msk.f32.gmra.mxu1 %vm171_vm1, %v751_v3  ;;  %vm5483_vm3 = vcmp.eq.s32.totalorder %v7014_v38, 2  ;;  %vm5459_vm4 = vcmp.eq.s32.totalorder %v7014_v38, 0  ;;  %vm5495_vm5 = vcmp.eq.s32.totalorder %v7014_v38, 3  ;;  %vm5471_vm15 = vcmp.eq.s32.totalorder %v7014_v38, 1 }
 0x2d9   :  { %v7018_v60 = vsel %vm5483_vm3, 1.0, %v6420_v12  ;;  %v7023_v0 = vsel %vm5459_vm4, 1.0, %v6420_v12  ;;  %v7026_v40 = vsel %vm5495_vm5, 1.0, %v6420_v12 }
 0x2da   :  { %10135 = vst [vmem:[#allocation9_spill] sm:$0xff] %v7018_v60 }
 0x312   :  { %v588_v9 = vpop.xlane.xlu1 %587 }
 0x313   :  { %v608_v34 = vmul.f32 %v588_v9, %v6589_v47 }
 0x315   :  { %v620_v42 = vadd.f32 1e-05, %v608_v34 }
 0x317   :  { %6120 = vrsqrt.f32 %v620_v42  ;;  %vm701_vm7 = vweird.f32 %v620_v42 }
 0x31a   :  { %v591_v46 = vpop.xlane.xlu2 %590 }
 0x31b   :  { %v609_v35 = vmul.f32 %v591_v46, %v6589_v47 }
 0x31d   :  { %v6121_v17 = vpop.eup %6120  ;;  %v621_v54 = vadd.f32 1e-05, %v609_v35 }
 0x31e   :  { %v696_v61 = vmul.f32 %v6121_v17, %v620_v42  ;;  %vm702_vm6 = vweird.f32 %v6121_v17 }
 0x31f   :  { %6122 = vrsqrt.f32 %v621_v54  ;;  %vm703_vm8 = vmor %vm701_vm7, %vm702_vm6  ;;  %vm711_vm10 = vweird.f32 %v621_v54 }
 0x320   :  { %v697_v27 = vmul.f32 %v6121_v17, %v696_v61 }
 0x322   :  { %v698_v18 = vmul.f32 0.5, %v697_v27  ;;  %v594_v63 = vpop.xlane.xlu0 %593 }
 0x323   :  { %v610_v4 = vmul.f32 %v594_v63, %v6589_v47 }
 0x324   :  { %v699_v48 = vsub.f32 1.5, %v698_v18 }
 0x325   :  { %v6123_v11 = vpop.eup %6122  ;;  %v622_v56 = vadd.f32 1e-05, %v610_v4  ;;  %v7055_v58 = vpop.f32.mrf.mxu1 }
 0x326   :  { %v706_v15 = vmul.f32 %v6123_v11, %v621_v54  ;;  %v700_v20 = vmul.f32 %v6121_v17, %v699_v48  ;;  %vm712_vm9 = vweird.f32 %v6123_v11 }
 0x327   :  { %6124 = vrsqrt.f32 %v622_v56  ;;  %vm713_vm11 = vmor %vm711_vm10, %vm712_vm9  ;;  %vm721_vm13 = vweird.f32 %v622_v56 }
 0x328   :  { %v707_v51 = vmul.f32 %v6123_v11, %v706_v15  ;;  %v704_v21 = vsel %vm703_vm8, %v6121_v17, %v700_v20  ;;  %v757_v20 = vsel %vm171_vm1, %v6690_v22, 0.0 }
 0x329   :  { %v752_v33 = vmul.f32 %v704_v21, %v6942_v5 }
 0x32a   :  { %v708_v19 = vmul.f32 0.5, %v707_v51  ;;  %v597_v3 = vpop.xlane.xlu1 %596  ;;  %v2003_v28 = vpop.xlane.xlu0 %2002 }
 0x32b   :  { %v611_v30 = vmul.f32 %v597_v3, %v6589_v47  ;;  %v2010_v24 = vmul.f32 %v2003_v28, %v6589_v47  ;;  %5442 = vmatmul.msk.f32.gmra.mxu1 %vm171_vm1, %v752_v33  ;;  %v6352_v33 = vld [vmem:[%s9951_s3] sm:$0xff] }
 0x32c   :  { %v709_v2 = vsub.f32 1.5, %v708_v19  ;;  %v7087_v19 = vperm.slane %v6352_v33, 3 }
 0x32d   :  { %v6125_v37 = vpop.eup %6124  ;;  %v623_v9 = vadd.f32 1e-05, %v611_v30  ;;  %v7062_v41 = vsub.f32 %v6969_v44, %v2010_v24  ;;  %v7064_v34 = vpop.f32.mrf.mxu1 }
 0x32e   :  { %v716_v5 = vmul.f32 %v6125_v37, %v622_v56  ;;  %v710_v10 = vmul.f32 %v6123_v11, %v709_v2  ;;  %vm722_vm12 = vweird.f32 %v6125_v37 }
 0x32f   :  { %6126 = vrsqrt.f32 %v623_v9  ;;  %v2016_v42 = vmul.f32 %v7062_v41, %v7062_v41  ;;  %vm723_vm14 = vmor %vm721_vm13, %vm722_vm12  ;;  %vm731_vm2 = vweird.f32 %v623_v9 }
 0x330   :  { %v717_v49 = vmul.f32 %v6125_v37, %v716_v5  ;;  %v714_v36 = vsel %vm713_vm11, %v6123_v11, %v710_v10  ;;  %v7099_v10 = vsel %vm5471_vm15, 1.0, %v6420_v12  ;;  %v760_v12 = vsel %vm171_vm1, %v6711_v39, 0.0 }
 0x331   :  { %v2019_v46 = vsel %vm171_vm1, %v2016_v42, 0.0  ;;  %v753_v35 = vmul.f32 %v714_v36, %v6950_v23 }
 0x332   :  { %v718_v50 = vmul.f32 0.5, %v717_v49  ;;  %v600_v17 = vpop.xlane.xlu2 %599  ;;  %v2006_v44 = vpop.xlane.xlu1 %2005  ;;  %2020 = vadd.xlane.f32.xlu0 %v2019_v46 }
 0x333   :  { %v612_v55 = vmul.f32 %v600_v17, %v6589_v47  ;;  %v2011_v54 = vmul.f32 %v2006_v44, %v6589_v47  ;;  %5443 = vmatmul.msk.f32.gmra.mxu1 %vm171_vm1, %v753_v35  ;;  %v766_v35 = vsel %vm171_vm1, %v6749_v31, 0.0 }
 0x334   :  { %v719_v61 = vsub.f32 1.5, %v718_v50  ;;  %v7115_v50 = vadd.f32 %v7064_v34, %v7087_v19 }
 0x335   :  { %v6127_v25 = vpop.eup %6126  ;;  %v624_v27 = vadd.f32 1e-05, %v612_v55  ;;  %v7074_v53 = vsub.f32 %v6983_v1, %v2011_v54  ;;  %v1089_v18 = vpop.f32.mrf.mxu1  ;;  %v7123_v55 = vadd.f32 %v7055_v58, %v7087_v19 }
 0x336   :  { %v726_v23 = vmul.f32 %v6127_v25, %v623_v9  ;;  %v720_v63 = vmul.f32 %v6125_v37, %v719_v61  ;;  %vm732_vm0 = vweird.f32 %v6127_v25  ;;  %v7102_v42 = vadd.f32 %v1089_v18, %v7087_v19  ;;  %10138 = vst [vmem:[#allocation12_spill] sm:$0xff] %v7115_v50 }
 0x337   :  { %6128 = vrsqrt.f32 %v624_v27  ;;  %v2017_v4 = vmul.f32 %v7074_v53, %v7074_v53  ;;  %vm733_vm3 = vmor %vm731_vm2, %vm732_vm0  ;;  %vm741_vm5 = vweird.f32 %v624_v27  ;;  %10139 = vst [vmem:[#allocation13_spill] sm:$0xff] %v7123_v55  ;;  %v2141_v34 = vmul.f32 %v7099_v10, %v7115_v50 }
 0x338   :  { %v727_v48 = vmul.f32 %v6127_v25, %v726_v23  ;;  %v724_v11 = vsel %vm723_vm14, %v6125_v37, %v720_v63  ;;  %10137 = vst [vmem:[#allocation11_spill] sm:$0xff] %v7102_v42  ;;  %v763_v61 = vsel %vm171_vm1, %v6732_v6, 0.0  ;;  %v2140_v58 = vmul.f32 %v7099_v10, %v7123_v55 }
 0x339   :  { %v2022_v15 = vsel %vm171_vm1, %v2017_v4, 0.0  ;;  %v754_v51 = vmul.f32 %v724_v11, %v6960_v43  ;;  %v772_v18 = vsel %vm171_vm1, %v6775_v59, 0.0 }
 0x33a   :  { %v728_v1 = vmul.f32 0.5, %v727_v48  ;;  %v2009_v21 = vpop.xlane.xlu2 %2008  ;;  %2023 = vadd.xlane.f32.xlu1 %v2022_v15  ;;  %758 = vadd.xlane.f32.xlu0 %v757_v20 }
 0x33b   :  { %v2012_v56 = vmul.f32 %v2009_v21, %v6589_v47  ;;  %5444 = vmatmul.msk.f32.gmra.mxu1 %vm171_vm1, %v754_v51 }
 0x33c   :  { %v729_v3 = vsub.f32 1.5, %v728_v1 }
 0x33d   :  { %v6129_v28 = vpop.eup %6128  ;;  %v7091_v43 = vsub.f32 %v6996_v52, %v2012_v56  ;;  %v1092_v30 = vpop.f32.mrf.mxu1 }
 0x33e   :  { %v736_v24 = vmul.f32 %v6129_v28, %v624_v27  ;;  %v7094_v2 = vadd.f32 %v1092_v30, %v7087_v19  ;;  %v730_v37 = vmul.f32 %v6127_v25, %v729_v3  ;;  %vm742_vm4 = vweird.f32 %v6129_v28 }
 0x33f   :  { %v2018_v5 = vmul.f32 %v7091_v43, %v7091_v43  ;;  %vm743_vm6 = vmor %vm741_vm5, %vm742_vm4  ;;  %v769_v27 = vsel %vm171_vm1, %v6762_v45, 0.0 }
 0x340   :  { %10136 = vst [vmem:[#allocation10_spill] sm:$0xff] %v7094_v2  ;;  %v737_v38 = vmul.f32 %v6129_v28, %v736_v24  ;;  %v2143_v52 = vmul.f32 %v7099_v10, %v7094_v2  ;;  %v734_v9 = vsel %vm733_vm3, %v6127_v25, %v730_v37 }
 0x341   :  { %v2025_v49 = vsel %vm171_vm1, %v2018_v5, 0.0  ;;  %v755_v36 = vmul.f32 %v734_v9, %v6972_v13  ;;  %v2142_v13 = vmul.f32 %v7099_v10, %v7102_v42 }
 0x342   :  { %v738_v46 = vmul.f32 0.5, %v737_v38  ;;  %2026 = vadd.xlane.f32.xlu2 %v2025_v49  ;;  %5579 = vmatpush.xpose.msk.msrb.mxu3 %vm171_vm1, %v2143_v52 }
 0x343   :  { %761 = vadd.xlane.f32.xlu1 %v760_v12  ;;  %767 = vadd.xlane.f32.xlu0 %v766_v35 }
 0x344   :  { %v739_v17 = vsub.f32 1.5, %v738_v46  ;;  %5445 = vmatmul.msk.f32.gmra.mxu1 %vm171_vm1, %v755_v36 }
 0x345   :  { %v1095_v23 = vpop.f32.mrf.mxu1 }
 0x346   :  { %5580 = vmatpush.xpose.msk.msrb.mxu3 %vm171_vm1, %v2142_v13  ;;  %v740_v44 = vmul.f32 %v6129_v28, %v739_v17  ;;  %v7170_v36 = vadd.f32 %v1095_v23, %v7087_v19 }
 0x348   :  { %v744_v54 = vsel %vm743_vm6, %v6129_v28, %v740_v44  ;;  %10143 = vst [vmem:[#allocation17_spill] sm:$0xff] %v7170_v36 }
 0x349   :  { %v756_v25 = vmul.f32 %v744_v54, %v6986_v62  ;;  %v775_v62 = vsel %vm171_vm1, %v6788_v7, 0.0 }
 0x34a   :  { %764 = vadd.xlane.f32.xlu2 %v763_v61  ;;  %5581 = vmatpush.xpose.msk.msrb.mxu3 %vm171_vm1, %v2141_v34 }
 0x34b   :  { %770 = vadd.xlane.f32.xlu1 %v769_v27  ;;  %v7183_v27 = vld [vmem:[%s9951_s3 + $0x10] sm:$0xff] }
 0x34c   :  { %5446 = vmatmul.msk.f32.gmra.mxu1 %vm171_vm1, %v756_v25  ;;  %v2156_v25 = vmul.f32 %v7018_v60, %v7170_v36 }
 0x34d   :  { %v1098_v63 = vpop.f32.mrf.mxu1 }
 0x34e   :  { %5582 = vmatpush.xpose.msk.msrb.mxu3 %vm171_vm1, %v2140_v58  ;;  %v7154_v30 = vadd.f32 %v1098_v63, %v7087_v19 }
 0x350   :  { %10142 = vst [vmem:[#allocation16_spill] sm:$0xff] %v7154_v30  ;;  %v2157_v12 = vmul.f32 %v7018_v60, %v7154_v30 }
 0x352   :  { %773 = vadd.xlane.f32.xlu2 %v772_v18 }
 0x353   :  { %776 = vadd.xlane.f32.xlu1 %v775_v62 }
 0x355   :  { %v1101_v4 = vpop.f32.mrf.mxu1 }
 0x356   :  { %v7146_v1 = vadd.f32 %v1101_v4, %v7087_v19 }
 0x358   :  { %10141 = vst [vmem:[#allocation15_spill] sm:$0xff] %v7146_v1  ;;  %v2158_v24 = vmul.f32 %v7018_v60, %v7146_v1 }
 0x3a5   :  { %v2021_v48 = vpop.xlane.xlu0 %2020 }
 0x3a6   :  { %v2028_v11 = vmul.f32 %v2021_v48, %v6589_v47 }
 0x3a8   :  { %v2031_v15 = vadd.f32 1e-05, %v2028_v11  ;;  %v1104_v20 = vpop.f32.mrf.mxu1  ;;  %v7197_v11 = vperm.slane %v7183_v27, 0 }
 0x3a9   :  { %v7143_v51 = vadd.f32 %v1104_v20, %v7087_v19 }
 0x3aa   :  { %6130 = vrsqrt.f32 %v2031_v15  ;;  %vm2040_vm8 = vweird.f32 %v2031_v15 }
 0x3ab   :  { %10140 = vst [vmem:[#allocation14_spill] sm:$0xff] %v7143_v51  ;;  %v2159_v21 = vmul.f32 %v7018_v60, %v7143_v51 }
 0x3ad   :  { %v2024_v56 = vpop.xlane.xlu1 %2023  ;;  %5601 = vmatpush.xpose.msk.msrb.mxu0 %vm171_vm1, %v2159_v21  ;;  %v759_v33 = vpop.xlane.xlu0 %758  ;;  %v2155_v21 = vmul.f32 %v7018_v60, %v7094_v2 }
 0x3ae   :  { %v2029_v3 = vmul.f32 %v2024_v56, %v6589_v47  ;;  %v793_v28 = vmul.f32 %v759_v33, %v6589_v47 }
 0x3b0   :  { %v6131_v37 = vpop.eup %6130  ;;  %v7158_v5 = vadd.f32 1e-05, %v2029_v3  ;;  %v7161_v38 = vsub.f32 %v6690_v22, %v793_v28  ;;  %v7163_v52 = vpop.f32.mrf.mxu1  ;;  %v7207_v3 = vperm.slane %v7183_v27, 1 }
 0x3b1   :  { %v2035_v9 = vmul.f32 %v6131_v37, %v2031_v15  ;;  %5602 = vmatpush.xpose.msk.msrb.mxu0 %vm171_vm1, %v2158_v24  ;;  %vm2041_vm7 = vweird.f32 %v6131_v37 }
 0x3b2   :  { %6132 = vrsqrt.f32 %v7158_v5  ;;  %v817_v49 = vmul.f32 %v7161_v38, %v7161_v38  ;;  %vm2042_vm9 = vmor %vm2040_vm8, %vm2041_vm7  ;;  %vm2050_vm11 = vweird.f32 %v7158_v5 }
 0x3b3   :  { %v2036_v46 = vmul.f32 %v6131_v37, %v2035_v9 }
 0x3b4   :  { %v829_v22 = vsel %vm171_vm1, %v817_v49, 0.0 }
 0x3b5   :  { %v2037_v35 = vmul.f32 0.5, %v2036_v46  ;;  %v2027_v17 = vpop.xlane.xlu2 %2026  ;;  %5603 = vmatpush.xpose.msk.msrb.mxu0 %vm171_vm1, %v2157_v12  ;;  %830 = vadd.xlane.f32.xlu0 %v829_v22  ;;  %v2154_v22 = vmul.f32 %v7018_v60, %v7102_v42 }
 0x3b6   :  { %v2030_v13 = vmul.f32 %v2027_v17, %v6589_v47  ;;  %v762_v44 = vpop.xlane.xlu1 %761  ;;  %v768_v34 = vpop.xlane.xlu0 %767 }
 0x3b7   :  { %v2038_v54 = vsub.f32 1.5, %v2037_v35  ;;  %v794_v61 = vmul.f32 %v762_v44, %v6589_v47  ;;  %v796_v48 = vmul.f32 %v768_v34, %v6589_v47 }
 0x3b8   :  { %v6133_v58 = vpop.eup %6132  ;;  %v7185_v18 = vadd.f32 1e-05, %v2030_v13  ;;  %v7187_v62 = vpop.f32.mrf.mxu1 }
 0x3b9   :  { %v2039_v23 = vmul.f32 %v6131_v37, %v2038_v54  ;;  %v2045_v63 = vmul.f32 %v6133_v58, %v7158_v5  ;;  %v7191_v4 = vsub.f32 %v6711_v39, %v794_v61  ;;  %5604 = vmatpush.xpose.msk.msrb.mxu0 %vm171_vm1, %v2156_v25  ;;  %v778_v39 = vsel %vm171_vm1, %v6816_v57, 0.0 }
 0x3ba   :  { %6134 = vrsqrt.f32 %v7185_v18  ;;  %v7210_v24 = vsub.f32 %v6749_v31, %v796_v48  ;;  %vm2051_vm10 = vweird.f32 %v6133_v58  ;;  %v2153_v25 = vmul.f32 %v7018_v60, %v7115_v50 }
 0x3bb   :  { %v2046_v15 = vmul.f32 %v6133_v58, %v2045_v63  ;;  %v818_v20 = vmul.f32 %v7191_v4, %v7191_v4  ;;  %v2043_v56 = vsel %vm2042_vm9, %v6131_v37, %v2039_v23  ;;  %vm2052_vm12 = vmor %vm2050_vm11, %vm2051_vm10  ;;  %vm2060_vm14 = vweird.f32 %v7185_v18 }
 0x3bc   :  { %v2064_v33 = vmul.f32 %v2043_v56, %v7062_v41  ;;  %v820_v61 = vmul.f32 %v7210_v24, %v7210_v24  ;;  %v781_v56 = vsel %vm171_vm1, %v6837_v29, 0.0 }
 0x3bd   :  { %v2047_v28 = vmul.f32 0.5, %v2046_v15  ;;  %v765_v9 = vpop.xlane.xlu2 %764  ;;  %v832_v49 = vsel %vm171_vm1, %v818_v20, 0.0  ;;  %5605 = vmatpush.xpose.msk.msrb.mxu0 %vm171_vm1, %v2155_v21  ;;  %779 = vadd.xlane.f32.xlu0 %v778_v39 }
 0x3be   :  { %v795_v37 = vmul.f32 %v765_v9, %v6589_v47  ;;  %833 = vadd.xlane.f32.xlu2 %v832_v49  ;;  %v771_v46 = vpop.xlane.xlu1 %770  ;;  %v2068_v12 = vmul.f32 %v7197_v11, %v2064_v33  ;;  %v838_v39 = vsel %vm171_vm1, %v820_v61, 0.0 }
 0x3bf   :  { %v2048_v41 = vsub.f32 1.5, %v2047_v28  ;;  %v797_v34 = vmul.f32 %v771_v46, %v6589_v47 }
 0x3c0   :  { %v6135_v35 = vpop.eup %6134  ;;  %v7220_v31 = vsub.f32 %v6732_v6, %v795_v37  ;;  %v7223_v17 = vadd.f32 %v7207_v3, %v2068_v12 }
 0x3c1   :  { %v2049_v13 = vmul.f32 %v6133_v58, %v2048_v41  ;;  %v2055_v44 = vmul.f32 %v6135_v35, %v7185_v18  ;;  %v1113_v54 = vpop.f32.mrf.mxu1  ;;  %5606 = vmatpush.xpose.msk.msrb.mxu0 %vm171_vm1, %v2154_v22  ;;  %v7239_v20 = vsub.f32 %v6762_v45, %v797_v34  ;;  %vm2061_vm13 = vweird.f32 %v6135_v35 }
 0x3c2   :  { %5573 = vmatmul.msk.f32.vlgmr.msra.gmra.mxu3 %vm171_vm1, %v7223_v17  ;;  %v819_v6 = vmul.f32 %v7220_v31, %v7220_v31  ;;  %v2152_v45 = vmul.f32 %v7018_v60, %v7123_v55  ;;  %vm2062_vm15 = vmor %vm2060_vm14, %vm2061_vm13  ;;  %v784_v41 = vsel %vm171_vm1, %v6857_v16, 0.0  ;;  %v7264_v22 = vadd.f32 %v1113_v54, %v7087_v19 }
 0x3c3   :  { %v2056_v5 = vmul.f32 %v6135_v35, %v2055_v44  ;;  %v2053_v23 = vsel %vm2052_vm12, %v6133_v58, %v2049_v13  ;;  %v821_v46 = vmul.f32 %v7239_v20, %v7239_v20 }
 0x3c4   :  { %v835_v63 = vsel %vm171_vm1, %v819_v6, 0.0  ;;  %v2065_v48 = vmul.f32 %v2053_v23, %v7074_v53  ;;  %10145 = vst [vmem:[#allocation19_spill] sm:$0xff] %v7264_v22  ;;  %v2138_v23 = vmul.f32 %v7023_v0, %v7264_v22 }
 0x3c5   :  { %v2057_v15 = vmul.f32 0.5, %v2056_v5  ;;  %v774_v21 = vpop.xlane.xlu2 %773  ;;  %836 = vadd.xlane.f32.xlu1 %v835_v63  ;;  %5607 = vmatpush.xpose.msk.msrb.mxu0 %vm171_vm1, %v2153_v25  ;;  %v841_v54 = vsel %vm171_vm1, %v821_v46, 0.0  ;;  %v787_v25 = vsel %vm171_vm1, %v6877_v14, 0.0  ;;  %v2150_v63 = vmul.f32 %v7099_v10, %v7264_v22 }
 0x3c6   :  { %782 = vadd.xlane.f32.xlu2 %v781_v56  ;;  %839 = vadd.xlane.f32.xlu0 %v838_v39  ;;  %v2069_v58 = vmul.f32 %v7197_v11, %v2065_v48  ;;  %v798_v53 = vmul.f32 %v774_v21, %v6589_v47  ;;  %v777_v28 = vpop.xlane.xlu1 %776  ;;  %v2174_v48 = vmul.f32 %v7026_v40, %v7264_v22  ;;  %v790_v56 = vsel %vm171_vm1, %v6897_v32, 0.0 }
 0x3c7   :  { %v2058_v33 = vsub.f32 1.5, %v2057_v15  ;;  %v799_v13 = vmul.f32 %v777_v28, %v6589_v47  ;;  %v2147_v28 = vmul.f32 %v7099_v10, %v7143_v51  ;;  %v2170_v46 = vmul.f32 %v7026_v40, %v7146_v1 }
 0x3c8   :  { %v7250_v9 = vadd.f32 %v7207_v3, %v2069_v58  ;;  %v7267_v18 = vsub.f32 %v6775_v59, %v798_v53 }
 0x3c9   :  { %v2059_v49 = vmul.f32 %v6135_v35, %v2058_v33  ;;  %v1116_v37 = vpop.f32.mrf.mxu1  ;;  %5608 = vmatpush.xpose.msk.msrb.mxu0 %vm171_vm1, %v2152_v45  ;;  %v2135_v45 = vmul.f32 %v7023_v0, %v7143_v51 }
 0x3ca   :  { %v7257_v12 = vadd.f32 %v1116_v37, %v7087_v19  ;;  %5574 = vmatmul.msk.f32.gmra.mxu3 %vm171_vm1, %v7250_v9  ;;  %v2134_v37 = vmul.f32 %v7023_v0, %v7146_v1 }
 0x3cb   :  { %v2063_v44 = vsel %vm2062_vm15, %v6135_v35, %v2059_v49  ;;  %v7281_v35 = vsub.f32 %v6788_v7, %v799_v13  ;;  %v822_v7 = vmul.f32 %v7267_v18, %v7267_v18  ;;  %v2171_v49 = vmul.f32 %v7026_v40, %v7143_v51 }
 0x3cc   :  { %10144 = vst [vmem:[#allocation18_spill] sm:$0xff] %v7257_v12  ;;  %v2139_v34 = vmul.f32 %v7023_v0, %v7257_v12  ;;  %v2151_v61 = vmul.f32 %v7099_v10, %v7257_v12  ;;  %v2175_v6 = vmul.f32 %v7026_v40, %v7257_v12  ;;  %v2066_v5 = vmul.f32 %v2063_v44, %v7091_v43 }
 0x3cd   :  { %785 = vadd.xlane.f32.xlu1 %v784_v41  ;;  %v7289_v43 = vadd.f32 %v7187_v62, %v7087_v19  ;;  %v823_v62 = vmul.f32 %v7281_v35, %v7281_v35  ;;  %v844_v15 = vsel %vm171_vm1, %v822_v7, 0.0  ;;  %v2133_v41 = vmul.f32 %v7023_v0, %v7154_v30 }
 0x3ce   :  { %842 = vadd.xlane.f32.xlu2 %v841_v54  ;;  %5583 = vmatpush.xpose.msk.msrb.mxu3 %vm171_vm1, %v2139_v34  ;;  %v2070_v59 = vmul.f32 %v7197_v11, %v2066_v5  ;;  %v2145_v13 = vmul.f32 %v7099_v10, %v7154_v30  ;;  %v2169_v44 = vmul.f32 %v7026_v40, %v7154_v30 }
 0x3cf   :  { %5609 = vmatpush.xpose.msk.msrb.mxu0 %vm171_vm1, %v2151_v61  ;;  %5623 = vmatpush.xpose.msk.msrb.mxu1 %vm171_vm1, %v2175_v6  ;;  %10146 = vst [vmem:[#allocation20_spill] sm:$0xff] %v7289_v43  ;;  %v2137_v21 = vmul.f32 %v7023_v0, %v7289_v43  ;;  %v2149_v39 = vmul.f32 %v7099_v10, %v7289_v43 }
 0x3d0   :  { %788 = vadd.xlane.f32.xlu0 %v787_v25  ;;  %v2074_v11 = vadd.f32 %v7207_v3, %v2070_v59  ;;  %v7307_v3 = vadd.f32 %v7163_v52, %v7087_v19  ;;  %v2173_v58 = vmul.f32 %v7026_v40, %v7289_v43  ;;  %v847_v19 = vsel %vm171_vm1, %v823_v62, 0.0 }
 0x3d1   :  { %v2132_v34 = vmul.f32 %v7023_v0, %v7170_v36  ;;  %v2168_v61 = vmul.f32 %v7026_v40, %v7170_v36  ;;  %v2131_v6 = vmul.f32 %v7023_v0, %v7094_v2  ;;  %v2167_v5 = vmul.f32 %v7026_v40, %v7094_v2 }
 0x3d2   :  { %5584 = vmatpush.xpose.msk.msrb.mxu3 %vm171_vm1, %v2138_v23  ;;  %10147 = vst [vmem:[#allocation21_spill] sm:$0xff] %v7307_v3  ;;  %v2136_v52 = vmul.f32 %v7023_v0, %v7307_v3  ;;  %v2148_v33 = vmul.f32 %v7099_v10, %v7307_v3  ;;  %v2172_v53 = vmul.f32 %v7026_v40, %v7307_v3 }
 0x3d3   :  { %5610 = vmatpush.xpose.msk.msrb.mxu0 %vm171_vm1, %v2150_v63  ;;  %5624 = vmatpush.xpose.msk.msrb.mxu1 %vm171_vm1, %v2174_v48  ;;  %v2130_v54 = vmul.f32 %v7023_v0, %v7102_v42  ;;  %v2166_v59 = vmul.f32 %v7026_v40, %v7102_v42  ;;  %v2129_v25 = vmul.f32 %v7023_v0, %v7115_v50 }
 0x3d4   :  { %5575 = vmatmul.msk.f32.gmra.mxu3 %vm171_vm1, %v2074_v11  ;;  %v2165_v23 = vmul.f32 %v7026_v40, %v7115_v50  ;;  %v2164_v7 = vmul.f32 %v7026_v40, %v7123_v55  ;;  %v2163_v63 = vmul.f32 %v7018_v60, %v7257_v12  ;;  %v2162_v48 = vmul.f32 %v7018_v60, %v7264_v22 }
 0x3d5   :  { %845 = vadd.xlane.f32.xlu1 %v844_v15  ;;  %v2161_v62 = vmul.f32 %v7018_v60, %v7289_v43  ;;  %v2160_v15 = vmul.f32 %v7018_v60, %v7307_v3 }
 0x3d6   :  { %791 = vadd.xlane.f32.xlu2 %v790_v56  ;;  %5585 = vmatpush.xpose.msk.msrb.mxu3 %vm171_vm1, %v2137_v21  ;;  %v1126_v21 = vld [vmem:[%s9954_s6 + $0x38] sm:$0xff]  ;;  %v1125_v56 = vld [vmem:[%s9954_s6 + $0x30] sm:$0xff] }
 0x3d7   :  { %5611 = vmatpush.xpose.msk.msrb.mxu0 %vm171_vm1, %v2149_v39  ;;  %5625 = vmatpush.xpose.msk.msrb.mxu1 %vm171_vm1, %v2173_v58  ;;  %v1124_v39 = vld [vmem:[%s9954_s6 + $0x28] sm:$0xff]  ;;  %v1123_v58 = vld [vmem:[%s9954_s6 + $0x20] sm:$0xff] }
 0x3d8   :  { %848 = vadd.xlane.f32.xlu0 %v847_v19  ;;  %1172 = vmatpush.msra.mxu2 %v1126_v21  ;;  %v1122_v19 = vld [vmem:[%s9954_s6 + $0x18] sm:$0xff] }
 0x3da   :  { %5586 = vmatpush.xpose.msk.msrb.mxu3 %vm171_vm1, %v2136_v52  ;;  %1173 = vmatpush.msra.mxu2 %v1125_v56  ;;  %v1121_v52 = vld [vmem:[%s9954_s6 + $0x10] sm:$0xff] }
 0x3db   :  { %5612 = vmatpush.xpose.msk.msrb.mxu0 %vm171_vm1, %v2148_v33  ;;  %5626 = vmatpush.xpose.msk.msrb.mxu1 %vm171_vm1, %v2172_v53  ;;  %v1120_v33 = vld [vmem:[%s9954_s6 + $0x8] sm:$0xff]  ;;  %v1119_v53 = vld [vmem:[%s9954_s6] sm:$0xff]  ;;  %s6421_s6 = smov 64  }
 0x3dc   :  { %5576 = vmatmul.msk.f32.gmra.mxu3 %vm171_vm1, %v7223_v17  ;;  %v2146_v17 = vmul.f32 %v7099_v10, %v7146_v1  ;;  %1174 = vmatpush.msra.mxu2 %v1124_v39 }
 0x3de   :  { %5587 = vmatpush.xpose.msk.msrb.mxu3 %vm171_vm1, %v2135_v45  ;;  %1175 = vmatpush.msra.mxu2 %v1123_v58 }
 0x3df   :  { %5613 = vmatpush.xpose.msk.msrb.mxu0 %vm171_vm1, %v2147_v28  ;;  %5627 = vmatpush.xpose.msk.msrb.mxu1 %vm171_vm1, %v2171_v49 }
 0x3e0   :  { %1176 = vmatpush.msra.mxu2 %v1122_v19 }
 0x3e2   :  { %5588 = vmatpush.xpose.msk.msrb.mxu3 %vm171_vm1, %v2134_v37  ;;  %1177 = vmatpush.msra.mxu2 %v1121_v52 }
 0x3e3   :  { %5614 = vmatpush.xpose.msk.msrb.mxu0 %vm171_vm1, %v2146_v17  ;;  %5628 = vmatpush.xpose.msk.msrb.mxu1 %vm171_vm1, %v2170_v46 }
 0x3e4   :  { %5577 = vmatmul.msk.f32.gmra.mxu3 %vm171_vm1, %v7250_v9  ;;  %v2144_v9 = vmul.f32 %v7099_v10, %v7170_v36  ;;  %1178 = vmatpush.msra.mxu2 %v1120_v33 }
 0x3e6   :  { %5589 = vmatpush.xpose.msk.msrb.mxu3 %vm171_vm1, %v2133_v41  ;;  %1179 = vmatpush.msra.mxu2 %v1119_v53 }
 0x3e7   :  { %5615 = vmatpush.xpose.msk.msrb.mxu0 %vm171_vm1, %v2145_v13  ;;  %5629 = vmatpush.xpose.msk.msrb.mxu1 %vm171_vm1, %v2169_v44 }
 0x3ea   :  { %5590 = vmatpush.xpose.msk.msrb.mxu3 %vm171_vm1, %v2132_v34 }
 0x3eb   :  { %5616 = vmatpush.xpose.msk.msrb.mxu0 %vm171_vm1, %v2144_v9  ;;  %5630 = vmatpush.xpose.msk.msrb.mxu1 %vm171_vm1, %v2168_v61 }
 0x3ec   :  { %5578 = vmatmul.msk.f32.gmra.mxu3 %vm171_vm1, %v2074_v11  ;;  %v2128_v11 = vmul.f32 %v7023_v0, %v7123_v55 }
 0x3ee   :  { %5591 = vmatpush.xpose.msk.msrb.mxu3 %vm171_vm1, %v2131_v6 }
 0x3ef   :  { %5631 = vmatpush.xpose.msk.msrb.mxu1 %vm171_vm1, %v2167_v5 }
 0x3f2   :  { %5592 = vmatpush.xpose.msk.msrb.mxu3 %vm171_vm1, %v2130_v54 }
 0x3f3   :  { %5632 = vmatpush.xpose.msk.msrb.mxu1 %vm171_vm1, %v2166_v59 }
 0x3f6   :  { %5593 = vmatpush.xpose.msk.msrb.mxu3 %vm171_vm1, %v2129_v25 }
 0x3f7   :  { %5633 = vmatpush.xpose.msk.msrb.mxu1 %vm171_vm1, %v2165_v23 }
 0x3fa   :  { %5594 = vmatpush.xpose.msk.msrb.mxu3 %vm171_vm1, %v2128_v11 }
 0x3fb   :  { %5634 = vmatpush.xpose.msk.msrb.mxu1 %vm171_vm1, %v2164_v7 }
 0x3ff   :  { %5635 = vmatpush.xpose.msk.msrb.mxu1 %vm171_vm1, %v2163_v63 }
 0x403   :  { %5636 = vmatpush.xpose.msk.msrb.mxu1 %vm171_vm1, %v2162_v48 }
 0x407   :  { %5637 = vmatpush.xpose.msk.msrb.mxu1 %vm171_vm1, %v2161_v62 }
 0x40b   :  { %5638 = vmatpush.xpose.msk.msrb.mxu1 %vm171_vm1, %v2160_v15 }
 0x428   :  { %v831_v45 = vpop.xlane.xlu0 %830 }
 0x429   :  { %v865_v28 = vmul.f32 %v831_v45, %v6589_v47 }
 0x42b   :  { %v877_v49 = vadd.f32 1e-05, %v865_v28 }
 0x42d   :  { %6136 = vrsqrt.f32 %v877_v49  ;;  %vm895_vm2 = vweird.f32 %v877_v49 }
 0x430   :  { %v780_v37 = vpop.xlane.xlu0 %779 }
 0x431   :  { %v834_v17 = vpop.xlane.xlu2 %833  ;;  %v800_v46 = vmul.f32 %v780_v37, %v6589_v47 }
 0x432   :  { %v866_v41 = vmul.f32 %v834_v17, %v6589_v47 }
 0x433   :  { %v6137_v13 = vpop.eup %6136  ;;  %v7437_v44 = vsub.f32 %v6816_v57, %v800_v46 }
 0x434   :  { %v890_v34 = vmul.f32 %v6137_v13, %v877_v49  ;;  %v878_v9 = vadd.f32 1e-05, %v866_v41  ;;  %vm896_vm0 = vweird.f32 %v6137_v13 }
 0x435   :  { %v824_v61 = vmul.f32 %v7437_v44, %v7437_v44  ;;  %vm897_vm3 = vmor %vm895_vm2, %vm896_vm0 }
 0x436   :  { %v891_v6 = vmul.f32 %v6137_v13, %v890_v34  ;;  %6138 = vrsqrt.f32 %v878_v9  ;;  %vm905_vm5 = vweird.f32 %v878_v9 }
 0x437   :  { %v850_v5 = vsel %vm171_vm1, %v824_v61, 0.0 }
 0x438   :  { %v892_v54 = vmul.f32 0.5, %v891_v6  ;;  %v837_v59 = vpop.xlane.xlu1 %836  ;;  %851 = vadd.xlane.f32.xlu1 %v850_v5 }
 0x439   :  { %v783_v25 = vpop.xlane.xlu2 %782  ;;  %v867_v23 = vmul.f32 %v837_v59, %v6589_v47  ;;  %v840_v11 = vpop.xlane.xlu0 %839 }
 0x43a   :  { %v893_v7 = vsub.f32 1.5, %v892_v54  ;;  %v801_v57 = vmul.f32 %v783_v25, %v6589_v47  ;;  %v868_v63 = vmul.f32 %v840_v11, %v6589_v47 }
 0x43b   :  { %v7445_v48 = vadd.f32 1e-05, %v867_v23 }
 0x43c   :  { %v6139_v62 = vpop.eup %6138  ;;  %v7448_v15 = vsub.f32 %v6837_v29, %v801_v57  ;;  %v7450_v21 = vadd.f32 1e-05, %v868_v63  ;;  %v894_v56 = vmul.f32 %v6137_v13, %v893_v7 }
 0x43d   :  { %v900_v39 = vmul.f32 %v6139_v62, %v878_v9  ;;  %6140 = vrsqrt.f32 %v7445_v48  ;;  %vm906_vm4 = vweird.f32 %v6139_v62  ;;  %vm915_vm8 = vweird.f32 %v7445_v48 }
 0x43e   :  { %6142 = vrsqrt.f32 %v7450_v21  ;;  %v825_v58 = vmul.f32 %v7448_v15, %v7448_v15  ;;  %v898_v19 = vsel %vm897_vm3, %v6137_v13, %v894_v56  ;;  %vm907_vm6 = vmor %vm905_vm5, %vm906_vm4  ;;  %vm925_vm11 = vweird.f32 %v7450_v21 }
 0x43f   :  { %v901_v52 = vmul.f32 %v6139_v62, %v900_v39  ;;  %v1009_v33 = vmul.f32 %v898_v19, %v7161_v38  ;;  %v7465_v38 = vperm.slane %v7183_v27, 2 }
 0x440   :  { %v853_v53 = vsel %vm171_vm1, %v825_v58, 0.0  ;;  %v786_v29 = vpop.xlane.xlu1 %785 }
 0x441   :  { %v902_v45 = vmul.f32 0.5, %v901_v52  ;;  %854 = vadd.xlane.f32.xlu2 %v853_v53  ;;  %v843_v28 = vpop.xlane.xlu2 %842  ;;  %v802_v49 = vmul.f32 %v786_v29, %v6589_v47  ;;  %5447 = vmatmul.msk.f32.vlgmr.msra.gmra.mxu2 %vm171_vm1, %v1009_v33 }
 0x442   :  { %v869_v37 = vmul.f32 %v843_v28, %v6589_v47 }
 0x443   :  { %v6141_v17 = vpop.eup %6140  ;;  %v903_v46 = vsub.f32 1.5, %v902_v45  ;;  %v7462_v41 = vsub.f32 %v6857_v16, %v802_v49  ;;  %v789_v13 = vpop.xlane.xlu0 %788 }
 0x444   :  { %v7467_v34 = vpop.eup %6142  ;;  %v910_v61 = vmul.f32 %v6141_v17, %v7445_v48  ;;  %v7470_v6 = vadd.f32 1e-05, %v869_v37  ;;  %v803_v5 = vmul.f32 %v789_v13, %v6589_v47  ;;  %vm916_vm7 = vweird.f32 %v6141_v17 }
 0x445   :  { %v920_v54 = vmul.f32 %v7467_v34, %v7450_v21  ;;  %v2110_v59 = vpop.f32.mrf.mxu3  ;;  %v826_v16 = vmul.f32 %v7462_v41, %v7462_v41  ;;  %v904_v25 = vmul.f32 %v6139_v62, %v903_v46  ;;  %vm917_vm9 = vmor %vm915_vm8, %vm916_vm7  ;;  %vm926_vm10 = vweird.f32 %v7467_v34 }
 0x446   :  { %v911_v27 = vmul.f32 %v6141_v17, %v910_v61  ;;  %6144 = vrsqrt.f32 %v7470_v6  ;;  %v7479_v23 = vsub.f32 %v6877_v14, %v803_v5  ;;  %v2111_v7 = vadd.f32 %v2110_v59, %v7465_v38  ;;  %vm927_vm12 = vmor %vm925_vm11, %vm926_vm10 }
 0x447   :  { %v921_v11 = vmul.f32 %v7467_v34, %v920_v54  ;;  %v856_v9 = vsel %vm171_vm1, %v826_v16, 0.0  ;;  %v908_v57 = vsel %vm907_vm6, %v6139_v62, %v904_v25  ;;  %vm935_vm14 = vweird.f32 %v7470_v6 }
 0x448   :  { %v912_v63 = vmul.f32 0.5, %v911_v27  ;;  %v846_v56 = vpop.xlane.xlu1 %845  ;;  %857 = vadd.xlane.f32.xlu0 %v856_v9  ;;  %v827_v39 = vmul.f32 %v7479_v23, %v7479_v23  ;;  %v1010_v58 = vmul.f32 %v908_v57, %v7191_v4  ;;  %5595 = vmatmul.msk.f32.vlgmr.msrb.gmra.mxu3 %vm171_vm1, %v2111_v7 }
 0x449   :  { %v922_v19 = vmul.f32 0.5, %v921_v11  ;;  %v792_v52 = vpop.xlane.xlu2 %791  ;;  %v870_v14 = vmul.f32 %v846_v56, %v6589_v47  ;;  %5617 = vmatmul.msk.f32.vlgmr.msrb.gmra.mxu0 %vm171_vm1, %v2111_v7  ;;  %5639 = vmatmul.msk.f32.vlgmr.msrb.gmra.mxu1 %vm171_vm1, %v2111_v7 }
 0x44a   :  { %v913_v33 = vsub.f32 1.5, %v912_v63  ;;  %v804_v53 = vmul.f32 %v792_v52, %v6589_v47  ;;  %v859_v62 = vsel %vm171_vm1, %v827_v39, 0.0  ;;  %5448 = vmatmul.msk.f32.gmra.mxu2 %vm171_vm1, %v1010_v58  ;;  %v5840_v58 = vpack.i.bf16 %v7018_v60, %v7099_v10 }
 0x44b   :  { %v7494_v29 = vadd.f32 1e-05, %v870_v14  ;;  %860 = vadd.xlane.f32.xlu1 %v859_v62  ;;  %v849_v4 = vpop.xlane.xlu0 %848  ;;  %v923_v46 = vsub.f32 1.5, %v922_v19 }
 0x44c   :  { %v6145_v45 = vpop.eup %6144  ;;  %v7498_v28 = vsub.f32 %v6897_v32, %v804_v53  ;;  %v871_v49 = vmul.f32 %v849_v4, %v6589_v47  ;;  %v914_v37 = vmul.f32 %v6141_v17, %v913_v33 }
 0x44d   :  { %v930_v13 = vmul.f32 %v6145_v45, %v7470_v6  ;;  %6146 = vrsqrt.f32 %v7494_v29  ;;  %v2113_v61 = vpop.f32.mrf.mxu3  ;;  %v924_v11 = vmul.f32 %v7467_v34, %v923_v46  ;;  %vm936_vm13 = vweird.f32 %v6145_v45 }
 0x44e   :  { %v7503_v5 = vadd.f32 1e-05, %v871_v49  ;;  %v2114_v54 = vadd.f32 %v2113_v61, %v7465_v38  ;;  %v828_v48 = vmul.f32 %v7498_v28, %v7498_v28  ;;  %v918_v59 = vsel %vm917_vm9, %v6141_v17, %v914_v37  ;;  %vm937_vm15 = vmor %vm935_vm14, %vm936_vm13 }
 0x44f   :  { %v931_v32 = vmul.f32 %v6145_v45, %v930_v13  ;;  %v1011_v16 = vmul.f32 %v918_v59, %v7220_v31  ;;  %v928_v57 = vsel %vm927_vm12, %v7467_v34, %v924_v11  ;;  %vm945_vm2 = vweird.f32 %v7494_v29 }
 0x450   :  { %v862_v25 = vsel %vm171_vm1, %v828_v48, 0.0  ;;  %6148 = vrsqrt.f32 %v7503_v5  ;;  %5596 = vmatmul.msk.f32.gmra.mxu3 %vm171_vm1, %v2114_v54  ;;  %v1012_v19 = vmul.f32 %v928_v57, %v7210_v24  ;;  %v5865_v13 = vpack.i.bf16 %v7023_v0, %v7026_v40 }
 0x451   :  { %863 = vadd.xlane.f32.xlu2 %v862_v25  ;;  %v932_v27 = vmul.f32 0.5, %v931_v32  ;;  %5618 = vmatmul.msk.f32.gmra.mxu0 %vm171_vm1, %v2114_v54  ;;  %v5870_v61 = vpack.i.bf16 %v7026_v40, %v7018_v60  ;;  %vm955_vm5 = vweird.f32 %v7503_v5  ;;  %v1808_v25 = vadd.s32 256, %v7006_v26 }
 0x452   :  { %5640 = vmatmul.msk.f32.gmra.mxu1 %vm171_vm1, %v2114_v54  ;;  %5449 = vmatmul.msk.f32.gmra.mxu2 %vm171_vm1, %v1011_v16  ;;  %vm1893_vm9 = vcmp.ge.s32.totalorder %v7006_v26, 96  ;;  %v7594_v57 = vpack.i.bf16 %v7018_v60, %v7018_v60 }
 0x453   :  { %v6147_v17 = vpop.eup %6146  ;;  %v933_v7 = vsub.f32 1.5, %v932_v27  ;;  %vm1910_vm8 = vcmp.ge.s32.totalorder %v1808_v25, 288 }
 0x454   :  { %v940_v31 = vmul.f32 %v6147_v17, %v7494_v29  ;;  %vm946_vm0 = vweird.f32 %v6147_v17  ;;  %v1913_v11 = vsel %vm1910_vm8, 1, %v6419_v8 }
 0x455   :  { %v934_v21 = vmul.f32 %v6145_v45, %v933_v7  ;;  %vm947_vm3 = vmor %vm945_vm2, %vm946_vm0  ;;  %v1896_v7 = vsel %vm1893_vm9, 1, %v6419_v8 }
 0x456   :  { %v941_v9 = vmul.f32 %v6147_v17, %v940_v31  ;;  %v6149_v63 = vpop.eup %6148  ;;  %v1916_v31 = vadd.s32 2, %v1913_v11 }
 0x457   :  { %v2116_v56 = vpop.f32.mrf.mxu3  ;;  %v950_v14 = vmul.f32 %v6149_v63, %v7503_v5  ;;  %v938_v33 = vsel %vm937_vm15, %v6145_v45, %v934_v21  ;;  %vm956_vm4 = vweird.f32 %v6149_v63  ;;  %v7567_v5 = vpack.i.bf16 %v7026_v40, %v7099_v10 }
 0x458   :  { %v2117_v39 = vadd.f32 %v2116_v56, %v7465_v38  ;;  %v942_v52 = vmul.f32 0.5, %v941_v9  ;;  %v1013_v4 = vmul.f32 %v938_v33, %v7239_v20  ;;  %vm957_vm6 = vmor %vm955_vm5, %vm956_vm4  ;;  %v1917_v56 = vmul.u32 96, %v1896_v7 }
 0x459   :  { %v951_v34 = vmul.f32 %v6149_v63, %v950_v14 }
 0x45a   :  { %5597 = vmatmul.msk.f32.gmra.mxu3 %vm171_vm1, %v2117_v39  ;;  %5619 = vmatmul.msk.f32.gmra.mxu0 %vm171_vm1, %v2117_v39  ;;  %v943_v24 = vsub.f32 1.5, %v942_v52  ;;  %v7602_v14 = vsub.s32 %v7006_v26, %v1917_v56 }
 0x45b   :  { %5641 = vmatmul.msk.f32.gmra.mxu1 %vm171_vm1, %v2117_v39  ;;  %5450 = vmatmul.msk.f32.gmra.mxu2 %vm171_vm1, %v1012_v19  ;;  %v952_v49 = vmul.f32 0.5, %v951_v34 }
 0x45c   :  { %5841 = vrot.lane.b32.xlu0 %v5840_v58, %s6421_s6  ;;  %v944_v37 = vmul.f32 %v6147_v17, %v943_v24  ;;  %vm1923_vm14 = vcmp.ge.s32.totalorder %v7602_v14, 16  ;;  %vm1929_vm15 = vcmp.ge.s32.totalorder %v7602_v14, 32 }
 0x45d   :  { %v953_v6 = vsub.f32 1.5, %v952_v49 }
 0x45e   :  { %v948_v20 = vsel %vm947_vm3, %v6147_v17, %v944_v37  ;;  %vm1938_vm3 = vcmp.ge.s32.totalorder %v7602_v14, 48 }
 0x45f   :  { %v2119_v53 = vpop.f32.mrf.mxu3  ;;  %v1014_v54 = vmul.f32 %v948_v20, %v7267_v18  ;;  %v954_v29 = vmul.f32 %v6149_v63, %v953_v6  ;;  %v5860_v18 = vpack.i.bf16 %v7018_v60, %v7023_v0 }
 0x460   :  { %v2120_v62 = vadd.f32 %v2119_v53, %v7465_v38 }
 0x461   :  { %v958_v48 = vsel %vm957_vm6, %v6149_v63, %v954_v29  ;;  %v1919_v63 = vmul.u32 96, %v1916_v31  ;;  %v1941_v29 = vsel %vm1938_vm3, 1, %v6419_v8  ;;  %vm1947_vm6 = vcmp.ge.s32.totalorder %v7602_v14, 64 }
 0x462   :  { %5598 = vmatmul.msk.f32.gmra.mxu3 %vm171_vm1, %v2120_v62  ;;  %5620 = vmatmul.msk.f32.gmra.mxu0 %vm171_vm1, %v2120_v62  ;;  %v1015_v16 = vmul.f32 %v958_v48, %v7281_v35  ;;  %v5890_v35 = vpack.i.bf16 %v7099_v10, %v7023_v0  ;;  %v1950_v11 = vsel %vm1947_vm6, 1, %v6419_v8 }
 0x463   :  { %5642 = vmatmul.msk.f32.gmra.mxu1 %vm171_vm1, %v2120_v62  ;;  %5451 = vmatmul.msk.f32.gmra.mxu2 %vm171_vm1, %v1013_v4  ;;  %v7599_v52 = vsub.s32 %v1808_v25, %v1919_v63  ;;  %v1926_v62 = vsel %vm1923_vm14, 1, %v6419_v8  ;;  %v1932_v4 = vsel %vm1929_vm15, 1, %v6419_v8 }
 0x464   :  { %5846 = vrot.lane.b32.xlu1 %v5840_v58, %s6421_s6  ;;  %5856 = vrot.lane.b32.xlu0 %v5840_v58, %s6421_s6 }
 0x465   :  { %vm1925_vm12 = vcmp.ge.s32.totalorder %v7599_v52, 16  ;;  %vm1931_vm13 = vcmp.ge.s32.totalorder %v7599_v52, 32  ;;  %vm1940_vm2 = vcmp.ge.s32.totalorder %v7599_v52, 48  ;;  %vm1949_vm5 = vcmp.ge.s32.totalorder %v7599_v52, 64 }
 0x466   :  { %v1934_v33 = vsel %vm1931_vm13, 1, %v6419_v8  ;;  %vm1958_vm9 = vcmp.ge.s32.totalorder %v7599_v52, 80 }
 0x467   :  { %v2122_v45 = vpop.f32.mrf.mxu3 }
 0x468   :  { %v2123_v46 = vadd.f32 %v2122_v45, %v7465_v38 }
 0x469   :  { %5851 = vrot.lane.b32.xlu2 %v5840_v58, %s6421_s6 }
 0x46a   :  { %5599 = vmatmul.msk.f32.gmra.mxu3 %vm171_vm1, %v2123_v46  ;;  %5621 = vmatmul.msk.f32.gmra.mxu0 %vm171_vm1, %v2123_v46 }
 0x46b   :  { %5643 = vmatmul.msk.f32.gmra.mxu1 %vm171_vm1, %v2123_v46  ;;  %5452 = vmatmul.msk.f32.gmra.mxu2 %vm171_vm1, %v1014_v54  ;;  %v1943_v46 = vsel %vm1940_vm2, 1, %v6419_v8  ;;  %v1935_v54 = vadd.s32 %v1932_v4, %v1926_v62 }
 0x46c   :  { %5866 = vrot.lane.b32.xlu1 %v5865_v13, %s6421_s6  ;;  %5871 = vrot.lane.b32.xlu0 %v5870_v61, %s6421_s6 }
 0x46d   :  { %v1944_v25 = vadd.s32 %v1941_v29, %v1935_v54 }
 0x46f   :  { %v2125_v59 = vpop.f32.mrf.mxu3 }
 0x470   :  { %v2126_v32 = vadd.f32 %v2125_v59, %v7465_v38  ;;  %v1807_v38 = vadd.s32 128, %v7006_v26  ;;  %v1928_v26 = vsel %vm1925_vm12, 1, %v6419_v8 }
 0x471   :  { %5861 = vrot.lane.b32.xlu2 %v5860_v18, %s6421_s6  ;;  %v1937_v45 = vadd.s32 %v1934_v33, %v1928_v26 }
 0x472   :  { %5600 = vmatmul.msk.f32.gmra.mxu3 %vm171_vm1, %v2126_v32  ;;  %5622 = vmatmul.msk.f32.gmra.mxu0 %vm171_vm1, %v2126_v32  ;;  %vm1900_vm7 = vcmp.ge.s32.totalorder %v1807_v38, 192 }
 0x473   :  { %5644 = vmatmul.msk.f32.gmra.mxu1 %vm171_vm1, %v2126_v32  ;;  %5453 = vmatmul.msk.f32.gmra.mxu2 %vm171_vm1, %v1015_v16  ;;  %v1903_v27 = vsel %vm1900_vm7, 1, %v6419_v8  ;;  %v1946_v32 = vadd.s32 %v1943_v46, %v1937_v45 }
 0x474   :  { %5881 = vrot.lane.b32.xlu1 %v5865_v13, %s6421_s6  ;;  %5886 = vrot.lane.b32.xlu0 %v5870_v61, %s6421_s6  ;;  %v1906_v17 = vadd.s32 1, %v1903_v27 }
 0x476   :  { %v1918_v9 = vmul.u32 96, %v1906_v17 }
 0x478   :  { %v1921_v58 = vsub.s32 %v1807_v38, %v1918_v9  ;;  %v1952_v38 = vsel %vm1949_vm5, 1, %v6419_v8 }
 0x479   :  { %5876 = vrot.lane.b32.xlu2 %v5860_v18, %s6421_s6  ;;  %v1955_v56 = vadd.s32 %v1952_v38, %v1946_v32  ;;  %v9961_v32 = vmov -1e+30  }
 0x47a   :  { %vm1924_vm10 = vcmp.ge.s32.totalorder %v1921_v58, 16  ;;  %vm1930_vm11 = vcmp.ge.s32.totalorder %v1921_v58, 32  ;;  %vm1939_vm0 = vcmp.ge.s32.totalorder %v1921_v58, 48  ;;  %vm1948_vm4 = vcmp.ge.s32.totalorder %v1921_v58, 64 }
 0x47b   :  { %v1927_v24 = vsel %vm1924_vm10, 1, %v6419_v8  ;;  %v1933_v34 = vsel %vm1930_vm11, 1, %v6419_v8  ;;  %v1942_v20 = vsel %vm1939_vm0, 1, %v6419_v8  ;;  %v1951_v59 = vsel %vm1948_vm4, 1, %v6419_v8 }
 0x47c   :  { %5896 = vrot.lane.b32.xlu1 %v5865_v13, %s6421_s6  ;;  %5901 = vrot.lane.b32.xlu0 %v7567_v5, %s6421_s6  ;;  %v1936_v6 = vadd.s32 %v1933_v34, %v1927_v24  ;;  %vm1957_vm7 = vcmp.ge.s32.totalorder %v1921_v58, 80  ;;  %vm1956_vm10 = vcmp.ge.s32.totalorder %v7602_v14, 80  ;;  %v1953_v24 = vadd.s32 %v1950_v11, %v1944_v25 }
 0x47d   :  { %v1960_v63 = vsel %vm1957_vm7, 1, %v6419_v8  ;;  %v1961_v14 = vsel %vm1958_vm9, 1, %v6419_v8  ;;  %v1959_v26 = vsel %vm1956_vm10, 1, %v6419_v8 }
 0x47e   :  { %v1945_v48 = vadd.s32 %v1942_v20, %v1936_v6  ;;  %v7650_v6 = vadd.s32 %v1959_v26, %v1953_v24 }
 0x480   :  { %v1954_v9 = vadd.s32 %v1951_v59, %v1945_v48  ;;  %vm5555_vm0 = vcmp.eq.s32.totalorder %v7650_v6, 0  ;;  %vm5567_vm6 = vcmp.eq.s32.totalorder %v7650_v6, 4  ;;  %vm5558_vm9 = vcmp.eq.s32.totalorder %v7650_v6, 1 }
 0x481   :  { %5891 = vrot.lane.b32.xlu2 %v5890_v35, %s6421_s6  ;;  %v7680_v38 = vsel %vm5555_vm0, 0.0, %v9961_v32 }
 0x482   :  { %v7645_v4 = vadd.s32 %v1960_v63, %v1954_v9  ;;  %10150 = vst [vmem:[#allocation24_spill] sm:$0xff] %v7680_v38 }
 0x484   :  { %5906 = vrot.lane.b32.xlu1 %v5890_v35, %s6421_s6  ;;  %5911 = vrot.lane.b32.xlu0 %v5865_v13, %s6421_s6  ;;  %vm5556_vm13 = vcmp.eq.s32.totalorder %v7645_v4, 0  ;;  %vm5568_vm3 = vcmp.eq.s32.totalorder %v7645_v4, 4  ;;  %vm5562_vm0 = vcmp.eq.s32.totalorder %v7645_v4, 2 }
 0x48c   :  { %5916 = vrot.lane.b32.xlu1 %v7567_v5, %s6421_s6  ;;  %5921 = vrot.lane.b32.xlu0 %v5890_v35, %s6421_s6 }
 0x494   :  { %5926 = vrot.lane.b32.xlu1 %v5865_v13, %s6421_s6  ;;  %5931 = vrot.lane.b32.xlu0 %v7567_v5, %s6421_s6 }
 0x49c   :  { %5936 = vrot.lane.b32.xlu0 %v5890_v35, %s6421_s6 }
 0x4a4   :  { %5941 = vrot.lane.b32.xlu0 %v5865_v13, %s6421_s6 }
 0x4ab   :  { %v852_v39 = vpop.xlane.xlu1 %851 }
 0x4ac   :  { %v872_v19 = vmul.f32 %v852_v39, %v6589_v47  ;;  %5951 = vrot.lane.b32.xlu0 %v7594_v57, %s6421_s6 }
 0x4ae   :  { %v884_v21 = vadd.f32 1e-05, %v872_v19 }
 0x4b0   :  { %6150 = vrsqrt.f32 %v884_v21  ;;  %vm965_vm11 = vweird.f32 %v884_v21 }
 0x4b4   :  { %v855_v53 = vpop.xlane.xlu2 %854 }
 0x4b5   :  { %v873_v49 = vmul.f32 %v855_v53, %v6589_v47 }
 0x4b6   :  { %v6151_v37 = vpop.eup %6150 }
 0x4b7   :  { %v960_v13 = vmul.f32 %v6151_v37, %v884_v21  ;;  %v7619_v61 = vadd.f32 1e-05, %v873_v49  ;;  %vm966_vm8 = vweird.f32 %v6151_v37  ;;  %v7648_v49 = vadd.s32 %v1961_v14, %v1955_v56 }
 0x4b8   :  { %vm967_vm12 = vmor %vm965_vm11, %vm966_vm8  ;;  %vm5559_vm8 = vcmp.eq.s32.totalorder %v7645_v4, 1 }
 0x4b9   :  { %v961_v18 = vmul.f32 %v6151_v37, %v960_v13  ;;  %6152 = vrsqrt.f32 %v7619_v61  ;;  %vm5557_vm15 = vcmp.eq.s32.totalorder %v7648_v49, 0  ;;  %vm975_vm2 = vweird.f32 %v7619_v61 }
 0x4ba   :  { %vm5569_vm4 = vcmp.eq.s32.totalorder %v7648_v49, 4  ;;  %v7690_v9 = vsel %vm5557_vm15, 0.0, %v9961_v32 }
 0x4bb   :  { %v962_v16 = vmul.f32 0.5, %v961_v18  ;;  %v858_v35 = vpop.xlane.xlu0 %857  ;;  %10152 = vst [vmem:[#allocation26_spill] sm:$0xff] %v7690_v9 }
 0x4bc   :  { %v874_v27 = vmul.f32 %v858_v35, %v6589_v47 }
 0x4bd   :  { %v963_v17 = vsub.f32 1.5, %v962_v16  ;;  %v7671_v16 = vsel %vm5556_vm13, 0.0, %v9961_v32 }
 0x4be   :  { %v861_v31 = vpop.xlane.xlu1 %860  ;;  %v7631_v7 = vadd.f32 1e-05, %v874_v27  ;;  %10148 = vst [vmem:[#allocation22_spill] sm:$0xff] %v7671_v16  ;;  %v7683_v27 = vsel %vm5569_vm4, 0.0, %v9961_v32 }
 0x4bf   :  { %v6153_v39 = vpop.eup %6152  ;;  %v875_v58 = vmul.f32 %v861_v31, %v6589_v47  ;;  %v964_v19 = vmul.f32 %v6151_v37, %v963_v17  ;;  %10151 = vst [vmem:[#allocation25_spill] sm:$0xff] %v7683_v27 }
 0x4c0   :  { %v970_v34 = vmul.f32 %v6153_v39, %v7619_v61  ;;  %6154 = vrsqrt.f32 %v7631_v7  ;;  %vm976_vm14 = vweird.f32 %v6153_v39  ;;  %v7675_v61 = vsel %vm5568_vm3, 0.0, %v9961_v32 }
 0x4c1   :  { %v7642_v33 = vadd.f32 1e-05, %v875_v58  ;;  %v968_v53 = vsel %vm967_vm12, %v6151_v37, %v964_v19  ;;  %vm977_vm5 = vmor %vm975_vm2, %vm976_vm14  ;;  %10149 = vst [vmem:[#allocation23_spill] sm:$0xff] %v7675_v61  ;;  %vm985_vm10 = vweird.f32 %v7631_v7  ;;  %vm5560_vm12 = vcmp.eq.s32.totalorder %v7648_v49, 1 }
 0x4c2   :  { %v971_v21 = vmul.f32 %v6153_v39, %v970_v34  ;;  %v1016_v62 = vmul.f32 %v968_v53, %v7437_v44  ;;  %v7707_v34 = vsel %vm5567_vm6, 0.0, %v9961_v32  ;;  %vm5561_vm2 = vcmp.eq.s32.totalorder %v7650_v6, 2 }
 0x4c3   :  { %6156 = vrsqrt.f32 %v7642_v33  ;;  %10153 = vst [vmem:[#allocation27_spill] sm:$0xff] %v7707_v34  ;;  %vm995_vm14 = vweird.f32 %v7642_v33  ;;  %vm5563_vm3 = vcmp.eq.s32.totalorder %v7648_v49, 2  ;;  %vm5565_vm6 = vcmp.eq.s32.totalorder %v7645_v4, 3 }
 0x4c4   :  { %v972_v20 = vmul.f32 0.5, %v971_v21  ;;  %v864_v45 = vpop.xlane.xlu2 %863  ;;  %v7652_v52 = vpop.f32.mrf.mxu2  ;;  %5454 = vmatmul.msk.f32.gmra.mxu2 %vm171_vm1, %v1016_v62 }
 0x4c5   :  { %v876_v8 = vmul.f32 %v864_v45, %v6589_v47 }
 0x4c6   :  { %v6155_v37 = vpop.eup %6154  ;;  %v973_v46 = vsub.f32 1.5, %v972_v20  ;;  %v2438_v44 = vpop.f32.mrf.mxu0 }
 0x4c7   :  { %v980_v13 = vmul.f32 %v6155_v37, %v7631_v7  ;;  %v7658_v54 = vadd.f32 1e-05, %v876_v8  ;;  %v2473_v29 = vpop.f32.mrf.mxu1  ;;  %v7694_v58 = vadd.f32 %v2438_v44, %v7671_v16  ;;  %vm986_vm7 = vweird.f32 %v6155_v37 }
 0x4c8   :  { %v974_v18 = vmul.f32 %v6153_v39, %v973_v46  ;;  %v7713_v26 = vadd.f32 %v2473_v29, %v7690_v9  ;;  %vm987_vm11 = vmor %vm985_vm10, %vm986_vm7  ;;  %v7731_v29 = vsel %vm5558_vm9, 0.0, %v9961_v32  ;;  %vm5564_vm7 = vcmp.eq.s32.totalorder %v7650_v6, 3 }
 0x4c9   :  { %v7665_v48 = vpop.eup %6156  ;;  %v981_v59 = vmul.f32 %v6155_v37, %v980_v13  ;;  %6158 = vrsqrt.f32 %v7658_v54  ;;  %v7726_v13 = vsel %vm5559_vm8, 0.0, %v9961_v32  ;;  %10156 = vst [vmem:[#allocation30_spill] sm:$0xff] %v7731_v29  ;;  %vm5566_vm9 = vcmp.eq.s32.totalorder %v7648_v49, 3 }
 0x4ca   :  { %v990_v35 = vmul.f32 %v7665_v48, %v7642_v33  ;;  %v978_v25 = vsel %vm977_vm5, %v6153_v39, %v974_v18  ;;  %10154 = vst [vmem:[#allocation28_spill] sm:$0xff] %v7713_v26  ;;  %vm996_vm13 = vweird.f32 %v7665_v48  ;;  %vm1005_vm5 = vweird.f32 %v7658_v54 }
 0x4cb   :  { %v982_v11 = vmul.f32 0.5, %v981_v59  ;;  %v1017_v17 = vmul.f32 %v978_v25, %v7448_v15  ;;  %v2403_v63 = vpop.f32.mrf.mxu3  ;;  %10155 = vst [vmem:[#allocation29_spill] sm:$0xff] %v7726_v13  ;;  %vm997_vm15 = vmor %vm995_vm14, %vm996_vm13  ;;  %vm5571_vm10 = vcmp.eq.s32.totalorder %v7645_v4, 5 }
 0x4cc   :  { %v991_v31 = vmul.f32 %v7665_v48, %v990_v35  ;;  %v7697_v39 = vadd.f32 %v2403_v63, %v7680_v38  ;;  %v7735_v35 = vsel %vm5560_vm12, 0.0, %v9961_v32  ;;  %vm5572_vm12 = vcmp.eq.s32.totalorder %v7648_v49, 5 }
 0x4cd   :  { %v983_v56 = vsub.f32 1.5, %v982_v11  ;;  %v7699_v19 = vpop.f32.mrf.mxu2  ;;  %5455 = vmatmul.msk.f32.gmra.mxu2 %vm171_vm1, %v1017_v17  ;;  %10157 = vst [vmem:[#allocation31_spill] sm:$0xff] %v7735_v35 }
 0x4ce   :  { %v992_v15 = vmul.f32 0.5, %v991_v31  ;;  %v7703_v24 = vpop.permute.xlu0 %5841  ;;  %v2441_v53 = vpop.f32.mrf.mxu0  ;;  %v2491_v62 = vmax.f32 %v7697_v39, %v7694_v58 }
 0x4cf   :  { %v7709_v14 = vpop.eup %6158  ;;  %v2476_v21 = vpop.f32.mrf.mxu1  ;;  %v984_v20 = vmul.f32 %v6155_v37, %v983_v56  ;;  %v7740_v11 = vadd.f32 %v2441_v53, %v7726_v13 }
 0x4d0   :  { %v993_v45 = vsub.f32 1.5, %v992_v15  ;;  %v1000_v8 = vmul.f32 %v7709_v14, %v7658_v54  ;;  %v2492_v46 = vmax.f32 %v2491_v62, %v7713_v26  ;;  %v7750_v63 = vadd.f32 %v2476_v21, %v7735_v35  ;;  %v6353_v21 = vld [vmem:[%s9951_s3] sm:$0xff] }
 0x4d1   :  { %v988_v7 = vsel %vm987_vm11, %v6155_v37, %v984_v20  ;;  %vm1006_vm4 = vweird.f32 %v7709_v14  ;;  %vm5570_vm11 = vcmp.eq.s32.totalorder %v7650_v6, 5 }
 0x4d2   :  { %v1001_v44 = vmul.f32 %v7709_v14, %v1000_v8  ;;  %v1018_v18 = vmul.f32 %v988_v7, %v7462_v41  ;;  %2493 = vmax.xlane.f32.xlu2 %v2492_v46  ;;  %v994_v25 = vmul.f32 %v7665_v48, %v993_v45  ;;  %10159 = vst [vmem:[#allocation33_spill] sm:$0xff] %v7750_v63  ;;  %v7764_v8 = vperm.slane %v6353_v21, 4  ;;  %vm7804_vm8 = vmor %vm1005_vm5, %vm1006_vm4 }
 0x4d3   :  { %v2406_v37 = vpop.f32.mrf.mxu3  ;;  %v7767_v46 = vsel %vm5562_vm0, 0.0, %v9961_v32  ;;  %v7770_v7 = vsel %vm5561_vm2, 0.0, %v9961_v32 }
 0x4d4   :  { %v1002_v59 = vmul.f32 0.5, %v1001_v44  ;;  %v7743_v17 = vadd.f32 %v2406_v37, %v7731_v29  ;;  %v998_v33 = vsel %vm997_vm15, %v7665_v48, %v994_v25  ;;  %10160 = vst [vmem:[#allocation34_spill] sm:$0xff] %v7767_v46 }
 0x4d5   :  { %5456 = vmatmul.msk.f32.gmra.mxu2 %vm171_vm1, %v1018_v18  ;;  %v1187_v31 = vpop.f32.mrf.mxu2  ;;  %10161 = vst [vmem:[#allocation35_spill] sm:$0xff] %v7770_v7  ;;  %v1019_v44 = vmul.f32 %v998_v33, %v7479_v23 }
 0x4d6   :  { %10158 = vst [vmem:[#allocation32_spill] sm:$0xff] %v7743_v17  ;;  %v7747_v41 = vpop.permute.xlu1 %5846  ;;  %v7752_v15 = vpop.permute.xlu0 %5856  ;;  %v2495_v53 = vmax.f32 %v7743_v17, %v7740_v11  ;;  %v1003_v62 = vsub.f32 1.5, %v1002_v59  ;;  %v7776_v18 = vadd.f32 %v1187_v31, %v7764_v8  ;;  %v7779_v59 = vsel %vm5563_vm3, 0.0, %v9961_v32 }
 0x4d7   :  { %v2444_v56 = vpop.f32.mrf.mxu0  ;;  %10162 = vst [vmem:[#allocation36_spill] sm:$0xff] %v7779_v59  ;;  %v7793_v31 = vadd.f32 %v7699_v19, %v7764_v8  ;;  %v7838_v35 = vunpack.i.l.bf16 %v7747_v41 }
 0x4d8   :  { %v2479_v20 = vpop.f32.mrf.mxu1  ;;  %v2496_v45 = vmax.f32 %v2495_v53, %v7750_v63  ;;  %v1004_v48 = vmul.f32 %v7709_v14, %v1003_v62  ;;  %v7784_v25 = vadd.f32 %v2444_v56, %v7767_v46  ;;  %v7828_v46 = vpop.permute.xlu2 %5851  ;;  %v10171_v56 = vmov -1e+30  }
 0x4d9   :  { %10165 = vst [vmem:[#allocation39_spill] sm:$0xff] %v7793_v31  ;;  %v7809_v21 = vadd.f32 %v2479_v20, %v7779_v59  ;;  %v2190_v20 = vmul.f32 %v7099_v10, %v7776_v18  ;;  %v7826_v59 = vadd.f32 %v7652_v52, %v7764_v8  ;;  %v2189_v52 = vmul.f32 %v7099_v10, %v7793_v31 }
 0x4da   :  { %2497 = vmax.xlane.f32.xlu1 %v2496_v45  ;;  %10163 = vst [vmem:[#allocation37_spill] sm:$0xff] %v7784_v25  ;;  %v7846_v9 = vunpack.i.l.bf16 %v7828_v46  ;;  %v7854_v16 = vsel %vm5566_vm9, 0.0, %v10171_v56 }
 0x4db   :  { %10168 = vst [vmem:[#allocation40_spill] sm:$0xff] %v7809_v21 }
 0x4dc   :  { %10170 = vst [vmem:[#allocation42_spill] sm:$0xff] %v7826_v59  ;;  %v2774_v3 = vsel %vm171_vm1, %v2189_v52, %v7846_v9 }
 0x4dd   :  { %v2409_v37 = vpop.f32.mrf.mxu3  ;;  %5457 = vmatmul.msk.f32.gmra.mxu2 %vm171_vm1, %v1019_v44  ;;  %v1008_v44 = vsel %vm7804_vm8, %v7709_v14, %v1004_v48  ;;  %v7831_v14 = vsel %vm5565_vm6, 0.0, %v10171_v56  ;;  %10174 = vst [vmem:[#allocation45_spill] sm:$0xff] %v7838_v35 }
 0x4de   :  { %v7787_v23 = vadd.f32 %v2409_v37, %v7770_v7  ;;  %v7789_v53 = vpop.permute.xlu1 %5866  ;;  %v1190_v62 = vpop.f32.mrf.mxu2  ;;  %v7817_v37 = vunpack.i.l.bf16 %v7703_v24  ;;  %10172 = vst [vmem:[#allocation43_spill] sm:$0xff] %v7831_v14  ;;  %v7835_v7 = vsel %vm5564_vm7, 0.0, %v10171_v56  ;;  %v1020_v29 = vmul.f32 %v1008_v44, %v7498_v28 }
 0x4df   :  { %v7796_v33 = vadd.f32 %v1190_v62, %v7764_v8  ;;  %v2447_v45 = vpop.f32.mrf.mxu0  ;;  %v7799_v54 = vpop.permute.xlu0 %5871  ;;  %10173 = vst [vmem:[#allocation44_spill] sm:$0xff] %v7835_v7  ;;  %v2775_v28 = vsel %vm171_vm1, %v2190_v20, %v7838_v35 }
 0x4e0   :  { %10164 = vst [vmem:[#allocation38_spill] sm:$0xff] %v7787_v23  ;;  %v2499_v19 = vmax.f32 %v7787_v23, %v7784_v25  ;;  %v2482_v62 = vpop.f32.mrf.mxu1  ;;  %v7961_v50 = vpop.permute.xlu2 %5861  ;;  %v8036_v47 = vunpack.i.l.bf16 %v7799_v54 }
 0x4e1   :  { %10169 = vst [vmem:[#allocation41_spill] sm:$0xff] %v7817_v37  ;;  %v2191_v32 = vmul.f32 %v7099_v10, %v7796_v33  ;;  %v7874_v36 = vadd.f32 %v2482_v62, %v7854_v16 }
 0x4e2   :  { %v2500_v48 = vmax.f32 %v2499_v19, %v7809_v21  ;;  %10175 = vst [vmem:[#allocation46_spill] sm:$0xff] %v7846_v9  ;;  %v7849_v19 = vunpack.i.l.bf16 %v7752_v15  ;;  %v8174_v21 = vunpack.i.l.bf16 %v7961_v50 }
 0x4e3   :  { %v2776_v13 = vsel %vm171_vm1, %v2191_v32, %v7817_v37  ;;  %10177 = vst [vmem:[#allocation48_spill] sm:$0xff] %v7854_v16  ;;  %v7860_v32 = vadd.f32 %v2447_v45, %v7831_v14 }
 0x4e4   :  { %2501 = vmax.xlane.f32.xlu0 %v2500_v48  ;;  %2809 = vmatpush.msrb.mxu2 %v2776_v13  ;;  %10176 = vst [vmem:[#allocation47_spill] sm:$0xff] %v7849_v19 }
 0x4e5   :  { %v2412_v38 = vpop.f32.mrf.mxu3  ;;  %5458 = vmatmul.msk.f32.gmra.mxu2 %vm171_vm1, %v1020_v29  ;;  %10178 = vst [vmem:[#allocation49_spill] sm:$0xff] %v7860_v32  ;;  %v2188_v29 = vmul.f32 %v7099_v10, %v7826_v59 }
 0x4e6   :  { %v7863_v13 = vadd.f32 %v2412_v38, %v7835_v7  ;;  %v7865_v44 = vpop.permute.xlu1 %5881  ;;  %2810 = vmatpush.msrb.mxu2 %v2775_v28  ;;  %10180 = vst [vmem:[#allocation51_spill] sm:$0xff] %v7874_v36  ;;  %v7880_v38 = vmul.f32 %v7817_v37, %v7796_v33  ;;  %v7887_v7 = vmul.f32 %v7838_v35, %v7776_v18  ;;  %v1193_v12 = vpop.f32.mrf.mxu2 }
 0x4e7   :  { %v7867_v48 = vpop.permute.xlu0 %5886  ;;  %v2450_v20 = vpop.f32.mrf.mxu0  ;;  %v2773_v28 = vsel %vm171_vm1, %v2188_v29, %v7849_v19  ;;  %v7993_v37 = vadd.f32 %v1193_v12, %v7764_v8  ;;  %10208 = vst [vmem:[#allocation79_spill] sm:$0xff] %v8036_v47 }
 0x4e8   :  { %10179 = vst [vmem:[#allocation50_spill] sm:$0xff] %v7863_v13  ;;  %2811 = vmatpush.msrb.mxu2 %v2774_v3  ;;  %v2503_v45 = vmax.f32 %v7863_v13, %v7860_v32  ;;  %v2485_v62 = vpop.f32.mrf.mxu1  ;;  %v7953_v43 = vadd.f32 %v2450_v20, %v7675_v61  ;;  %v7963_v1 = vpop.permute.xlu2 %5876 }
 0x4e9   :  { %10181 = vst [vmem:[#allocation52_spill] sm:$0xff] %v7880_v38  ;;  %v7958_v30 = vadd.f32 %v2485_v62, %v7683_v27  ;;  %v7981_v27 = vunpack.i.h.bf16 %v7703_v24 }
 0x4ea   :  { %2812 = vmatpush.msrb.mxu2 %v2773_v28  ;;  %v2504_v52 = vmax.f32 %v2503_v45, %v7874_v36  ;;  %10182 = vst [vmem:[#allocation53_spill] sm:$0xff] %v7887_v7  ;;  %5946 = vrot.lane.b32.xlu2 %v7567_v5, %s6421_s6  ;;  %v7901_v45 = vsel %vm5571_vm10, 0.0, %v10171_v56  ;;  %v7906_v5 = vsel %vm5570_vm11, 0.0, %v10171_v56 }
 0x4eb   :  { %10183 = vst [vmem:[#allocation54_spill] sm:$0xff] %v7901_v45 }
 0x4ec   :  { %2505 = vmax.xlane.f32.xlu1 %v2504_v52  ;;  %10184 = vst [vmem:[#allocation55_spill] sm:$0xff] %v7906_v5  ;;  %v7909_v52 = vsel %vm5572_vm12, 0.0, %v10171_v56 }
 0x4ed   :  { %v2415_v16 = vpop.f32.mrf.mxu3  ;;  %10185 = vst [vmem:[#allocation56_spill] sm:$0xff] %v7909_v52 }
 0x4ee   :  { %v7893_v14 = vpop.permute.xlu1 %5896  ;;  %10194 = vst [vmem:[#allocation65_spill] sm:$0xff] %v7953_v43 }
 0x4ef   :  { %v7896_v29 = vpop.permute.xlu0 %5901  ;;  %v2453_v28 = vpop.f32.mrf.mxu0  ;;  %10195 = vst [vmem:[#allocation66_spill] sm:$0xff] %v7958_v30  ;;  %v7990_v51 = vunpack.i.h.bf16 %v7893_v14 }
 0x4f0   :  { %v2488_v4 = vpop.f32.mrf.mxu1  ;;  %v7912_v38 = vadd.f32 %v2453_v28, %v7901_v45  ;;  %10199 = vst [vmem:[#allocation70_spill] sm:$0xff] %v7981_v27 }
 0x4f1   :  { %v7920_v7 = vadd.f32 %v2488_v4, %v7909_v52  ;;  %10201 = vst [vmem:[#allocation72_spill] sm:$0xff] %v7993_v37 }
 0x4f2   :  { %5956 = vrot.lane.b32.xlu2 %v7594_v57, %s6421_s6  ;;  %10186 = vst [vmem:[#allocation57_spill] sm:$0xff] %v7912_v38 }
 0x4f3   :  { %10188 = vst [vmem:[#allocation59_spill] sm:$0xff] %v7920_v7 }
 0x4f5   :  { %v2418_v3 = vpop.f32.mrf.mxu3 }
 0x4f6   :  { %v7915_v49 = vadd.f32 %v2418_v3, %v7906_v5  ;;  %v7917_v6 = vpop.permute.xlu1 %5906  ;;  %v7950_v5 = vadd.f32 %v2415_v16, %v7707_v34  ;;  %v7965_v16 = vpop.permute.xlu2 %5891 }
 0x4f7   :  { %v7924_v19 = vpop.permute.xlu0 %5911 }
 0x4f8   :  { %10187 = vst [vmem:[#allocation58_spill] sm:$0xff] %v7915_v49  ;;  %v2511_v57 = vmax.f32 %v7915_v49, %v7912_v38  ;;  %v2507_v22 = vmax.f32 %v7950_v5, %v7953_v43 }
 0x4f9   :  { %10193 = vst [vmem:[#allocation64_spill] sm:$0xff] %v7950_v5  ;;  %v8081_v5 = vunpack.i.l.bf16 %v7867_v48 }
 0x4fa   :  { %v2512_v56 = vmax.f32 %v2511_v57, %v7920_v7  ;;  %v2508_v9 = vmax.f32 %v2507_v22, %v7958_v30  ;;  %v8024_v30 = vunpack.i.h.bf16 %v7828_v46  ;;  %v2203_v7 = vmul.f32 %v7018_v60, %v7796_v33 }
 0x4fb   :  { %10216 = vst [vmem:[#allocation87_spill] sm:$0xff] %v8081_v5 }
 0x4fc   :  { %2513 = vmax.xlane.f32.xlu1 %v2512_v56  ;;  %v1196_v56 = vpop.f32.mrf.mxu2  ;;  %10206 = vst [vmem:[#allocation77_spill] sm:$0xff] %v8024_v30 }
 0x4fd   :  { %v7975_v22 = vadd.f32 %v1196_v56, %v7764_v8 }
 0x4fe   :  { %v7927_v55 = vpop.permute.xlu1 %5916 }
 0x4ff   :  { %v7929_v28 = vpop.permute.xlu0 %5921  ;;  %10197 = vst [vmem:[#allocation68_spill] sm:$0xff] %v7975_v22  ;;  %v2205_v42 = vmul.f32 %v7018_v60, %v7975_v22 }
 0x500   :  { %v7934_v3 = vunpack.i.l.bf16 %v7929_v28 }
 0x501   :  { %v2790_v46 = vsel %vm171_vm1, %v2205_v42, %v8024_v30 }
 0x502   :  { %10189 = vst [vmem:[#allocation60_spill] sm:$0xff] %v7934_v3  ;;  %v7945_v57 = vmul.f32 %v7934_v3, %v7796_v33 }
 0x504   :  { %10192 = vst [vmem:[#allocation63_spill] sm:$0xff] %v7945_v57  ;;  %v1199_v34 = vpop.f32.mrf.mxu2 }
 0x505   :  { %v7968_v20 = vadd.f32 %v1199_v34, %v7764_v8  ;;  %v7987_v34 = vunpack.i.l.bf16 %v7965_v16 }
 0x506   :  { %v7931_v45 = vpop.permute.xlu1 %5926 }
 0x507   :  { %v7937_v4 = vunpack.i.h.bf16 %v7931_v45  ;;  %10196 = vst [vmem:[#allocation67_spill] sm:$0xff] %v7968_v20  ;;  %v7972_v57 = vpop.permute.xlu0 %5931  ;;  %v8009_v2 = vmul.f32 %v7990_v51, %v7968_v20 }
 0x509   :  { %10190 = vst [vmem:[#allocation61_spill] sm:$0xff] %v7937_v4  ;;  %v7941_v52 = vmul.f32 %v7937_v4, %v7776_v18 }
 0x50a   :  { %10204 = vst [vmem:[#allocation75_spill] sm:$0xff] %v8009_v2  ;;  %v8054_v2 = vunpack.i.h.bf16 %v7972_v57 }
 0x50b   :  { %10191 = vst [vmem:[#allocation62_spill] sm:$0xff] %v7941_v52  ;;  %v7984_v52 = vunpack.i.h.bf16 %v7747_v41 }
 0x50c   :  { %10212 = vst [vmem:[#allocation83_spill] sm:$0xff] %v8054_v2  ;;  %v8091_v43 = vmul.f32 %v8054_v2, %v7776_v18 }
 0x50d   :  { %10200 = vst [vmem:[#allocation71_spill] sm:$0xff] %v7984_v52  ;;  %v8001_v24 = vmul.f32 %v7984_v52, %v7968_v20 }
 0x50e   :  { %10218 = vst [vmem:[#allocation89_spill] sm:$0xff] %v8091_v43 }
 0x50f   :  { %10202 = vst [vmem:[#allocation73_spill] sm:$0xff] %v8001_v24  ;;  %v8059_v24 = vunpack.i.h.bf16 %v7963_v1 }
 0x511   :  { %10213 = vst [vmem:[#allocation84_spill] sm:$0xff] %v8059_v24 }
 0x51b   :  { %2509 = vmax.xlane.f32.xlu2 %v2508_v9 }
 0x545   :  { %v7970_v61 = vpop.xlane.xlu2 %2493 }
 0x547   :  { %v1202_v62 = vpop.f32.mrf.mxu2 }
 0x548   :  { %v7978_v9 = vadd.f32 %v1202_v62, %v7764_v8  ;;  %v2206_v62 = vmul.f32 %v7018_v60, %v7968_v20 }
 0x54a   :  { %10198 = vst [vmem:[#allocation69_spill] sm:$0xff] %v7978_v9  ;;  %v2207_v56 = vmul.f32 %v7018_v60, %v7978_v9  ;;  %v8005_v41 = vmul.f32 %v7981_v27, %v7978_v9  ;;  %v8013_v12 = vmul.f32 %v7987_v34, %v7978_v9  ;;  %v2791_v38 = vsel %vm171_vm1, %v2206_v62, %v7984_v52 }
 0x54c   :  { %10203 = vst [vmem:[#allocation74_spill] sm:$0xff] %v8005_v41  ;;  %v2792_v35 = vsel %vm171_vm1, %v2207_v56, %v7981_v27  ;;  %v2204_v56 = vmul.f32 %v7018_v60, %v7993_v37  ;;  %v8070_v27 = vmul.f32 %v8036_v47, %v7776_v18 }
 0x54d   :  { %10205 = vst [vmem:[#allocation76_spill] sm:$0xff] %v8013_v12  ;;  %2844 = vmatpush.msra.mxu3 %v2792_v35  ;;  %v8026_v49 = vpop.permute.xlu2 %5946  ;;  %v8033_v35 = vunpack.i.h.bf16 %v7752_v15  ;;  %v8042_v12 = vpop.permute.xlu0 %5936  ;;  %v8051_v15 = vunpack.i.h.bf16 %v7867_v48 }
 0x54e   :  { %10209 = vst [vmem:[#allocation80_spill] sm:$0xff] %v8042_v12 }
 0x54f   :  { %2845 = vmatpush.msra.mxu3 %v2791_v38  ;;  %10207 = vst [vmem:[#allocation78_spill] sm:$0xff] %v8033_v35  ;;  %v8048_v38 = vunpack.i.h.bf16 %v7961_v50  ;;  %v2789_v42 = vsel %vm171_vm1, %v2204_v56, %v8033_v35  ;;  %v2201_v35 = vmul.f32 %v7018_v60, %v7793_v31 }
 0x550   :  { %v1205_v41 = vpop.f32.mrf.mxu2  ;;  %10211 = vst [vmem:[#allocation82_spill] sm:$0xff] %v8051_v15 }
 0x551   :  { %v8045_v62 = vadd.f32 %v1205_v41, %v7764_v8  ;;  %2846 = vmatpush.msra.mxu3 %v2790_v46  ;;  %10210 = vst [vmem:[#allocation81_spill] sm:$0xff] %v8048_v38  ;;  %v2202_v41 = vmul.f32 %v7018_v60, %v7776_v18  ;;  %v8064_v46 = vunpack.i.l.bf16 %v7927_v55  ;;  %v2788_v52 = vsel %vm171_vm1, %v2203_v7, %v8048_v38 }
 0x552   :  { %10214 = vst [vmem:[#allocation85_spill] sm:$0xff] %v8070_v27  ;;  %v2786_v48 = vsel %vm171_vm1, %v2201_v35, %v8059_v24  ;;  %v2200_v7 = vmul.f32 %v7018_v60, %v7826_v59  ;;  %v8103_v27 = vunpack.i.l.bf16 %v7963_v1  ;;  %v8115_v35 = vunpack.i.h.bf16 %v7917_v6 }
 0x553   :  { %2847 = vmatpush.msra.mxu3 %v2789_v42  ;;  %v8074_v56 = vmul.f32 %v8051_v15, %v8045_v62  ;;  %v2787_v42 = vsel %vm171_vm1, %v2202_v41, %v8036_v47  ;;  %v8087_v36 = vmul.f32 %v8064_v46, %v8045_v62 }
 0x554   :  { %v2785_v24 = vsel %vm171_vm1, %v2200_v7, %v8081_v5  ;;  %v8166_v5 = vunpack.i.l.bf16 %v7924_v19 }
 0x555   :  { %10215 = vst [vmem:[#allocation86_spill] sm:$0xff] %v8074_v56  ;;  %2848 = vmatpush.msra.mxu3 %v2788_v52  ;;  %v8094_v52 = vunpack.i.l.bf16 %v7931_v45  ;;  %v5957_v41 = vpop.permute.xlu2 %5956  ;;  %v8109_v45 = vunpack.i.h.bf16 %v7865_v44  ;;  %v8119_v56 = vpop.permute.xlu0 %5941 }
 0x556   :  { %10217 = vst [vmem:[#allocation88_spill] sm:$0xff] %v8087_v36  ;;  %v8121_v1 = vunpack.i.h.bf16 %v5957_v41  ;;  %v8147_v36 = vunpack.i.l.bf16 %v5957_v41  ;;  %v8186_v41 = vunpack.i.h.bf16 %v7965_v16  ;;  %v2516_v16 = vsub.f32 %v7694_v58, %v7970_v61 }
 0x557   :  { %10219 = vst [vmem:[#allocation90_spill] sm:$0xff] %v8094_v52  ;;  %2849 = vmatpush.msra.mxu3 %v2787_v42  ;;  %v8112_v42 = vunpack.i.l.bf16 %v7865_v44  ;;  %v8133_v44 = vmul.f32 %v8109_v45, %v8045_v62 }
 0x558   :  { %v1208_v47 = vpop.f32.mrf.mxu2  ;;  %10221 = vst [vmem:[#allocation92_spill] sm:$0xff] %v8119_v56  ;;  %v8157_v32 = vmul.f32 %v8121_v1, %v8045_v62 }
 0x559   :  { %v8106_v13 = vadd.f32 %v1208_v47, %v7764_v8  ;;  %2850 = vmatpush.msra.mxu3 %v2786_v48  ;;  %10220 = vst [vmem:[#allocation91_spill] sm:$0xff] %v8112_v42  ;;  %v8125_v47 = vmul.f32 %v8094_v52, %v7796_v33  ;;  %v8129_v48 = vmul.f32 %v8048_v38, %v7796_v33  ;;  %v8169_v38 = vunpack.i.h.bf16 %v8042_v12 }
 0x55a   :  { %10222 = vst [vmem:[#allocation93_spill] sm:$0xff] %v8121_v1  ;;  %v8258_v12 = vunpack.i.h.bf16 %v7799_v54  ;;  %v2196_v54 = vmul.f32 %v7099_v10, %v8045_v62 }
 0x55b   :  { %2851 = vmatpush.msra.mxu3 %v2785_v24  ;;  %10223 = vst [vmem:[#allocation94_spill] sm:$0xff] %v8125_v47  ;;  %v8137_v7 = vmul.f32 %v8103_v27, %v8106_v13  ;;  %v8141_v43 = vmul.f32 %v8115_v35, %v8106_v13  ;;  %v8145_v24 = vmul.f32 %v8112_v42, %v8106_v13 }
 0x55c   :  { %10224 = vst [vmem:[#allocation95_spill] sm:$0xff] %v8129_v48  ;;  %v8161_v23 = vmul.f32 %v8147_v36, %v8106_v13  ;;  %v8180_v48 = vunpack.i.h.bf16 %v7789_v53  ;;  %v2185_v1 = vmul.f32 %v7023_v0, %v8106_v13  ;;  %v2197_v58 = vmul.f32 %v7099_v10, %v8106_v13 }
 0x55d   :  { %10225 = vst [vmem:[#allocation96_spill] sm:$0xff] %v8133_v44  ;;  %v8171_v47 = vpop.permute.xlu0 %5951  ;;  %v2221_v26 = vmul.f32 %v7026_v40, %v8106_v13 }
 0x55e   :  { %10226 = vst [vmem:[#allocation97_spill] sm:$0xff] %v8137_v7  ;;  %v8200_v7 = vmul.f32 %v8166_v5, %v7975_v22 }
 0x55f   :  { %10227 = vst [vmem:[#allocation98_spill] sm:$0xff] %v8141_v43  ;;  %v8183_v43 = vunpack.i.l.bf16 %v7789_v53  ;;  %v8204_v53 = vmul.f32 %v8169_v38, %v7975_v22 }
 0x560   :  { %10228 = vst [vmem:[#allocation99_spill] sm:$0xff] %v8145_v24  ;;  %v1211_v63 = vpop.f32.mrf.mxu2 }
 0x561   :  { %10229 = vst [vmem:[#allocation100_spill] sm:$0xff] %v8147_v36  ;;  %v8177_v24 = vadd.f32 %v1211_v63, %v7764_v8  ;;  %v8196_v63 = vmul.f32 %v8024_v30, %v7975_v22  ;;  %v2184_v30 = vmul.f32 %v7023_v0, %v8045_v62 }
 0x562   :  { %10230 = vst [vmem:[#allocation101_spill] sm:$0xff] %v8157_v32  ;;  %v8192_v32 = vunpack.i.l.bf16 %v8171_v47 }
 0x563   :  { %10231 = vst [vmem:[#allocation102_spill] sm:$0xff] %v8161_v23  ;;  %v8189_v23 = vunpack.i.l.bf16 %v7896_v29  ;;  %v2186_v36 = vmul.f32 %v7023_v0, %v8177_v24  ;;  %v2222_v60 = vmul.f32 %v7026_v40, %v8177_v24  ;;  %v8231_v2 = vmul.f32 %v8180_v48, %v8177_v24 }
 0x564   :  { %10232 = vst [vmem:[#allocation103_spill] sm:$0xff] %v8166_v5 }
 0x565   :  { %10233 = vst [vmem:[#allocation104_spill] sm:$0xff] %v8169_v38 }
 0x566   :  { %10234 = vst [vmem:[#allocation105_spill] sm:$0xff] %v8171_v47  ;;  %v2198_v47 = vmul.f32 %v7099_v10, %v8177_v24 }
 0x567   :  { %10235 = vst [vmem:[#allocation106_spill] sm:$0xff] %v8177_v24 }
 0x568   :  { %10236 = vst [vmem:[#allocation107_spill] sm:$0xff] %v8186_v41  ;;  %v1214_v50 = vpop.f32.mrf.mxu2 }
 0x569   :  { %10237 = vst [vmem:[#allocation108_spill] sm:$0xff] %v8192_v32  ;;  %v8209_v44 = vadd.f32 %v1214_v50, %v7764_v8 }
 0x56a   :  { %10238 = vst [vmem:[#allocation109_spill] sm:$0xff] %v8196_v63  ;;  %v10275_v63 = vld [vmem:[#allocation51_spill] sm:$0xff] }
 0x56b   :  { %10239 = vst [vmem:[#allocation110_spill] sm:$0xff] %v8200_v7  ;;  %v2187_v8 = vmul.f32 %v7023_v0, %v8209_v44  ;;  %v2199_v50 = vmul.f32 %v7099_v10, %v8209_v44  ;;  %v2223_v59 = vmul.f32 %v7026_v40, %v8209_v44  ;;  %v8235_v4 = vmul.f32 %v8174_v21, %v8209_v44 }
 0x56c   :  { %10240 = vst [vmem:[#allocation111_spill] sm:$0xff] %v8204_v53  ;;  %v8239_v25 = vmul.f32 %v8183_v43, %v8209_v44  ;;  %v8243_v52 = vmul.f32 %v8186_v41, %v8209_v44  ;;  %v8247_v17 = vmul.f32 %v8192_v32, %v8209_v44 }
 0x56d   :  { %10241 = vst [vmem:[#allocation112_spill] sm:$0xff] %v8231_v2  ;;  %v2772_v24 = vsel %vm171_vm1, %v2187_v8, %v8174_v21  ;;  %v2784_v56 = vsel %vm171_vm1, %v2199_v50, %v8186_v41  ;;  %v2808_v3 = vsel %vm171_vm1, %v2223_v59, %v8183_v43  ;;  %v2771_v59 = vsel %vm171_vm1, %v2186_v36, %v8180_v48 }
 0x56e   :  { %10242 = vst [vmem:[#allocation113_spill] sm:$0xff] %v8235_v4  ;;  %2813 = vmatpush.msrb.mxu2 %v2772_v24  ;;  %2852 = vmatpush.msra.mxu3 %v2784_v56  ;;  %v2783_v41 = vsel %vm171_vm1, %v2198_v47, %v8189_v23  ;;  %v8275_v24 = vunpack.i.l.bf16 %v7893_v14  ;;  %v2220_v36 = vmul.f32 %v7026_v40, %v8045_v62  ;;  %v8301_v8 = vunpack.i.l.bf16 %v7972_v57 }
 0x56f   :  { %10243 = vst [vmem:[#allocation114_spill] sm:$0xff] %v8239_v25  ;;  %2879 = vmatpush.msra.mxu0 %v2808_v3  ;;  %v2807_v3 = vsel %vm171_vm1, %v2222_v60, %v8258_v12  ;;  %v2181_v47 = vmul.f32 %v7023_v0, %v7975_v22  ;;  %v2770_v50 = vsel %vm171_vm1, %v2185_v1, %v8103_v27  ;;  %v2535_v60 = vmul.f32 1.442695, %v2516_v16 }
 0x570   :  { %10244 = vst [vmem:[#allocation115_spill] sm:$0xff] %v8243_v52  ;;  %2814 = vmatpush.msrb.mxu2 %v2771_v59  ;;  %2853 = vmatpush.msra.mxu3 %v2783_v41  ;;  %v2782_v56 = vsel %vm171_vm1, %v2197_v58, %v8115_v35  ;;  %v2183_v14 = vmul.f32 %v7023_v0, %v7978_v9  ;;  %v8298_v58 = vunpack.i.h.bf16 %v7929_v28  ;;  %v10264_v52 = vld [vmem:[#allocation105_spill] sm:$0xff] }
 0x571   :  { %10245 = vst [vmem:[#allocation116_spill] sm:$0xff] %v8247_v17  ;;  %2880 = vmatpush.msra.mxu0 %v2807_v3  ;;  %v2195_v41 = vmul.f32 %v7099_v10, %v7978_v9  ;;  %v2806_v59 = vsel %vm171_vm1, %v2221_v26, %v8112_v42  ;;  %v2219_v3 = vmul.f32 %v7026_v40, %v7978_v9  ;;  %v8308_v26 = vunpack.i.h.bf16 %v7896_v29  ;;  %v10269_v9 = vld [vmem:[#allocation49_spill] sm:$0xff] }
 0x572   :  { %2815 = vmatpush.msrb.mxu2 %v2770_v50  ;;  %2854 = vmatpush.msra.mxu3 %v2782_v56  ;;  %v2182_v1 = vmul.f32 %v7023_v0, %v7968_v20  ;;  %10246 = vst [vmem:[#allocation117_spill] sm:$0xff] %v8298_v58  ;;  %v2769_v16 = vsel %vm171_vm1, %v2184_v30, %v8109_v45  ;;  %v8310_v56 = vpop.xlane.xlu1 %2497  ;;  %v8319_v30 = vunpack.i.l.bf16 %v7917_v6  ;;  %6160 = vpow2.f32 %v2535_v60 }
 0x573   :  { %10247 = vst [vmem:[#allocation118_spill] sm:$0xff] %v8301_v8  ;;  %2881 = vmatpush.msra.mxu0 %v2806_v59  ;;  %v2781_v50 = vsel %vm171_vm1, %v2196_v54, %v8064_v46  ;;  %v2805_v28 = vsel %vm171_vm1, %v2220_v36, %v8051_v15  ;;  %v2218_v57 = vmul.f32 %v7026_v40, %v7968_v20  ;;  %v8328_v36 = vunpack.i.h.bf16 %v7924_v19 }
 0x574   :  { %2816 = vmatpush.msrb.mxu2 %v2769_v16  ;;  %2855 = vmatpush.msra.mxu3 %v2781_v50  ;;  %v2193_v59 = vmul.f32 %v7099_v10, %v7975_v22  ;;  %v2768_v29 = vsel %vm171_vm1, %v2183_v14, %v7987_v34  ;;  %v2780_v54 = vsel %vm171_vm1, %v2195_v41, %v8298_v58  ;;  %v8335_v14 = vunpack.i.l.bf16 %v8026_v49 }
 0x575   :  { %2882 = vmatpush.msra.mxu0 %v2805_v28  ;;  %v2194_v16 = vmul.f32 %v7099_v10, %v7968_v20  ;;  %v2515_v50 = vsub.f32 %v7697_v39, %v7970_v61  ;;  %v2804_v6 = vsel %vm171_vm1, %v2219_v3, %v8275_v24  ;;  %v2519_v41 = vsub.f32 %v7740_v11, %v8310_v56 }
 0x576   :  { %2817 = vmatpush.msrb.mxu2 %v2768_v29  ;;  %2856 = vmatpush.msra.mxu3 %v2780_v54  ;;  %10248 = vst [vmem:[#allocation119_spill] sm:$0xff] %v8335_v14  ;;  %v2767_v19 = vsel %vm171_vm1, %v2182_v1, %v7990_v51  ;;  %v8344_v39 = vunpack.i.h.bf16 %v7927_v55  ;;  %v2803_v60 = vsel %vm171_vm1, %v2218_v57, %v8308_v26 }
 0x577   :  { %2883 = vmatpush.msra.mxu0 %v2804_v6  ;;  %v2779_v28 = vsel %vm171_vm1, %v2194_v16, %v8301_v8  ;;  %v2217_v3 = vmul.f32 %v7026_v40, %v7975_v22  ;;  %v2766_v11 = vsel %vm171_vm1, %v2181_v47, %v8319_v30  ;;  %v2778_v1 = vsel %vm171_vm1, %v2193_v59, %v8169_v38  ;;  %v10283_v22 = vld [vmem:[#allocation45_spill] sm:$0xff] }
 0x578   :  { %2818 = vmatpush.msrb.mxu2 %v2767_v19  ;;  %2857 = vmatpush.msra.mxu3 %v2779_v28  ;;  %v2180_v29 = vmul.f32 %v7023_v0, %v7993_v37  ;;  %v2192_v55 = vmul.f32 %v7099_v10, %v7993_v37  ;;  %v2533_v54 = vmul.f32 1.442695, %v2515_v50  ;;  %v2216_v16 = vmul.f32 %v7026_v40, %v7993_v37  ;;  %v6161_v19 = vpop.eup %6160  ;;  %v8370_v28 = vpop.xlane.xlu0 %2501  ;;  %v10286_v37 = vld [vmem:[#allocation14_spill] sm:$0xff] }
 0x579   :  { %2884 = vmatpush.msra.mxu0 %v2803_v60  ;;  %v2802_v57 = vsel %vm171_vm1, %v2217_v3, %v8166_v5  ;;  %v2177_v47 = vmul.f32 %v7023_v0, %v7793_v31  ;;  %v2541_v6 = vmul.f32 1.442695, %v2519_v41  ;;  %v2179_v50 = vmul.f32 %v7023_v0, %v7796_v33 }
 0x57a   :  { %2819 = vmatpush.msrb.mxu2 %v2766_v11  ;;  %2858 = vmatpush.msra.mxu3 %v2778_v1  ;;  %v2765_v59 = vsel %vm171_vm1, %v2180_v29, %v8328_v36  ;;  %v2777_v10 = vsel %vm171_vm1, %v2192_v55, %v8335_v14  ;;  %v2801_v60 = vsel %vm171_vm1, %v2216_v16, %v8344_v39  ;;  %v10249_v11 = vld [vmem:[#allocation80_spill] sm:$0xff]  ;;  %6162 = vpow2.f32 %v2533_v54  ;;  %v3401_v14 = vld [vmem:[%s9958_s10 + $0x58] sm:$0xff] }
 0x57b   :  { %2885 = vmatpush.msra.mxu0 %v2802_v57  ;;  %v2215_v41 = vmul.f32 %v7026_v40, %v7796_v33  ;;  %v2178_v3 = vmul.f32 %v7023_v0, %v7776_v18  ;;  %v8379_v1 = vunpack.i.l.bf16 %v10249_v11  ;;  %v10251_v29 = vld [vmem:[#allocation28_spill] sm:$0xff]  ;;  %v2214_v16 = vmul.f32 %v7026_v40, %v7776_v18  ;;  %v10255_v11 = vld [vmem:[#allocation90_spill] sm:$0xff]  ;;  %v10258_v18 = vld [vmem:[#allocation61_spill] sm:$0xff] }
 0x57c   :  { %2820 = vmatpush.msrb.mxu2 %v2765_v59  ;;  %2859 = vmatpush.msra.mxu3 %v2777_v10  ;;  %v2517_v55 = vsub.f32 %v10251_v29, %v7970_v61  ;;  %v10252_v57 = vld [vmem:[#allocation60_spill] sm:$0xff]  ;;  %6164 = vpow2.f32 %v2541_v6  ;;  %v8402_v54 = vunpack.i.h.bf16 %v8026_v49  ;;  %v10260_v29 = vld [vmem:[#allocation83_spill] sm:$0xff] }
 0x57d   :  { %10250 = vst [vmem:[#allocation80_spill] sm:$0xff] %v8379_v1  ;;  %2886 = vmatpush.msra.mxu0 %v2801_v60  ;;  %2860 = vmatmul.f32.vlgmr.msra.gmra.mxu3 %v6161_v19  ;;  %v2764_v59 = vsel %vm171_vm1, %v2179_v50, %v10252_v57  ;;  %v10253_v10 = vld [vmem:[#allocation92_spill] sm:$0xff]  ;;  %v2800_v53 = vsel %vm171_vm1, %v2215_v41, %v10255_v11  ;;  %v10257_v50 = vld [vmem:[#allocation37_spill] sm:$0xff] }
 0x57e   :  { %v8388_v32 = vunpack.i.l.bf16 %v10253_v10  ;;  %v10254_v33 = vld [vmem:[#allocation32_spill] sm:$0xff]  ;;  %2821 = vmatpush.msrb.mxu2 %v2764_v59  ;;  %v8395_v61 = vunpack.i.h.bf16 %v10253_v10  ;;  %v2522_v19 = vsub.f32 %v10257_v50, %v8370_v28  ;;  %v2763_v60 = vsel %vm171_vm1, %v2178_v3, %v10258_v18  ;;  %10259 = vst [vmem:[#allocation60_spill] sm:$0xff] %v8402_v54 }
 0x57f   :  { %v2518_v17 = vsub.f32 %v10254_v33, %v8310_v56  ;;  %2887 = vmatpush.msra.mxu0 %v2800_v53  ;;  %v2799_v59 = vsel %vm171_vm1, %v2214_v16, %v10260_v29  ;;  %v2213_v41 = vmul.f32 %v7026_v40, %v7793_v31  ;;  %v2537_v10 = vmul.f32 1.442695, %v2517_v55  ;;  %v10261_v33 = vld [vmem:[#allocation42_spill] sm:$0xff]  ;;  %v10262_v16 = vld [vmem:[#allocation9_spill] sm:$0xff] }
 0x580   :  { %10256 = vst [vmem:[#allocation28_spill] sm:$0xff] %v8395_v61  ;;  %2822 = vmatpush.msrb.mxu2 %v2763_v60  ;;  %v2762_v6 = vsel %vm171_vm1, %v2177_v47, %v8379_v1  ;;  %v2176_v53 = vmul.f32 %v7023_v0, %v10261_v33  ;;  %v2212_v3 = vmul.f32 %v7026_v40, %v10261_v33  ;;  %v2547_v7 = vmul.f32 1.442695, %v2522_v19  ;;  %v6163_v47 = vpop.eup %6162  ;;  %v3404_v31 = vld [vmem:[%s9958_s10 + $0x70] sm:$0xff]  ;;  %v3402_v33 = vld [vmem:[%s9958_s10 + $0x60] sm:$0xff] }
 0x581   :  { %2888 = vmatpush.msra.mxu0 %v2799_v59  ;;  %v2539_v50 = vmul.f32 1.442695, %v2518_v17  ;;  %v2798_v49 = vsel %vm171_vm1, %v2213_v41, %v8388_v32  ;;  %v2211_v60 = vmul.f32 %v10262_v16, %v8209_v44  ;;  %v2506_v59 = vpop.xlane.xlu1 %2505  ;;  %v10263_v17 = vld [vmem:[#allocation106_spill] sm:$0xff]  ;;  %v8425_v40 = vunpack.i.h.bf16 %v10264_v52  ;;  %v10266_v44 = vld [vmem:[#allocation33_spill] sm:$0xff] }
 0x582   :  { %2823 = vmatpush.msrb.mxu2 %v2762_v6  ;;  %v2761_v55 = vsel %vm171_vm1, %v2176_v53, %v8395_v61  ;;  %v2797_v0 = vsel %vm171_vm1, %v2212_v3, %v8402_v54  ;;  %v2210_v41 = vmul.f32 %v10262_v16, %v10263_v17  ;;  %v6165_v6 = vpop.eup %6164  ;;  %6166 = vpow2.f32 %v2537_v10  ;;  %v10267_v53 = vld [vmem:[#allocation38_spill] sm:$0xff] }
 0x583   :  { %2889 = vmatpush.msra.mxu0 %v2798_v49  ;;  %10265 = vst [vmem:[#allocation92_spill] sm:$0xff] %v8425_v40  ;;  %v2520_v19 = vsub.f32 %v10266_v44, %v8310_v56  ;;  %6168 = vpow2.f32 %v2539_v50  ;;  %v2521_v49 = vsub.f32 %v10267_v53, %v8370_v28  ;;  %v2209_v20 = vmul.f32 %v10262_v16, %v8106_v13  ;;  %v10271_v53 = vld [vmem:[#allocation93_spill] sm:$0xff] }
 0x584   :  { %2824 = vmatpush.msrb.mxu2 %v2761_v55  ;;  %v10268_v55 = vld [vmem:[#allocation108_spill] sm:$0xff]  ;;  %v2525_v52 = vsub.f32 %v10269_v9, %v2506_v59  ;;  %6170 = vpow2.f32 %v2547_v7  ;;  %v2795_v56 = vsel %vm171_vm1, %v2210_v41, %v8425_v40 }
 0x585   :  { %2890 = vmatpush.msra.mxu0 %v2797_v0  ;;  %2825 = vmatmul.f32.vlgmr.msrb.gmra.mxu2 %v6163_v47  ;;  %v2796_v3 = vsel %vm171_vm1, %v2211_v60, %v10268_v55  ;;  %v2543_v10 = vmul.f32 1.442695, %v2520_v19  ;;  %v2545_v50 = vmul.f32 1.442695, %v2521_v49  ;;  %v10270_v47 = vld [vmem:[#allocation100_spill] sm:$0xff]  ;;  %v10273_v49 = vld [vmem:[#allocation50_spill] sm:$0xff] }
 0x586   :  { %2863 = vmatmul.f32.gmra.mxu3 %v6165_v6  ;;  %v2794_v0 = vsel %vm171_vm1, %v2209_v20, %v10270_v47  ;;  %v2208_v6 = vmul.f32 %v10262_v16, %v8045_v62  ;;  %v2553_v44 = vmul.f32 1.442695, %v2525_v52  ;;  %v10272_v41 = vld [vmem:[#allocation40_spill] sm:$0xff]  ;;  %v10274_v62 = vld [vmem:[#allocation65_spill] sm:$0xff] }
 0x587   :  { %2891 = vmatpush.msra.mxu0 %v2796_v3  ;;  %6172 = vpow2.f32 %v2543_v10  ;;  %v2523_v19 = vsub.f32 %v10272_v41, %v8370_v28  ;;  %v2524_v3 = vsub.f32 %v10273_v49, %v2506_v59  ;;  %v2526_v28 = vsub.f32 %v10275_v63, %v2506_v59  ;;  %v10279_v59 = vld [vmem:[#allocation66_spill] sm:$0xff] }
 0x588   :  { %v6167_v60 = vpop.eup %6166  ;;  %v2793_v9 = vsel %vm171_vm1, %v2208_v6, %v10271_v53  ;;  %6174 = vpow2.f32 %v2545_v50  ;;  %v10277_v50 = vld [vmem:[#allocation57_spill] sm:$0xff] }
 0x589   :  { %2892 = vmatpush.msra.mxu0 %v2795_v56  ;;  %v6169_v13 = vpop.eup %6168  ;;  %6176 = vpow2.f32 %v2553_v44  ;;  %v2549_v52 = vmul.f32 1.442695, %v2523_v19  ;;  %v2551_v56 = vmul.f32 1.442695, %v2524_v3  ;;  %v2514_v10 = vpop.xlane.xlu1 %2513  ;;  %v2555_v44 = vmul.f32 1.442695, %v2526_v28 }
 0x58a   :  { %v6171_v7 = vpop.eup %6170 }
 0x58b   :  { %2893 = vmatpush.msra.mxu0 %v2794_v0  ;;  %6178 = vpow2.f32 %v2549_v52 }
 0x58c   :  { %6180 = vpow2.f32 %v2551_v56 }
 0x58d   :  { %2894 = vmatpush.msra.mxu0 %v2793_v9  ;;  %2828 = vmatmul.f32.gmra.mxu2 %v6169_v13  ;;  %v6173_v0 = vpop.eup %6172  ;;  %v10276_v13 = vld [vmem:[#allocation64_spill] sm:$0xff] }
 0x58e   :  { %2866 = vmatmul.f32.gmra.mxu3 %v6171_v7  ;;  %2895 = vmatmul.f32.vlgmr.msra.gmra.mxu0 %v6167_v60  ;;  %v2510_v20 = vpop.xlane.xlu2 %2509  ;;  %v6175_v17 = vpop.eup %6174  ;;  %v2531_v60 = vsub.f32 %v10277_v50, %v2514_v10 }
 0x58f   :  { %v2528_v16 = vsub.f32 %v10274_v62, %v2510_v20  ;;  %v6177_v25 = vpop.eup %6176  ;;  %v2527_v9 = vsub.f32 %v10276_v13, %v2510_v20  ;;  %v10278_v62 = vld [vmem:[#allocation58_spill] sm:$0xff] }
 0x590   :  { %v2565_v19 = vmul.f32 1.442695, %v2531_v60  ;;  %v2530_v63 = vsub.f32 %v10278_v62, %v2514_v10 }
 0x591   :  { %v2559_v6 = vmul.f32 1.442695, %v2528_v16  ;;  %v2557_v7 = vmul.f32 1.442695, %v2527_v9  ;;  %v6179_v41 = vpop.eup %6178 }
 0x592   :  { %v6181_v49 = vpop.eup %6180 }
 0x593   :  { %6182 = vpow2.f32 %v2559_v6  ;;  %v10280_v6 = vld [vmem:[#allocation59_spill] sm:$0xff] }
 0x594   :  { %6184 = vpow2.f32 %v2555_v44  ;;  %v2532_v28 = vsub.f32 %v10280_v6, %v2514_v10 }
 0x595   :  { %2831 = vmatmul.f32.gmra.mxu2 %v6175_v17  ;;  %6186 = vpow2.f32 %v2557_v7  ;;  %v2563_v17 = vmul.f32 1.442695, %v2530_v63 }
 0x596   :  { %2869 = vmatmul.f32.gmra.mxu3 %v6177_v25  ;;  %2898 = vmatmul.f32.gmra.mxu0 %v6173_v0  ;;  %6188 = vpow2.f32 %v2565_v19  ;;  %v2529_v25 = vsub.f32 %v10279_v59, %v2510_v20  ;;  %v2567_v13 = vmul.f32 1.442695, %v2532_v28 }
 0x597   :  { %6190 = vpow2.f32 %v2563_v17 }
 0x598   :  { %v2561_v52 = vmul.f32 1.442695, %v2529_v25 }
 0x599   :  { %v6183_v3 = vpop.eup %6182 }
 0x59a   :  { %v6185_v16 = vpop.eup %6184  ;;  %6192 = vpow2.f32 %v2561_v52 }
 0x59b   :  { %v6187_v56 = vpop.eup %6186  ;;  %6194 = vpow2.f32 %v2567_v13 }
 0x59c   :  { %v6189_v0 = vpop.eup %6188 }
 0x59d   :  { %2834 = vmatmul.f32.gmra.mxu2 %v6181_v49  ;;  %v6191_v9 = vpop.eup %6190 }
 0x59e   :  { %2872 = vmatmul.f32.gmra.mxu3 %v6183_v3  ;;  %2901 = vmatmul.f32.gmra.mxu0 %v6179_v41 }
 0x5a0   :  { %v6193_v50 = vpop.eup %6192 }
 0x5a1   :  { %v6195_v60 = vpop.eup %6194 }
 0x5a5   :  { %2837 = vmatmul.f32.gmra.mxu2 %v6187_v56 }
 0x5a6   :  { %2875 = vmatmul.f32.gmra.mxu3 %v6189_v0  ;;  %2904 = vmatmul.f32.gmra.mxu0 %v6185_v16 }
 0x5ad   :  { %2840 = vmatmul.f32.gmra.mxu2 %v6191_v9 }
 0x5ae   :  { %2907 = vmatmul.f32.gmra.mxu0 %v6193_v50  ;;  %v2963_v50 = vld [vmem:[%s9956_s8 + $0x38] sm:$0xff] }
 0x5af   :  { %2990 = vmatpush.msra.mxu1 %v2963_v50  ;;  %5823 = vmatpush.msrb.mxu3 %v2963_v50 }
 0x5b6   :  { %2910 = vmatmul.f32.gmra.mxu0 %v6195_v60  ;;  %v2962_v60 = vld [vmem:[%s9956_s8 + $0x30] sm:$0xff] }
 0x5b7   :  { %2991 = vmatpush.msra.mxu1 %v2962_v60  ;;  %5824 = vmatpush.msrb.mxu3 %v2962_v60 }
 0x600   :  { %v2861_v20 = vpop.f32.mrf.mxu3 }
 0x608   :  { %v2826_v44 = vpop.f32.mrf.mxu2 }
 0x609   :  { %v2862_v7 = vadd.f32 %v2861_v20, %v2826_v44  ;;  %v2864_v41 = vpop.f32.mrf.mxu3 }
 0x60b   :  { %v2896_v19 = vpop.f32.mrf.mxu0 }
 0x60c   :  { %v8454_v49 = vadd.f32 %v2896_v19, %v2862_v7  ;;  %v2961_v7 = vld [vmem:[%s9956_s8 + $0x28] sm:$0xff]  ;;  %v2960_v19 = vld [vmem:[%s9956_s8 + $0x20] sm:$0xff] }
 0x60d   :  { %2992 = vmatpush.msra.mxu1 %v2961_v7  ;;  %5825 = vmatpush.msrb.mxu3 %v2961_v7 }
 0x60e   :  { %v2914_v3 = vmax.f32 %v8454_v49, 1e-30 }
 0x60f   :  { %2993 = vmatpush.msra.mxu1 %v2960_v19  ;;  %5826 = vmatpush.msrb.mxu3 %v2960_v19 }
 0x610   :  { %6196 = vrcp.f32 %v2914_v3  ;;  %v2829_v10 = vpop.f32.mrf.mxu2 }
 0x611   :  { %v2865_v62 = vadd.f32 %v2864_v41, %v2829_v10  ;;  %v2867_v63 = vpop.f32.mrf.mxu3  ;;  %v2959_v10 = vld [vmem:[%s9956_s8 + $0x18] sm:$0xff] }
 0x612   :  { %2994 = vmatpush.msra.mxu1 %v2959_v10  ;;  %5827 = vmatpush.msrb.mxu3 %v2959_v10 }
 0x613   :  { %v2899_v59 = vpop.f32.mrf.mxu0 }
 0x614   :  { %v8457_v25 = vadd.f32 %v2899_v59, %v2865_v62 }
 0x616   :  { %v6197_v17 = vpop.eup %6196  ;;  %v2915_v16 = vmax.f32 %v8457_v25, 1e-30 }
 0x617   :  { %2932 = vrot.lane.b32.xlu1 %v6197_v17, %s6421_s6  ;;  %v2958_v17 = vld [vmem:[%s9956_s8 + $0x10] sm:$0xff] }
 0x618   :  { %6198 = vrcp.f32 %v2915_v16  ;;  %v2832_v52 = vpop.f32.mrf.mxu2  ;;  %2995 = vmatpush.msra.mxu1 %v2958_v17  ;;  %5828 = vmatpush.msrb.mxu3 %v2958_v17 }
 0x619   :  { %v2868_v56 = vadd.f32 %v2867_v63, %v2832_v52  ;;  %v2870_v6 = vpop.f32.mrf.mxu3 }
 0x61b   :  { %v2902_v0 = vpop.f32.mrf.mxu0 }
 0x61c   :  { %v8461_v28 = vadd.f32 %v2902_v0, %v2868_v56  ;;  %v2957_v56 = vld [vmem:[%s9956_s8 + $0x8] sm:$0xff] }
 0x61d   :  { %2996 = vmatpush.msra.mxu1 %v2957_v56  ;;  %5829 = vmatpush.msrb.mxu3 %v2957_v56 }
 0x61e   :  { %v6199_v13 = vpop.eup %6198  ;;  %v2916_v9 = vmax.f32 %v8461_v28, 1e-30 }
 0x61f   :  { %2934 = vrot.lane.b32.xlu0 %v6199_v13, %s6421_s6 }
 0x620   :  { %6200 = vrcp.f32 %v2916_v9  ;;  %v2835_v20 = vpop.f32.mrf.mxu2 }
 0x621   :  { %v2871_v44 = vadd.f32 %v2870_v6, %v2835_v20  ;;  %v2873_v63 = vpop.f32.mrf.mxu3 }
 0x623   :  { %v2905_v41 = vpop.f32.mrf.mxu0 }
 0x624   :  { %v2906_v3 = vadd.f32 %v2905_v41, %v2871_v44 }
 0x626   :  { %v6201_v62 = vpop.eup %6200  ;;  %v2917_v59 = vmax.f32 %v2906_v3, 1e-30 }
 0x627   :  { %2936 = vrot.lane.b32.xlu1 %v6201_v62, %s6421_s6  ;;  %v2956_v62 = vld [vmem:[%s9956_s8] sm:$0xff] }
 0x628   :  { %6202 = vrcp.f32 %v2917_v59  ;;  %v2838_v16 = vpop.f32.mrf.mxu2  ;;  %2997 = vmatpush.msra.mxu1 %v2956_v62  ;;  %5830 = vmatpush.msrb.mxu3 %v2956_v62 }
 0x629   :  { %v2874_v52 = vadd.f32 %v2873_v63, %v2838_v16  ;;  %v2876_v50 = vpop.f32.mrf.mxu3 }
 0x62b   :  { %v2908_v0 = vpop.f32.mrf.mxu0 }
 0x62c   :  { %v2909_v6 = vadd.f32 %v2908_v0, %v2874_v52 }
 0x62e   :  { %v6203_v13 = vpop.eup %6202  ;;  %v2918_v9 = vmax.f32 %v2909_v6, 1e-30 }
 0x62f   :  { %2938 = vrot.lane.b32.xlu0 %v6203_v13, %s6421_s6 }
 0x630   :  { %6204 = vrcp.f32 %v2918_v9  ;;  %v2841_v60 = vpop.f32.mrf.mxu2 }
 0x631   :  { %v2877_v20 = vadd.f32 %v2876_v50, %v2841_v60 }
 0x633   :  { %v2911_v44 = vpop.f32.mrf.mxu0 }
 0x634   :  { %v2912_v7 = vadd.f32 %v2911_v44, %v2877_v20  ;;  %v6355_v44 = vld [vmem:[#allocation2] sm:$0xff] }
 0x636   :  { %v6205_v41 = vpop.eup %6204  ;;  %v2919_v19 = vmax.f32 %v2912_v7, 1e-30 }
 0x637   :  { %2940 = vrot.lane.b32.xlu2 %v6205_v41, %s6421_s6 }
 0x638   :  { %6206 = vrcp.f32 %v2919_v19 }
 0x63e   :  { %v6207_v10 = vpop.eup %6206 }
 0x63f   :  { %2942 = vrot.lane.b32.xlu1 %v6207_v10, %s6421_s6 }
 0x689   :  { %v2933_v63 = vpop.permute.xlu1 %2932 }
 0x68a   :  { %v2950_v59 = vmul.f32 %v2933_v63, %v8454_v49 }
 0x68c   :  { %5645 = vmatmul.msk.f32.vlgmr.msra.gmra.mxu1 %vm171_vm1, %v2950_v59 }
 0x691   :  { %v2935_v17 = vpop.permute.xlu0 %2934  ;;  %v2941_v16 = vpop.permute.xlu2 %2940 }
 0x692   :  { %v2951_v52 = vmul.f32 %v2935_v17, %v8457_v25  ;;  %v2954_v56 = vmul.f32 %v2941_v16, %v2909_v6  ;;  %v8505_v25 = vld [vmem:[%s9951_s3 + $0x10] sm:$0xff] }
 0x693   :  { %v3023_v6 = vperm.slane %v8505_v25, 3 }
 0x694   :  { %5646 = vmatmul.msk.f32.gmra.mxu1 %vm171_vm1, %v2951_v52  ;;  %5649 = vmatmul.msk.f32.vlgmr.msrb.gmra.mxu3 %vm171_vm1, %v2954_v56  ;;  %v6357_v56 = vld [vmem:[#allocation2 + $0x10] sm:$0xff] }
 0x699   :  { %v2937_v0 = vpop.permute.xlu1 %2936 }
 0x69a   :  { %v2952_v13 = vmul.f32 %v2937_v0, %v8461_v28 }
 0x69c   :  { %5647 = vmatmul.msk.f32.gmra.mxu1 %vm171_vm1, %v2952_v13 }
 0x6a1   :  { %v2939_v9 = vpop.permute.xlu0 %2938 }
 0x6a2   :  { %v2953_v50 = vmul.f32 %v2939_v9, %v2906_v3 }
 0x6a4   :  { %5648 = vmatmul.msk.f32.gmra.mxu1 %vm171_vm1, %v2953_v50 }
 0x6b1   :  { %v2943_v49 = vpop.permute.xlu1 %2942 }
 0x6b2   :  { %v2955_v60 = vmul.f32 %v2943_v49, %v2912_v7  ;;  %v6356_v7 = vld [vmem:[#allocation2 + $0x8] sm:$0xff] }
 0x6b4   :  { %5650 = vmatmul.msk.f32.gmra.mxu3 %vm171_vm1, %v2955_v60 }
 0x709   :  { %v2999_v20 = vpop.f32.mrf.mxu1 }
 0x70a   :  { %v3017_v28 = vadd.f32 %v6355_v44, %v2999_v20 }
 0x70c   :  { %v8508_v41 = vadd.f32 %v3023_v6, %v3017_v28 }
 0x70e   :  { %v3030_v3 = vsel %vm171_vm1, %v8508_v41, 0.0 }
 0x70f   :  { %3031 = vadd.xlane.f32.xlu0 %v3030_v3 }
 0x711   :  { %v3002_v19 = vpop.f32.mrf.mxu1 }
 0x712   :  { %v3018_v10 = vadd.f32 %v6356_v7, %v3002_v19 }
 0x714   :  { %v8512_v62 = vadd.f32 %v3023_v6, %v3018_v10 }
 0x716   :  { %v3033_v63 = vsel %vm171_vm1, %v8512_v62, 0.0 }
 0x717   :  { %v3011_v59 = vpop.f32.mrf.mxu3  ;;  %3034 = vadd.xlane.f32.xlu1 %v3033_v63 }
 0x718   :  { %v3021_v17 = vadd.f32 %v6356_v7, %v3011_v59  ;;  %v10281_v59 = vld [vmem:[#allocation8_spill] sm:$0xff] }
 0x719   :  { %v3005_v16 = vpop.f32.mrf.mxu1 }
 0x71a   :  { %v8516_v52 = vadd.f32 %v3023_v6, %v3021_v17  ;;  %v3019_v0 = vadd.f32 %v6357_v56, %v3005_v16 }
 0x71c   :  { %v8518_v13 = vadd.f32 %v3023_v6, %v3019_v0  ;;  %v3042_v50 = vsel %vm171_vm1, %v8516_v52, 0.0 }
 0x71e   :  { %v3036_v9 = vsel %vm171_vm1, %v8518_v13, 0.0 }
 0x71f   :  { %3037 = vadd.xlane.f32.xlu2 %v3036_v9  ;;  %3043 = vadd.xlane.f32.xlu1 %v3042_v50 }
 0x721   :  { %v3008_v49 = vpop.f32.mrf.mxu1 }
 0x722   :  { %v3020_v60 = vadd.f32 %v6355_v44, %v3008_v49 }
 0x724   :  { %v8524_v20 = vadd.f32 %v3023_v6, %v3020_v60 }
 0x726   :  { %v3039_v28 = vsel %vm171_vm1, %v8524_v20, 0.0 }
 0x727   :  { %3040 = vadd.xlane.f32.xlu0 %v3039_v28 }
 0x737   :  { %v3014_v3 = vpop.f32.mrf.mxu3 }
 0x738   :  { %v3022_v19 = vadd.f32 %v6357_v56, %v3014_v3 }
 0x73a   :  { %v8528_v7 = vadd.f32 %v3023_v6, %v3022_v19 }
 0x73c   :  { %v3045_v10 = vsel %vm171_vm1, %v8528_v7, 0.0 }
 0x73d   :  { %3046 = vadd.xlane.f32.xlu0 %v3045_v10 }
 0x782   :  { %v3032_v63 = vpop.xlane.xlu0 %3031 }
 0x783   :  { %v3048_v17 = vmul.f32 %v3032_v63, %v10281_v59 }
 0x785   :  { %v8534_v16 = vsub.f32 %v8508_v41, %v3048_v17 }
 0x787   :  { %v3060_v44 = vmul.f32 %v8534_v16, %v8534_v16 }
 0x789   :  { %v3066_v0 = vsel %vm171_vm1, %v3060_v44, 0.0 }
 0x78a   :  { %3067 = vadd.xlane.f32.xlu1 %v3066_v0  ;;  %v3035_v9 = vpop.xlane.xlu1 %3034 }
 0x78b   :  { %v3049_v6 = vmul.f32 %v3035_v9, %v10281_v59 }
 0x78d   :  { %v8541_v56 = vsub.f32 %v8512_v62, %v3049_v6 }
 0x78f   :  { %v3061_v50 = vmul.f32 %v8541_v56, %v8541_v56 }
 0x791   :  { %v3069_v49 = vsel %vm171_vm1, %v3061_v50, 0.0 }
 0x792   :  { %v3038_v60 = vpop.xlane.xlu2 %3037  ;;  %3070 = vadd.xlane.f32.xlu2 %v3069_v49  ;;  %v3044_v28 = vpop.xlane.xlu1 %3043 }
 0x793   :  { %v3050_v3 = vmul.f32 %v3038_v60, %v10281_v59  ;;  %v3052_v19 = vmul.f32 %v3044_v28, %v10281_v59 }
 0x795   :  { %v8549_v10 = vsub.f32 %v8518_v13, %v3050_v3  ;;  %v8552_v63 = vsub.f32 %v8516_v52, %v3052_v19  ;;  %v10282_v19 = vld [vmem:[#allocation11_spill] sm:$0xff] }
 0x797   :  { %v3062_v17 = vmul.f32 %v8549_v10, %v8549_v10  ;;  %v3064_v44 = vmul.f32 %v8552_v63, %v8552_v63 }
 0x799   :  { %v3072_v0 = vsel %vm171_vm1, %v3062_v17, 0.0  ;;  %v3078_v9 = vsel %vm171_vm1, %v3064_v44, 0.0  ;;  %v3728_v17 = vmul.f32 %v10283_v22, %v10282_v19  ;;  %v10287_v22 = vld [vmem:[#allocation70_spill] sm:$0xff] }
 0x79a   :  { %v3041_v6 = vpop.xlane.xlu0 %3040  ;;  %3073 = vadd.xlane.f32.xlu0 %v3072_v0  ;;  %3079 = vadd.xlane.f32.xlu2 %v3078_v9  ;;  %v3745_v4 = vmul.f32 %v10287_v22, %v10286_v37 }
 0x79b   :  { %v3051_v50 = vmul.f32 %v3041_v6, %v10281_v59 }
 0x79d   :  { %v8562_v49 = vsub.f32 %v8524_v20, %v3051_v50  ;;  %v10284_v50 = vld [vmem:[#allocation10_spill] sm:$0xff] }
 0x79f   :  { %v3063_v60 = vmul.f32 %v8562_v49, %v8562_v49 }
 0x7a1   :  { %v3075_v28 = vsel %vm171_vm1, %v3063_v60, 0.0  ;;  %v10285_v60 = vld [vmem:[#allocation41_spill] sm:$0xff] }
 0x7a2   :  { %3076 = vadd.xlane.f32.xlu1 %v3075_v28  ;;  %v3729_v28 = vmul.f32 %v10285_v60, %v10284_v50  ;;  %v3178_v60 = vld [vmem:[%s9957_s9 + $0x10] sm:$0xff] }
 0x7b0   :  { %v3047_v3 = vpop.xlane.xlu0 %3046 }
 0x7b1   :  { %v3053_v44 = vmul.f32 %v3047_v3, %v10281_v59  ;;  %v3190_v3 = vld [vmem:[%s9957_s9 + $0x70] sm:$0xff] }
 0x7b2   :  { %3886 = vrot.lane.b32.xlu2 %v3728_v17, %s6421_s6  ;;  %v3191_v17 = vld [vmem:[%s9957_s9 + $0x78] sm:$0xff]  ;;  %3220 = vmatpush.msra.mxu2 %v3190_v3  ;;  %v3185_v3 = vld [vmem:[%s9957_s9 + $0x48] sm:$0xff] }
 0x7b3   :  { %v8572_v0 = vsub.f32 %v8528_v7, %v3053_v44  ;;  %3255 = vmatpush.msra.mxu3 %v3191_v17  ;;  %v3188_v44 = vld [vmem:[%s9957_s9 + $0x60] sm:$0xff]  ;;  %v3182_v17 = vld [vmem:[%s9957_s9 + $0x30] sm:$0xff] }
 0x7b4   :  { %3221 = vmatpush.msra.mxu2 %v3188_v44  ;;  %v3183_v44 = vld [vmem:[%s9957_s9 + $0x38] sm:$0xff] }
 0x7b5   :  { %v3065_v9 = vmul.f32 %v8572_v0, %v8572_v0 }
 0x7b7   :  { %v3081_v6 = vsel %vm171_vm1, %v3065_v9, 0.0  ;;  %v3189_v9 = vld [vmem:[%s9957_s9 + $0x68] sm:$0xff] }
 0x7b8   :  { %3082 = vadd.xlane.f32.xlu0 %v3081_v6  ;;  %3256 = vmatpush.msra.mxu3 %v3189_v9  ;;  %v3187_v6 = vld [vmem:[%s9957_s9 + $0x58] sm:$0xff] }
 0x7ba   :  { %3257 = vmatpush.msra.mxu3 %v3187_v6  ;;  %v3180_v6 = vld [vmem:[%s9957_s9 + $0x20] sm:$0xff] }
 0x7bb   :  { %3888 = vrot.lane.b32.xlu1 %v3729_v28, %s6421_s6  ;;  %v3184_v28 = vld [vmem:[%s9957_s9 + $0x40] sm:$0xff] }
 0x7bc   :  { %3258 = vmatpush.msra.mxu3 %v3185_v3 }
 0x7be   :  { %3259 = vmatpush.msra.mxu3 %v3183_v44  ;;  %v3176_v44 = vld [vmem:[%s9957_s9] sm:$0xff] }
 0x7cc   :  { %3920 = vrot.lane.b32.xlu0 %v3745_v4, %s6421_s6  ;;  %v3186_v4 = vld [vmem:[%s9957_s9 + $0x50] sm:$0xff] }
 0x7cd   :  { %3222 = vmatpush.msra.mxu2 %v3186_v4 }
 0x7cf   :  { %3223 = vmatpush.msra.mxu2 %v3184_v28  ;;  %v3181_v28 = vld [vmem:[%s9957_s9 + $0x28] sm:$0xff] }
 0x7d0   :  { %3260 = vmatpush.msra.mxu3 %v3181_v28 }
 0x7d1   :  { %3224 = vmatpush.msra.mxu2 %v3182_v17  ;;  %v3179_v17 = vld [vmem:[%s9957_s9 + $0x18] sm:$0xff] }
 0x7d2   :  { %3261 = vmatpush.msra.mxu3 %v3179_v17 }
 0x7d3   :  { %3225 = vmatpush.msra.mxu2 %v3180_v6 }
 0x7d5   :  { %3226 = vmatpush.msra.mxu2 %v3178_v60  ;;  %v3405_v60 = vld [vmem:[%s9958_s10 + $0x78] sm:$0xff] }
 0x7d6   :  { %3422 = vmatpush.msrb.mxu0 %v3405_v60 }
 0x7d7   :  { %3227 = vmatpush.msra.mxu2 %v3176_v44  ;;  %v3403_v44 = vld [vmem:[%s9958_s10 + $0x68] sm:$0xff] }
 0x7d8   :  { %3423 = vmatpush.msrb.mxu0 %v3404_v31 }
 0x7da   :  { %3424 = vmatpush.msrb.mxu0 %v3403_v44  ;;  %v8656_v44 = vperm.slane %v8505_v25, 4 }
 0x7dc   :  { %3425 = vmatpush.msrb.mxu0 %v3402_v33  ;;  %v8661_v33 = vperm.slane %v8505_v25, 5 }
 0x7de   :  { %3426 = vmatpush.msrb.mxu0 %v3401_v14 }
 0x7fd   :  { %v3068_v9 = vpop.xlane.xlu1 %3067 }
 0x7fe   :  { %v3084_v4 = vmul.f32 %v3068_v9, %v10281_v59  ;;  %v3177_v9 = vld [vmem:[%s9957_s9 + $0x8] sm:$0xff] }
 0x7ff   :  { %3262 = vmatpush.msra.mxu3 %v3177_v9 }
 0x800   :  { %v3090_v3 = vadd.f32 1e-05, %v3084_v4 }
 0x802   :  { %6208 = vrsqrt.f32 %v3090_v3  ;;  %vm3102_vm14 = vweird.f32 %v3090_v3 }
 0x805   :  { %v3071_v4 = vpop.xlane.xlu2 %3070 }
 0x806   :  { %v3085_v6 = vmul.f32 %v3071_v4, %v10281_v59 }
 0x808   :  { %v6209_v28 = vpop.eup %6208  ;;  %v3091_v22 = vadd.f32 1e-05, %v3085_v6 }
 0x809   :  { %v3097_v2 = vmul.f32 %v6209_v28, %v3090_v3  ;;  %vm3103_vm13 = vweird.f32 %v6209_v28 }
 0x80a   :  { %6210 = vrsqrt.f32 %v3091_v22  ;;  %vm3104_vm15 = vmor %vm3102_vm14, %vm3103_vm13  ;;  %vm3112_vm2 = vweird.f32 %v3091_v22 }
 0x80b   :  { %v3098_v17 = vmul.f32 %v6209_v28, %v3097_v2 }
 0x80d   :  { %v3099_v9 = vmul.f32 0.5, %v3098_v17  ;;  %v3074_v4 = vpop.xlane.xlu0 %3073  ;;  %v3080_v6 = vpop.xlane.xlu2 %3079 }
 0x80e   :  { %v3086_v47 = vmul.f32 %v3074_v4, %v10281_v59  ;;  %v3088_v2 = vmul.f32 %v3080_v6, %v10281_v59  ;;  %v3400_v4 = vld [vmem:[%s9958_s10 + $0x50] sm:$0xff] }
 0x80f   :  { %v3100_v60 = vsub.f32 1.5, %v3099_v9  ;;  %3427 = vmatpush.msrb.mxu0 %v3400_v4 }
 0x810   :  { %v6211_v53 = vpop.eup %6210  ;;  %v3092_v31 = vadd.f32 1e-05, %v3086_v47  ;;  %v8650_v17 = vadd.f32 1e-05, %v3088_v2 }
 0x811   :  { %v3101_v61 = vmul.f32 %v6209_v28, %v3100_v60  ;;  %v3107_v40 = vmul.f32 %v6211_v53, %v3091_v22  ;;  %v3399_v60 = vld [vmem:[%s9958_s10 + $0x48] sm:$0xff]  ;;  %vm3113_vm0 = vweird.f32 %v6211_v53  ;;  %v3396_v22 = vld [vmem:[%s9958_s10 + $0x30] sm:$0xff] }
 0x812   :  { %6212 = vrsqrt.f32 %v3092_v31  ;;  %3428 = vmatpush.msrb.mxu0 %v3399_v60  ;;  %vm3114_vm3 = vmor %vm3112_vm2, %vm3113_vm0  ;;  %vm3122_vm5 = vweird.f32 %v3092_v31  ;;  %vm3142_vm11 = vweird.f32 %v8650_v17 }
 0x813   :  { %v3105_v9 = vsel %vm3104_vm15, %v6209_v28, %v3101_v61  ;;  %v3108_v6 = vmul.f32 %v6211_v53, %v3107_v40  ;;  %6214 = vrsqrt.f32 %v8650_v17  ;;  %v3398_v40 = vld [vmem:[%s9958_s10 + $0x40] sm:$0xff] }
 0x814   :  { %v3156_v47 = vmul.f32 %v3105_v9, %v8534_v16  ;;  %3429 = vmatpush.msrb.mxu0 %v3398_v40  ;;  %v3395_v40 = vld [vmem:[%s9958_s10 + $0x28] sm:$0xff] }
 0x815   :  { %v3109_v3 = vmul.f32 0.5, %v3108_v6  ;;  %v3077_v2 = vpop.xlane.xlu1 %3076 }
 0x816   :  { %v3163_v38 = vmul.f32 %v8656_v44, %v3156_v47  ;;  %v3087_v14 = vmul.f32 %v3077_v2, %v10281_v59  ;;  %v3397_v47 = vld [vmem:[%s9958_s10 + $0x38] sm:$0xff] }
 0x817   :  { %v3110_v61 = vsub.f32 1.5, %v3109_v3  ;;  %3430 = vmatpush.msrb.mxu0 %v3397_v47 }
 0x818   :  { %v6213_v16 = vpop.eup %6212  ;;  %v3093_v28 = vadd.f32 1e-05, %v3087_v14  ;;  %v3170_v4 = vadd.f32 %v8661_v33, %v3163_v38 }
 0x819   :  { %v8672_v9 = vpop.eup %6214  ;;  %v3111_v6 = vmul.f32 %v6211_v53, %v3110_v61  ;;  %v3117_v1 = vmul.f32 %v6213_v16, %v3092_v31  ;;  %3431 = vmatpush.msrb.mxu0 %v3396_v22  ;;  %vm3123_vm4 = vweird.f32 %v6213_v16 }
 0x81a   :  { %v3137_v3 = vmul.f32 %v8672_v9, %v8650_v17  ;;  %6216 = vrsqrt.f32 %v3093_v28  ;;  %5651 = vmatmul.msk.f32.vlgmr.msra.gmra.mxu2 %vm171_vm1, %v3170_v4  ;;  %5657 = vmatmul.msk.f32.vlgmr.msra.gmra.mxu3 %vm171_vm1, %v3170_v4  ;;  %vm3124_vm6 = vmor %vm3122_vm5, %vm3123_vm4  ;;  %vm3143_vm8 = vweird.f32 %v8672_v9  ;;  %vm3132_vm9 = vweird.f32 %v3093_v28 }
 0x81b   :  { %v3115_v38 = vsel %vm3114_vm3, %v6211_v53, %v3111_v6  ;;  %v3118_v2 = vmul.f32 %v6213_v16, %v3117_v1  ;;  %3432 = vmatpush.msrb.mxu0 %v3395_v40  ;;  %v3394_v1 = vld [vmem:[%s9958_s10 + $0x20] sm:$0xff]  ;;  %vm3144_vm12 = vmor %vm3142_vm11, %vm3143_vm8 }
 0x81c   :  { %v3157_v60 = vmul.f32 %v3115_v38, %v8541_v56  ;;  %v3138_v61 = vmul.f32 %v8672_v9, %v3137_v3  ;;  %v3393_v38 = vld [vmem:[%s9958_s10 + $0x18] sm:$0xff] }
 0x81d   :  { %v3119_v14 = vmul.f32 0.5, %v3118_v2  ;;  %3433 = vmatpush.msrb.mxu0 %v3394_v1  ;;  %v3392_v2 = vld [vmem:[%s9958_s10 + $0x10] sm:$0xff] }
 0x81e   :  { %v3164_v55 = vmul.f32 %v8656_v44, %v3157_v60  ;;  %v3139_v47 = vmul.f32 0.5, %v3138_v61  ;;  %v3391_v60 = vld [vmem:[%s9958_s10 + $0x8] sm:$0xff] }
 0x81f   :  { %v3120_v4 = vsub.f32 1.5, %v3119_v14  ;;  %3434 = vmatpush.msrb.mxu0 %v3393_v38 }
 0x820   :  { %v6217_v53 = vpop.eup %6216  ;;  %v3171_v56 = vadd.f32 %v8661_v33, %v3164_v55  ;;  %v3140_v14 = vsub.f32 1.5, %v3139_v47 }
 0x821   :  { %v3121_v6 = vmul.f32 %v6213_v16, %v3120_v4  ;;  %v3127_v3 = vmul.f32 %v6217_v53, %v3093_v28  ;;  %3435 = vmatpush.msrb.mxu0 %v3392_v2  ;;  %v3390_v4 = vld [vmem:[%s9958_s10] sm:$0xff]  ;;  %vm3133_vm7 = vweird.f32 %v6217_v53 }
 0x822   :  { %5652 = vmatmul.msk.f32.gmra.mxu2 %vm171_vm1, %v3171_v56  ;;  %5658 = vmatmul.msk.f32.gmra.mxu3 %vm171_vm1, %v3171_v56  ;;  %v3420_v56 = vld [vmem:[%s9958_s10 + $0xf0] sm:$0xff]  ;;  %vm3134_vm10 = vmor %vm3132_vm9, %vm3133_vm7 }
 0x823   :  { %v3125_v22 = vsel %vm3124_vm6, %v6213_v16, %v3121_v6  ;;  %v3128_v55 = vmul.f32 %v6217_v53, %v3127_v3  ;;  %3436 = vmatpush.msrb.mxu0 %v3391_v60  ;;  %v3141_v6 = vmul.f32 %v8672_v9, %v3140_v14  ;;  %v3419_v3 = vld [vmem:[%s9958_s10 + $0xe8] sm:$0xff] }
 0x824   :  { %v3158_v31 = vmul.f32 %v3125_v22, %v8549_v10  ;;  %v3421_v10 = vld [vmem:[%s9958_s10 + $0xf8] sm:$0xff] }
 0x825   :  { %v3129_v61 = vmul.f32 0.5, %v3128_v55  ;;  %3437 = vmatpush.msrb.mxu0 %v3390_v4  ;;  %3457 = vmatpush.msrb.mxu1 %v3421_v10  ;;  %v3145_v55 = vsel %vm3144_vm12, %v8672_v9, %v3141_v6 }
 0x826   :  { %v3165_v40 = vmul.f32 %v8656_v44, %v3158_v31 }
 0x827   :  { %v3130_v1 = vsub.f32 1.5, %v3129_v61  ;;  %3458 = vmatpush.msrb.mxu1 %v3420_v56  ;;  %v3887_v61 = vpop.permute.xlu2 %3886 }
 0x828   :  { %v3172_v16 = vadd.f32 %v8661_v33, %v3165_v40 }
 0x829   :  { %v3131_v47 = vmul.f32 %v6217_v53, %v3130_v1  ;;  %3459 = vmatpush.msrb.mxu1 %v3419_v3 }
 0x82a   :  { %5653 = vmatmul.msk.f32.gmra.mxu2 %vm171_vm1, %v3172_v16  ;;  %5659 = vmatmul.msk.f32.gmra.mxu3 %vm171_vm1, %v3172_v16 }
 0x82b   :  { %v3135_v38 = vsel %vm3134_vm10, %v6217_v53, %v3131_v47  ;;  %v3083_v2 = vpop.xlane.xlu0 %3082  ;;  %v3160_v53 = vmul.f32 %v3145_v55, %v8552_v63  ;;  %v3412_v55 = vld [vmem:[%s9958_s10 + $0xb0] sm:$0xff] }
 0x82c   :  { %v3089_v22 = vmul.f32 %v3083_v2, %v10281_v59  ;;  %v3159_v28 = vmul.f32 %v3135_v38, %v8562_v49  ;;  %v3418_v2 = vld [vmem:[%s9958_s10 + $0xe0] sm:$0xff] }
 0x82d   :  { %v3889_v31 = vpop.permute.xlu1 %3888  ;;  %v3167_v49 = vmul.f32 %v8656_v44, %v3160_v53  ;;  %3460 = vmatpush.msrb.mxu1 %v3418_v2  ;;  %v3409_v53 = vld [vmem:[%s9958_s10 + $0x98] sm:$0xff] }
 0x82e   :  { %v3095_v60 = vadd.f32 1e-05, %v3089_v22  ;;  %5677 = vmatpush.xpose.msk.msrb.mxu3 %vm171_vm1, %v3889_v31  ;;  %v3166_v14 = vmul.f32 %v8656_v44, %v3159_v28  ;;  %v3417_v22 = vld [vmem:[%s9958_s10 + $0xd8] sm:$0xff]  ;;  %v3411_v31 = vld [vmem:[%s9958_s10 + $0xa8] sm:$0xff] }
 0x82f   :  { %v3174_v4 = vadd.f32 %v8661_v33, %v3167_v49  ;;  %3461 = vmatpush.msrb.mxu1 %v3417_v22  ;;  %v3413_v28 = vld [vmem:[%s9958_s10 + $0xb8] sm:$0xff] }
 0x830   :  { %6218 = vrsqrt.f32 %v3095_v60  ;;  %v3173_v17 = vadd.f32 %v8661_v33, %v3166_v14  ;;  %vm3152_vm14 = vweird.f32 %v3095_v60  ;;  %v8775_v14 = vld [vmem:[%s9951_s3 + $0x20] sm:$0xff] }
 0x831   :  { %v8787_v49 = vperm.slane %v8775_v14, 6 }
 0x832   :  { %5654 = vmatmul.msk.f32.gmra.mxu2 %vm171_vm1, %v3173_v17  ;;  %5660 = vmatmul.msk.f32.gmra.mxu3 %vm171_vm1, %v3173_v17  ;;  %v61_v17 = vld [vmem:[%s9951_s3 + $0x28] sm:$0xff] }
 0x833   :  { %5678 = vmatpush.xpose.msk.msrb.mxu3 %vm171_vm1, %v3887_v61  ;;  %v3408_v61 = vld [vmem:[%s9958_s10 + $0x90] sm:$0xff] }
 0x836   :  { %v6219_v9 = vpop.eup %6218 }
 0x837   :  { %v3147_v40 = vmul.f32 %v6219_v9, %v3095_v60  ;;  %vm3153_vm13 = vweird.f32 %v6219_v9  ;;  %v3410_v60 = vld [vmem:[%s9958_s10 + $0xa0] sm:$0xff] }
 0x838   :  { %vm3154_vm15 = vmor %vm3152_vm14, %vm3153_vm13 }
 0x839   :  { %v3148_v1 = vmul.f32 %v6219_v9, %v3147_v40  ;;  %v3407_v40 = vld [vmem:[%s9958_s10 + $0x88] sm:$0xff] }
 0x83a   :  { %5655 = vmatmul.msk.f32.gmra.mxu2 %vm171_vm1, %v3174_v4  ;;  %5661 = vmatmul.msk.f32.gmra.mxu3 %vm171_vm1, %v3174_v4 }
 0x83b   :  { %v3149_v16 = vmul.f32 0.5, %v3148_v1 }
 0x83d   :  { %v3150_v63 = vsub.f32 1.5, %v3149_v16 }
 0x83e   :  { %v3921_v10 = vpop.permute.xlu0 %3920 }
 0x83f   :  { %v3151_v56 = vmul.f32 %v6219_v9, %v3150_v63  ;;  %5699 = vmatpush.xpose.msk.msra.mxu0 %vm171_vm1, %v3921_v10  ;;  %v3406_v10 = vld [vmem:[%s9958_s10 + $0x80] sm:$0xff] }
 0x841   :  { %v3155_v6 = vsel %vm3154_vm15, %v6219_v9, %v3151_v56  ;;  %v8789_v9 = vperm.slane %v61_v17, 6 }
 0x842   :  { %v3161_v47 = vmul.f32 %v3155_v6, %v8572_v0  ;;  %v3416_v0 = vld [vmem:[%s9958_s10 + $0xd0] sm:$0xff] }
 0x843   :  { %3462 = vmatpush.msrb.mxu1 %v3416_v0 }
 0x844   :  { %v3168_v3 = vmul.f32 %v8656_v44, %v3161_v47  ;;  %v3415_v44 = vld [vmem:[%s9958_s10 + $0xc8] sm:$0xff] }
 0x845   :  { %3463 = vmatpush.msrb.mxu1 %v3415_v44 }
 0x846   :  { %v3175_v38 = vadd.f32 %v8661_v33, %v3168_v3  ;;  %v3414_v33 = vld [vmem:[%s9958_s10 + $0xc0] sm:$0xff] }
 0x847   :  { %3464 = vmatpush.msrb.mxu1 %v3414_v33 }
 0x848   :  { %5656 = vmatmul.msk.f32.gmra.mxu2 %vm171_vm1, %v3175_v38  ;;  %5662 = vmatmul.msk.f32.gmra.mxu3 %vm171_vm1, %v3175_v38 }
 0x849   :  { %3465 = vmatpush.msrb.mxu1 %v3413_v28 }
 0x84b   :  { %3466 = vmatpush.msrb.mxu1 %v3412_v55 }
 0x84d   :  { %3467 = vmatpush.msrb.mxu1 %v3411_v31 }
 0x84f   :  { %3468 = vmatpush.msrb.mxu1 %v3410_v60 }
 0x851   :  { %3469 = vmatpush.msrb.mxu1 %v3409_v53 }
 0x853   :  { %3470 = vmatpush.msrb.mxu1 %v3408_v61 }
 0x855   :  { %3471 = vmatpush.msrb.mxu1 %v3407_v40 }
 0x857   :  { %3472 = vmatpush.msrb.mxu1 %v3406_v10 }
 0x89d   :  { %v3229_v4 = vpop.f32.mrf.mxu2  ;;  %v3264_v1 = vpop.f32.mrf.mxu3 }
 0x89e   :  { %v3230_v16 = vadd.f32 %v3229_v4, %v8787_v49  ;;  %v3265_v63 = vadd.f32 %v3264_v1, %v8789_v9 }
 0x8a0   :  { %v3282_v56 = vmul.f32 %v3230_v16, %v3230_v16  ;;  %v3283_v6 = vmul.f32 %v3265_v63, %v3265_v63 }
 0x8a2   :  { %v3294_v47 = vmul.f32 %v3282_v56, %v3230_v16  ;;  %v3295_v3 = vmul.f32 %v3283_v6, %v3265_v63 }
 0x8a4   :  { %v3306_v38 = vmul.f32 0.044715, %v3294_v47  ;;  %v3307_v2 = vmul.f32 0.044715, %v3295_v3 }
 0x8a5   :  { %v3232_v22 = vpop.f32.mrf.mxu2  ;;  %v3267_v0 = vpop.f32.mrf.mxu3 }
 0x8a6   :  { %v3318_v44 = vadd.f32 %v3306_v38, %v3230_v16  ;;  %v3319_v33 = vadd.f32 %v3307_v2, %v3265_v63  ;;  %v3233_v28 = vadd.f32 %v3232_v22, %v8787_v49  ;;  %v8801_v55 = vadd.f32 %v3267_v0, %v8789_v9 }
 0x8a8   :  { %v3330_v31 = vmul.f32 0.7978846, %v3318_v44  ;;  %v3331_v60 = vmul.f32 0.7978846, %v3319_v33  ;;  %v3284_v17 = vmul.f32 %v3233_v28, %v3233_v28  ;;  %v3285_v53 = vmul.f32 %v8801_v55, %v8801_v55 }
 0x8aa   :  { %6220 = vtanh.f32 %v3330_v31  ;;  %v3296_v61 = vmul.f32 %v3284_v17, %v3233_v28  ;;  %v3297_v40 = vmul.f32 %v3285_v53, %v8801_v55 }
 0x8ab   :  { %6222 = vtanh.f32 %v3331_v60 }
 0x8ac   :  { %v3308_v4 = vmul.f32 0.044715, %v3296_v61  ;;  %v3309_v1 = vmul.f32 0.044715, %v3297_v40 }
 0x8ad   :  { %v3235_v10 = vpop.f32.mrf.mxu2  ;;  %v3270_v56 = vpop.f32.mrf.mxu3 }
 0x8ae   :  { %v8807_v6 = vadd.f32 %v3235_v10, %v8787_v49  ;;  %v8810_v47 = vadd.f32 %v3270_v56, %v8789_v9  ;;  %v3320_v3 = vadd.f32 %v3308_v4, %v3233_v28  ;;  %v3321_v38 = vadd.f32 %v3309_v1, %v8801_v55 }
 0x8b0   :  { %v6221_v2 = vpop.eup %6220  ;;  %v3286_v22 = vmul.f32 %v8807_v6, %v8807_v6  ;;  %v3287_v0 = vmul.f32 %v8810_v47, %v8810_v47  ;;  %v3332_v44 = vmul.f32 0.7978846, %v3320_v3  ;;  %v3333_v33 = vmul.f32 0.7978846, %v3321_v38 }
 0x8b1   :  { %v6223_v31 = vpop.eup %6222  ;;  %v3354_v60 = vadd.f32 1.0, %v6221_v2 }
 0x8b2   :  { %v3298_v17 = vmul.f32 %v3286_v22, %v8807_v6  ;;  %v3299_v53 = vmul.f32 %v3287_v0, %v8810_v47  ;;  %v3355_v61 = vadd.f32 1.0, %v6223_v31  ;;  %6224 = vtanh.f32 %v3332_v44 }
 0x8b3   :  { %v3366_v40 = vmul.f32 0.5, %v3354_v60  ;;  %6226 = vtanh.f32 %v3333_v33 }
 0x8b4   :  { %v3310_v4 = vmul.f32 0.044715, %v3298_v17  ;;  %v3311_v1 = vmul.f32 0.044715, %v3299_v53  ;;  %v3367_v10 = vmul.f32 0.5, %v3355_v61 }
 0x8b5   :  { %v3378_v56 = vmul.f32 %v3366_v40, %v3230_v16  ;;  %v3238_v8 = vpop.f32.mrf.mxu2  ;;  %v3273_v18 = vpop.f32.mrf.mxu3 }
 0x8b6   :  { %v3323_v54 = vadd.f32 %v3311_v1, %v8810_v47  ;;  %v8821_v3 = vadd.f32 %v3238_v8, %v8787_v49  ;;  %v8824_v38 = vadd.f32 %v3273_v18, %v8789_v9  ;;  %v3379_v2 = vmul.f32 %v3367_v10, %v3265_v63 }
 0x8b7   :  { %3438 = vmatmul.f32.vlgmr.msrb.gmra.mxu0 %v3378_v56  ;;  %v3322_v22 = vadd.f32 %v3310_v4, %v8807_v6 }
 0x8b8   :  { %v6225_v0 = vpop.eup %6224  ;;  %v3288_v44 = vmul.f32 %v8821_v3, %v8821_v3  ;;  %v3289_v16 = vmul.f32 %v8824_v38, %v8824_v38  ;;  %3473 = vmatmul.f32.vlgmr.msrb.gmra.mxu1 %v3379_v2  ;;  %v3335_v33 = vmul.f32 0.7978846, %v3323_v54 }
 0x8b9   :  { %v6227_v31 = vpop.eup %6226  ;;  %v3356_v60 = vadd.f32 1.0, %v6225_v0  ;;  %v3334_v8 = vmul.f32 0.7978846, %v3322_v22 }
 0x8ba   :  { %v3300_v17 = vmul.f32 %v3288_v44, %v8821_v3  ;;  %v3301_v18 = vmul.f32 %v3289_v16, %v8824_v38  ;;  %v3357_v63 = vadd.f32 1.0, %v6227_v31  ;;  %6228 = vtanh.f32 %v3335_v33 }
 0x8bb   :  { %v3368_v53 = vmul.f32 0.5, %v3356_v60  ;;  %6230 = vtanh.f32 %v3334_v8 }
 0x8bc   :  { %v3312_v61 = vmul.f32 0.044715, %v3300_v17  ;;  %v3313_v40 = vmul.f32 0.044715, %v3301_v18  ;;  %v3369_v4 = vmul.f32 0.5, %v3357_v63 }
 0x8bd   :  { %v3241_v1 = vpop.f32.mrf.mxu2  ;;  %v3276_v10 = vpop.f32.mrf.mxu3  ;;  %v3380_v56 = vmul.f32 %v3368_v53, %v3233_v28 }
 0x8be   :  { %v3325_v2 = vadd.f32 %v3313_v40, %v8824_v38  ;;  %v3242_v54 = vadd.f32 %v3241_v1, %v8787_v49  ;;  %v3277_v22 = vadd.f32 %v3276_v10, %v8789_v9  ;;  %v3381_v0 = vmul.f32 %v3369_v4, %v8801_v55 }
 0x8bf   :  { %3441 = vmatmul.f32.gmra.mxu0 %v3380_v56  ;;  %v3324_v44 = vadd.f32 %v3312_v61, %v8821_v3 }
 0x8c0   :  { %v6229_v16 = vpop.eup %6228  ;;  %v3290_v33 = vmul.f32 %v3242_v54, %v3242_v54  ;;  %v3291_v31 = vmul.f32 %v3277_v22, %v3277_v22  ;;  %3476 = vmatmul.f32.gmra.mxu1 %v3381_v0  ;;  %v3337_v60 = vmul.f32 0.7978846, %v3325_v2 }
 0x8c1   :  { %v6231_v8 = vpop.eup %6230  ;;  %v3359_v17 = vadd.f32 1.0, %v6229_v16  ;;  %v3336_v18 = vmul.f32 0.7978846, %v3324_v44 }
 0x8c2   :  { %v3302_v28 = vmul.f32 %v3290_v33, %v3242_v54  ;;  %v3303_v63 = vmul.f32 %v3291_v31, %v3277_v22  ;;  %v3358_v53 = vadd.f32 1.0, %v6231_v8  ;;  %6232 = vtanh.f32 %v3337_v60 }
 0x8c3   :  { %v3371_v40 = vmul.f32 0.5, %v3359_v17  ;;  %6234 = vtanh.f32 %v3336_v18 }
 0x8c4   :  { %v3314_v1 = vmul.f32 0.044715, %v3302_v28  ;;  %v3315_v10 = vmul.f32 0.044715, %v3303_v63  ;;  %v3370_v55 = vmul.f32 0.5, %v3358_v53 }
 0x8c5   :  { %v3383_v4 = vmul.f32 %v3371_v40, %v8810_v47 }
 0x8c6   :  { %v3327_v61 = vadd.f32 %v3315_v10, %v3277_v22  ;;  %v3382_v56 = vmul.f32 %v3370_v55, %v8807_v6  ;;  %v3326_v58 = vadd.f32 %v3314_v1, %v3242_v54 }
 0x8c8   :  { %v6233_v0 = vpop.eup %6232  ;;  %3444 = vmatmul.f32.gmra.mxu0 %v3382_v56  ;;  %3479 = vmatmul.f32.gmra.mxu1 %v3383_v4  ;;  %v3338_v2 = vmul.f32 0.7978846, %v3326_v58  ;;  %v3339_v44 = vmul.f32 0.7978846, %v3327_v61 }
 0x8c9   :  { %v6235_v16 = vpop.eup %6234  ;;  %v3361_v33 = vadd.f32 1.0, %v6233_v0 }
 0x8ca   :  { %v3360_v31 = vadd.f32 1.0, %v6235_v16  ;;  %6236 = vtanh.f32 %v3338_v2 }
 0x8cb   :  { %v3244_v60 = vpop.f32.mrf.mxu2  ;;  %v3279_v8 = vpop.f32.mrf.mxu3  ;;  %v3373_v17 = vmul.f32 0.5, %v3361_v33  ;;  %6238 = vtanh.f32 %v3339_v44 }
 0x8cc   :  { %v3245_v18 = vadd.f32 %v3244_v60, %v8787_v49  ;;  %v3280_v47 = vadd.f32 %v3279_v8, %v8789_v9  ;;  %v3372_v28 = vmul.f32 0.5, %v3360_v31 }
 0x8cd   :  { %v3385_v6 = vmul.f32 %v3373_v17, %v8824_v38 }
 0x8ce   :  { %v3292_v63 = vmul.f32 %v3245_v18, %v3245_v18  ;;  %v3293_v53 = vmul.f32 %v3280_v47, %v3280_v47  ;;  %v3384_v58 = vmul.f32 %v3372_v28, %v8821_v3 }
 0x8d0   :  { %v6237_v40 = vpop.eup %6236  ;;  %v3304_v1 = vmul.f32 %v3292_v63, %v3245_v18  ;;  %v3305_v10 = vmul.f32 %v3293_v53, %v3280_v47  ;;  %3447 = vmatmul.f32.gmra.mxu0 %v3384_v58  ;;  %3482 = vmatmul.f32.gmra.mxu1 %v3385_v6 }
 0x8d1   :  { %v6239_v55 = vpop.eup %6238  ;;  %v3362_v4 = vadd.f32 1.0, %v6237_v40 }
 0x8d2   :  { %v3316_v61 = vmul.f32 0.044715, %v3304_v1  ;;  %v3317_v56 = vmul.f32 0.044715, %v3305_v10  ;;  %v3363_v0 = vadd.f32 1.0, %v6239_v55 }
 0x8d3   :  { %v3374_v49 = vmul.f32 0.5, %v3362_v4 }
 0x8d4   :  { %v3329_v2 = vadd.f32 %v3317_v56, %v3280_v47  ;;  %v3375_v9 = vmul.f32 0.5, %v3363_v0  ;;  %v3328_v44 = vadd.f32 %v3316_v61, %v3245_v18 }
 0x8d5   :  { %v3386_v16 = vmul.f32 %v3374_v49, %v3242_v54 }
 0x8d6   :  { %v3387_v38 = vmul.f32 %v3375_v9, %v3277_v22  ;;  %v3340_v33 = vmul.f32 0.7978846, %v3328_v44  ;;  %v3341_v31 = vmul.f32 0.7978846, %v3329_v2  ;;  %v3498_v22 = vperm.slane %v8505_v25, 6 }
 0x8d8   :  { %3450 = vmatmul.f32.gmra.mxu0 %v3386_v16  ;;  %3485 = vmatmul.f32.gmra.mxu1 %v3387_v38  ;;  %6240 = vtanh.f32 %v3340_v33 }
 0x8d9   :  { %6242 = vtanh.f32 %v3341_v31 }
 0x8de   :  { %v6241_v3 = vpop.eup %6240 }
 0x8df   :  { %v6243_v60 = vpop.eup %6242  ;;  %v3364_v8 = vadd.f32 1.0, %v6241_v3 }
 0x8e0   :  { %v3365_v17 = vadd.f32 1.0, %v6243_v60 }
 0x8e1   :  { %v3376_v28 = vmul.f32 0.5, %v3364_v8 }
 0x8e2   :  { %v3377_v6 = vmul.f32 0.5, %v3365_v17 }
 0x8e3   :  { %v3388_v63 = vmul.f32 %v3376_v28, %v3245_v18 }
 0x8e4   :  { %v3389_v53 = vmul.f32 %v3377_v6, %v3280_v47 }
 0x8e5   :  { %3453 = vmatmul.f32.gmra.mxu0 %v3388_v63 }
 0x8e6   :  { %3488 = vmatmul.f32.gmra.mxu1 %v3389_v53 }
 0x934   :  { %v3439_v58 = vpop.f32.mrf.mxu0 }
 0x935   :  { %v3474_v40 = vpop.f32.mrf.mxu1 }
 0x936   :  { %v3475_v54 = vadd.f32 %v3474_v40, %v3439_v58 }
 0x938   :  { %v3492_v1 = vadd.f32 %v3475_v54, %v8508_v41 }
 0x93a   :  { %v8846_v10 = vadd.f32 %v3498_v22, %v3492_v1  ;;  %v10294_v1 = vld [vmem:[#allocation15_spill] sm:$0xff] }
 0x93c   :  { %10288 = vst [vmem:[#allocation32_spill] sm:$0xff] %v8846_v10  ;;  %v3505_v55 = vsel %vm171_vm1, %v8846_v10, 0.0  ;;  %v3442_v4 = vpop.f32.mrf.mxu0 }
 0x93d   :  { %v3477_v61 = vpop.f32.mrf.mxu1  ;;  %3506 = vadd.xlane.f32.xlu1 %v3505_v55  ;;  %v10295_v55 = vld [vmem:[#allocation71_spill] sm:$0xff] }
 0x93e   :  { %v3478_v56 = vadd.f32 %v3477_v61, %v3442_v4  ;;  %v10296_v4 = vld [vmem:[#allocation18_spill] sm:$0xff] }
 0x93f   :  { %v3761_v61 = vmul.f32 %v8183_v43, %v10296_v4 }
 0x940   :  { %v3493_v18 = vadd.f32 %v3478_v56, %v8512_v62 }
 0x942   :  { %v8851_v47 = vadd.f32 %v3498_v22, %v3493_v18 }
 0x944   :  { %10289 = vst [vmem:[#allocation90_spill] sm:$0xff] %v8851_v47  ;;  %v3508_v0 = vsel %vm171_vm1, %v8851_v47, 0.0 }
 0x945   :  { %v3480_v49 = vpop.f32.mrf.mxu1  ;;  %3509 = vadd.xlane.f32.xlu2 %v3508_v0  ;;  %v3445_v25 = vpop.f32.mrf.mxu0 }
 0x946   :  { %v3481_v41 = vadd.f32 %v3480_v49, %v3445_v25 }
 0x948   :  { %v3494_v2 = vadd.f32 %v3481_v41, %v8518_v13 }
 0x94a   :  { %v8856_v9 = vadd.f32 %v3498_v22, %v3494_v2 }
 0x94c   :  { %10290 = vst [vmem:[#allocation37_spill] sm:$0xff] %v8856_v9  ;;  %v3511_v44 = vsel %vm171_vm1, %v8856_v9, 0.0 }
 0x94d   :  { %3512 = vadd.xlane.f32.xlu0 %v3511_v44  ;;  %v3448_v16 = vpop.f32.mrf.mxu0  ;;  %v3483_v38 = vpop.f32.mrf.mxu1 }
 0x94e   :  { %v3484_v62 = vadd.f32 %v3483_v38, %v3448_v16 }
 0x950   :  { %v3495_v33 = vadd.f32 %v3484_v62, %v8524_v20 }
 0x952   :  { %v8861_v31 = vadd.f32 %v3498_v22, %v3495_v33 }
 0x954   :  { %10291 = vst [vmem:[#allocation83_spill] sm:$0xff] %v8861_v31  ;;  %v3514_v3 = vsel %vm171_vm1, %v8861_v31, 0.0 }
 0x955   :  { %v3486_v60 = vpop.f32.mrf.mxu1  ;;  %3515 = vadd.xlane.f32.xlu1 %v3514_v3  ;;  %v3451_v8 = vpop.f32.mrf.mxu0 }
 0x956   :  { %v3487_v13 = vadd.f32 %v3486_v60, %v3451_v8  ;;  %v10297_v60 = vld [vmem:[#allocation12_spill] sm:$0xff]  ;;  %v10298_v8 = vld [vmem:[#allocation46_spill] sm:$0xff] }
 0x958   :  { %v3496_v17 = vadd.f32 %v3487_v13, %v8516_v52  ;;  %v3744_v52 = vmul.f32 %v10295_v55, %v10294_v1  ;;  %v3727_v13 = vmul.f32 %v10298_v8, %v10297_v60 }
 0x95a   :  { %v8866_v28 = vadd.f32 %v3498_v22, %v3496_v17 }
 0x95c   :  { %10292 = vst [vmem:[#allocation9_spill] sm:$0xff] %v8866_v28  ;;  %v3517_v6 = vsel %vm171_vm1, %v8866_v28, 0.0 }
 0x95d   :  { %3518 = vadd.xlane.f32.xlu2 %v3517_v6  ;;  %v10299_v6 = vld [vmem:[#allocation16_spill] sm:$0xff] }
 0x962   :  { %v3454_v63 = vpop.f32.mrf.mxu0 }
 0x963   :  { %v3489_v53 = vpop.f32.mrf.mxu1 }
 0x964   :  { %v3490_v20 = vadd.f32 %v3489_v53, %v3454_v63  ;;  %v10300_v63 = vld [vmem:[#allocation77_spill] sm:$0xff] }
 0x965   :  { %v3743_v53 = vmul.f32 %v10300_v63, %v10299_v6 }
 0x966   :  { %v3497_v58 = vadd.f32 %v3490_v20, %v8528_v7 }
 0x968   :  { %v8871_v40 = vadd.f32 %v3498_v22, %v3497_v58  ;;  %v10301_v58 = vld [vmem:[#allocation19_spill] sm:$0xff] }
 0x96a   :  { %10293 = vst [vmem:[#allocation105_spill] sm:$0xff] %v8871_v40  ;;  %v3520_v54 = vsel %vm171_vm1, %v8871_v40, 0.0 }
 0x96b   :  { %3521 = vadd.xlane.f32.xlu0 %v3520_v54  ;;  %v3760_v54 = vmul.f32 %v8258_v12, %v10301_v58 }
 0x975   :  { %3918 = vrot.lane.b32.xlu2 %v3744_v52, %s6421_s6  ;;  %v10302_v52 = vld [vmem:[#allocation20_spill] sm:$0xff] }
 0x97f   :  { %3952 = vrot.lane.b32.xlu0 %v3761_v61, %s6421_s6  ;;  %v3759_v61 = vmul.f32 %v8112_v42, %v10302_v52 }
 0x9b0   :  { %v3507_v56 = vpop.xlane.xlu1 %3506 }
 0x9b1   :  { %v3523_v18 = vmul.f32 %v3507_v56, %v10281_v59 }
 0x9b3   :  { %v8883_v7 = vsub.f32 %v8846_v10, %v3523_v18 }
 0x9b5   :  { %v3535_v22 = vmul.f32 %v8883_v7, %v8883_v7 }
 0x9b7   :  { %v3541_v0 = vsel %vm171_vm1, %v3535_v22, 0.0 }
 0x9b8   :  { %v3510_v49 = vpop.xlane.xlu2 %3509  ;;  %3542 = vadd.xlane.f32.xlu1 %v3541_v0 }
 0x9b9   :  { %v3524_v25 = vmul.f32 %v3510_v49, %v10281_v59 }
 0x9bb   :  { %v8890_v41 = vsub.f32 %v8851_v47, %v3524_v25 }
 0x9bd   :  { %v3536_v2 = vmul.f32 %v8890_v41, %v8890_v41 }
 0x9bf   :  { %v3544_v44 = vsel %vm171_vm1, %v3536_v2, 0.0 }
 0x9c0   :  { %v3513_v16 = vpop.xlane.xlu0 %3512  ;;  %3545 = vadd.xlane.f32.xlu2 %v3544_v44 }
 0x9c1   :  { %v3525_v38 = vmul.f32 %v3513_v16, %v10281_v59 }
 0x9c3   :  { %v8897_v62 = vsub.f32 %v8856_v9, %v3525_v38 }
 0x9c5   :  { %v3537_v33 = vmul.f32 %v8897_v62, %v8897_v62 }
 0x9c7   :  { %v3547_v3 = vsel %vm171_vm1, %v3537_v33, 0.0 }
 0x9c8   :  { %3548 = vadd.xlane.f32.xlu0 %v3547_v3  ;;  %v3516_v18 = vpop.xlane.xlu1 %3515 }
 0x9c9   :  { %v3526_v22 = vmul.f32 %v3516_v18, %v10281_v59  ;;  %v10305_v18 = vld [vmem:[#allocation17_spill] sm:$0xff] }
 0x9cb   :  { %v8917_v49 = vsub.f32 %v8861_v31, %v3526_v22  ;;  %v10306_v22 = vld [vmem:[#allocation78_spill] sm:$0xff] }
 0x9cd   :  { %v3538_v2 = vmul.f32 %v8917_v49, %v8917_v49 }
 0x9cf   :  { %v3550_v16 = vsel %vm171_vm1, %v3538_v2, 0.0 }
 0x9d0   :  { %v3519_v17 = vpop.xlane.xlu2 %3518 }
 0x9d1   :  { %3884 = vrot.lane.b32.xlu1 %v3727_v13, %s6421_s6  ;;  %v3527_v25 = vmul.f32 %v3519_v17, %v10281_v59 }
 0x9d3   :  { %v8924_v44 = vsub.f32 %v8866_v28, %v3527_v25  ;;  %v10307_v25 = vld [vmem:[#allocation81_spill] sm:$0xff] }
 0x9d4   :  { %v3741_v2 = vmul.f32 %v10307_v25, %v10284_v50 }
 0x9d5   :  { %v3539_v38 = vmul.f32 %v8924_v44, %v8924_v44 }
 0x9d7   :  { %v3553_v33 = vsel %vm171_vm1, %v3539_v38, 0.0 }
 0x9d8   :  { %3916 = vrot.lane.b32.xlu2 %v3743_v53, %s6421_s6  ;;  %v3919_v20 = vpop.permute.xlu2 %3918 }
 0x9d9   :  { %5700 = vmatpush.xpose.msk.msra.mxu0 %vm171_vm1, %v3919_v20  ;;  %v10303_v20 = vld [vmem:[#allocation13_spill] sm:$0xff] }
 0x9dc   :  { %3950 = vrot.lane.b32.xlu0 %v3760_v54, %s6421_s6  ;;  %v10304_v54 = vld [vmem:[#allocation47_spill] sm:$0xff] }
 0x9de   :  { %v3522_v56 = vpop.xlane.xlu0 %3521 }
 0x9df   :  { %v3528_v3 = vmul.f32 %v3522_v56, %v10281_v59  ;;  %v3725_v56 = vmul.f32 %v8174_v21, %v10296_v4 }
 0x9e1   :  { %v8932_v13 = vsub.f32 %v8871_v40, %v3528_v3  ;;  %v5670_v3 = vld [vmem:[%s9955_s7 + $0x78] sm:$0xff] }
 0x9e2   :  { %3687 = vmatpush.msrb.mxu2 %v5670_v3 }
 0x9e3   :  { %v3540_v17 = vmul.f32 %v8932_v13, %v8932_v13 }
 0x9e4   :  { %3948 = vrot.lane.b32.xlu0 %v3759_v61, %s6421_s6  ;;  %v3726_v61 = vmul.f32 %v10304_v54, %v10303_v20 }
 0x9e5   :  { %v3556_v53 = vsel %vm171_vm1, %v3540_v17, 0.0  ;;  %v5669_v17 = vld [vmem:[%s9955_s7 + $0x70] sm:$0xff] }
 0x9e6   :  { %3688 = vmatpush.msrb.mxu2 %v5669_v17  ;;  %v5666_v17 = vld [vmem:[%s9955_s7 + $0x58] sm:$0xff] }
 0x9f1   :  { %v3953_v0 = vpop.permute.xlu0 %3952 }
 0x9f2   :  { %5721 = vmatpush.xpose.msk.msra.mxu1 %vm171_vm1, %v3953_v0  ;;  %v3742_v0 = vmul.f32 %v10306_v22, %v10305_v18 }
 0x9fb   :  { %3551 = vadd.xlane.f32.xlu1 %v3550_v16  ;;  %v10308_v16 = vld [vmem:[#allocation21_spill] sm:$0xff] }
 0x9fc   :  { %v3758_v38 = vmul.f32 %v8051_v15, %v10308_v16 }
 0xa01   :  { %3554 = vadd.xlane.f32.xlu2 %v3553_v33  ;;  %v3724_v33 = vmul.f32 %v8180_v48, %v10301_v58 }
 0xa0e   :  { %3557 = vadd.xlane.f32.xlu0 %v3556_v53  ;;  %v10309_v53 = vld [vmem:[#allocation79_spill] sm:$0xff] }
 0xa14   :  { %3882 = vrot.lane.b32.xlu1 %v3726_v61, %s6421_s6  ;;  %v3740_v61 = vmul.f32 %v10309_v53, %v10282_v19 }
 0xa19   :  { %3914 = vrot.lane.b32.xlu2 %v3742_v0, %s6421_s6  ;;  %v3757_v0 = vmul.f32 %v8275_v24, %v10286_v37 }
 0xa1c   :  { %3880 = vrot.lane.b32.xlu1 %v3725_v56, %s6421_s6  ;;  %v5668_v56 = vld [vmem:[%s9955_s7 + $0x68] sm:$0xff] }
 0xa1d   :  { %3689 = vmatpush.msrb.mxu2 %v5668_v56  ;;  %v10310_v56 = vld [vmem:[#allocation84_spill] sm:$0xff] }
 0xa1e   :  { %v3739_v40 = vmul.f32 %v10310_v56, %v10297_v60 }
 0xa21   :  { %3912 = vrot.lane.b32.xlu2 %v3741_v2, %s6421_s6  ;;  %v3723_v2 = vmul.f32 %v8103_v27, %v10302_v52 }
 0xa22   :  { %3946 = vrot.lane.b32.xlu0 %v3758_v38, %s6421_s6  ;;  %v5667_v38 = vld [vmem:[%s9955_s7 + $0x60] sm:$0xff] }
 0xa23   :  { %3690 = vmatpush.msrb.mxu2 %v5667_v38  ;;  %v3756_v38 = vmul.f32 %v8308_v26, %v10294_v1 }
 0xa24   :  { %3878 = vrot.lane.b32.xlu1 %v3724_v33, %s6421_s6 }
 0xa25   :  { %3691 = vmatpush.msrb.mxu2 %v5666_v17 }
 0xa29   :  { %3910 = vrot.lane.b32.xlu2 %v3740_v61, %s6421_s6 }
 0xa2a   :  { %3944 = vrot.lane.b32.xlu0 %v3757_v0, %s6421_s6  ;;  %v5665_v0 = vld [vmem:[%s9955_s7 + $0x50] sm:$0xff] }
 0xa2b   :  { %v3543_v33 = vpop.xlane.xlu1 %3542  ;;  %3692 = vmatpush.msrb.mxu2 %v5665_v0 }
 0xa2c   :  { %v3559_v3 = vmul.f32 %v3543_v33, %v10281_v59  ;;  %3876 = vrot.lane.b32.xlu1 %v3723_v2, %s6421_s6  ;;  %v5664_v2 = vld [vmem:[%s9955_s7 + $0x48] sm:$0xff]  ;;  %v3722_v33 = vmul.f32 %v8109_v45, %v10308_v16 }
 0xa2d   :  { %3693 = vmatpush.msrb.mxu2 %v5664_v2 }
 0xa2e   :  { %v3565_v61 = vadd.f32 1e-05, %v3559_v3  ;;  %v5663_v3 = vld [vmem:[%s9955_s7 + $0x40] sm:$0xff] }
 0xa2f   :  { %3694 = vmatpush.msrb.mxu2 %v5663_v3  ;;  %v3721_v3 = vmul.f32 %v7987_v34, %v10286_v37 }
 0xa30   :  { %6244 = vrsqrt.f32 %v3565_v61  ;;  %vm3577_vm2 = vweird.f32 %v3565_v61 }
 0xa31   :  { %3908 = vrot.lane.b32.xlu2 %v3739_v40, %s6421_s6  ;;  %v10311_v40 = vld [vmem:[#allocation87_spill] sm:$0xff] }
 0xa32   :  { %3942 = vrot.lane.b32.xlu0 %v3756_v38, %s6421_s6  ;;  %v3738_v2 = vmul.f32 %v10311_v40, %v10303_v20  ;;  %v3755_v38 = vmul.f32 %v8166_v5, %v10299_v6 }
 0xa33   :  { %v3546_v17 = vpop.xlane.xlu2 %3545 }
 0xa34   :  { %v3560_v0 = vmul.f32 %v3546_v17, %v10281_v59  ;;  %3874 = vrot.lane.b32.xlu1 %v3722_v33, %s6421_s6 }
 0xa36   :  { %v6245_v28 = vpop.eup %6244  ;;  %v3566_v31 = vadd.f32 1e-05, %v3560_v0 }
 0xa37   :  { %v3572_v9 = vmul.f32 %v6245_v28, %v3565_v61  ;;  %vm3578_vm0 = vweird.f32 %v6245_v28 }
 0xa38   :  { %6246 = vrsqrt.f32 %v3566_v31  ;;  %vm3579_vm3 = vmor %vm3577_vm2, %vm3578_vm0  ;;  %vm3587_vm5 = vweird.f32 %v3566_v31 }
 0xa39   :  { %v3573_v47 = vmul.f32 %v6245_v28, %v3572_v9  ;;  %3906 = vrot.lane.b32.xlu2 %v3738_v2, %s6421_s6 }
 0xa3a   :  { %3940 = vrot.lane.b32.xlu0 %v3755_v38, %s6421_s6  ;;  %v10312_v38 = vld [vmem:[#allocation107_spill] sm:$0xff] }
 0xa3b   :  { %v3574_v17 = vmul.f32 0.5, %v3573_v47  ;;  %v3917_v33 = vpop.permute.xlu2 %3916  ;;  %v3549_v10 = vpop.xlane.xlu0 %3548  ;;  %v3737_v42 = vmul.f32 %v10312_v38, %v10296_v4  ;;  %v6358_v47 = vld [vmem:[%s9951_s3 + $0x10] sm:$0xff] }
 0xa3c   :  { %v3561_v0 = vmul.f32 %v3549_v10, %v10281_v59  ;;  %5701 = vmatpush.xpose.msk.msra.mxu0 %vm171_vm1, %v3917_v33  ;;  %3872 = vrot.lane.b32.xlu1 %v3721_v3, %s6421_s6  ;;  %v9015_v25 = vperm.slane %v6358_v47, 7  ;;  %v3754_v10 = vmul.f32 %v8344_v39, %v10305_v18  ;;  %v3720_v33 = vmul.f32 %v7990_v51, %v10294_v1 }
 0xa3d   :  { %v3575_v15 = vsub.f32 1.5, %v3574_v17 }
 0xa3e   :  { %v6247_v5 = vpop.eup %6246  ;;  %v3567_v9 = vadd.f32 1e-05, %v3561_v0 }
 0xa3f   :  { %v3576_v53 = vmul.f32 %v6245_v28, %v3575_v15  ;;  %v3582_v2 = vmul.f32 %v6247_v5, %v3566_v31  ;;  %v9021_v15 = vperm.slane %v8775_v14, 0  ;;  %vm3588_vm4 = vweird.f32 %v6247_v5 }
 0xa40   :  { %6248 = vrsqrt.f32 %v3567_v9  ;;  %vm3589_vm6 = vmor %vm3587_vm5, %vm3588_vm4  ;;  %v3719_v31 = vmul.f32 %v8319_v30, %v10299_v6  ;;  %vm3597_vm8 = vweird.f32 %v3567_v9 }
 0xa41   :  { %v3580_v3 = vsel %vm3579_vm3, %v6245_v28, %v3576_v53  ;;  %v3583_v17 = vmul.f32 %v6247_v5, %v3582_v2  ;;  %3904 = vrot.lane.b32.xlu2 %v3737_v42, %s6421_s6  ;;  %v3736_v2 = vmul.f32 %v8189_v23, %v10301_v58 }
 0xa42   :  { %v3631_v61 = vmul.f32 %v3580_v3, %v8883_v7  ;;  %3938 = vrot.lane.b32.xlu0 %v3754_v10, %s6421_s6  ;;  %v3753_v10 = vmul.f32 %v10255_v11, %v10284_v50 }
 0xa43   :  { %v3584_v0 = vmul.f32 0.5, %v3583_v17  ;;  %v3885_v47 = vpop.permute.xlu1 %3884 }
 0xa44   :  { %v3638_v38 = vmul.f32 %v9015_v25, %v3631_v61  ;;  %3870 = vrot.lane.b32.xlu1 %v3720_v33, %s6421_s6  ;;  %5679 = vmatpush.xpose.msk.msrb.mxu3 %vm171_vm1, %v3885_v47 }
 0xa45   :  { %v3585_v28 = vsub.f32 1.5, %v3584_v0 }
 0xa46   :  { %v6249_v42 = vpop.eup %6248  ;;  %v3645_v14 = vadd.f32 %v9021_v15, %v3638_v38 }
 0xa47   :  { %v3586_v53 = vmul.f32 %v6247_v5, %v3585_v28  ;;  %v3592_v7 = vmul.f32 %v6249_v42, %v3567_v9  ;;  %vm3598_vm7 = vweird.f32 %v6249_v42  ;;  %v3718_v9 = vmul.f32 %v8328_v36, %v10305_v18 }
 0xa48   :  { %5671 = vmatmul.msk.f32.vlgmr.msrb.gmra.mxu2 %vm171_vm1, %v3645_v14  ;;  %vm3599_vm9 = vmor %vm3597_vm8, %vm3598_vm7  ;;  %v3752_v14 = vmul.f32 %v10260_v29, %v10282_v19 }
 0xa49   :  { %v3590_v3 = vsel %vm3589_vm6, %v6247_v5, %v3586_v53  ;;  %v3593_v17 = vmul.f32 %v6249_v42, %v3592_v7  ;;  %3902 = vrot.lane.b32.xlu2 %v3736_v2, %s6421_s6 }
 0xa4a   :  { %v3632_v61 = vmul.f32 %v3590_v3, %v8890_v41  ;;  %3936 = vrot.lane.b32.xlu0 %v3753_v10, %s6421_s6  ;;  %v3735_v41 = vmul.f32 %v8115_v35, %v10302_v52 }
 0xa4b   :  { %v3594_v38 = vmul.f32 0.5, %v3593_v17  ;;  %v3717_v17 = vmul.f32 %v10252_v57, %v10284_v50 }
 0xa4c   :  { %3868 = vrot.lane.b32.xlu1 %v3719_v31, %s6421_s6  ;;  %v3639_v33 = vmul.f32 %v9015_v25, %v3632_v61  ;;  %v10313_v61 = vld [vmem:[#allocation117_spill] sm:$0xff] }
 0xa4d   :  { %v3595_v0 = vsub.f32 1.5, %v3594_v38  ;;  %v3733_v31 = vmul.f32 %v10313_v61, %v10286_v37  ;;  %v10314_v38 = vld [vmem:[#allocation60_spill] sm:$0xff] }
 0xa4e   :  { %v3951_v47 = vpop.permute.xlu0 %3950  ;;  %v3646_v5 = vadd.f32 %v9021_v15, %v3639_v33  ;;  %v3750_v33 = vmul.f32 %v10314_v38, %v10303_v20  ;;  %v10318_v37 = vld [vmem:[#allocation80_spill] sm:$0xff] }
 0xa4f   :  { %v3596_v28 = vmul.f32 %v6249_v42, %v3595_v0  ;;  %5722 = vmatpush.xpose.msk.msra.mxu1 %vm171_vm1, %v3951_v47  ;;  %v10315_v0 = vld [vmem:[#allocation61_spill] sm:$0xff] }
 0xa50   :  { %5672 = vmatmul.msk.f32.gmra.mxu2 %vm171_vm1, %v3646_v5  ;;  %v3716_v47 = vmul.f32 %v10315_v0, %v10282_v19  ;;  %v10316_v5 = vld [vmem:[#allocation118_spill] sm:$0xff] }
 0xa51   :  { %v3600_v53 = vsel %vm3599_vm9, %v6249_v42, %v3596_v28  ;;  %3900 = vrot.lane.b32.xlu2 %v3735_v41, %s6421_s6  ;;  %v3734_v42 = vmul.f32 %v8064_v46, %v10308_v16  ;;  %v3732_v50 = vmul.f32 %v10316_v5, %v10294_v1  ;;  %v10317_v28 = vld [vmem:[#allocation108_spill] sm:$0xff] }
 0xa52   :  { %v3633_v7 = vmul.f32 %v3600_v53, %v8897_v62  ;;  %3934 = vrot.lane.b32.xlu0 %v3752_v14, %s6421_s6  ;;  %v3751_v62 = vmul.f32 %v8388_v32, %v10297_v60  ;;  %v3749_v41 = vmul.f32 %v10317_v28, %v10296_v4  ;;  %v3715_v14 = vmul.f32 %v10318_v37, %v10297_v60  ;;  %v10320_v1 = vld [vmem:[#allocation92_spill] sm:$0xff] }
 0xa53   :  { %v10321_v4 = vld [vmem:[#allocation28_spill] sm:$0xff] }
 0xa54   :  { %3866 = vrot.lane.b32.xlu1 %v3718_v9, %s6421_s6  ;;  %v3640_v2 = vmul.f32 %v9015_v25, %v3633_v7  ;;  %v10319_v7 = vld [vmem:[#allocation104_spill] sm:$0xff] }
 0xa55   :  { %v3731_v9 = vmul.f32 %v10319_v7, %v10299_v6  ;;  %v10322_v6 = vld [vmem:[#allocation93_spill] sm:$0xff] }
 0xa56   :  { %v3949_v10 = vpop.permute.xlu0 %3948  ;;  %v3647_v3 = vadd.f32 %v9021_v15, %v3640_v2  ;;  %v3748_v2 = vmul.f32 %v10320_v1, %v10301_v58  ;;  %v10323_v58 = vld [vmem:[#allocation119_spill] sm:$0xff] }
 0xa57   :  { %5723 = vmatpush.xpose.msk.msra.mxu1 %vm171_vm1, %v3949_v10 }
 0xa58   :  { %5673 = vmatmul.msk.f32.gmra.mxu2 %vm171_vm1, %v3647_v3  ;;  %v3714_v3 = vmul.f32 %v10321_v4, %v10303_v20  ;;  %v10324_v20 = vld [vmem:[#allocation100_spill] sm:$0xff] }
 0xa59   :  { %3898 = vrot.lane.b32.xlu2 %v3734_v42, %s6421_s6 }
 0xa5a   :  { %3932 = vrot.lane.b32.xlu0 %v3751_v62, %s6421_s6 }
 0xa5c   :  { %3864 = vrot.lane.b32.xlu1 %v3717_v17, %s6421_s6  ;;  %v3746_v17 = vmul.f32 %v10322_v6, %v10308_v16 }
 0xa61   :  { %3896 = vrot.lane.b32.xlu2 %v3733_v31, %s6421_s6  ;;  %v3730_v31 = vmul.f32 %v10323_v58, %v10305_v18 }
 0xa62   :  { %3930 = vrot.lane.b32.xlu0 %v3750_v33, %s6421_s6 }
 0xa64   :  { %3862 = vrot.lane.b32.xlu1 %v3716_v47, %s6421_s6 }
 0xa69   :  { %3894 = vrot.lane.b32.xlu2 %v3732_v50, %s6421_s6  ;;  %v3747_v50 = vmul.f32 %v10324_v20, %v10302_v52  ;;  %v10327_v52 = vld [vmem:[#allocation112_spill] sm:$0xff] }
 0xa6a   :  { %3928 = vrot.lane.b32.xlu0 %v3749_v41, %s6421_s6 }
 0xa6c   :  { %3860 = vrot.lane.b32.xlu1 %v3715_v14, %s6421_s6 }
 0xa6e   :  { %v3552_v53 = vpop.xlane.xlu1 %3551 }
 0xa6f   :  { %v3562_v19 = vmul.f32 %v3552_v53, %v10281_v59  ;;  %v10325_v53 = vld [vmem:[#allocation42_spill] sm:$0xff] }
 0xa70   :  { %v3774_v16 = vmul.f32 %v10304_v54, %v10325_v53 }
 0xa71   :  { %v3568_v10 = vadd.f32 1e-05, %v3562_v19  ;;  %3892 = vrot.lane.b32.xlu2 %v3731_v9, %s6421_s6  ;;  %v10326_v19 = vld [vmem:[#allocation39_spill] sm:$0xff] }
 0xa72   :  { %3926 = vrot.lane.b32.xlu0 %v3748_v2, %s6421_s6  ;;  %v3775_v9 = vmul.f32 %v10298_v8, %v10326_v19 }
 0xa73   :  { %6250 = vrsqrt.f32 %v3568_v10  ;;  %vm3607_vm11 = vweird.f32 %v3568_v10 }
 0xa74   :  { %v3555_v60 = vpop.xlane.xlu2 %3554  ;;  %3858 = vrot.lane.b32.xlu1 %v3714_v3, %s6421_s6 }
 0xa75   :  { %v3563_v42 = vmul.f32 %v3555_v60, %v10281_v59 }
 0xa77   :  { %v3569_v62 = vadd.f32 1e-05, %v3563_v42  ;;  %v5965_v42 = vpack.i.bf16 %v3774_v16, %v3775_v9  ;;  %v10330_v16 = vld [vmem:[#allocation53_spill] sm:$0xff]  ;;  %v10331_v9 = vld [vmem:[#allocation52_spill] sm:$0xff] }
 0xa78   :  { %v10332_v7 = vpack.i.bf16 %v10330_v16, %v10331_v9 }
 0xa79   :  { %v6251_v33 = vpop.eup %6250  ;;  %6252 = vrsqrt.f32 %v3569_v62  ;;  %3922 = vrot.lane.b32.xlu2 %v3746_v17, %s6421_s6  ;;  %v10328_v17 = vld [vmem:[#allocation113_spill] sm:$0xff]  ;;  %vm3617_vm14 = vweird.f32 %v3569_v62 }
 0xa7a   :  { %v3602_v47 = vmul.f32 %v6251_v33, %v3568_v10  ;;  %3890 = vrot.lane.b32.xlu0 %v3730_v31, %s6421_s6  ;;  %vm3608_vm10 = vweird.f32 %v6251_v33  ;;  %v10329_v31 = vpack.i.bf16 %v10327_v52, %v10328_v17 }
 0xa7b   :  { %vm3609_vm12 = vmor %vm3607_vm11, %vm3608_vm10 }
 0xa7c   :  { %v3603_v41 = vmul.f32 %v6251_v33, %v3602_v47  ;;  %v3915_v14 = vpop.permute.xlu2 %3914  ;;  %3924 = vrot.lane.b32.xlu1 %v3747_v50, %s6421_s6 }
 0xa7d   :  { %5702 = vmatpush.xpose.msk.msra.mxu0 %vm171_vm1, %v3915_v14 }
 0xa7e   :  { %v3604_v18 = vmul.f32 0.5, %v3603_v41 }
 0xa7f   :  { %v6253_v2 = vpop.eup %6252 }
 0xa80   :  { %v3605_v3 = vsub.f32 1.5, %v3604_v18  ;;  %v3612_v60 = vmul.f32 %v6253_v2, %v3569_v62  ;;  %vm3618_vm13 = vweird.f32 %v6253_v2 }
 0xa81   :  { %5971 = vrot.lane.b32.xlu2 %v10329_v31, %s6421_s6  ;;  %v3558_v47 = vpop.xlane.xlu0 %3557  ;;  %vm3619_vm15 = vmor %vm3617_vm14, %vm3618_vm13 }
 0xa82   :  { %v3606_v50 = vmul.f32 %v6251_v33, %v3605_v3  ;;  %v3613_v6 = vmul.f32 %v6253_v2, %v3612_v60  ;;  %v3564_v14 = vmul.f32 %v3558_v47, %v10281_v59  ;;  %5966 = vrot.lane.b32.xlu0 %v5965_v42, %s6421_s6  ;;  %v10333_v60 = vld [vmem:[#allocation73_spill] sm:$0xff]  ;;  %v10334_v42 = vld [vmem:[#allocation74_spill] sm:$0xff] }
 0xa83   :  { %v10335_v17 = vpack.i.bf16 %v10333_v60, %v10334_v42  ;;  %v10344_v42 = vld [vmem:[#allocation98_spill] sm:$0xff] }
 0xa84   :  { %v3610_v41 = vsel %vm3609_vm12, %v6251_v33, %v3606_v50  ;;  %v3614_v20 = vmul.f32 0.5, %v3613_v6  ;;  %v3570_v18 = vadd.f32 1e-05, %v3564_v14  ;;  %v3913_v28 = vpop.permute.xlu2 %3912  ;;  %5961 = vrot.lane.b32.xlu1 %v10332_v7, %s6421_s6  ;;  %v10339_v14 = vld [vmem:[#allocation96_spill] sm:$0xff] }
 0xa85   :  { %v3634_v52 = vmul.f32 %v3610_v41, %v8917_v49  ;;  %5703 = vmatpush.xpose.msk.msra.mxu0 %vm171_vm1, %v3913_v28  ;;  %v10336_v28 = vld [vmem:[#allocation75_spill] sm:$0xff]  ;;  %v10340_v41 = vld [vmem:[#allocation97_spill] sm:$0xff] }
 0xa86   :  { %v3615_v10 = vsub.f32 1.5, %v3614_v20  ;;  %6254 = vrsqrt.f32 %v3570_v18  ;;  %v3883_v3 = vpop.permute.xlu1 %3882  ;;  %v10337_v20 = vld [vmem:[#allocation76_spill] sm:$0xff]  ;;  %v10341_v16 = vpack.i.bf16 %v10339_v14, %v10340_v41  ;;  %vm3627_vm2 = vweird.f32 %v3570_v18 }
 0xa87   :  { %5680 = vmatpush.xpose.msk.msrb.mxu3 %vm171_vm1, %v3883_v3  ;;  %v3641_v33 = vmul.f32 %v9015_v25, %v3634_v52  ;;  %v10338_v31 = vpack.i.bf16 %v10336_v28, %v10337_v20  ;;  %v10347_v28 = vld [vmem:[#allocation62_spill] sm:$0xff]  ;;  %v10348_v20 = vld [vmem:[#allocation63_spill] sm:$0xff] }
 0xa88   :  { %v3616_v6 = vmul.f32 %v6253_v2, %v3615_v10  ;;  %v10342_v10 = vld [vmem:[#allocation72_spill] sm:$0xff] }
 0xa89   :  { %6001 = vrot.lane.b32.xlu2 %v10335_v17, %s6421_s6  ;;  %v3648_v49 = vadd.f32 %v9021_v15, %v3641_v33  ;;  %v3766_v3 = vmul.f32 %v8328_v36, %v10342_v10  ;;  %v10345_v17 = vld [vmem:[#allocation94_spill] sm:$0xff] }
 0xa8a   :  { %v3620_v7 = vsel %vm3619_vm15, %v6253_v2, %v3616_v6  ;;  %5981 = vrot.lane.b32.xlu0 %v10338_v31, %s6421_s6  ;;  %v10349_v31 = vpack.i.bf16 %v10347_v28, %v10348_v20  ;;  %v10353_v28 = vld [vmem:[#allocation106_spill] sm:$0xff] }
 0xa8b   :  { %v3635_v47 = vmul.f32 %v3620_v7, %v8924_v44  ;;  %5674 = vmatmul.msk.f32.gmra.mxu2 %vm171_vm1, %v3648_v49  ;;  %v10343_v44 = vld [vmem:[#allocation68_spill] sm:$0xff]  ;;  %v10346_v49 = vpack.i.bf16 %v10344_v42, %v10345_v17  ;;  %v10350_v42 = vld [vmem:[#allocation109_spill] sm:$0xff]  ;;  %v10351_v17 = vld [vmem:[#allocation114_spill] sm:$0xff] }
 0xa8c   :  { %v6255_v50 = vpop.eup %6254  ;;  %v3911_v62 = vpop.permute.xlu2 %3910  ;;  %5976 = vrot.lane.b32.xlu1 %v10341_v16, %s6421_s6  ;;  %v3767_v6 = vmul.f32 %v8319_v30, %v10343_v44  ;;  %v3762_v16 = vmul.f32 %v10321_v4, %v10325_v53 }
 0xa8d   :  { %v3622_v9 = vmul.f32 %v6255_v50, %v3570_v18  ;;  %5704 = vmatpush.xpose.msk.msra.mxu0 %vm171_vm1, %v3911_v62  ;;  %v3642_v2 = vmul.f32 %v9015_v25, %v3635_v47  ;;  %vm3628_vm0 = vweird.f32 %v6255_v50 }
 0xa8e   :  { %v3881_v52 = vpop.permute.xlu1 %3880  ;;  %v5985_v47 = vpack.i.bf16 %v3766_v3, %v3767_v6  ;;  %vm3629_vm3 = vmor %vm3627_vm2, %vm3628_vm0 }
 0xa8f   :  { %v3623_v33 = vmul.f32 %v6255_v50, %v3622_v9  ;;  %5681 = vmatpush.xpose.msk.msrb.mxu3 %vm171_vm1, %v3881_v52  ;;  %v3649_v7 = vadd.f32 %v9021_v15, %v3642_v2  ;;  %v3763_v52 = vmul.f32 %v10318_v37, %v10326_v19 }
 0xa91   :  { %v3624_v60 = vmul.f32 0.5, %v3623_v33  ;;  %6046 = vrot.lane.b32.xlu2 %v10346_v49, %s6421_s6  ;;  %v5995_v44 = vpack.i.bf16 %v3762_v16, %v3763_v52  ;;  %v10352_v49 = vpack.i.bf16 %v10350_v42, %v10351_v17  ;;  %v10357_v16 = vld [vmem:[#allocation69_spill] sm:$0xff] }
 0xa92   :  { %5991 = vrot.lane.b32.xlu0 %v10349_v31, %s6421_s6  ;;  %v10358_v52 = vld [vmem:[#allocation85_spill] sm:$0xff] }
 0xa93   :  { %v3625_v62 = vsub.f32 1.5, %v3624_v60  ;;  %5675 = vmatmul.msk.f32.gmra.mxu2 %vm171_vm1, %v3649_v7 }
 0xa94   :  { %v3909_v14 = vpop.permute.xlu2 %3908  ;;  %v3947_v41 = vpop.permute.xlu0 %3946  ;;  %5986 = vrot.lane.b32.xlu1 %v5985_v47, %s6421_s6  ;;  %v10354_v47 = vld [vmem:[#allocation95_spill] sm:$0xff] }
 0xa95   :  { %v3626_v9 = vmul.f32 %v6255_v50, %v3625_v62  ;;  %5705 = vmatpush.xpose.msk.msra.mxu0 %vm171_vm1, %v3909_v14  ;;  %5724 = vmatpush.xpose.msk.msra.mxu1 %vm171_vm1, %v3947_v41  ;;  %v10355_v62 = vld [vmem:[#allocation99_spill] sm:$0xff] }
 0xa96   :  { %v3879_v2 = vpop.permute.xlu1 %3878  ;;  %v10356_v14 = vpack.i.bf16 %v10354_v47, %v10355_v62 }
 0xa97   :  { %v3630_v3 = vsel %vm3629_vm3, %v6255_v50, %v3626_v9  ;;  %5682 = vmatpush.xpose.msk.msrb.mxu3 %vm171_vm1, %v3879_v2  ;;  %v3808_v50 = vmul.f32 %v8258_v12, %v10353_v28  ;;  %v3805_v9 = vmul.f32 %v8275_v24, %v10357_v16  ;;  %v3787_v2 = vmul.f32 %v10310_v56, %v10326_v19 }
 0xa98   :  { %v3636_v33 = vmul.f32 %v3630_v3, %v8932_v13  ;;  %v10359_v3 = vld [vmem:[#allocation86_spill] sm:$0xff] }
 0xa9a   :  { %5996 = vrot.lane.b32.xlu0 %v5995_v44, %s6421_s6  ;;  %v3643_v6 = vmul.f32 %v9015_v25, %v3636_v33  ;;  %v3790_v25 = vmul.f32 %v10306_v22, %v10342_v10  ;;  %v10360_v33 = vpack.i.bf16 %v10358_v52, %v10359_v3  ;;  %v6025_v44 = vpack.i.bf16 %v3787_v2, %v3805_v9 }
 0xa9b   :  { %v3802_v9 = vmul.f32 %v8344_v39, %v10342_v10 }
 0xa9c   :  { %v3907_v18 = vpop.permute.xlu2 %3906  ;;  %v3945_v60 = vpop.permute.xlu0 %3944  ;;  %6006 = vrot.lane.b32.xlu1 %v10352_v49, %s6421_s6  ;;  %v3650_v7 = vadd.f32 %v9021_v15, %v3643_v6  ;;  %v6010_v20 = vpack.i.bf16 %v3790_v25, %v3808_v50  ;;  %v3786_v49 = vmul.f32 %v10311_v40, %v10325_v53 }
 0xa9d   :  { %5706 = vmatpush.xpose.msk.msra.mxu0 %vm171_vm1, %v3907_v18  ;;  %5725 = vmatpush.xpose.msk.msra.mxu1 %vm171_vm1, %v3945_v60  ;;  %v10361_v60 = vld [vmem:[#allocation67_spill] sm:$0xff] }
 0xa9e   :  { %5676 = vmatmul.msk.f32.gmra.mxu2 %vm171_vm1, %v3650_v7  ;;  %v3877_v13 = vpop.permute.xlu1 %3876  ;;  %v3804_v42 = vmul.f32 %v8308_v26, %v10361_v60 }
 0xa9f   :  { %5683 = vmatpush.xpose.msk.msrb.mxu3 %vm171_vm1, %v3877_v13 }
 0xaa0   :  { %v6030_v7 = vpack.i.bf16 %v3786_v49, %v3804_v42  ;;  %v3781_v49 = vmul.f32 %v10313_v61, %v10357_v16 }
 0xaa2   :  { %6011 = vrot.lane.b32.xlu0 %v6010_v20, %s6421_s6  ;;  %v10362_v20 = vld [vmem:[#allocation115_spill] sm:$0xff] }
 0xaa4   :  { %v3905_v31 = vpop.permute.xlu2 %3904  ;;  %v3943_v15 = vpop.permute.xlu0 %3942  ;;  %6016 = vrot.lane.b32.xlu1 %v10356_v14, %s6421_s6  ;;  %v3784_v14 = vmul.f32 %v8189_v23, %v10353_v28 }
 0xaa5   :  { %5707 = vmatpush.xpose.msk.msra.mxu0 %vm171_vm1, %v3905_v31  ;;  %5726 = vmatpush.xpose.msk.msra.mxu1 %vm171_vm1, %v3943_v15  ;;  %v10363_v31 = vld [vmem:[#allocation110_spill] sm:$0xff] }
 0xaa6   :  { %v3875_v41 = vpop.permute.xlu1 %3874  ;;  %v10364_v15 = vpack.i.bf16 %v10362_v20, %v10363_v31  ;;  %v6040_v2 = vpack.i.bf16 %v3784_v14, %v3802_v9  ;;  %v3798_v31 = vmul.f32 %v10314_v38, %v10325_v53 }
 0xaa7   :  { %5684 = vmatpush.xpose.msk.msrb.mxu3 %vm171_vm1, %v3875_v41 }
 0xaaa   :  { %6021 = vrot.lane.b32.xlu0 %v10360_v33, %s6421_s6 }
 0xaac   :  { %v3903_v6 = vpop.permute.xlu2 %3902  ;;  %v3941_v18 = vpop.permute.xlu0 %3940  ;;  %6026 = vrot.lane.b32.xlu1 %v6025_v44, %s6421_s6  ;;  %v10365_v44 = vld [vmem:[#allocation88_spill] sm:$0xff] }
 0xaad   :  { %5708 = vmatpush.xpose.msk.msra.mxu0 %vm171_vm1, %v3903_v6  ;;  %5727 = vmatpush.xpose.msk.msra.mxu1 %vm171_vm1, %v3941_v18  ;;  %v10366_v6 = vld [vmem:[#allocation89_spill] sm:$0xff] }
 0xaae   :  { %v3873_v17 = vpop.permute.xlu1 %3872  ;;  %v10367_v18 = vpack.i.bf16 %v10365_v44, %v10366_v6 }
 0xaaf   :  { %5685 = vmatpush.xpose.msk.msrb.mxu3 %vm171_vm1, %v3873_v17 }
 0xab2   :  { %6031 = vrot.lane.b32.xlu0 %v6030_v7, %s6421_s6 }
 0xab4   :  { %v3901_v50 = vpop.permute.xlu2 %3900  ;;  %v3939_v13 = vpop.permute.xlu0 %3938 }
 0xab5   :  { %5709 = vmatpush.xpose.msk.msra.mxu0 %vm171_vm1, %v3901_v50  ;;  %5728 = vmatpush.xpose.msk.msra.mxu1 %vm171_vm1, %v3939_v13  ;;  %v3799_v50 = vmul.f32 %v8388_v32, %v10326_v19 }
 0xab6   :  { %v3871_v25 = vpop.permute.xlu1 %3870 }
 0xab7   :  { %5686 = vmatpush.xpose.msk.msrb.mxu3 %vm171_vm1, %v3871_v25  ;;  %v6055_v13 = vpack.i.bf16 %v3781_v49, %v3799_v50  ;;  %v10368_v49 = vld [vmem:[#allocation70_spill] sm:$0xff] }
 0xaba   :  { %6036 = vrot.lane.b32.xlu0 %v10364_v15, %s6421_s6  ;;  %v3780_v15 = vmul.f32 %v10316_v5, %v10361_v60 }
 0xabc   :  { %v3899_v47 = vpop.permute.xlu2 %3898  ;;  %v3937_v62 = vpop.permute.xlu0 %3936  ;;  %v6060_v19 = vpack.i.bf16 %v3780_v15, %v3798_v31 }
 0xabd   :  { %5710 = vmatpush.xpose.msk.msra.mxu0 %vm171_vm1, %v3899_v47  ;;  %5729 = vmatpush.xpose.msk.msra.mxu1 %vm171_vm1, %v3937_v62 }
 0xabe   :  { %v3869_v41 = vpop.permute.xlu1 %3868 }
 0xabf   :  { %5687 = vmatpush.xpose.msk.msrb.mxu3 %vm171_vm1, %v3869_v41  ;;  %v9250_v41 = vld [vmem:[%s9951_s3 + $0x20] sm:$0xff] }
 0xac0   :  { %v9253_v60 = vperm.slane %v9250_v41, 1 }
 0xac2   :  { %6041 = vrot.lane.b32.xlu0 %v6040_v2, %s6421_s6 }
 0xac4   :  { %v3897_v52 = vpop.permute.xlu2 %3896  ;;  %v3935_v3 = vpop.permute.xlu0 %3934 }
 0xac5   :  { %5711 = vmatpush.xpose.msk.msra.mxu0 %vm171_vm1, %v3897_v52  ;;  %5730 = vmatpush.xpose.msk.msra.mxu1 %vm171_vm1, %v3935_v3 }
 0xac6   :  { %v3867_v33 = vpop.permute.xlu1 %3866 }
 0xac7   :  { %5688 = vmatpush.xpose.msk.msrb.mxu3 %vm171_vm1, %v3867_v33 }
 0xaca   :  { %6051 = vrot.lane.b32.xlu0 %v10367_v18, %s6421_s6 }
 0xacb   :  { %v3696_v53 = vpop.f32.mrf.mxu2 }
 0xacc   :  { %v3895_v42 = vpop.permute.xlu2 %3894  ;;  %v3933_v17 = vpop.permute.xlu0 %3932  ;;  %v3697_v3 = vadd.f32 %v3696_v53, %v9253_v60 }
 0xacd   :  { %5712 = vmatpush.xpose.msk.msra.mxu0 %vm171_vm1, %v3895_v42  ;;  %5731 = vmatpush.xpose.msk.msra.mxu1 %vm171_vm1, %v3933_v17 }
 0xace   :  { %v3865_v7 = vpop.permute.xlu1 %3864 }
 0xacf   :  { %5689 = vmatpush.xpose.msk.msrb.mxu3 %vm171_vm1, %v3865_v7 }
 0xad2   :  { %6056 = vrot.lane.b32.xlu0 %v6055_v13, %s6421_s6 }
 0xad3   :  { %v3699_v33 = vpop.f32.mrf.mxu2 }
 0xad4   :  { %v3893_v25 = vpop.permute.xlu2 %3892  ;;  %v3931_v20 = vpop.permute.xlu0 %3930  ;;  %v3700_v50 = vadd.f32 %v3699_v33, %v9253_v60 }
 0xad5   :  { %5713 = vmatpush.xpose.msk.msra.mxu0 %vm171_vm1, %v3893_v25  ;;  %5732 = vmatpush.xpose.msk.msra.mxu1 %vm171_vm1, %v3931_v20 }
 0xad6   :  { %v3863_v16 = vpop.permute.xlu1 %3862 }
 0xad7   :  { %5690 = vmatpush.xpose.msk.msrb.mxu3 %vm171_vm1, %v3863_v16 }
 0xada   :  { %6061 = vrot.lane.b32.xlu0 %v6060_v19, %s6421_s6 }
 0xadb   :  { %v3702_v20 = vpop.f32.mrf.mxu2 }
 0xadc   :  { %v3923_v47 = vpop.permute.xlu2 %3922  ;;  %v3929_v62 = vpop.permute.xlu0 %3928  ;;  %v3703_v19 = vadd.f32 %v3702_v20, %v9253_v60 }
 0xadd   :  { %5733 = vmatpush.xpose.msk.msra.mxu1 %vm171_vm1, %v3929_v62 }
 0xade   :  { %v3861_v14 = vpop.permute.xlu1 %3860 }
 0xadf   :  { %5691 = vmatpush.xpose.msk.msrb.mxu3 %vm171_vm1, %v3861_v14  ;;  %v10369_v14 = vld [vmem:[#allocation41_spill] sm:$0xff] }
 0xae4   :  { %v5972_v9 = vpop.permute.xlu2 %5971  ;;  %v3927_v2 = vpop.permute.xlu0 %3926 }
 0xae5   :  { %5734 = vmatpush.xpose.msk.msra.mxu1 %vm171_vm1, %v3927_v2 }
 0xae6   :  { %v3859_v52 = vpop.permute.xlu1 %3858 }
 0xae7   :  { %5692 = vmatpush.xpose.msk.msrb.mxu3 %vm171_vm1, %v3859_v52 }
 0xaea   :  { %5693 = vmatmul.msk.f32.vlgmr.msrb.gmra.mxu3 %vm171_vm1, %v3697_v3 }
 0xaec   :  { %v6002_v44 = vpop.permute.xlu2 %6001  ;;  %v3891_v6 = vpop.permute.xlu0 %3890 }
 0xaed   :  { %v6003_v18 = vunpack.i.l.bf16 %v6002_v44  ;;  %5714 = vmatpush.xpose.msk.msra.mxu0 %vm171_vm1, %v3891_v6  ;;  %v6004_v42 = vunpack.i.h.bf16 %v6002_v44  ;;  %v5974_v6 = vunpack.i.h.bf16 %v5972_v9 }
 0xaee   :  { %v3925_v17 = vpop.permute.xlu1 %3924 }
 0xaef   :  { %5735 = vmatpush.xpose.msk.msra.mxu1 %vm171_vm1, %v3925_v17  ;;  %v4474_v7 = vsel %vm171_vm1, %v6003_v18, %v10368_v49  ;;  %v4473_v13 = vsel %vm171_vm1, %v6004_v42, %v10295_v55 }
 0xaf0   :  { %5715 = vmatmul.msk.f32.vlgmr.msra.gmra.mxu0 %vm171_vm1, %v3697_v3  ;;  %4526 = vmatpush.msra.mxu3 %v4474_v7 }
 0xaf2   :  { %5694 = vmatmul.msk.f32.gmra.mxu3 %vm171_vm1, %v3700_v50 }
 0xaf3   :  { %4527 = vmatpush.msra.mxu3 %v4473_v13  ;;  %5736 = vmatpush.xpose.msk.msra.mxu1 %vm171_vm1, %v3923_v47  ;;  %v10370_v47 = vld [vmem:[#allocation45_spill] sm:$0xff] }
 0xaf4   :  { %v5967_v25 = vpop.permute.xlu0 %5966 }
 0xaf5   :  { %v5968_v62 = vunpack.i.l.bf16 %v5967_v25  ;;  %v5969_v55 = vunpack.i.h.bf16 %v5967_v25 }
 0xaf6   :  { %5737 = vmatmul.msk.f32.vlgmr.msra.gmra.mxu1 %vm171_vm1, %v3697_v3  ;;  %v5962_v31 = vpop.permute.xlu1 %5961  ;;  %v5973_v3 = vunpack.i.l.bf16 %v5972_v9 }
 0xaf7   :  { %v5964_v16 = vunpack.i.h.bf16 %v5962_v31  ;;  %v5963_v15 = vunpack.i.l.bf16 %v5962_v31  ;;  %v4456_v33 = vsel %vm171_vm1, %v5968_v62, %v10298_v8  ;;  %v4455_v18 = vsel %vm171_vm1, %v5969_v55, %v10304_v54 }
 0xaf8   :  { %5716 = vmatmul.msk.f32.gmra.mxu0 %vm171_vm1, %v3700_v50  ;;  %v4454_v17 = vsel %vm171_vm1, %v5973_v3, %v8174_v21  ;;  %v4453_v8 = vsel %vm171_vm1, %v5974_v6, %v8180_v48 }
 0xaf9   :  { %v4458_v53 = vsel %vm171_vm1, %v5963_v15, %v10369_v14  ;;  %v4457_v2 = vsel %vm171_vm1, %v5964_v16, %v10370_v47 }
 0xafa   :  { %5695 = vmatmul.msk.f32.gmra.mxu3 %vm171_vm1, %v3703_v19  ;;  %4491 = vmatpush.msra.mxu2 %v4458_v53 }
 0xafc   :  { %v5982_v52 = vpop.permute.xlu0 %5981  ;;  %4492 = vmatpush.msra.mxu2 %v4457_v2 }
 0xafd   :  { %v5984_v13 = vunpack.i.h.bf16 %v5982_v52 }
 0xafe   :  { %5738 = vmatmul.msk.f32.gmra.mxu1 %vm171_vm1, %v3700_v50  ;;  %v5977_v44 = vpop.permute.xlu1 %5976  ;;  %4493 = vmatpush.msra.mxu2 %v4456_v33  ;;  %v5983_v50 = vunpack.i.l.bf16 %v5982_v52 }
 0xaff   :  { %v5978_v42 = vunpack.i.l.bf16 %v5977_v44  ;;  %v5979_v49 = vunpack.i.h.bf16 %v5977_v44  ;;  %v4449_v31 = vsel %vm171_vm1, %v5984_v13, %v7990_v51 }
 0xb00   :  { %5717 = vmatmul.msk.f32.gmra.mxu0 %vm171_vm1, %v3703_v19  ;;  %4494 = vmatpush.msra.mxu2 %v4455_v18  ;;  %v4450_v20 = vsel %vm171_vm1, %v5983_v50, %v7987_v34 }
 0xb01   :  { %v4452_v9 = vsel %vm171_vm1, %v5978_v42, %v8103_v27  ;;  %v4451_v25 = vsel %vm171_vm1, %v5979_v49, %v8109_v45  ;;  %v10371_v49 = vld [vmem:[#allocation81_spill] sm:$0xff] }
 0xb02   :  { %4495 = vmatpush.msra.mxu2 %v4454_v17 }
 0xb04   :  { %v5992_v7 = vpop.permute.xlu0 %5991  ;;  %4496 = vmatpush.msra.mxu2 %v4453_v8 }
 0xb05   :  { %v5993_v27 = vunpack.i.l.bf16 %v5992_v7  ;;  %v5994_v45 = vunpack.i.h.bf16 %v5992_v7 }
 0xb06   :  { %5739 = vmatmul.msk.f32.gmra.mxu1 %vm171_vm1, %v3703_v19  ;;  %v5987_v54 = vpop.permute.xlu1 %5986  ;;  %4497 = vmatpush.msra.mxu2 %v4452_v9  ;;  %v10372_v9 = vld [vmem:[#allocation91_spill] sm:$0xff] }
 0xb07   :  { %v5988_v21 = vunpack.i.l.bf16 %v5987_v54  ;;  %v5989_v48 = vunpack.i.h.bf16 %v5987_v54  ;;  %v4446_v51 = vsel %vm171_vm1, %v5993_v27, %v10252_v57 }
 0xb08   :  { %4498 = vmatpush.msra.mxu2 %v4451_v25 }
 0xb09   :  { %v4448_v15 = vsel %vm171_vm1, %v5988_v21, %v8319_v30  ;;  %v4447_v34 = vsel %vm171_vm1, %v5989_v48, %v8328_v36  ;;  %v4445_v36 = vsel %vm171_vm1, %v5994_v45, %v10315_v0  ;;  %v10373_v21 = vld [vmem:[#allocation79_spill] sm:$0xff]  ;;  %v10374_v48 = vld [vmem:[#allocation82_spill] sm:$0xff] }
 0xb0a   :  { %4499 = vmatpush.msra.mxu2 %v4450_v20 }
 0xb0c   :  { %v5997_v16 = vpop.permute.xlu0 %5996  ;;  %4500 = vmatpush.msra.mxu2 %v4449_v31 }
 0xb0d   :  { %v5998_v55 = vunpack.i.l.bf16 %v5997_v16  ;;  %v5999_v47 = vunpack.i.h.bf16 %v5997_v16 }
 0xb0e   :  { %v3705_v19 = vpop.f32.mrf.mxu2  ;;  %v6007_v62 = vpop.permute.xlu1 %6006  ;;  %4501 = vmatpush.msra.mxu2 %v4448_v15 }
 0xb0f   :  { %v3706_v14 = vadd.f32 %v3705_v19, %v9253_v60  ;;  %v6009_v53 = vunpack.i.h.bf16 %v6007_v62  ;;  %v6008_v52 = vunpack.i.l.bf16 %v6007_v62  ;;  %v4444_v33 = vsel %vm171_vm1, %v5998_v55, %v10318_v37 }
 0xb10   :  { %4502 = vmatpush.msra.mxu2 %v4447_v34  ;;  %v10375_v34 = vld [vmem:[#allocation107_spill] sm:$0xff] }
 0xb11   :  { %5696 = vmatmul.msk.f32.gmra.mxu3 %vm171_vm1, %v3706_v14  ;;  %5718 = vmatmul.msk.f32.gmra.mxu0 %vm171_vm1, %v3706_v14  ;;  %v4472_v30 = vsel %vm171_vm1, %v6009_v53, %v10300_v63  ;;  %v4443_v63 = vsel %vm171_vm1, %v5999_v47, %v10321_v4  ;;  %v4490_v37 = vsel %vm171_vm1, %v6008_v52, %v8183_v43  ;;  %v6047_v47 = vpop.permute.xlu2 %6046 }
 0xb12   :  { %5740 = vmatmul.msk.f32.gmra.mxu1 %vm171_vm1, %v3706_v14  ;;  %4503 = vmatpush.msra.mxu2 %v4446_v51  ;;  %v10376_v51 = vld [vmem:[#allocation103_spill] sm:$0xff] }
 0xb13   :  { %4528 = vmatpush.msra.mxu3 %v4472_v30 }
 0xb14   :  { %v6012_v2 = vpop.permute.xlu0 %6011  ;;  %4504 = vmatpush.msra.mxu2 %v4445_v36 }
 0xb15   :  { %v6014_v3 = vunpack.i.h.bf16 %v6012_v2  ;;  %v6013_v6 = vunpack.i.l.bf16 %v6012_v2  ;;  %v6049_v2 = vunpack.i.h.bf16 %v6047_v47 }
 0xb16   :  { %v3708_v44 = vpop.f32.mrf.mxu2  ;;  %v6017_v57 = vpop.permute.xlu1 %6016  ;;  %4505 = vmatpush.msra.mxu2 %v4444_v33 }
 0xb17   :  { %v3709_v18 = vadd.f32 %v3708_v44, %v9253_v60  ;;  %v6019_v42 = vunpack.i.h.bf16 %v6017_v57  ;;  %v4471_v0 = vsel %vm171_vm1, %v6014_v3, %v10306_v22  ;;  %v6018_v17 = vunpack.i.l.bf16 %v6017_v57 }
 0xb18   :  { %4506 = vmatpush.msra.mxu2 %v4443_v63  ;;  %4529 = vmatpush.msra.mxu3 %v4471_v0  ;;  %v4489_v22 = vsel %vm171_vm1, %v6013_v6, %v8258_v12  ;;  %v4464_v44 = vsel %vm171_vm1, %v6049_v2, %v8115_v35 }
 0xb19   :  { %5697 = vmatmul.msk.f32.gmra.mxu3 %vm171_vm1, %v3709_v18  ;;  %5719 = vmatmul.msk.f32.gmra.mxu0 %vm171_vm1, %v3709_v18  ;;  %v4470_v4 = vsel %vm171_vm1, %v6019_v42, %v10371_v49  ;;  %v4488_v54 = vsel %vm171_vm1, %v6018_v17, %v10372_v9 }
 0xb1a   :  { %5741 = vmatmul.msk.f32.gmra.mxu1 %vm171_vm1, %v3709_v18  ;;  %4561 = vmatpush.msrb.mxu2 %v4490_v37 }
 0xb1b   :  { %4530 = vmatpush.msra.mxu3 %v4470_v4 }
 0xb1c   :  { %4562 = vmatpush.msrb.mxu2 %v4489_v22  ;;  %v6022_v8 = vpop.permute.xlu0 %6021 }
 0xb1d   :  { %v6024_v7 = vunpack.i.h.bf16 %v6022_v8  ;;  %v6023_v50 = vunpack.i.l.bf16 %v6022_v8 }
 0xb1e   :  { %4563 = vmatpush.msrb.mxu2 %v4488_v54  ;;  %v6027_v13 = vpop.permute.xlu1 %6026 }
 0xb1f   :  { %v6029_v43 = vunpack.i.h.bf16 %v6027_v13  ;;  %v6028_v25 = vunpack.i.l.bf16 %v6027_v13  ;;  %v4469_v20 = vsel %vm171_vm1, %v6024_v7, %v10373_v21  ;;  %v4487_v31 = vsel %vm171_vm1, %v6023_v50, %v10374_v48  ;;  %v10377_v7 = vld [vmem:[#allocation24_spill] sm:$0xff]  ;;  %v10378_v50 = vld [vmem:[#allocation22_spill] sm:$0xff]  ;;  %v10381_v48 = vld [vmem:[#allocation29_spill] sm:$0xff] }
 0xb20   :  { %4531 = vmatpush.msra.mxu3 %v4469_v20  ;;  %4564 = vmatpush.msrb.mxu2 %v4487_v31  ;;  %v10379_v13 = vld [vmem:[#allocation26_spill] sm:$0xff] }
 0xb21   :  { %v3711_v12 = vpop.f32.mrf.mxu2  ;;  %v4468_v16 = vsel %vm171_vm1, %v6029_v43, %v10310_v56  ;;  %v4486_v27 = vsel %vm171_vm1, %v6028_v25, %v8275_v24 }
 0xb22   :  { %v3712_v15 = vadd.f32 %v3711_v12, %v9253_v60  ;;  %4532 = vmatpush.msra.mxu3 %v4468_v16  ;;  %4565 = vmatpush.msrb.mxu2 %v4486_v27  ;;  %v10382_v27 = vld [vmem:[#allocation31_spill] sm:$0xff] }
 0xb24   :  { %v6032_v19 = vpop.permute.xlu0 %6031  ;;  %5698 = vmatmul.msk.f32.gmra.mxu3 %vm171_vm1, %v3712_v15  ;;  %5720 = vmatmul.msk.f32.gmra.mxu0 %vm171_vm1, %v3712_v15 }
 0xb25   :  { %v6034_v62 = vunpack.i.h.bf16 %v6032_v19  ;;  %v6033_v45 = vunpack.i.l.bf16 %v6032_v19  ;;  %5742 = vmatmul.msk.f32.gmra.mxu1 %vm171_vm1, %v3712_v15 }
 0xb27   :  { %v4467_v14 = vsel %vm171_vm1, %v6034_v62, %v10311_v40  ;;  %v4485_v56 = vsel %vm171_vm1, %v6033_v45, %v8308_v26  ;;  %v6048_v40 = vunpack.i.l.bf16 %v6047_v47 }
 0xb28   :  { %4533 = vmatpush.msra.mxu3 %v4467_v14  ;;  %4566 = vmatpush.msrb.mxu2 %v4485_v56  ;;  %v10383_v14 = vld [vmem:[#allocation35_spill] sm:$0xff] }
 0xb29   :  { %v4482_v57 = vsel %vm171_vm1, %v6048_v40, %v10255_v11  ;;  %v10386_v40 = vld [vmem:[#allocation43_spill] sm:$0xff] }
 0xb2c   :  { %v6037_v24 = vpop.permute.xlu0 %6036 }
 0xb2d   :  { %v6039_v60 = vunpack.i.h.bf16 %v6037_v24  ;;  %v6038_v53 = vunpack.i.l.bf16 %v6037_v24  ;;  %v10384_v24 = vld [vmem:[#allocation34_spill] sm:$0xff] }
 0xb2f   :  { %v4466_v55 = vsel %vm171_vm1, %v6039_v60, %v10375_v34  ;;  %v4484_v30 = vsel %vm171_vm1, %v6038_v53, %v10376_v51 }
 0xb30   :  { %4534 = vmatpush.msra.mxu3 %v4466_v55  ;;  %4567 = vmatpush.msrb.mxu2 %v4484_v30  ;;  %v10385_v55 = vld [vmem:[#allocation36_spill] sm:$0xff] }
 0xb34   :  { %v6042_v36 = vpop.permute.xlu0 %6041 }
 0xb35   :  { %v6044_v52 = vunpack.i.h.bf16 %v6042_v36  ;;  %v6043_v3 = vunpack.i.l.bf16 %v6042_v36 }
 0xb37   :  { %v4465_v26 = vsel %vm171_vm1, %v6044_v52, %v8189_v23  ;;  %v4483_v33 = vsel %vm171_vm1, %v6043_v3, %v8344_v39  ;;  %v10387_v3 = vld [vmem:[#allocation44_spill] sm:$0xff] }
 0xb38   :  { %4535 = vmatpush.msra.mxu3 %v4465_v26  ;;  %4568 = vmatpush.msrb.mxu2 %v4483_v33  ;;  %v10388_v33 = vld [vmem:[#allocation48_spill] sm:$0xff] }
 0xb3a   :  { %4536 = vmatpush.msra.mxu3 %v4464_v44  ;;  %4569 = vmatpush.msrb.mxu2 %v4482_v57 }
 0xb3c   :  { %v6052_v63 = vpop.permute.xlu0 %6051 }
 0xb3d   :  { %v6054_v6 = vunpack.i.h.bf16 %v6052_v63  ;;  %v6053_v18 = vunpack.i.l.bf16 %v6052_v63 }
 0xb3f   :  { %v4463_v42 = vsel %vm171_vm1, %v6054_v6, %v8064_v46  ;;  %v4481_v23 = vsel %vm171_vm1, %v6053_v18, %v10260_v29 }
 0xb40   :  { %4537 = vmatpush.msra.mxu3 %v4463_v42  ;;  %4570 = vmatpush.msrb.mxu2 %v4481_v23  ;;  %v10389_v23 = vld [vmem:[#allocation101_spill] sm:$0xff] }
 0xb44   :  { %v6057_v39 = vpop.permute.xlu0 %6056 }
 0xb45   :  { %v6059_v0 = vunpack.i.h.bf16 %v6057_v39  ;;  %v6058_v17 = vunpack.i.l.bf16 %v6057_v39  ;;  %v10390_v39 = vld [vmem:[#allocation102_spill] sm:$0xff] }
 0xb47   :  { %v4462_v35 = vsel %vm171_vm1, %v6059_v0, %v10313_v61  ;;  %v4480_v11 = vsel %vm171_vm1, %v6058_v17, %v8388_v32  ;;  %v10391_v0 = vpack.i.bf16 %v10389_v23, %v10390_v39  ;;  %v10392_v17 = vld [vmem:[#allocation23_spill] sm:$0xff] }
 0xb48   :  { %4538 = vmatpush.msra.mxu3 %v4462_v35  ;;  %4571 = vmatpush.msrb.mxu2 %v4480_v11  ;;  %v10393_v11 = vld [vmem:[#allocation27_spill] sm:$0xff] }
 0xb4c   :  { %v6062_v37 = vpop.permute.xlu0 %6061 }
 0xb4d   :  { %v6064_v49 = vunpack.i.h.bf16 %v6062_v37  ;;  %v6063_v4 = vunpack.i.l.bf16 %v6062_v37 }
 0xb4f   :  { %v4461_v46 = vsel %vm171_vm1, %v6064_v49, %v10316_v5  ;;  %v4479_v29 = vsel %vm171_vm1, %v6063_v4, %v10314_v38  ;;  %v10380_v38 = vld [vmem:[#allocation30_spill] sm:$0xff]  ;;  %v10394_v49 = vld [vmem:[#allocation25_spill] sm:$0xff] }
 0xb50   :  { %4539 = vmatpush.msra.mxu3 %v4461_v46  ;;  %4572 = vmatpush.msrb.mxu2 %v4479_v29 }
 0xb6d   :  { %v4085_v22 = vpop.f32.mrf.mxu3  ;;  %v4120_v8 = vpop.f32.mrf.mxu0 }
 0xb6e   :  { %v4086_v61 = vadd.f32 %v4085_v22, %v10377_v7  ;;  %v9370_v9 = vadd.f32 %v4120_v8, %v10378_v50  ;;  %v10395_v50 = vld [vmem:[#allocation54_spill] sm:$0xff] }
 0xb70   :  { %v4173_v54 = vmax.f32 %v4086_v61, %v9370_v9 }
 0xb73   :  { %v4155_v32 = vpop.f32.mrf.mxu1 }
 0xb74   :  { %v9374_v43 = vadd.f32 %v4155_v32, %v10379_v13 }
 0xb75   :  { %v4088_v25 = vpop.f32.mrf.mxu3  ;;  %v4123_v5 = vpop.f32.mrf.mxu0 }
 0xb76   :  { %v4174_v21 = vmax.f32 %v4173_v54, %v9374_v43  ;;  %v4089_v20 = vadd.f32 %v4088_v25, %v10380_v38  ;;  %v9379_v31 = vadd.f32 %v4123_v5, %v10381_v48  ;;  %v10396_v54 = vld [vmem:[#allocation55_spill] sm:$0xff]  ;;  %v10397_v25 = vld [vmem:[#allocation56_spill] sm:$0xff]  ;;  %v3796_v48 = vmul.f32 %v10320_v1, %v10353_v28 }
 0xb78   :  { %4175 = vmax.xlane.f32.xlu2 %v4174_v21  ;;  %v4177_v16 = vmax.f32 %v4089_v20, %v9379_v31 }
 0xb7b   :  { %v4158_v12 = vpop.f32.mrf.mxu1 }
 0xb7c   :  { %v9383_v15 = vadd.f32 %v4158_v12, %v10382_v27  ;;  %v3778_v12 = vmul.f32 %v10323_v58, %v10342_v10  ;;  %v10398_v27 = vld [vmem:[#allocation111_spill] sm:$0xff] }
 0xb7d   :  { %v4091_v19 = vpop.f32.mrf.mxu3  ;;  %v4126_v62 = vpop.f32.mrf.mxu0 }
 0xb7e   :  { %v4178_v45 = vmax.f32 %v4177_v16, %v9383_v15  ;;  %v4092_v56 = vadd.f32 %v4091_v19, %v10383_v14  ;;  %v9388_v60 = vadd.f32 %v4126_v62, %v10384_v24  ;;  %v6070_v16 = vpack.i.bf16 %v3778_v12, %v3796_v48  ;;  %v10399_v19 = vld [vmem:[#allocation116_spill] sm:$0xff] }
 0xb7f   :  { %v10400_v62 = vpack.i.bf16 %v10398_v27, %v10399_v19 }
 0xb80   :  { %4179 = vmax.xlane.f32.xlu1 %v4178_v45  ;;  %v4181_v34 = vmax.f32 %v4092_v56, %v9388_v60 }
 0xb83   :  { %v4161_v53 = vpop.f32.mrf.mxu1 }
 0xb84   :  { %v9392_v51 = vadd.f32 %v4161_v53, %v10385_v55 }
 0xb86   :  { %v4182_v30 = vmax.f32 %v4181_v34, %v9392_v51 }
 0xb88   :  { %4183 = vmax.xlane.f32.xlu0 %v4182_v30 }
 0xb8e   :  { %v4129_v47 = vpop.f32.mrf.mxu0 }
 0xb8f   :  { %v4164_v36 = vpop.f32.mrf.mxu1  ;;  %v9396_v52 = vadd.f32 %v4129_v47, %v10386_v40 }
 0xb90   :  { %v9400_v44 = vadd.f32 %v4164_v36, %v10388_v33 }
 0xb94   :  { %v4094_v2 = vpop.f32.mrf.mxu3 }
 0xb95   :  { %v4095_v26 = vadd.f32 %v4094_v2, %v10387_v3 }
 0xb96   :  { %v4132_v6 = vpop.f32.mrf.mxu0 }
 0xb97   :  { %v4185_v57 = vmax.f32 %v4095_v26, %v9396_v52  ;;  %v4167_v18 = vpop.f32.mrf.mxu1  ;;  %v9409_v35 = vadd.f32 %v4132_v6, %v10392_v17 }
 0xb98   :  { %v9413_v4 = vadd.f32 %v4167_v18, %v10394_v49 }
 0xb99   :  { %v4186_v63 = vmax.f32 %v4185_v57, %v9400_v44 }
 0xb9b   :  { %4187 = vmax.xlane.f32.xlu2 %v4186_v63 }
 0xb9c   :  { %v4097_v42 = vpop.f32.mrf.mxu3  ;;  %6076 = vrot.lane.b32.xlu0 %v10391_v0, %s6421_s6 }
 0xb9d   :  { %v4098_v37 = vadd.f32 %v4097_v42, %v10393_v11 }
 0xb9f   :  { %v4189_v46 = vmax.f32 %v4098_v37, %v9409_v35 }
 0xba1   :  { %v4190_v29 = vmax.f32 %v4189_v46, %v9413_v4  ;;  %v4135_v22 = vpop.f32.mrf.mxu0 }
 0xba2   :  { %v4170_v8 = vpop.f32.mrf.mxu1  ;;  %v9418_v32 = vadd.f32 %v4135_v22, %v10395_v50 }
 0xba3   :  { %4191 = vmax.xlane.f32.xlu2 %v4190_v29  ;;  %v9422_v5 = vadd.f32 %v4170_v8, %v10397_v25  ;;  %v10402_v25 = vld [vmem:[#allocation108_spill] sm:$0xff] }
 0xba7   :  { %v4100_v7 = vpop.f32.mrf.mxu3 }
 0xba8   :  { %v4101_v13 = vadd.f32 %v4100_v7, %v10396_v54  ;;  %v10401_v54 = vld [vmem:[#allocation104_spill] sm:$0xff] }
 0xbaa   :  { %v4193_v21 = vmax.f32 %v4101_v13, %v9418_v32 }
 0xbac   :  { %v4194_v38 = vmax.f32 %v4193_v21, %v9422_v5 }
 0xbae   :  { %4195 = vmax.xlane.f32.xlu1 %v4194_v38 }
 0xbbb   :  { %6071 = vrot.lane.b32.xlu2 %v6070_v16, %s6421_s6  ;;  %v10403_v16 = vld [vmem:[#allocation100_spill] sm:$0xff] }
 0xbc7   :  { %6066 = vrot.lane.b32.xlu1 %v10400_v62, %s6421_s6  ;;  %v10404_v62 = vld [vmem:[#allocation93_spill] sm:$0xff] }
 0xbeb   :  { %v4176_v45 = vpop.xlane.xlu2 %4175 }
 0xbec   :  { %v4197_v14 = vsub.f32 %v4086_v61, %v4176_v45  ;;  %v4199_v39 = vsub.f32 %v9374_v43, %v4176_v45 }
 0xbee   :  { %v4215_v24 = vmul.f32 1.442695, %v4197_v14  ;;  %v4219_v11 = vmul.f32 1.442695, %v4199_v39 }
 0xbf0   :  { %6256 = vpow2.f32 %v4215_v24 }
 0xbf3   :  { %v4180_v53 = vpop.xlane.xlu1 %4179 }
 0xbf4   :  { %v4200_v34 = vsub.f32 %v4089_v20, %v4180_v53  ;;  %v4202_v43 = vsub.f32 %v9383_v15, %v4180_v53 }
 0xbf6   :  { %v6257_v55 = vpop.eup %6256  ;;  %v4221_v30 = vmul.f32 1.442695, %v4200_v34  ;;  %v4225_v19 = vmul.f32 1.442695, %v4202_v43  ;;  %v5750_v43 = vld [vmem:[%s9956_s8 + $0x78] sm:$0xff] }
 0xbf7   :  { %4507 = vmatmul.f32.vlgmr.msra.gmra.mxu2 %v6257_v55  ;;  %4673 = vmatpush.msrb.mxu0 %v5750_v43 }
 0xbf8   :  { %6258 = vpow2.f32 %v4221_v30 }
 0xbfb   :  { %v9435_v28 = vpop.xlane.xlu0 %4183 }
 0xbfc   :  { %v4203_v10 = vsub.f32 %v4092_v56, %v9435_v28  ;;  %v4204_v15 = vsub.f32 %v9388_v60, %v9435_v28 }
 0xbfe   :  { %v6259_v47 = vpop.eup %6258  ;;  %v4227_v36 = vmul.f32 1.442695, %v4203_v10  ;;  %v4229_v14 = vmul.f32 1.442695, %v4204_v15 }
 0xbff   :  { %4510 = vmatmul.f32.gmra.mxu2 %v6259_v47 }
 0xc00   :  { %6260 = vpow2.f32 %v4227_v36 }
 0xc06   :  { %v6261_v2 = vpop.eup %6260 }
 0xc07   :  { %4513 = vmatmul.f32.gmra.mxu2 %v6261_v2 }
 0xc0e   :  { %v9438_v40 = vpop.xlane.xlu2 %4187  ;;  %v6077_v49 = vpop.permute.xlu0 %6076 }
 0xc0f   :  { %v4206_v61 = vsub.f32 %v4095_v26, %v9438_v40  ;;  %v4198_v26 = vsub.f32 %v9370_v9, %v4176_v45  ;;  %v6078_v50 = vunpack.i.l.bf16 %v6077_v49  ;;  %v4207_v34 = vsub.f32 %v9396_v52, %v9438_v40 }
 0xc10   :  { %v4208_v55 = vsub.f32 %v9400_v44, %v9438_v40 }
 0xc11   :  { %v4233_v3 = vmul.f32 1.442695, %v4206_v61  ;;  %v4217_v0 = vmul.f32 1.442695, %v4198_v26  ;;  %v4476_v27 = vsel %vm171_vm1, %v6078_v50, %v10403_v16  ;;  %v4235_v30 = vmul.f32 1.442695, %v4207_v34 }
 0xc12   :  { %v4237_v47 = vmul.f32 1.442695, %v4208_v55 }
 0xc13   :  { %6262 = vpow2.f32 %v4233_v3 }
 0xc16   :  { %v9441_v20 = vpop.xlane.xlu2 %4191 }
 0xc17   :  { %v4209_v33 = vsub.f32 %v4098_v37, %v9441_v20  ;;  %v4201_v37 = vsub.f32 %v9379_v31, %v4180_v53  ;;  %v6079_v31 = vunpack.i.h.bf16 %v6077_v49  ;;  %v4211_v52 = vsub.f32 %v9413_v4, %v9441_v20 }
 0xc19   :  { %v6263_v57 = vpop.eup %6262  ;;  %v4239_v63 = vmul.f32 1.442695, %v4209_v33  ;;  %v4223_v21 = vmul.f32 1.442695, %v4201_v37  ;;  %v4475_v45 = vsel %vm171_vm1, %v6079_v31, %v10404_v62  ;;  %v4243_v61 = vmul.f32 1.442695, %v4211_v52 }
 0xc1a   :  { %4516 = vmatmul.f32.gmra.mxu2 %v6263_v57  ;;  %v5748_v31 = vld [vmem:[%s9956_s8 + $0x68] sm:$0xff]  ;;  %v5743_v52 = vld [vmem:[%s9956_s8 + $0x40] sm:$0xff] }
 0xc1b   :  { %6264 = vpow2.f32 %v4239_v63 }
 0xc1e   :  { %v6072_v17 = vpop.permute.xlu2 %6071 }
 0xc1f   :  { %v6074_v29 = vunpack.i.h.bf16 %v6072_v17  ;;  %v6073_v22 = vunpack.i.l.bf16 %v6072_v17 }
 0xc21   :  { %v6265_v56 = vpop.eup %6264  ;;  %v9444_v6 = vpop.xlane.xlu1 %4195  ;;  %v4459_v38 = vsel %vm171_vm1, %v6074_v29, %v10323_v58  ;;  %v4477_v48 = vsel %vm171_vm1, %v6073_v22, %v10320_v1  ;;  %v4205_v1 = vsub.f32 %v9392_v51, %v9435_v28  ;;  %v4210_v51 = vsub.f32 %v9409_v35, %v9441_v20 }
 0xc22   :  { %v4212_v18 = vsub.f32 %v4101_v13, %v9444_v6  ;;  %4519 = vmatmul.f32.gmra.mxu2 %v6265_v56  ;;  %v4213_v44 = vsub.f32 %v9418_v32, %v9444_v6  ;;  %v4214_v35 = vsub.f32 %v9422_v5, %v9444_v6 }
 0xc23   :  { %v4231_v53 = vmul.f32 1.442695, %v4205_v1  ;;  %v4241_v36 = vmul.f32 1.442695, %v4210_v51 }
 0xc24   :  { %v4245_v42 = vmul.f32 1.442695, %v4212_v18  ;;  %v4247_v3 = vmul.f32 1.442695, %v4213_v44  ;;  %v4249_v57 = vmul.f32 1.442695, %v4214_v35 }
 0xc26   :  { %6266 = vpow2.f32 %v4245_v42 }
 0xc27   :  { %6268 = vpow2.f32 %v4217_v0 }
 0xc28   :  { %6270 = vpow2.f32 %v4219_v11 }
 0xc29   :  { %6272 = vpow2.f32 %v4223_v21  ;;  %v5749_v21 = vld [vmem:[%s9956_s8 + $0x70] sm:$0xff] }
 0xc2a   :  { %6274 = vpow2.f32 %v4225_v19  ;;  %4674 = vmatpush.msrb.mxu0 %v5749_v21 }
 0xc2b   :  { %6276 = vpow2.f32 %v4229_v14 }
 0xc2c   :  { %v6267_v23 = vpop.eup %6266  ;;  %6278 = vpow2.f32 %v4231_v53  ;;  %4675 = vmatpush.msrb.mxu0 %v5748_v31  ;;  %v10410_v31 = vld [vmem:[#allocation105_spill] sm:$0xff] }
 0xc2d   :  { %4522 = vmatmul.f32.gmra.mxu2 %v6267_v23  ;;  %v6269_v12 = vpop.eup %6268  ;;  %6280 = vpow2.f32 %v4235_v30 }
 0xc2e   :  { %v6271_v58 = vpop.eup %6270  ;;  %6282 = vpow2.f32 %v4237_v47 }
 0xc2f   :  { %v6273_v24 = vpop.eup %6272  ;;  %6284 = vpow2.f32 %v4241_v36 }
 0xc30   :  { %v6275_v60 = vpop.eup %6274  ;;  %6286 = vpow2.f32 %v4243_v61 }
 0xc31   :  { %v6277_v10 = vpop.eup %6276  ;;  %6288 = vpow2.f32 %v4247_v3 }
 0xc32   :  { %v6279_v28 = vpop.eup %6278  ;;  %6290 = vpow2.f32 %v4249_v57 }
 0xc33   :  { %v6281_v2 = vpop.eup %6280 }
 0xc34   :  { %v6283_v40 = vpop.eup %6282 }
 0xc35   :  { %v6285_v33 = vpop.eup %6284 }
 0xc36   :  { %v6287_v4 = vpop.eup %6286 }
 0xc37   :  { %v6289_v20 = vpop.eup %6288 }
 0xc38   :  { %v6291_v63 = vpop.eup %6290 }
 0xc39   :  { %v6067_v46 = vpop.permute.xlu1 %6066 }
 0xc3a   :  { %v6069_v8 = vunpack.i.h.bf16 %v6067_v46  ;;  %v6068_v7 = vunpack.i.l.bf16 %v6067_v46 }
 0xc3c   :  { %v4460_v13 = vsel %vm171_vm1, %v6069_v8, %v10401_v54  ;;  %v4478_v9 = vsel %vm171_vm1, %v6068_v7, %v10402_v25 }
 0xc3d   :  { %4540 = vmatpush.msra.mxu3 %v4460_v13  ;;  %4573 = vmatpush.msrb.mxu2 %v4478_v9 }
 0xc3f   :  { %4541 = vmatpush.msra.mxu3 %v4459_v38  ;;  %4574 = vmatpush.msrb.mxu2 %v4477_v48 }
 0xc40   :  { %4542 = vmatmul.f32.vlgmr.msra.gmra.mxu3 %v6269_v12  ;;  %v5747_v12 = vld [vmem:[%s9956_s8 + $0x60] sm:$0xff] }
 0xc41   :  { %4575 = vmatpush.msrb.mxu2 %v4476_v27  ;;  %v5746_v27 = vld [vmem:[%s9956_s8 + $0x58] sm:$0xff]  ;;  %4676 = vmatpush.msrb.mxu0 %v5747_v12 }
 0xc43   :  { %4576 = vmatpush.msrb.mxu2 %v4475_v45  ;;  %v5745_v45 = vld [vmem:[%s9956_s8 + $0x50] sm:$0xff]  ;;  %4677 = vmatpush.msrb.mxu0 %v5746_v27 }
 0xc44   :  { %4577 = vmatmul.f32.vlgmr.msrb.gmra.mxu2 %v6271_v58  ;;  %v5744_v58 = vld [vmem:[%s9956_s8 + $0x48] sm:$0xff] }
 0xc45   :  { %4678 = vmatpush.msrb.mxu0 %v5745_v45 }
 0xc47   :  { %4679 = vmatpush.msrb.mxu0 %v5744_v58 }
 0xc48   :  { %4545 = vmatmul.f32.gmra.mxu3 %v6273_v24 }
 0xc49   :  { %4680 = vmatpush.msrb.mxu0 %v5743_v52 }
 0xc4c   :  { %4580 = vmatmul.f32.gmra.mxu2 %v6275_v60 }
 0xc50   :  { %4548 = vmatmul.f32.gmra.mxu3 %v6277_v10 }
 0xc54   :  { %4583 = vmatmul.f32.gmra.mxu2 %v6279_v28 }
 0xc58   :  { %4551 = vmatmul.f32.gmra.mxu3 %v6281_v2 }
 0xc5c   :  { %4586 = vmatmul.f32.gmra.mxu2 %v6283_v40 }
 0xc60   :  { %4554 = vmatmul.f32.gmra.mxu3 %v6285_v33 }
 0xc64   :  { %4589 = vmatmul.f32.gmra.mxu2 %v6287_v4 }
 0xc68   :  { %4557 = vmatmul.f32.gmra.mxu3 %v6289_v20 }
 0xc6c   :  { %4592 = vmatmul.f32.gmra.mxu2 %v6291_v63 }
 0xc7a   :  { %v4508_v56 = vpop.f32.mrf.mxu2 }
 0xc82   :  { %v4511_v32 = vpop.f32.mrf.mxu2 }
 0xc8a   :  { %v4514_v18 = vpop.f32.mrf.mxu2 }
 0xc9d   :  { %v4517_v42 = vpop.f32.mrf.mxu2 }
 0xca5   :  { %v4520_v23 = vpop.f32.mrf.mxu2 }
 0xcb0   :  { %v4523_v26 = vpop.f32.mrf.mxu2 }
 0xcc3   :  { %v4543_v39 = vpop.f32.mrf.mxu3 }
 0xcc4   :  { %v4544_v5 = vadd.f32 %v4543_v39, %v4508_v56  ;;  %v4706_v56 = vperm.slane %v9250_v41, 2  ;;  %v10407_v41 = vld [vmem:[#allocation37_spill] sm:$0xff] }
 0xcc7   :  { %v4578_v6 = vpop.f32.mrf.mxu2 }
 0xcc8   :  { %v4579_v0 = vadd.f32 %v4578_v6, %v4544_v5  ;;  %v10406_v5 = vld [vmem:[#allocation90_spill] sm:$0xff] }
 0xcca   :  { %v4596_v17 = vmax.f32 %v4579_v0, 1e-30 }
 0xccb   :  { %v4546_v11 = vpop.f32.mrf.mxu3 }
 0xccc   :  { %6292 = vrcp.f32 %v4596_v17  ;;  %v4547_v37 = vadd.f32 %v4546_v11, %v4511_v32 }
 0xccf   :  { %v4581_v49 = vpop.f32.mrf.mxu2 }
 0xcd0   :  { %v4582_v46 = vadd.f32 %v4581_v49, %v4547_v37 }
 0xcd2   :  { %v6293_v29 = vpop.eup %6292  ;;  %v4597_v22 = vmax.f32 %v4582_v46, 1e-30 }
 0xcd3   :  { %v4549_v8 = vpop.f32.mrf.mxu3  ;;  %4614 = vrot.lane.b32.xlu2 %v6293_v29, %s6421_s6 }
 0xcd4   :  { %6294 = vrcp.f32 %v4597_v22  ;;  %v4550_v7 = vadd.f32 %v4549_v8, %v4514_v18  ;;  %v10405_v18 = vld [vmem:[#allocation32_spill] sm:$0xff]  ;;  %v10408_v22 = vld [vmem:[#allocation83_spill] sm:$0xff] }
 0xcd7   :  { %v4584_v50 = vpop.f32.mrf.mxu2 }
 0xcd8   :  { %v4585_v54 = vadd.f32 %v4584_v50, %v4550_v7 }
 0xcda   :  { %v6295_v13 = vpop.eup %6294  ;;  %v4598_v25 = vmax.f32 %v4585_v54, 1e-30 }
 0xcdb   :  { %v4552_v9 = vpop.f32.mrf.mxu3  ;;  %4616 = vrot.lane.b32.xlu0 %v6295_v13, %s6421_s6  ;;  %v10409_v13 = vld [vmem:[#allocation9_spill] sm:$0xff] }
 0xcdc   :  { %6296 = vrcp.f32 %v4598_v25  ;;  %v4553_v38 = vadd.f32 %v4552_v9, %v4517_v42 }
 0xcdf   :  { %v4587_v48 = vpop.f32.mrf.mxu2 }
 0xce0   :  { %v4588_v16 = vadd.f32 %v4587_v48, %v4553_v38 }
 0xce2   :  { %v6297_v19 = vpop.eup %6296  ;;  %v4599_v15 = vmax.f32 %v4588_v16, 1e-30 }
 0xce3   :  { %v4555_v62 = vpop.f32.mrf.mxu3  ;;  %4618 = vrot.lane.b32.xlu2 %v6297_v19, %s6421_s6 }
 0xce4   :  { %6298 = vrcp.f32 %v4599_v15  ;;  %v4556_v1 = vadd.f32 %v4555_v62, %v4520_v23 }
 0xce7   :  { %v4590_v14 = vpop.f32.mrf.mxu2 }
 0xce8   :  { %v4591_v24 = vadd.f32 %v4590_v14, %v4556_v1 }
 0xcea   :  { %v6299_v53 = vpop.eup %6298  ;;  %v4600_v34 = vmax.f32 %v4591_v24, 1e-30 }
 0xceb   :  { %v4558_v60 = vpop.f32.mrf.mxu3  ;;  %4620 = vrot.lane.b32.xlu0 %v6299_v53, %s6421_s6 }
 0xcec   :  { %6300 = vrcp.f32 %v4600_v34  ;;  %v4559_v55 = vadd.f32 %v4558_v60, %v4523_v26 }
 0xcef   :  { %v4593_v30 = vpop.f32.mrf.mxu2 }
 0xcf0   :  { %v4594_v10 = vadd.f32 %v4593_v30, %v4559_v55 }
 0xcf2   :  { %v6301_v47 = vpop.eup %6300  ;;  %v4601_v51 = vmax.f32 %v4594_v10, 1e-30 }
 0xcf3   :  { %4622 = vrot.lane.b32.xlu1 %v6301_v47, %s6421_s6 }
 0xcf4   :  { %6302 = vrcp.f32 %v4601_v51 }
 0xcfa   :  { %v6303_v28 = vpop.eup %6302 }
 0xcfb   :  { %4624 = vrot.lane.b32.xlu2 %v6303_v28, %s6421_s6 }
 0xd2d   :  { %v4615_v36 = vpop.permute.xlu2 %4614 }
 0xd2e   :  { %v4632_v2 = vmul.f32 %v4615_v36, %v4579_v0 }
 0xd30   :  { %5751 = vmatmul.msk.f32.vlgmr.msrb.gmra.mxu0 %vm171_vm1, %v4632_v2 }
 0xd3d   :  { %v4619_v40 = vpop.permute.xlu2 %4618 }
 0xd3e   :  { %v4634_v35 = vmul.f32 %v4619_v40, %v4585_v54 }
 0xd4d   :  { %v4617_v61 = vpop.permute.xlu0 %4616 }
 0xd4e   :  { %v4633_v44 = vmul.f32 %v4617_v61, %v4582_v46 }
 0xd50   :  { %5752 = vmatmul.msk.f32.gmra.mxu0 %vm171_vm1, %v4633_v44 }
 0xd55   :  { %v4625_v20 = vpop.permute.xlu2 %4624 }
 0xd56   :  { %v4637_v63 = vmul.f32 %v4625_v20, %v4594_v10  ;;  %v5771_v20 = vld [vmem:[%s9957_s9 + $0xf0] sm:$0xff] }
 0xd57   :  { %4904 = vmatpush.msrb.mxu1 %v5771_v20 }
 0xd58   :  { %5753 = vmatmul.msk.f32.gmra.mxu0 %vm171_vm1, %v4634_v35 }
 0xd5d   :  { %v4621_v3 = vpop.permute.xlu0 %4620 }
 0xd5e   :  { %v4635_v33 = vmul.f32 %v4621_v3, %v4588_v16 }
 0xd60   :  { %5754 = vmatmul.msk.f32.gmra.mxu0 %vm171_vm1, %v4635_v33 }
 0xd65   :  { %v4623_v57 = vpop.permute.xlu1 %4622 }
 0xd66   :  { %v4636_v4 = vmul.f32 %v4623_v57, %v4591_v24 }
 0xd68   :  { %5755 = vmatmul.msk.f32.gmra.mxu0 %vm171_vm1, %v4636_v4 }
 0xd70   :  { %5756 = vmatmul.msk.f32.gmra.mxu0 %vm171_vm1, %v4637_v63  ;;  %v5772_v63 = vld [vmem:[%s9957_s9 + $0xf8] sm:$0xff] }
 0xd71   :  { %4939 = vmatpush.msrb.mxu3 %v5772_v63 }
 0xdad   :  { %v4682_v32 = vpop.f32.mrf.mxu0 }
 0xdae   :  { %v4700_v42 = vadd.f32 %v4682_v32, %v10405_v18  ;;  %v5770_v32 = vld [vmem:[%s9957_s9 + $0xe8] sm:$0xff]  ;;  %v5767_v18 = vld [vmem:[%s9957_s9 + $0xd0] sm:$0xff] }
 0xdaf   :  { %4940 = vmatpush.msrb.mxu3 %v5770_v32 }
 0xdb0   :  { %v9517_v23 = vadd.f32 %v4706_v56, %v4700_v42  ;;  %v5768_v42 = vld [vmem:[%s9957_s9 + $0xd8] sm:$0xff] }
 0xdb1   :  { %4941 = vmatpush.msrb.mxu3 %v5768_v42 }
 0xdb2   :  { %v4713_v26 = vsel %vm171_vm1, %v9517_v23, 0.0 }
 0xdb3   :  { %4714 = vadd.xlane.f32.xlu0 %v4713_v26  ;;  %v5765_v26 = vld [vmem:[%s9957_s9 + $0xc0] sm:$0xff] }
 0xdcd   :  { %v4685_v39 = vpop.f32.mrf.mxu0 }
 0xdce   :  { %v4701_v6 = vadd.f32 %v4685_v39, %v10406_v5  ;;  %v5766_v39 = vld [vmem:[%s9957_s9 + $0xc8] sm:$0xff] }
 0xdcf   :  { %4942 = vmatpush.msrb.mxu3 %v5766_v39 }
 0xdd0   :  { %v9522_v0 = vadd.f32 %v4706_v56, %v4701_v6 }
 0xdd2   :  { %v4716_v17 = vsel %vm171_vm1, %v9522_v0, 0.0 }
 0xdd3   :  { %4717 = vadd.xlane.f32.xlu1 %v4716_v17  ;;  %v5763_v17 = vld [vmem:[%s9957_s9 + $0xb0] sm:$0xff] }
 0xdd5   :  { %v4688_v11 = vpop.f32.mrf.mxu0 }
 0xdd6   :  { %v4702_v37 = vadd.f32 %v4688_v11, %v10407_v41  ;;  %v5764_v11 = vld [vmem:[%s9957_s9 + $0xb8] sm:$0xff] }
 0xdd7   :  { %4943 = vmatpush.msrb.mxu3 %v5764_v11 }
 0xdd8   :  { %v9527_v49 = vadd.f32 %v4706_v56, %v4702_v37  ;;  %v5761_v37 = vld [vmem:[%s9957_s9 + $0xa0] sm:$0xff] }
 0xdda   :  { %v4719_v46 = vsel %vm171_vm1, %v9527_v49, 0.0 }
 0xddb   :  { %4720 = vadd.xlane.f32.xlu2 %v4719_v46  ;;  %v5762_v46 = vld [vmem:[%s9957_s9 + $0xa8] sm:$0xff] }
 0xddc   :  { %4944 = vmatpush.msrb.mxu3 %v5762_v46  ;;  %v5798_v46 = vld [vmem:[%s9958_s10 + $0x168] sm:$0xff] }
 0xddd   :  { %v4691_v29 = vpop.f32.mrf.mxu0 }
 0xdde   :  { %v4703_v8 = vadd.f32 %v4691_v29, %v10408_v22  ;;  %v5759_v29 = vld [vmem:[%s9957_s9 + $0x90] sm:$0xff]  ;;  %v5760_v22 = vld [vmem:[%s9957_s9 + $0x98] sm:$0xff] }
 0xddf   :  { %4945 = vmatpush.msrb.mxu3 %v5760_v22 }
 0xde0   :  { %v9532_v7 = vadd.f32 %v4706_v56, %v4703_v8  ;;  %v5757_v8 = vld [vmem:[%s9957_s9 + $0x80] sm:$0xff] }
 0xde2   :  { %v4722_v50 = vsel %vm171_vm1, %v9532_v7, 0.0 }
 0xde3   :  { %4723 = vadd.xlane.f32.xlu0 %v4722_v50  ;;  %v5758_v50 = vld [vmem:[%s9957_s9 + $0x88] sm:$0xff] }
 0xde4   :  { %4946 = vmatpush.msrb.mxu3 %v5758_v50 }
 0xde5   :  { %v4694_v54 = vpop.f32.mrf.mxu0 }
 0xde6   :  { %v4704_v25 = vadd.f32 %v4694_v54, %v10409_v13 }
 0xde8   :  { %v9537_v9 = vadd.f32 %v4706_v56, %v4704_v25 }
 0xdea   :  { %v4725_v43 = vsel %vm171_vm1, %v9537_v9, 0.0 }
 0xdeb   :  { %4726 = vadd.xlane.f32.xlu2 %v4725_v43 }
 0xded   :  { %v4697_v21 = vpop.f32.mrf.mxu0 }
 0xdee   :  { %v4705_v38 = vadd.f32 %v4697_v21, %v10410_v31 }
 0xdf0   :  { %v9542_v48 = vadd.f32 %v4706_v56, %v4705_v38  ;;  %v5769_v56 = vld [vmem:[%s9957_s9 + $0xe0] sm:$0xff] }
 0xdf1   :  { %4905 = vmatpush.msrb.mxu1 %v5769_v56  ;;  %v9640_v38 = vld [vmem:[%s9951_s3 + $0x20] sm:$0xff] }
 0xdf2   :  { %v4728_v12 = vsel %vm171_vm1, %v9542_v48, 0.0 }
 0xdf3   :  { %4729 = vadd.xlane.f32.xlu1 %v4728_v12  ;;  %4906 = vmatpush.msrb.mxu1 %v5767_v18  ;;  %v9643_v12 = vperm.slane %v9640_v38, 3 }
 0xdf5   :  { %4907 = vmatpush.msrb.mxu1 %v5765_v26 }
 0xdf7   :  { %4908 = vmatpush.msrb.mxu1 %v5763_v17  ;;  %v5799_v17 = vld [vmem:[%s9958_s10 + $0x170] sm:$0xff] }
 0xdf9   :  { %4909 = vmatpush.msrb.mxu1 %v5761_v37 }
 0xdfb   :  { %4910 = vmatpush.msrb.mxu1 %v5759_v29 }
 0xdfd   :  { %4911 = vmatpush.msrb.mxu1 %v5757_v8 }
 0xe26   :  { %v4715_v16 = vpop.xlane.xlu0 %4714 }
 0xe27   :  { %v4731_v27 = vmul.f32 %v4715_v16, %v10281_v59 }
 0xe29   :  { %v9548_v19 = vsub.f32 %v9517_v23, %v4731_v27  ;;  %v9646_v27 = vperm.slane %v9640_v38, 4 }
 0xe2b   :  { %v4743_v15 = vmul.f32 %v9548_v19, %v9548_v19 }
 0xe2d   :  { %v4749_v62 = vsel %vm171_vm1, %v4743_v15, 0.0 }
 0xe2e   :  { %4750 = vadd.xlane.f32.xlu0 %v4749_v62 }
 0xe46   :  { %v4718_v45 = vpop.xlane.xlu1 %4717 }
 0xe47   :  { %v4732_v58 = vmul.f32 %v4718_v45, %v10281_v59 }
 0xe49   :  { %v9555_v1 = vsub.f32 %v9522_v0, %v4732_v58 }
 0xe4b   :  { %v4744_v14 = vmul.f32 %v9555_v1, %v9555_v1 }
 0xe4d   :  { %v4752_v24 = vsel %vm171_vm1, %v4744_v14, 0.0 }
 0xe4e   :  { %4753 = vadd.xlane.f32.xlu2 %v4752_v24  ;;  %v4721_v53 = vpop.xlane.xlu2 %4720 }
 0xe4f   :  { %v4733_v34 = vmul.f32 %v4721_v53, %v10281_v59 }
 0xe51   :  { %v9562_v60 = vsub.f32 %v9527_v49, %v4733_v34 }
 0xe53   :  { %v4745_v55 = vmul.f32 %v9562_v60, %v9562_v60 }
 0xe55   :  { %v4755_v30 = vsel %vm171_vm1, %v4745_v55, 0.0 }
 0xe56   :  { %v4724_v10 = vpop.xlane.xlu0 %4723  ;;  %4756 = vadd.xlane.f32.xlu1 %v4755_v30 }
 0xe57   :  { %v4734_v47 = vmul.f32 %v4724_v10, %v10281_v59 }
 0xe59   :  { %v9569_v51 = vsub.f32 %v9532_v7, %v4734_v47 }
 0xe5b   :  { %v4746_v28 = vmul.f32 %v9569_v51, %v9569_v51 }
 0xe5d   :  { %v4758_v52 = vsel %vm171_vm1, %v4746_v28, 0.0 }
 0xe5e   :  { %4759 = vadd.xlane.f32.xlu0 %v4758_v52  ;;  %v4727_v36 = vpop.xlane.xlu2 %4726 }
 0xe5f   :  { %v4735_v2 = vmul.f32 %v4727_v36, %v10281_v59 }
 0xe61   :  { %v9576_v61 = vsub.f32 %v9537_v9, %v4735_v2 }
 0xe63   :  { %v4747_v44 = vmul.f32 %v9576_v61, %v9576_v61 }
 0xe65   :  { %v4761_v40 = vsel %vm171_vm1, %v4747_v44, 0.0 }
 0xe66   :  { %v4730_v35 = vpop.xlane.xlu1 %4729  ;;  %4762 = vadd.xlane.f32.xlu2 %v4761_v40 }
 0xe67   :  { %v4736_v3 = vmul.f32 %v4730_v35, %v10281_v59 }
 0xe69   :  { %v9583_v33 = vsub.f32 %v9542_v48, %v4736_v3 }
 0xe6b   :  { %v4748_v57 = vmul.f32 %v9583_v33, %v9583_v33 }
 0xe6d   :  { %v4764_v4 = vsel %vm171_vm1, %v4748_v57, 0.0 }
 0xe6e   :  { %4765 = vadd.xlane.f32.xlu1 %v4764_v4 }
 0xea1   :  { %v4751_v5 = vpop.xlane.xlu0 %4750 }
 0xea2   :  { %v4767_v6 = vmul.f32 %v4751_v5, %v10281_v59 }
 0xea4   :  { %v4773_v41 = vadd.f32 1e-05, %v4767_v6 }
 0xea6   :  { %6304 = vrsqrt.f32 %v4773_v41  ;;  %vm4785_vm5 = vweird.f32 %v4773_v41 }
 0xeac   :  { %v6305_v54 = vpop.eup %6304 }
 0xead   :  { %v4780_v13 = vmul.f32 %v6305_v54, %v4773_v41  ;;  %vm4786_vm4 = vweird.f32 %v6305_v54 }
 0xeae   :  { %vm4787_vm6 = vmor %vm4785_vm5, %vm4786_vm4 }
 0xeaf   :  { %v4781_v25 = vmul.f32 %v6305_v54, %v4780_v13 }
 0xeb1   :  { %v4782_v43 = vmul.f32 0.5, %v4781_v25 }
 0xeb3   :  { %v4783_v21 = vsub.f32 1.5, %v4782_v43 }
 0xeb5   :  { %v4784_v31 = vmul.f32 %v6305_v54, %v4783_v21 }
 0xeb7   :  { %v4788_v16 = vsel %vm4787_vm6, %v6305_v54, %v4784_v31 }
 0xeb8   :  { %v4839_v15 = vmul.f32 %v4788_v16, %v9548_v19 }
 0xeba   :  { %v4846_v62 = vmul.f32 %v9643_v12, %v4839_v15 }
 0xebc   :  { %v4853_v45 = vadd.f32 %v9646_v27, %v4846_v62 }
 0xebe   :  { %5773 = vmatmul.msk.f32.vlgmr.msrb.gmra.mxu1 %vm171_vm1, %v4853_v45  ;;  %5779 = vmatmul.msk.f32.vlgmr.msrb.gmra.mxu3 %vm171_vm1, %v4853_v45 }
 0xec1   :  { %v4754_v58 = vpop.xlane.xlu2 %4753 }
 0xec2   :  { %v4768_v14 = vmul.f32 %v4754_v58, %v10281_v59 }
 0xec4   :  { %v4774_v24 = vadd.f32 1e-05, %v4768_v14 }
 0xec6   :  { %6306 = vrsqrt.f32 %v4774_v24  ;;  %vm4795_vm8 = vweird.f32 %v4774_v24 }
 0xec9   :  { %v4757_v53 = vpop.xlane.xlu1 %4756 }
 0xeca   :  { %v4769_v34 = vmul.f32 %v4757_v53, %v10281_v59 }
 0xecc   :  { %v6307_v55 = vpop.eup %6306  ;;  %v4775_v30 = vadd.f32 1e-05, %v4769_v34 }
 0xecd   :  { %v4790_v10 = vmul.f32 %v6307_v55, %v4774_v24  ;;  %vm4796_vm7 = vweird.f32 %v6307_v55 }
 0xece   :  { %6308 = vrsqrt.f32 %v4775_v30  ;;  %vm4797_vm9 = vmor %vm4795_vm8, %vm4796_vm7  ;;  %vm4805_vm11 = vweird.f32 %v4775_v30 }
 0xecf   :  { %v4791_v19 = vmul.f32 %v6307_v55, %v4790_v10 }
 0xed1   :  { %v4792_v47 = vmul.f32 0.5, %v4791_v19  ;;  %v4760_v28 = vpop.xlane.xlu0 %4759 }
 0xed2   :  { %v4770_v52 = vmul.f32 %v4760_v28, %v10281_v59 }
 0xed3   :  { %v4793_v36 = vsub.f32 1.5, %v4792_v47 }
 0xed4   :  { %v6309_v2 = vpop.eup %6308  ;;  %v4776_v44 = vadd.f32 1e-05, %v4770_v52 }
 0xed5   :  { %v4794_v40 = vmul.f32 %v6307_v55, %v4793_v36  ;;  %v4800_v35 = vmul.f32 %v6309_v2, %v4775_v30  ;;  %vm4806_vm10 = vweird.f32 %v6309_v2 }
 0xed6   :  { %6310 = vrsqrt.f32 %v4776_v44  ;;  %vm4807_vm12 = vmor %vm4805_vm11, %vm4806_vm10  ;;  %vm4815_vm14 = vweird.f32 %v4776_v44 }
 0xed7   :  { %v4798_v3 = vsel %vm4797_vm9, %v6307_v55, %v4794_v40  ;;  %v4801_v57 = vmul.f32 %v6309_v2, %v4800_v35  ;;  %v5797_v40 = vld [vmem:[%s9958_s10 + $0x160] sm:$0xff]  ;;  %v5816_v35 = vld [vmem:[%s9958_s10 + $0x1f8] sm:$0xff] }
 0xed8   :  { %v4840_v4 = vmul.f32 %v4798_v3, %v9555_v1  ;;  %v5800_v1 = vld [vmem:[%s9958_s10 + $0x178] sm:$0xff]  ;;  %5142 = vmatpush.msra.mxu0 %v5816_v35  ;;  %v5814_v3 = vld [vmem:[%s9958_s10 + $0x1e8] sm:$0xff] }
 0xed9   :  { %v4802_v20 = vmul.f32 0.5, %v4801_v57  ;;  %v4763_v63 = vpop.xlane.xlu2 %4762  ;;  %5107 = vmatpush.msra.mxu2 %v5800_v1  ;;  %v5794_v57 = vld [vmem:[%s9958_s10 + $0x148] sm:$0xff] }
 0xeda   :  { %v4771_v56 = vmul.f32 %v4763_v63, %v10281_v59  ;;  %v4847_v32 = vmul.f32 %v9643_v12, %v4840_v4  ;;  %v5813_v4 = vld [vmem:[%s9958_s10 + $0x1e0] sm:$0xff]  ;;  %v5812_v63 = vld [vmem:[%s9958_s10 + $0x1d8] sm:$0xff] }
 0xedb   :  { %v4803_v18 = vsub.f32 1.5, %v4802_v20  ;;  %5108 = vmatpush.msra.mxu2 %v5799_v17  ;;  %v5793_v20 = vld [vmem:[%s9958_s10 + $0x140] sm:$0xff] }
 0xedc   :  { %v6311_v42 = vpop.eup %6310  ;;  %v4777_v26 = vadd.f32 1e-05, %v4771_v56  ;;  %v4854_v39 = vadd.f32 %v9646_v27, %v4847_v32  ;;  %v9723_v56 = vperm.slane %v9640_v38, 7  ;;  %v5792_v32 = vld [vmem:[%s9958_s10 + $0x138] sm:$0xff]  ;;  %v5789_v17 = vld [vmem:[%s9958_s10 + $0x120] sm:$0xff] }
 0xedd   :  { %v4804_v5 = vmul.f32 %v6309_v2, %v4803_v18  ;;  %v4810_v6 = vmul.f32 %v6311_v42, %v4776_v44  ;;  %vm4816_vm13 = vweird.f32 %v6311_v42  ;;  %5109 = vmatpush.msra.mxu2 %v5798_v46  ;;  %v5811_v18 = vld [vmem:[%s9958_s10 + $0x1d0] sm:$0xff] }
 0xede   :  { %6312 = vrsqrt.f32 %v4777_v26  ;;  %5774 = vmatmul.msk.f32.gmra.mxu1 %vm171_vm1, %v4854_v39  ;;  %5780 = vmatmul.msk.f32.gmra.mxu3 %vm171_vm1, %v4854_v39  ;;  %vm4817_vm15 = vmor %vm4815_vm14, %vm4816_vm13  ;;  %vm4825_vm2 = vweird.f32 %v4777_v26  ;;  %v5790_v39 = vld [vmem:[%s9958_s10 + $0x128] sm:$0xff] }
 0xedf   :  { %v4808_v11 = vsel %vm4807_vm12, %v6309_v2, %v4804_v5  ;;  %v4811_v41 = vmul.f32 %v6311_v42, %v4810_v6  ;;  %5110 = vmatpush.msra.mxu2 %v5797_v40  ;;  %v5809_v5 = vld [vmem:[%s9958_s10 + $0x1c0] sm:$0xff] }
 0xee0   :  { %v4841_v37 = vmul.f32 %v4808_v11, %v9562_v60  ;;  %v5808_v11 = vld [vmem:[%s9958_s10 + $0x1b8] sm:$0xff] }
 0xee1   :  { %v4812_v29 = vmul.f32 0.5, %v4811_v41  ;;  %v4766_v22 = vpop.xlane.xlu1 %4765 }
 0xee2   :  { %v4772_v8 = vmul.f32 %v4766_v22, %v10281_v59  ;;  %v4848_v50 = vmul.f32 %v9643_v12, %v4841_v37  ;;  %v6361_v37 = vld [vmem:[%s9951_s3 + $0x28] sm:$0xff]  ;;  %v5807_v22 = vld [vmem:[%s9958_s10 + $0x1b0] sm:$0xff] }
 0xee3   :  { %v4813_v54 = vsub.f32 1.5, %v4812_v29  ;;  %v9753_v46 = vperm.slane %v6361_v37, 7  ;;  %v5788_v29 = vld [vmem:[%s9958_s10 + $0x118] sm:$0xff] }
 0xee4   :  { %v6313_v13 = vpop.eup %6312  ;;  %v4778_v25 = vadd.f32 1e-05, %v4772_v8  ;;  %v4855_v43 = vadd.f32 %v9646_v27, %v4848_v50  ;;  %v5787_v50 = vld [vmem:[%s9958_s10 + $0x110] sm:$0xff] }
 0xee5   :  { %v4814_v21 = vmul.f32 %v6311_v42, %v4813_v54  ;;  %v4820_v60 = vmul.f32 %v6313_v13, %v4777_v26  ;;  %vm4826_vm0 = vweird.f32 %v6313_v13  ;;  %v5810_v26 = vld [vmem:[%s9958_s10 + $0x1c8] sm:$0xff] }
 0xee6   :  { %6314 = vrsqrt.f32 %v4778_v25  ;;  %5775 = vmatmul.msk.f32.gmra.mxu1 %vm171_vm1, %v4855_v43  ;;  %5781 = vmatmul.msk.f32.gmra.mxu3 %vm171_vm1, %v4855_v43  ;;  %vm4827_vm3 = vmor %vm4825_vm2, %vm4826_vm0  ;;  %vm4835_vm5 = vweird.f32 %v4778_v25  ;;  %v5806_v54 = vld [vmem:[%s9958_s10 + $0x1a8] sm:$0xff] }
 0xee7   :  { %v4818_v31 = vsel %vm4817_vm15, %v6311_v42, %v4814_v21  ;;  %v4821_v16 = vmul.f32 %v6313_v13, %v4820_v60  ;;  %v5791_v42 = vld [vmem:[%s9958_s10 + $0x130] sm:$0xff]  ;;  %v5786_v21 = vld [vmem:[%s9958_s10 + $0x108] sm:$0xff]  ;;  %v5805_v60 = vld [vmem:[%s9958_s10 + $0x1a0] sm:$0xff] }
 0xee8   :  { %v4842_v15 = vmul.f32 %v4818_v31, %v9569_v51 }
 0xee9   :  { %v4822_v62 = vmul.f32 0.5, %v4821_v16 }
 0xeea   :  { %v4849_v45 = vmul.f32 %v9643_v12, %v4842_v15  ;;  %v5785_v15 = vld [vmem:[%s9958_s10 + $0x100] sm:$0xff] }
 0xeeb   :  { %v4823_v58 = vsub.f32 1.5, %v4822_v62  ;;  %v5804_v62 = vld [vmem:[%s9958_s10 + $0x198] sm:$0xff] }
 0xeec   :  { %v6315_v14 = vpop.eup %6314  ;;  %v4856_v24 = vadd.f32 %v9646_v27, %v4849_v45 }
 0xeed   :  { %v4824_v53 = vmul.f32 %v6313_v13, %v4823_v58  ;;  %v4830_v34 = vmul.f32 %v6315_v14, %v4778_v25  ;;  %vm4836_vm4 = vweird.f32 %v6315_v14 }
 0xeee   :  { %5776 = vmatmul.msk.f32.gmra.mxu1 %vm171_vm1, %v4856_v24  ;;  %5782 = vmatmul.msk.f32.gmra.mxu3 %vm171_vm1, %v4856_v24  ;;  %vm4837_vm6 = vmor %vm4835_vm5, %vm4836_vm4 }
 0xeef   :  { %v4828_v55 = vsel %vm4827_vm3, %v6313_v13, %v4824_v53  ;;  %v4831_v30 = vmul.f32 %v6315_v14, %v4830_v34  ;;  %v5802_v53 = vld [vmem:[%s9958_s10 + $0x188] sm:$0xff] }
 0xef0   :  { %v4843_v51 = vmul.f32 %v4828_v55, %v9576_v61  ;;  %v5801_v55 = vld [vmem:[%s9958_s10 + $0x180] sm:$0xff] }
 0xef1   :  { %v4832_v10 = vmul.f32 0.5, %v4831_v30 }
 0xef2   :  { %v4850_v19 = vmul.f32 %v9643_v12, %v4843_v51 }
 0xef3   :  { %v4833_v47 = vsub.f32 1.5, %v4832_v10 }
 0xef4   :  { %v4857_v28 = vadd.f32 %v9646_v27, %v4850_v19 }
 0xef5   :  { %v4834_v52 = vmul.f32 %v6315_v14, %v4833_v47 }
 0xef6   :  { %5777 = vmatmul.msk.f32.gmra.mxu1 %vm171_vm1, %v4857_v28  ;;  %5783 = vmatmul.msk.f32.gmra.mxu3 %vm171_vm1, %v4857_v28 }
 0xef7   :  { %v4838_v36 = vsel %vm4837_vm6, %v6315_v14, %v4834_v52  ;;  %v5803_v14 = vld [vmem:[%s9958_s10 + $0x190] sm:$0xff] }
 0xef8   :  { %v4844_v2 = vmul.f32 %v4838_v36, %v9583_v33  ;;  %v5796_v33 = vld [vmem:[%s9958_s10 + $0x158] sm:$0xff] }
 0xef9   :  { %5111 = vmatpush.msra.mxu2 %v5796_v33 }
 0xefa   :  { %v4851_v44 = vmul.f32 %v9643_v12, %v4844_v2  ;;  %v5815_v12 = vld [vmem:[%s9958_s10 + $0x1f0] sm:$0xff] }
 0xefb   :  { %5143 = vmatpush.msra.mxu0 %v5815_v12 }
 0xefc   :  { %v4858_v61 = vadd.f32 %v9646_v27, %v4851_v44  ;;  %v5795_v27 = vld [vmem:[%s9958_s10 + $0x150] sm:$0xff] }
 0xefd   :  { %5112 = vmatpush.msra.mxu2 %v5795_v27  ;;  %5144 = vmatpush.msra.mxu0 %v5814_v3 }
 0xefe   :  { %5778 = vmatmul.msk.f32.gmra.mxu1 %vm171_vm1, %v4858_v61  ;;  %5784 = vmatmul.msk.f32.gmra.mxu3 %vm171_vm1, %v4858_v61 }
 0xeff   :  { %5113 = vmatpush.msra.mxu2 %v5794_v57  ;;  %5145 = vmatpush.msra.mxu0 %v5813_v4 }
 0xf01   :  { %5114 = vmatpush.msra.mxu2 %v5793_v20  ;;  %5146 = vmatpush.msra.mxu0 %v5812_v63 }
 0xf03   :  { %5115 = vmatpush.msra.mxu2 %v5792_v32  ;;  %5147 = vmatpush.msra.mxu0 %v5811_v18 }
 0xf05   :  { %5116 = vmatpush.msra.mxu2 %v5791_v42  ;;  %5148 = vmatpush.msra.mxu0 %v5810_v26 }
 0xf07   :  { %5117 = vmatpush.msra.mxu2 %v5790_v39  ;;  %5149 = vmatpush.msra.mxu0 %v5809_v5 }
 0xf09   :  { %5118 = vmatpush.msra.mxu2 %v5789_v17  ;;  %5150 = vmatpush.msra.mxu0 %v5808_v11 }
 0xf0b   :  { %5119 = vmatpush.msra.mxu2 %v5788_v29  ;;  %5151 = vmatpush.msra.mxu0 %v5807_v22 }
 0xf0d   :  { %5120 = vmatpush.msra.mxu2 %v5787_v50  ;;  %5152 = vmatpush.msra.mxu0 %v5806_v54 }
 0xf0f   :  { %5121 = vmatpush.msra.mxu2 %v5786_v21  ;;  %5153 = vmatpush.msra.mxu0 %v5805_v60 }
 0xf11   :  { %5122 = vmatpush.msra.mxu2 %v5785_v15  ;;  %5154 = vmatpush.msra.mxu0 %v5804_v62 }
 0xf13   :  { %5155 = vmatpush.msra.mxu0 %v5803_v14 }
 0xf15   :  { %5156 = vmatpush.msra.mxu0 %v5802_v53 }
 0xf17   :  { %5157 = vmatpush.msra.mxu0 %v5801_v55 }
 0xf3b   :  { %v4913_v6 = vpop.f32.mrf.mxu1 }
 0xf3c   :  { %v4914_v1 = vadd.f32 %v4913_v6, %v9723_v56 }
 0xf3e   :  { %v4966_v41 = vmul.f32 %v4914_v1, %v4914_v1 }
 0xf40   :  { %v4978_v8 = vmul.f32 %v4966_v41, %v4914_v1 }
 0xf41   :  { %v4948_v13 = vpop.f32.mrf.mxu3 }
 0xf42   :  { %v4990_v25 = vmul.f32 0.044715, %v4978_v8  ;;  %v4949_v43 = vadd.f32 %v4948_v13, %v9753_v46 }
 0xf44   :  { %v5002_v31 = vadd.f32 %v4990_v25, %v4914_v1  ;;  %v4967_v16 = vmul.f32 %v4949_v43, %v4949_v43 }
 0xf46   :  { %v5014_v45 = vmul.f32 0.7978846, %v5002_v31  ;;  %v4979_v58 = vmul.f32 %v4967_v16, %v4949_v43 }
 0xf48   :  { %6316 = vtanh.f32 %v5014_v45  ;;  %v4991_v24 = vmul.f32 0.044715, %v4979_v58 }
 0xf4a   :  { %v5003_v34 = vadd.f32 %v4991_v24, %v4949_v43 }
 0xf4c   :  { %v5015_v30 = vmul.f32 0.7978846, %v5003_v34 }
 0xf4e   :  { %v6317_v51 = vpop.eup %6316  ;;  %6318 = vtanh.f32 %v5015_v30 }
 0xf4f   :  { %v5038_v10 = vadd.f32 1.0, %v6317_v51 }
 0xf51   :  { %v5050_v19 = vmul.f32 0.5, %v5038_v10 }
 0xf53   :  { %v5062_v47 = vmul.f32 %v5050_v19, %v4914_v1 }
 0xf54   :  { %v6319_v28 = vpop.eup %6318 }
 0xf55   :  { %v5039_v52 = vadd.f32 1.0, %v6319_v28  ;;  %5123 = vmatmul.f32.vlgmr.msra.gmra.mxu2 %v5062_v47 }
 0xf57   :  { %v5051_v36 = vmul.f32 0.5, %v5039_v52 }
 0xf59   :  { %v5063_v2 = vmul.f32 %v5051_v36, %v4949_v43 }
 0xf5b   :  { %v4916_v44 = vpop.f32.mrf.mxu1  ;;  %5158 = vmatmul.f32.vlgmr.msra.gmra.mxu0 %v5063_v2 }
 0xf5c   :  { %v4917_v61 = vadd.f32 %v4916_v44, %v9723_v56 }
 0xf5e   :  { %v4968_v40 = vmul.f32 %v4917_v61, %v4917_v61 }
 0xf60   :  { %v4980_v35 = vmul.f32 %v4968_v40, %v4917_v61 }
 0xf61   :  { %v4951_v33 = vpop.f32.mrf.mxu3 }
 0xf62   :  { %v4992_v12 = vmul.f32 0.044715, %v4980_v35  ;;  %v4952_v27 = vadd.f32 %v4951_v33, %v9753_v46 }
 0xf63   :  { %v4919_v3 = vpop.f32.mrf.mxu1 }
 0xf64   :  { %v5004_v57 = vadd.f32 %v4992_v12, %v4917_v61  ;;  %v4969_v4 = vmul.f32 %v4952_v27, %v4952_v27  ;;  %v4920_v20 = vadd.f32 %v4919_v3, %v9723_v56 }
 0xf66   :  { %v4981_v63 = vmul.f32 %v4969_v4, %v4952_v27  ;;  %v4970_v32 = vmul.f32 %v4920_v20, %v4920_v20  ;;  %v5016_v18 = vmul.f32 0.7978846, %v5004_v57 }
 0xf68   :  { %v4993_v42 = vmul.f32 0.044715, %v4981_v63  ;;  %v4982_v26 = vmul.f32 %v4970_v32, %v4920_v20  ;;  %6320 = vtanh.f32 %v5016_v18 }
 0xf69   :  { %v4954_v39 = vpop.f32.mrf.mxu3 }
 0xf6a   :  { %v5005_v5 = vadd.f32 %v4993_v42, %v4952_v27  ;;  %v4994_v6 = vmul.f32 0.044715, %v4982_v26  ;;  %v9793_v1 = vadd.f32 %v4954_v39, %v9753_v46 }
 0xf6b   :  { %v4922_v17 = vpop.f32.mrf.mxu1 }
 0xf6c   :  { %v5006_v11 = vadd.f32 %v4994_v6, %v4920_v20  ;;  %v4971_v41 = vmul.f32 %v9793_v1, %v9793_v1  ;;  %v9798_v37 = vadd.f32 %v4922_v17, %v9723_v56  ;;  %v5017_v29 = vmul.f32 0.7978846, %v5005_v5 }
 0xf6e   :  { %v6321_v22 = vpop.eup %6320  ;;  %v4983_v8 = vmul.f32 %v4971_v41, %v9793_v1  ;;  %v4972_v50 = vmul.f32 %v9798_v37, %v9798_v37  ;;  %6322 = vtanh.f32 %v5017_v29  ;;  %v5018_v54 = vmul.f32 0.7978846, %v5006_v11 }
 0xf6f   :  { %v5040_v13 = vadd.f32 1.0, %v6321_v22 }
 0xf70   :  { %v4995_v25 = vmul.f32 0.044715, %v4983_v8  ;;  %v4984_v43 = vmul.f32 %v4972_v50, %v9798_v37  ;;  %6324 = vtanh.f32 %v5018_v54 }
 0xf71   :  { %v4957_v21 = vpop.f32.mrf.mxu3  ;;  %v5052_v60 = vmul.f32 0.5, %v5040_v13 }
 0xf72   :  { %v5007_v31 = vadd.f32 %v4995_v25, %v9793_v1  ;;  %v4996_v16 = vmul.f32 0.044715, %v4984_v43  ;;  %v9806_v15 = vadd.f32 %v4957_v21, %v9753_v46 }
 0xf73   :  { %v4925_v62 = vpop.f32.mrf.mxu1  ;;  %v5064_v45 = vmul.f32 %v5052_v60, %v4917_v61 }
 0xf74   :  { %v6323_v58 = vpop.eup %6322  ;;  %v5008_v14 = vadd.f32 %v4996_v16, %v9798_v37  ;;  %v4973_v24 = vmul.f32 %v9806_v15, %v9806_v15  ;;  %v9812_v53 = vadd.f32 %v4925_v62, %v9723_v56  ;;  %v5019_v34 = vmul.f32 0.7978846, %v5007_v31 }
 0xf75   :  { %5126 = vmatmul.f32.gmra.mxu2 %v5064_v45  ;;  %v5041_v55 = vadd.f32 1.0, %v6323_v58 }
 0xf76   :  { %v6325_v30 = vpop.eup %6324  ;;  %v4985_v51 = vmul.f32 %v4973_v24, %v9806_v15  ;;  %v4974_v10 = vmul.f32 %v9812_v53, %v9812_v53  ;;  %6326 = vtanh.f32 %v5019_v34  ;;  %v5020_v19 = vmul.f32 0.7978846, %v5008_v14 }
 0xf77   :  { %v5053_v47 = vmul.f32 0.5, %v5041_v55  ;;  %v5042_v28 = vadd.f32 1.0, %v6325_v30 }
 0xf78   :  { %v4997_v52 = vmul.f32 0.044715, %v4985_v51  ;;  %v4986_v36 = vmul.f32 %v4974_v10, %v9812_v53  ;;  %6328 = vtanh.f32 %v5020_v19 }
 0xf79   :  { %v4960_v2 = vpop.f32.mrf.mxu3  ;;  %v5065_v44 = vmul.f32 %v5053_v47, %v4952_v27  ;;  %v5054_v61 = vmul.f32 0.5, %v5042_v28 }
 0xf7a   :  { %v5009_v40 = vadd.f32 %v4997_v52, %v9806_v15  ;;  %v4998_v35 = vmul.f32 0.044715, %v4986_v36  ;;  %v4961_v33 = vadd.f32 %v4960_v2, %v9753_v46 }
 0xf7b   :  { %v4928_v12 = vpop.f32.mrf.mxu1  ;;  %5161 = vmatmul.f32.gmra.mxu0 %v5065_v44  ;;  %v5066_v3 = vmul.f32 %v5054_v61, %v4920_v20 }
 0xf7c   :  { %v6327_v57 = vpop.eup %6326  ;;  %v5010_v4 = vadd.f32 %v4998_v35, %v9812_v53  ;;  %v4975_v63 = vmul.f32 %v4961_v33, %v4961_v33  ;;  %v4929_v32 = vadd.f32 %v4928_v12, %v9723_v56  ;;  %v5021_v18 = vmul.f32 0.7978846, %v5009_v40 }
 0xf7d   :  { %5129 = vmatmul.f32.gmra.mxu2 %v5066_v3  ;;  %v5043_v42 = vadd.f32 1.0, %v6327_v57  ;;  %v5183_v35 = vperm.slane %v9640_v38, 5 }
 0xf7e   :  { %v6329_v26 = vpop.eup %6328  ;;  %v4987_v27 = vmul.f32 %v4975_v63, %v4961_v33  ;;  %v4976_v39 = vmul.f32 %v4929_v32, %v4929_v32  ;;  %6330 = vtanh.f32 %v5021_v18  ;;  %v5022_v5 = vmul.f32 0.7978846, %v5010_v4 }
 0xf7f   :  { %v5055_v6 = vmul.f32 0.5, %v5043_v42  ;;  %v5044_v17 = vadd.f32 1.0, %v6329_v26 }
 0xf80   :  { %v4999_v11 = vmul.f32 0.044715, %v4987_v27  ;;  %v4988_v41 = vmul.f32 %v4976_v39, %v4929_v32  ;;  %6332 = vtanh.f32 %v5022_v5 }
 0xf81   :  { %v4963_v20 = vpop.f32.mrf.mxu3  ;;  %v5067_v29 = vmul.f32 %v5055_v6, %v9793_v1  ;;  %v5056_v22 = vmul.f32 0.5, %v5044_v17 }
 0xf82   :  { %v5011_v8 = vadd.f32 %v4999_v11, %v4961_v33  ;;  %v5000_v50 = vmul.f32 0.044715, %v4988_v41  ;;  %v4964_v56 = vadd.f32 %v4963_v20, %v9753_v46 }
 0xf83   :  { %5164 = vmatmul.f32.gmra.mxu0 %v5067_v29  ;;  %v5068_v54 = vmul.f32 %v5056_v22, %v9798_v37 }
 0xf84   :  { %v6331_v13 = vpop.eup %6330  ;;  %v5012_v25 = vadd.f32 %v5000_v50, %v4929_v32  ;;  %v4977_v43 = vmul.f32 %v4964_v56, %v4964_v56  ;;  %v5023_v21 = vmul.f32 0.7978846, %v5011_v8 }
 0xf85   :  { %5132 = vmatmul.f32.gmra.mxu2 %v5068_v54  ;;  %v5045_v60 = vadd.f32 1.0, %v6331_v13 }
 0xf86   :  { %v6333_v31 = vpop.eup %6332  ;;  %v4989_v16 = vmul.f32 %v4977_v43, %v4964_v56  ;;  %6334 = vtanh.f32 %v5023_v21  ;;  %v5024_v62 = vmul.f32 0.7978846, %v5012_v25 }
 0xf87   :  { %v5057_v45 = vmul.f32 0.5, %v5045_v60  ;;  %v5046_v1 = vadd.f32 1.0, %v6333_v31 }
 0xf88   :  { %v5001_v58 = vmul.f32 0.044715, %v4989_v16  ;;  %6336 = vtanh.f32 %v5024_v62 }
 0xf89   :  { %v5069_v14 = vmul.f32 %v5057_v45, %v9806_v15  ;;  %v5058_v46 = vmul.f32 0.5, %v5046_v1 }
 0xf8a   :  { %v5013_v24 = vadd.f32 %v5001_v58, %v4964_v56 }
 0xf8b   :  { %5167 = vmatmul.f32.gmra.mxu0 %v5069_v14  ;;  %v5070_v37 = vmul.f32 %v5058_v46, %v9812_v53 }
 0xf8c   :  { %v6335_v34 = vpop.eup %6334  ;;  %v5025_v55 = vmul.f32 0.7978846, %v5013_v24 }
 0xf8d   :  { %5135 = vmatmul.f32.gmra.mxu2 %v5070_v37  ;;  %v5047_v30 = vadd.f32 1.0, %v6335_v34 }
 0xf8e   :  { %v6337_v51 = vpop.eup %6336  ;;  %6338 = vtanh.f32 %v5025_v55 }
 0xf8f   :  { %v5059_v10 = vmul.f32 0.5, %v5047_v30  ;;  %v5048_v19 = vadd.f32 1.0, %v6337_v51 }
 0xf91   :  { %v5071_v47 = vmul.f32 %v5059_v10, %v4961_v33  ;;  %v5060_v28 = vmul.f32 0.5, %v5048_v19 }
 0xf93   :  { %5170 = vmatmul.f32.gmra.mxu0 %v5071_v47  ;;  %v5072_v52 = vmul.f32 %v5060_v28, %v4929_v32 }
 0xf94   :  { %v6339_v36 = vpop.eup %6338 }
 0xf95   :  { %5138 = vmatmul.f32.gmra.mxu2 %v5072_v52  ;;  %v5049_v15 = vadd.f32 1.0, %v6339_v36 }
 0xf97   :  { %v5061_v2 = vmul.f32 0.5, %v5049_v15 }
 0xf99   :  { %v5073_v44 = vmul.f32 %v5061_v2, %v4964_v56 }
 0xf9b   :  { %5173 = vmatmul.f32.gmra.mxu0 %v5073_v44 }
 0xfd8   :  { %v5124_v61 = vpop.f32.mrf.mxu2  ;;  %v5159_v53 = vpop.f32.mrf.mxu0 }
 0xfd9   :  { %v5160_v40 = vadd.f32 %v5159_v53, %v5124_v61 }
 0xfdb   :  { %v5177_v12 = vadd.f32 %v5160_v40, %v9517_v23 }
 0xfdd   :  { %v5184_v3 = vadd.f32 %v5183_v35, %v5177_v12  ;;  %v5343_v12 = vld [vmem:[%s9959_s11 + $0x38] sm:$0xff] }
 0xfde   :  { %5371 = vmatpush.msra.mxu1 %v5343_v12 }
 0xfdf   :  { %v5190_v57 = vsel %vm171_vm1, %v5184_v3, 0.0 }
 0xfe0   :  { %5191 = vadd.xlane.f32.xlu0 %v5190_v57  ;;  %v5341_v57 = vld [vmem:[%s9959_s11 + $0x28] sm:$0xff] }
 0xff8   :  { %v5127_v33 = vpop.f32.mrf.mxu2  ;;  %v5162_v4 = vpop.f32.mrf.mxu0 }
 0xff9   :  { %v5163_v63 = vadd.f32 %v5162_v4, %v5127_v33  ;;  %v5340_v33 = vld [vmem:[%s9959_s11 + $0x20] sm:$0xff] }
 0xffb   :  { %v5178_v32 = vadd.f32 %v5163_v63, %v9522_v0 }
 0xffd   :  { %v5185_v18 = vadd.f32 %v5183_v35, %v5178_v32  ;;  %v5339_v32 = vld [vmem:[%s9959_s11 + $0x18] sm:$0xff] }
 0xfff   :  { %v5193_v42 = vsel %vm171_vm1, %v5185_v18, 0.0 }
0x1000   :  { %v5165_v26 = vpop.f32.mrf.mxu0  ;;  %5194 = vadd.xlane.f32.xlu2 %v5193_v42  ;;  %v5130_v27 = vpop.f32.mrf.mxu2  ;;  %v5338_v42 = vld [vmem:[%s9959_s11 + $0x10] sm:$0xff] }
0x1001   :  { %v5166_v39 = vadd.f32 %v5165_v26, %v5130_v27  ;;  %v5337_v26 = vld [vmem:[%s9959_s11 + $0x8] sm:$0xff]  ;;  %v5336_v27 = vld [vmem:[%s9959_s11] sm:$0xff] }
0x1003   :  { %v5179_v38 = vadd.f32 %v5166_v39, %v9527_v49 }
0x1005   :  { %v5186_v5 = vadd.f32 %v5183_v35, %v5179_v38 }
0x1007   :  { %v5196_v23 = vsel %vm171_vm1, %v5186_v5, 0.0 }
0x1008   :  { %v5168_v6 = vpop.f32.mrf.mxu0  ;;  %5197 = vadd.xlane.f32.xlu1 %v5196_v23  ;;  %v5133_v17 = vpop.f32.mrf.mxu2 }
0x1009   :  { %v5169_v11 = vadd.f32 %v5168_v6, %v5133_v17 }
0x100b   :  { %v5180_v41 = vadd.f32 %v5169_v11, %v9532_v7  ;;  %v9904_v11 = vld [vmem:[%s9951_s3] sm:$0xff]  ;;  %s6423_s3 = smov [#allocation5]  }
0x100d   :  { %v5187_v20 = vadd.f32 %v5183_v35, %v5180_v41  ;;  %v9907_v41 = vperm.slane %v9904_v11, 5 }
0x100f   :  { %v5199_v0 = vsel %vm171_vm1, %v5187_v20, 0.0 }
0x1010   :  { %5200 = vadd.xlane.f32.xlu0 %v5199_v0  ;;  %v5136_v29 = vpop.f32.mrf.mxu2  ;;  %v5171_v22 = vpop.f32.mrf.mxu0  ;;  %v9910_v0 = vperm.slane %v9904_v11, 6 }
0x1011   :  { %v5172_v8 = vadd.f32 %v5171_v22, %v5136_v29 }
0x1013   :  { %v5181_v50 = vadd.f32 %v5172_v8, %v9537_v9 }
0x1015   :  { %v5188_v56 = vadd.f32 %v5183_v35, %v5181_v50 }
0x1017   :  { %v5202_v49 = vsel %vm171_vm1, %v5188_v56, 0.0 }
0x1018   :  { %v5174_v54 = vpop.f32.mrf.mxu0  ;;  %5203 = vadd.xlane.f32.xlu2 %v5202_v49  ;;  %v5139_v13 = vpop.f32.mrf.mxu2 }
0x1019   :  { %v5175_v25 = vadd.f32 %v5174_v54, %v5139_v13 }
0x101b   :  { %v5182_v43 = vadd.f32 %v5175_v25, %v9542_v48 }
0x101d   :  { %v5189_v21 = vadd.f32 %v5183_v35, %v5182_v43 }
0x101f   :  { %v5205_v7 = vsel %vm171_vm1, %v5189_v21, 0.0 }
0x1020   :  { %5206 = vadd.xlane.f32.xlu1 %v5205_v7 }
0x1053   :  { %v5192_v60 = vpop.xlane.xlu0 %5191 }
0x1054   :  { %v5208_v31 = vmul.f32 %v5192_v60, %v10281_v59 }
0x1056   :  { %v9841_v16 = vsub.f32 %v5184_v3, %v5208_v31  ;;  %v5342_v3 = vld [vmem:[%s9959_s11 + $0x30] sm:$0xff]  ;;  %s5408_s11 = sshll.u32 %s6423_s3, 4  ;;  %s5409_s11 = int_to_ptr.vmem [resolvable:$true] %s5408_s11 }
0x1057   :  { %5372 = vmatpush.msra.mxu1 %v5342_v3 }
0x1058   :  { %v5220_v9 = vmul.f32 %v9841_v16, %v9841_v16 }
0x1059   :  { %5373 = vmatpush.msra.mxu1 %v5341_v57 }
0x105a   :  { %v5226_v62 = vsel %vm171_vm1, %v5220_v9, 0.0 }
0x105b   :  { %5227 = vadd.xlane.f32.xlu0 %v5226_v62  ;;  %5374 = vmatpush.msra.mxu1 %v5340_v33 }
0x105d   :  { %5375 = vmatpush.msra.mxu1 %v5339_v32 }
0x105f   :  { %5376 = vmatpush.msra.mxu1 %v5338_v42 }
0x1061   :  { %5377 = vmatpush.msra.mxu1 %v5337_v26 }
0x1063   :  { %5378 = vmatpush.msra.mxu1 %v5336_v27 }
0x1073   :  { %v5195_v45 = vpop.xlane.xlu2 %5194 }
0x1074   :  { %v5209_v1 = vmul.f32 %v5195_v45, %v10281_v59 }
0x1076   :  { %v9847_v58 = vsub.f32 %v5185_v18, %v5209_v1 }
0x1078   :  { %v5221_v48 = vmul.f32 %v9847_v58, %v9847_v58 }
0x107a   :  { %v5229_v14 = vsel %vm171_vm1, %v5221_v48, 0.0 }
0x107b   :  { %v5198_v46 = vpop.xlane.xlu1 %5197  ;;  %5230 = vadd.xlane.f32.xlu2 %v5229_v14 }
0x107c   :  { %v5210_v24 = vmul.f32 %v5198_v46, %v10281_v59 }
0x107e   :  { %v9853_v37 = vsub.f32 %v5186_v5, %v5210_v24 }
0x1080   :  { %v5222_v34 = vmul.f32 %v9853_v37, %v9853_v37 }
0x1082   :  { %v5232_v55 = vsel %vm171_vm1, %v5222_v34, 0.0 }
0x1083   :  { %v5201_v30 = vpop.xlane.xlu0 %5200  ;;  %5233 = vadd.xlane.f32.xlu1 %v5232_v55 }
0x1084   :  { %v5211_v51 = vmul.f32 %v5201_v30, %v10281_v59 }
0x1086   :  { %v9859_v10 = vsub.f32 %v5187_v20, %v5211_v51 }
0x1088   :  { %v5223_v19 = vmul.f32 %v9859_v10, %v9859_v10 }
0x108a   :  { %v5235_v47 = vsel %vm171_vm1, %v5223_v19, 0.0 }
0x108b   :  { %5236 = vadd.xlane.f32.xlu0 %v5235_v47  ;;  %v5204_v28 = vpop.xlane.xlu2 %5203 }
0x108c   :  { %v5212_v52 = vmul.f32 %v5204_v28, %v10281_v59 }
0x108e   :  { %v9865_v36 = vsub.f32 %v5188_v56, %v5212_v52 }
0x1090   :  { %v5224_v15 = vmul.f32 %v9865_v36, %v9865_v36 }
0x1092   :  { %v5238_v2 = vsel %vm171_vm1, %v5224_v15, 0.0 }
0x1093   :  { %v5207_v44 = vpop.xlane.xlu1 %5206  ;;  %5239 = vadd.xlane.f32.xlu2 %v5238_v2 }
0x1094   :  { %v5213_v61 = vmul.f32 %v5207_v44, %v10281_v59 }
0x1096   :  { %v9871_v53 = vsub.f32 %v5189_v21, %v5213_v61 }
0x1098   :  { %v5225_v40 = vmul.f32 %v9871_v53, %v9871_v53 }
0x109a   :  { %v5241_v35 = vsel %vm171_vm1, %v5225_v40, 0.0 }
0x109b   :  { %5242 = vadd.xlane.f32.xlu1 %v5241_v35 }
0x10ce   :  { %v5228_v4 = vpop.xlane.xlu0 %5227 }
0x10cf   :  { %v5244_v63 = vmul.f32 %v5228_v4, %v10281_v59 }
0x10d1   :  { %v5250_v18 = vadd.f32 1e-05, %v5244_v63 }
0x10d3   :  { %6340 = vrsqrt.f32 %v5250_v18  ;;  %vm5262_vm8 = vweird.f32 %v5250_v18 }
0x10d9   :  { %v6341_v39 = vpop.eup %6340 }
0x10da   :  { %v5257_v38 = vmul.f32 %v6341_v39, %v5250_v18  ;;  %vm5263_vm7 = vweird.f32 %v6341_v39 }
0x10db   :  { %vm5264_vm9 = vmor %vm5262_vm8, %vm5263_vm7 }
0x10dc   :  { %v5258_v5 = vmul.f32 %v6341_v39, %v5257_v38 }
0x10de   :  { %v5259_v23 = vmul.f32 0.5, %v5258_v5 }
0x10e0   :  { %v5260_v6 = vsub.f32 1.5, %v5259_v23 }
0x10e2   :  { %v5261_v17 = vmul.f32 %v6341_v39, %v5260_v6 }
0x10e4   :  { %v5265_v20 = vsel %vm5264_vm9, %v6341_v39, %v5261_v17 }
0x10e5   :  { %v5316_v29 = vmul.f32 %v5265_v20, %v9841_v16 }
0x10e7   :  { %v5323_v22 = vmul.f32 %v9907_v41, %v5316_v29 }
0x10e9   :  { %v5330_v8 = vadd.f32 %v9910_v0, %v5323_v22 }
0x10eb   :  { %5817 = vmatmul.msk.f32.vlgmr.msra.gmra.mxu1 %vm171_vm1, %v5330_v8 }
0x10ee   :  { %v5231_v50 = vpop.xlane.xlu2 %5230 }
0x10ef   :  { %v5245_v56 = vmul.f32 %v5231_v50, %v10281_v59 }
0x10f1   :  { %v5251_v49 = vadd.f32 1e-05, %v5245_v56 }
0x10f3   :  { %6342 = vrsqrt.f32 %v5251_v49  ;;  %vm5272_vm11 = vweird.f32 %v5251_v49 }
0x10f6   :  { %v5234_v54 = vpop.xlane.xlu1 %5233 }
0x10f7   :  { %v5246_v13 = vmul.f32 %v5234_v54, %v10281_v59 }
0x10f9   :  { %v6343_v25 = vpop.eup %6342  ;;  %v5252_v43 = vadd.f32 1e-05, %v5246_v13 }
0x10fa   :  { %v5267_v21 = vmul.f32 %v6343_v25, %v5251_v49  ;;  %vm5273_vm10 = vweird.f32 %v6343_v25 }
0x10fb   :  { %6344 = vrsqrt.f32 %v5252_v43  ;;  %vm5274_vm12 = vmor %vm5272_vm11, %vm5273_vm10  ;;  %vm5282_vm14 = vweird.f32 %v5252_v43 }
0x10fc   :  { %v5268_v7 = vmul.f32 %v6343_v25, %v5267_v21 }
0x10fe   :  { %v5269_v60 = vmul.f32 0.5, %v5268_v7  ;;  %v5237_v31 = vpop.xlane.xlu0 %5236 }
0x10ff   :  { %v5247_v16 = vmul.f32 %v5237_v31, %v10281_v59 }
0x1100   :  { %v5270_v9 = vsub.f32 1.5, %v5269_v60 }
0x1101   :  { %v6345_v62 = vpop.eup %6344  ;;  %v5253_v45 = vadd.f32 1e-05, %v5247_v16 }
0x1102   :  { %v5271_v1 = vmul.f32 %v6343_v25, %v5270_v9  ;;  %v5277_v48 = vmul.f32 %v6345_v62, %v5252_v43  ;;  %vm5283_vm13 = vweird.f32 %v6345_v62 }
0x1103   :  { %6346 = vrsqrt.f32 %v5253_v45  ;;  %vm5284_vm15 = vmor %vm5282_vm14, %vm5283_vm13  ;;  %vm5292_vm2 = vweird.f32 %v5253_v45 }
0x1104   :  { %v5275_v14 = vsel %vm5274_vm12, %v6343_v25, %v5271_v1  ;;  %v5278_v46 = vmul.f32 %v6345_v62, %v5277_v48 }
0x1105   :  { %v5317_v24 = vmul.f32 %v5275_v14, %v9847_v58 }
0x1106   :  { %v5279_v34 = vmul.f32 0.5, %v5278_v46  ;;  %v5240_v55 = vpop.xlane.xlu2 %5239 }
0x1107   :  { %v5248_v30 = vmul.f32 %v5240_v55, %v10281_v59  ;;  %v5324_v51 = vmul.f32 %v9907_v41, %v5317_v24 }
0x1108   :  { %v5280_v19 = vsub.f32 1.5, %v5279_v34 }
0x1109   :  { %v6347_v47 = vpop.eup %6346  ;;  %v5254_v28 = vadd.f32 1e-05, %v5248_v30  ;;  %v5331_v52 = vadd.f32 %v9910_v0, %v5324_v51 }
0x110a   :  { %v5281_v15 = vmul.f32 %v6345_v62, %v5280_v19  ;;  %v5287_v2 = vmul.f32 %v6347_v47, %v5253_v45  ;;  %vm5293_vm0 = vweird.f32 %v6347_v47 }
0x110b   :  { %6348 = vrsqrt.f32 %v5254_v28  ;;  %5818 = vmatmul.msk.f32.gmra.mxu1 %vm171_vm1, %v5331_v52  ;;  %vm5294_vm3 = vmor %vm5292_vm2, %vm5293_vm0  ;;  %vm5302_vm5 = vweird.f32 %v5254_v28 }
0x110c   :  { %v5285_v58 = vsel %vm5284_vm15, %v6345_v62, %v5281_v15  ;;  %v5288_v44 = vmul.f32 %v6347_v47, %v5287_v2 }
0x110d   :  { %v5318_v61 = vmul.f32 %v5285_v58, %v9853_v37 }
0x110e   :  { %v5289_v40 = vmul.f32 0.5, %v5288_v44  ;;  %v5243_v35 = vpop.xlane.xlu1 %5242 }
0x110f   :  { %v5249_v12 = vmul.f32 %v5243_v35, %v10281_v59  ;;  %v5325_v3 = vmul.f32 %v9907_v41, %v5318_v61 }
0x1110   :  { %v5290_v57 = vsub.f32 1.5, %v5289_v40 }
0x1111   :  { %v6349_v33 = vpop.eup %6348  ;;  %v5255_v4 = vadd.f32 1e-05, %v5249_v12  ;;  %v5332_v63 = vadd.f32 %v9910_v0, %v5325_v3 }
0x1112   :  { %v5291_v32 = vmul.f32 %v6347_v47, %v5290_v57  ;;  %v5297_v18 = vmul.f32 %v6349_v33, %v5254_v28  ;;  %vm5303_vm4 = vweird.f32 %v6349_v33 }
0x1113   :  { %6350 = vrsqrt.f32 %v5255_v4  ;;  %5819 = vmatmul.msk.f32.gmra.mxu1 %vm171_vm1, %v5332_v63  ;;  %vm5304_vm6 = vmor %vm5302_vm5, %vm5303_vm4  ;;  %vm5312_vm8 = vweird.f32 %v5255_v4 }
0x1114   :  { %v5295_v37 = vsel %vm5294_vm3, %v6347_v47, %v5291_v32  ;;  %v5298_v42 = vmul.f32 %v6349_v33, %v5297_v18 }
0x1115   :  { %v5319_v26 = vmul.f32 %v5295_v37, %v9859_v10 }
0x1116   :  { %v5299_v59 = vmul.f32 0.5, %v5298_v42 }
0x1117   :  { %v5326_v27 = vmul.f32 %v9907_v41, %v5319_v26 }
0x1118   :  { %v5300_v39 = vsub.f32 1.5, %v5299_v59 }
0x1119   :  { %v6351_v38 = vpop.eup %6350  ;;  %v5333_v5 = vadd.f32 %v9910_v0, %v5326_v27 }
0x111a   :  { %v5301_v23 = vmul.f32 %v6349_v33, %v5300_v39  ;;  %v5307_v6 = vmul.f32 %v6351_v38, %v5255_v4  ;;  %vm5313_vm7 = vweird.f32 %v6351_v38 }
0x111b   :  { %5820 = vmatmul.msk.f32.gmra.mxu1 %vm171_vm1, %v5333_v5  ;;  %vm5314_vm9 = vmor %vm5312_vm8, %vm5313_vm7 }
0x111c   :  { %v5305_v17 = vsel %vm5304_vm6, %v6349_v33, %v5301_v23  ;;  %v5308_v20 = vmul.f32 %v6351_v38, %v5307_v6 }
0x111d   :  { %v5320_v29 = vmul.f32 %v5305_v17, %v9865_v36  ;;  %v5344_v36 = vperm.slane %v9904_v11, 7 }
0x111e   :  { %v5309_v22 = vmul.f32 0.5, %v5308_v20 }
0x111f   :  { %v5327_v10 = vmul.f32 %v9907_v41, %v5320_v29 }
0x1120   :  { %v5310_v8 = vsub.f32 1.5, %v5309_v22 }
0x1121   :  { %v5334_v50 = vadd.f32 %v9910_v0, %v5327_v10 }
0x1122   :  { %v5311_v56 = vmul.f32 %v6351_v38, %v5310_v8 }
0x1123   :  { %5821 = vmatmul.msk.f32.gmra.mxu1 %vm171_vm1, %v5334_v50 }
0x1124   :  { %v5315_v49 = vsel %vm5314_vm9, %v6351_v38, %v5311_v56 }
0x1125   :  { %v5321_v54 = vmul.f32 %v5315_v49, %v9871_v53 }
0x1127   :  { %v5328_v13 = vmul.f32 %v9907_v41, %v5321_v54 }
0x1129   :  { %v5335_v25 = vadd.f32 %v9910_v0, %v5328_v13 }
0x112b   :  { %5822 = vmatmul.msk.f32.gmra.mxu1 %vm171_vm1, %v5335_v25 }
0x1168   :  { %v5380_v43 = vpop.f32.mrf.mxu1 }
0x1169   :  { %v5381_v21 = vadd.f32 %v5380_v43, %v5344_v36 }
0x116b   :  { %5398 = vst [vmem:[#allocation5] sm:$0xff] %v5381_v21 }
0x1188   :  { %v5383_v7 = vpop.f32.mrf.mxu1 }
0x1189   :  { %v5384_v60 = vadd.f32 %v5383_v7, %v5344_v36 }
0x118b   :  { %5399 = vst [vmem:[#allocation5 + $0x8] sm:$0xff] %v5384_v60 }
0x1190   :  { %v5386_v31 = vpop.f32.mrf.mxu1 }
0x1191   :  { %v5387_v16 = vadd.f32 %v5386_v31, %v5344_v36 }
0x1193   :  { %5400 = vst [vmem:[#allocation5 + $0x10] sm:$0xff] %v5387_v16 }
0x1198   :  { %v5389_v9 = vpop.f32.mrf.mxu1 }
0x1199   :  { %v5390_v62 = vadd.f32 %v5389_v9, %v5344_v36 }
0x119b   :  { %5401 = vst [vmem:[#allocation5 + $0x18] sm:$0xff] %v5390_v62 }
0x11a0   :  { %v5392_v53 = vpop.f32.mrf.mxu1 }
0x11a1   :  { %v5393_v41 = vadd.f32 %v5392_v53, %v5344_v36 }
0x11a3   :  { %5402 = vst [vmem:[#allocation5 + $0x20] sm:$0xff] %v5393_v41 }
0x11a8   :  { %v5395_v11 = vpop.f32.mrf.mxu1 }
0x11a9   :  { %v5396_v0 = vadd.f32 %v5395_v11, %v5344_v36 }
0x11ab   :  { %5403 = vst [vmem:[#allocation5 + $0x28] sm:$0xff] %v5396_v0 }
0x11ac   :  { %5416 = dma.vmem_to_hbm [thread:$0]  %s5409_s11, 768, %s5411_s4, [#allocation4], %s6416_s26, %s6416_s26, %s6417_s27  }
0x11ad   :  { %6413 = dma.done.wait [#allocation4], 768  }
0x11ae   :  { %6414 = vsyncadd [#allocation4], 4294966528 }
0x11af   :  { %5421 = vsyncpa [#allocation3], 1 }
0x11b0   :  { %5422 = vsyncpa [#allocation4], 1 }

</bundles_post_ra>
